<compile_context>
chip_gen: v5e
topology: v5e:2x2
jax: 0.10.0
libtpu: 0.0.40
codegen_flags: <defaults>
</compile_context>

<pallas_src>
import jax
import jax.numpy as jnp
from jax.experimental import pallas as pl
from jax.experimental.pallas import tpu as pltpu


def _round_up(x, m):
    return (x + m - 1) // m * m


# --------------------- fused decoder kernel (one task per grid step) ---------------------
def decoder_kernel(enc_ref, wih_ref, whh_ref, bgi_ref, bhn_ref, wout_ref, bout_ref,
                   out_ref, x_scr, gi_scr):
    """Per grid step (= one task): run all GRU layers + the output linear.

    enc_ref : (1, T, Bp, Hp)  f32   time-major input, batch/hidden zero-padded
    wih_ref : (L, Hp, 3*Hp)   bf16  input->hidden weights, gates (r|z|n) concat on N
    whh_ref : (L, Hp, 3*Hp)   bf16  hidden->hidden weights, gates concat on N
    bgi_ref : (L, 1, 3*Hp)    f32   b_ih (+ b_hh for r,z) folded into hoisted proj
    bhn_ref : (L, 1, Hp)      f32   b_hh of the n gate (stays inside r * (...))
    wout_ref: (1, Hp, Vp)     bf16  task linear weight (lane-padded)
    bout_ref: (1, 1, Vp)      f32   task linear bias
    out_ref : (1, T*Bp, Vp)   f32   logits, time-major rows (row = t*Bp + b)
    x_scr   : (T, Bp, Hp)     f32   current layer output (feeds next layer / linear)
    gi_scr  : (T, Bp, 3*Hp)   f32   fused hoisted input projections (r|z|n)
    """
    T, Bp, Hp = x_scr.shape
    L = bhn_ref.shape[0]

    for l in range(L):
        # ---- hoisted input projection: ONE (T*Bp, Hp) x (Hp, 3*Hp) MXU matmul ----
        if l == 0:
            x2d = enc_ref[0].reshape(T * Bp, Hp)        # read enc directly, no copy
        else:
            x2d = x_scr[...].reshape(T * Bp, Hp)
        gi_scr[...] = (
            jnp.dot(x2d.astype(jnp.bfloat16), wih_ref[l],
                    preferred_element_type=jnp.float32)
            + bgi_ref[l]                                # (1, 3*Hp) broadcast
        ).reshape(T, Bp, 3 * Hp)

        # ---- sequential recurrence: ONE fused h @ Whh matmul per step; h in vregs ----
        def step(t, h):
            gh = jnp.dot(h.astype(jnp.bfloat16), whh_ref[l],
                         preferred_element_type=jnp.float32)      # (Bp, 3*Hp)
            gi = gi_scr[t]                                        # (Bp, 3*Hp)
            r = jax.nn.sigmoid(gi[:, 0 * Hp:1 * Hp] + gh[:, 0 * Hp:1 * Hp])
            z = jax.nn.sigmoid(gi[:, 1 * Hp:2 * Hp] + gh[:, 1 * Hp:2 * Hp])
            n = jnp.tanh(gi[:, 2 * Hp:3 * Hp]
                         + r * (gh[:, 2 * Hp:3 * Hp] + bhn_ref[l]))
            h_new = (1.0 - z) * n + z * h
            x_scr[t] = h_new                 # layer output for next layer / linear
            return h_new

        h0 = jnp.zeros((Bp, Hp), jnp.float32)
        jax.lax.fori_loop(0, T, step, h0, unroll=True if T <= 32 else 4)

    # ---- task linear: single lane-dense matmul (N = Vp, multiple of 128) ----
    y2d = x_scr[...].reshape(T * Bp, Hp).astype(jnp.bfloat16)
    out_ref[0] = (jnp.dot(y2d, wout_ref[0], preferred_element_type=jnp.float32)
                  + bout_ref[0])


# --------------------------------- parameter packing ---------------------------------
def pack_decoder_params(params, H, num_layers):
    """Pack per-task GRU + linear params into lane-aligned, gate-concatenated arrays."""
    Hp = _round_up(H, 128)
    Vmax = max(p["lin_w"].shape[1] for p in params)
    Vp = _round_up(Vmax, 128)
    nt, L = len(params), num_layers

    wih = jnp.zeros((nt * L, Hp, 3 * Hp), jnp.float32)
    whh = jnp.zeros((nt * L, Hp, 3 * Hp), jnp.float32)
    bgi = jnp.zeros((nt * L, 1, 3 * Hp), jnp.float32)
    bhn = jnp.zeros((nt * L, 1, Hp), jnp.float32)
    wout = jnp.zeros((nt, Hp, Vp), jnp.float32)
    bout = jnp.zeros((nt, 1, Vp), jnp.float32)

    for i, p in enumerate(params):
        for l, (w_ih, w_hh, b_ih, b_hh) in enumerate(p["gru_layers"]):
            idx = i * L + l
            for g in range(3):  # gate order: r, z, n — concatenated along N at Hp stride
                wih = wih.at[idx, :H, g * Hp:g * Hp + H].set(w_ih[g])
                whh = whh.at[idx, :H, g * Hp:g * Hp + H].set(w_hh[g])
                folded = b_ih[g] + b_hh[g] if g < 2 else b_ih[g]
                bgi = bgi.at[idx, 0, g * Hp:g * Hp + H].set(folded)
            bhn = bhn.at[idx, 0, :H].set(b_hh[2])
        V = p["lin_w"].shape[1]
        wout = wout.at[i, :H, :V].set(p["lin_w"])
        bout = bout.at[i, 0, :V].set(p["lin_b"])

    # Weights feed the MXU: store in bf16 (halves HBM DMA + VMEM residency).
    # Biases stay f32 (added in f32 elementwise path).
    return dict(wih=wih.astype(jnp.bfloat16), whh=whh.astype(jnp.bfloat16),
                bgi=bgi, bhn=bhn,
                wout=wout.astype(jnp.bfloat16), bout=bout, Hp=Hp, Vp=Vp)


def _vmem_limit_bytes(T, Bp, Hp, Vp, L):
    """Explicit scoped-VMEM budget: blocks are double-buffered by BlockSpec."""
    f32, bf16, db = 4, 2, 2
    enc = db * T * Bp * Hp * f32
    out = db * T * Bp * Vp * f32
    wih = db * L * Hp * 3 * Hp * bf16
    whh = db * L * Hp * 3 * Hp * bf16
    wout = db * Hp * Vp * bf16
    bias = db * (L * 3 * Hp + L * Hp + Vp + Vp) * f32
    scr = T * Bp * Hp * f32 + T * Bp * 3 * Hp * f32
    total = enc + out + wih + whh + wout + bias + scr
    # generous headroom for compiler-internal scratch; clamp to a sane range
    return int(min(max(2 * total + (4 << 20), 32 << 20), 120 << 20))


# --------------------------------- decoder forward ---------------------------------
def decoder_forward(encoder_outputs_list, params, num_layers):
    """encoder_outputs_list[i]: (B, T, H) batch-first. Returns list of (B, T, V_i)."""
    nt = len(encoder_outputs_list)
    B, T, H = encoder_outputs_list[0].shape
    L = num_layers
    packed = pack_decoder_params(params, H, num_layers)
    Hp, Vp = packed["Hp"], packed["Vp"]
    Bp = _round_up(B, 8)

    # Stack tasks, go time-major, pad batch to 8 sublanes and hidden to 128 lanes.
    enc = jnp.stack(encoder_outputs_list, axis=0)                   # (nt, B, T, H)
    enc = jnp.transpose(enc, (0, 2, 1, 3))                          # (nt, T, B, H)
    enc = jnp.pad(enc, ((0, 0), (0, 0), (0, Bp - B), (0, Hp - H)))  # (nt, T, Bp, Hp)

    out = pl.pallas_call(
        decoder_kernel,
        out_shape=jax.ShapeDtypeStruct((nt, T * Bp, Vp), jnp.float32),
        grid_spec=pltpu.PrefetchScalarGridSpec(
            num_scalar_prefetch=0,
            grid=(nt,),
            in_specs=[
                pl.BlockSpec((1, T, Bp, Hp), lambda i: (i, 0, 0, 0)),    # enc
                pl.BlockSpec((L, Hp, 3 * Hp), lambda i: (i, 0, 0)),      # wih (bf16)
                pl.BlockSpec((L, Hp, 3 * Hp), lambda i: (i, 0, 0)),      # whh (bf16)
                pl.BlockSpec((L, 1, 3 * Hp), lambda i: (i, 0, 0)),       # bgi
                pl.BlockSpec((L, 1, Hp), lambda i: (i, 0, 0)),           # bhn
                pl.BlockSpec((1, Hp, Vp), lambda i: (i, 0, 0)),          # wout (bf16)
                pl.BlockSpec((1, 1, Vp), lambda i: (i, 0, 0)),           # bout
            ],
            out_specs=pl.BlockSpec((1, T * Bp, Vp), lambda i: (i, 0, 0)),
            scratch_shapes=[
                pltpu.VMEM((T, Bp, Hp), jnp.float32),        # layer activations
                pltpu.VMEM((T, Bp, 3 * Hp), jnp.float32),    # fused gi (r|z|n)
            ],
        ),
        compiler_params=pltpu.CompilerParams(
            dimension_semantics=("parallel",),               # tasks are independent
            vmem_limit_bytes=_vmem_limit_bytes(T, Bp, Hp, Vp, L),
        ),
    )(enc, packed["wih"], packed["whh"], packed["bgi"], packed["bhn"],
      packed["wout"], packed["bout"])

    logits_list = []
    for i in range(nt):
        V = params[i]["lin_w"].shape[1]
        li = out[i].reshape(T, Bp, Vp)[:, :B, :V]            # strip padding
        logits_list.append(jnp.transpose(li, (1, 0, 2)))     # (B, T, V)
    return logits_list


# --------------------------- bf16-matched pure-JAX reference ---------------------------
def _bf16_dot(a, b):
    return jnp.dot(a.astype(jnp.bfloat16), b.astype(jnp.bfloat16),
                   preferred_element_type=jnp.float32)


def gru_layer_ref(x_tbh, w_ih, w_hh, b_ih, b_hh):
    H = w_hh.shape[-1]

    def step(h, x):
        r = jax.nn.sigmoid(_bf16_dot(x, w_ih[0]) + b_ih[0] + _bf16_dot(h, w_hh[0]) + b_hh[0])
        z = jax.nn.sigmoid(_bf16_dot(x, w_ih[1]) + b_ih[1] + _bf16_dot(h, w_hh[1]) + b_hh[1])
        n = jnp.tanh(_bf16_dot(x, w_ih[2]) + b_ih[2] + r * (_bf16_dot(h, w_hh[2]) + b_hh[2]))
        h_new = (1.0 - z) * n + z * h
        return h_new, h_new

    h0 = jnp.zeros((x_tbh.shape[1], H), jnp.float32)
    _, ys = jax.lax.scan(step, h0, x_tbh)
    return ys


def decoder_ref(encoder_outputs_list, params):
    outs = []
    for i, enc in enumerate(encoder_outputs_list):
        x = jnp.transpose(enc, (1, 0, 2))
        for (w_ih, w_hh, b_ih, b_hh) in params[i]["gru_layers"]:
            x = gru_layer_ref(x, w_ih, w_hh, b_ih, b_hh)
        logits = _bf16_dot(x, params[i]["lin_w"]) + params[i]["lin_b"]
        outs.append(jnp.transpose(logits, (1, 0, 2)))
    return outs


# --------------------------------- parameter init ---------------------------------
def init_params(key, hidden_size, num_layers, vocab_sizes):
    H = hidden_size
    scale = float(1.0 / jnp.sqrt(jnp.float32(H)))
    params = []
    for V in vocab_sizes:
        layers = []
        for _ in range(num_layers):
            key, k1, k2, k3, k4 = jax.random.split(key, 5)
            w_ih = jax.random.uniform(k1, (3, H, H), jnp.float32, -scale, scale)
            w_hh = jax.random.uniform(k2, (3, H, H), jnp.float32, -scale, scale)
            b_ih = jax.random.uniform(k3, (3, H), jnp.float32, -scale, scale)
            b_hh = jax.random.uniform(k4, (3, H), jnp.float32, -scale, scale)
            layers.append((w_ih, w_hh, b_ih, b_hh))
        key, k5, k6 = jax.random.split(key, 3)
        lin_w = jax.random.uniform(k5, (H, V), jnp.float32, -scale, scale)
        lin_b = jax.random.uniform(k6, (V,), jnp.float32, -scale, scale)
        params.append({"gru_layers": layers, "lin_w": lin_w, "lin_b": lin_b})
    return params


if __name__ == "__main__":
    batch, seq = 2, 8
    hidden_size = 32
    num_layers = 2
    vocab_sizes = [16, 24]          # => num_tasks = 2
    num_tasks = len(vocab_sizes)

    key = jax.random.PRNGKey(0)
    key, *ek = jax.random.split(key, num_tasks + 1)
    encoder_outputs_list = [
        jax.random.normal(ek[i], (batch, seq, hidden_size), jnp.float32)
        for i in range(num_tasks)
    ]
    params = init_params(key, hidden_size, num_layers, vocab_sizes)

    logits_list = decoder_forward(encoder_outputs_list, params, num_layers)
    logits_list = [jax.block_until_ready(l) for l in logits_list]

    # Sanity check against a bf16-matched pure-JAX reference (matmuls in bf16 with
    # f32 accumulation, elementwise in f32 — same numerics as the kernel).
    ref_list = decoder_ref(encoder_outputs_list, params)
    for i in range(num_tasks):
        assert logits_list[i].shape == (batch, seq, vocab_sizes[i])
        assert jnp.allclose(logits_list[i], ref_list[i], atol=2e-3, rtol=2e-3)

    print("KERNEL_OK")
</pallas_src>

<mosaic_0001>
module attributes {stable_mosaic.version = 11 : i64} {
  func.func @decoder_kernel(%arg0: i32, %arg1: memref<1x8x8x128xf32, #tpu.memory_space<vmem>>, %arg2: memref<2x128x384xbf16, #tpu.memory_space<vmem>>, %arg3: memref<2x128x384xbf16, #tpu.memory_space<vmem>>, %arg4: memref<2x1x384xf32, #tpu.memory_space<vmem>>, %arg5: memref<2x1x128xf32, #tpu.memory_space<vmem>>, %arg6: memref<1x128x128xbf16, #tpu.memory_space<vmem>>, %arg7: memref<1x1x128xf32, #tpu.memory_space<vmem>>, %arg8: memref<1x64x128xf32, #tpu.memory_space<vmem>>, %arg9: memref<8x8x128xf32, #tpu.memory_space<vmem>>, %arg10: memref<8x8x384xf32, #tpu.memory_space<vmem>>) attributes {dimension_semantics = [#tpu.dimension_semantics<parallel>], iteration_bounds = array<i64: 2>, scalar_prefetch = 0 : i64, scratch_operands = 2 : i64, tpu.core_type = #tpu.core_type<tc>, window_params = [{transform_indices = @transform_0, window_bounds = array<i64: 1, 8, 8, 128>}, {transform_indices = @transform_1, window_bounds = array<i64: 2, 128, 384>}, {transform_indices = @transform_2, window_bounds = array<i64: 2, 128, 384>}, {transform_indices = @transform_3, window_bounds = array<i64: 2, 1, 384>}, {transform_indices = @transform_4, window_bounds = array<i64: 2, 1, 128>}, {transform_indices = @transform_5, window_bounds = array<i64: 1, 128, 128>}, {transform_indices = @transform_6, window_bounds = array<i64: 1, 1, 128>}, {transform_indices = @transform_7, window_bounds = array<i64: 1, 64, 128>}]} {
    %c0 = arith.constant 0 : index
    %c0_0 = arith.constant 0 : index
    %c0_1 = arith.constant 0 : index
    %c0_2 = arith.constant 0 : index
    %0 = vector.load %arg1[%c0, %c0_0, %c0_1, %c0_2] : memref<1x8x8x128xf32, #tpu.memory_space<vmem>>, vector<1x8x8x128xf32>
    %1 = vector.shape_cast %0 : vector<1x8x8x128xf32> to vector<8x8x128xf32>
    %2 = vector.shape_cast %1 : vector<8x8x128xf32> to vector<64x128xf32>
    %3 = arith.truncf %2 : vector<64x128xf32> to vector<64x128xbf16>
    %c0_3 = arith.constant 0 : index
    %c0_4 = arith.constant 0 : index
    %c0_5 = arith.constant 0 : index
    %4 = vector.load %arg2[%c0_3, %c0_4, %c0_5] : memref<2x128x384xbf16, #tpu.memory_space<vmem>>, vector<1x128x384xbf16>
    %5 = vector.shape_cast %4 : vector<1x128x384xbf16> to vector<128x384xbf16>
    %cst = arith.constant dense<0.000000e+00> : vector<64x384xf32>
    %6 = tpu.matmul %3, %5, %cst {dimension_numbers = #tpu.dot_dimension_numbers<[1], [0], [0], [1], [0, 0, 1, 1], [], []>} : vector<64x128xbf16>, vector<128x384xbf16>, vector<64x384xf32> -> vector<64x384xf32>
    %c0_6 = arith.constant 0 : index
    %c0_7 = arith.constant 0 : index
    %c0_8 = arith.constant 0 : index
    %7 = vector.load %arg4[%c0_6, %c0_7, %c0_8] : memref<2x1x384xf32, #tpu.memory_space<vmem>>, vector<1x1x384xf32>
    %8 = vector.shape_cast %7 : vector<1x1x384xf32> to vector<1x384xf32>
    %9 = vector.broadcast %8 : vector<1x384xf32> to vector<64x384xf32>
    %10 = arith.addf %6, %9 : vector<64x384xf32>
    %11 = vector.shape_cast %10 : vector<64x384xf32> to vector<8x8x384xf32>
    %c0_9 = arith.constant 0 : index
    %c0_10 = arith.constant 0 : index
    %c0_11 = arith.constant 0 : index
    %12 = vector.load %arg10[%c0_9, %c0_10, %c0_11] : memref<8x8x384xf32, #tpu.memory_space<vmem>>, vector<8x8x384xf32>
    tpu.vector_store %arg10[%c0_9, %c0_10, %c0_11], %11 {strides = array<i32>} : memref<8x8x384xf32, #tpu.memory_space<vmem>>, vector<8x8x384xf32>,
    %cst_12 = arith.constant 0.000000e+00 : f32
    %13 = vector.broadcast %cst_12 : f32 to vector<8x128xf32>
    %c0_i32 = arith.constant 0 : i32
    %14 = arith.truncf %13 : vector<8x128xf32> to vector<8x128xbf16>
    %c0_13 = arith.constant 0 : index
    %c0_14 = arith.constant 0 : index
    %c0_15 = arith.constant 0 : index
    %15 = vector.load %arg3[%c0_13, %c0_14, %c0_15] : memref<2x128x384xbf16, #tpu.memory_space<vmem>>, vector<1x128x384xbf16>
    %16 = vector.shape_cast %15 : vector<1x128x384xbf16> to vector<128x384xbf16>
    %cst_16 = arith.constant dense<0.000000e+00> : vector<8x384xf32>
    %17 = tpu.matmul %14, %16, %cst_16 {dimension_numbers = #tpu.dot_dimension_numbers<[1], [0], [0], [1], [0, 0, 1, 1], [], []>} : vector<8x128xbf16>, vector<128x384xbf16>, vector<8x384xf32> -> vector<8x384xf32>
    %18 = arith.index_cast %c0_i32 : i32 to index
    %c0_17 = arith.constant 0 : index
    %c0_18 = arith.constant 0 : index
    %19 = vector.load %arg10[%18, %c0_17, %c0_18] : memref<8x8x384xf32, #tpu.memory_space<vmem>>, vector<1x8x384xf32>
    %20 = vector.shape_cast %19 : vector<1x8x384xf32> to vector<8x384xf32>
    %21 = vector.extract_strided_slice %20 {offsets = [0, 0], sizes = [8, 128], strides = [1, 1]} : vector<8x384xf32> to vector<8x128xf32>
    %22 = vector.extract_strided_slice %17 {offsets = [0, 0], sizes = [8, 128], strides = [1, 1]} : vector<8x384xf32> to vector<8x128xf32>
    %23 = arith.addf %21, %22 : vector<8x128xf32>
    %24 = arith.negf %23 : vector<8x128xf32>
    %25 = math.exp %24 : vector<8x128xf32>
    %cst_19 = arith.constant 1.000000e+00 : f32
    %26 = vector.broadcast %cst_19 : f32 to vector<8x128xf32>
    %27 = arith.addf %26, %25 : vector<8x128xf32>
    %28 = arith.divf %26, %27 : vector<8x128xf32>
    %29 = vector.extract_strided_slice %20 {offsets = [0, 128], sizes = [8, 128], strides = [1, 1]} : vector<8x384xf32> to vector<8x128xf32>
    %30 = vector.extract_strided_slice %17 {offsets = [0, 128], sizes = [8, 128], strides = [1, 1]} : vector<8x384xf32> to vector<8x128xf32>
    %31 = arith.addf %29, %30 : vector<8x128xf32>
    %32 = arith.negf %31 : vector<8x128xf32>
    %33 = math.exp %32 : vector<8x128xf32>
    %cst_20 = arith.constant 1.000000e+00 : f32
    %34 = vector.broadcast %cst_20 : f32 to vector<8x128xf32>
    %35 = arith.addf %34, %33 : vector<8x128xf32>
    %36 = arith.divf %34, %35 : vector<8x128xf32>
    %37 = vector.extract_strided_slice %20 {offsets = [0, 256], sizes = [8, 128], strides = [1, 1]} : vector<8x384xf32> to vector<8x128xf32>
    %38 = vector.extract_strided_slice %17 {offsets = [0, 256], sizes = [8, 128], strides = [1, 1]} : vector<8x384xf32> to vector<8x128xf32>
    %c0_21 = arith.constant 0 : index
    %c0_22 = arith.constant 0 : index
    %c0_23 = arith.constant 0 : index
    %39 = vector.load %arg5[%c0_21, %c0_22, %c0_23] : memref<2x1x128xf32, #tpu.memory_space<vmem>>, vector<1x1x128xf32>
    %40 = vector.shape_cast %39 : vector<1x1x128xf32> to vector<1x128xf32>
    %41 = vector.broadcast %40 : vector<1x128xf32> to vector<8x128xf32>
    %42 = arith.addf %38, %41 : vector<8x128xf32>
    %43 = arith.mulf %28, %42 : vector<8x128xf32>
    %44 = arith.addf %37, %43 : vector<8x128xf32>
    %45 = math.tanh %44 : vector<8x128xf32>
    %cst_24 = arith.constant 1.000000e+00 : f32
    %46 = vector.broadcast %cst_24 : f32 to vector<8x128xf32>
    %47 = arith.subf %46, %36 : vector<8x128xf32>
    %48 = arith.mulf %47, %45 : vector<8x128xf32>
    %49 = arith.mulf %36, %13 : vector<8x128xf32>
    %50 = arith.addf %48, %49 : vector<8x128xf32>
    %51 = arith.index_cast %c0_i32 : i32 to index
    %c0_25 = arith.constant 0 : index
    %c0_26 = arith.constant 0 : index
    %52 = vector.load %arg9[%51, %c0_25, %c0_26] : memref<8x8x128xf32, #tpu.memory_space<vmem>>, vector<1x8x128xf32>
    %53 = vector.shape_cast %52 : vector<1x8x128xf32> to vector<8x128xf32>
    %54 = vector.shape_cast %50 : vector<8x128xf32> to vector<1x8x128xf32>
    tpu.vector_store %arg9[%51, %c0_25, %c0_26], %54 {strides = array<i32>} : memref<8x8x128xf32, #tpu.memory_space<vmem>>, vector<1x8x128xf32>,
    %c1_i32 = arith.constant 1 : i32
    %55 = arith.truncf %50 : vector<8x128xf32> to vector<8x128xbf16>
    %c0_27 = arith.constant 0 : index
    %c0_28 = arith.constant 0 : index
    %c0_29 = arith.constant 0 : index
    %56 = vector.load %arg3[%c0_27, %c0_28, %c0_29] : memref<2x128x384xbf16, #tpu.memory_space<vmem>>, vector<1x128x384xbf16>
    %57 = vector.shape_cast %56 : vector<1x128x384xbf16> to vector<128x384xbf16>
    %cst_30 = arith.constant dense<0.000000e+00> : vector<8x384xf32>
    %58 = tpu.matmul %55, %57, %cst_30 {dimension_numbers = #tpu.dot_dimension_numbers<[1], [0], [0], [1], [0, 0, 1, 1], [], []>} : vector<8x128xbf16>, vector<128x384xbf16>, vector<8x384xf32> -> vector<8x384xf32>
    %59 = arith.index_cast %c1_i32 : i32 to index
    %c0_31 = arith.constant 0 : index
    %c0_32 = arith.constant 0 : index
    %60 = vector.load %arg10[%59, %c0_31, %c0_32] : memref<8x8x384xf32, #tpu.memory_space<vmem>>, vector<1x8x384xf32>
    %61 = vector.shape_cast %60 : vector<1x8x384xf32> to vector<8x384xf32>
    %62 = vector.extract_strided_slice %61 {offsets = [0, 0], sizes = [8, 128], strides = [1, 1]} : vector<8x384xf32> to vector<8x128xf32>
    %63 = vector.extract_strided_slice %58 {offsets = [0, 0], sizes = [8, 128], strides = [1, 1]} : vector<8x384xf32> to vector<8x128xf32>
    %64 = arith.addf %62, %63 : vector<8x128xf32>
    %65 = arith.negf %64 : vector<8x128xf32>
    %66 = math.exp %65 : vector<8x128xf32>
    %cst_33 = arith.constant 1.000000e+00 : f32
    %67 = vector.broadcast %cst_33 : f32 to vector<8x128xf32>
    %68 = arith.addf %67, %66 : vector<8x128xf32>
    %69 = arith.divf %67, %68 : vector<8x128xf32>
    %70 = vector.extract_strided_slice %61 {offsets = [0, 128], sizes = [8, 128], strides = [1, 1]} : vector<8x384xf32> to vector<8x128xf32>
    %71 = vector.extract_strided_slice %58 {offsets = [0, 128], sizes = [8, 128], strides = [1, 1]} : vector<8x384xf32> to vector<8x128xf32>
    %72 = arith.addf %70, %71 : vector<8x128xf32>
    %73 = arith.negf %72 : vector<8x128xf32>
    %74 = math.exp %73 : vector<8x128xf32>
    %cst_34 = arith.constant 1.000000e+00 : f32
    %75 = vector.broadcast %cst_34 : f32 to vector<8x128xf32>
    %76 = arith.addf %75, %74 : vector<8x128xf32>
    %77 = arith.divf %75, %76 : vector<8x128xf32>
    %78 = vector.extract_strided_slice %61 {offsets = [0, 256], sizes = [8, 128], strides = [1, 1]} : vector<8x384xf32> to vector<8x128xf32>
    %79 = vector.extract_strided_slice %58 {offsets = [0, 256], sizes = [8, 128], strides = [1, 1]} : vector<8x384xf32> to vector<8x128xf32>
    %c0_35 = arith.constant 0 : index
    %c0_36 = arith.constant 0 : index
    %c0_37 = arith.constant 0 : index
    %80 = vector.load %arg5[%c0_35, %c0_36, %c0_37] : memref<2x1x128xf32, #tpu.memory_space<vmem>>, vector<1x1x128xf32>
    %81 = vector.shape_cast %80 : vector<1x1x128xf32> to vector<1x128xf32>
    %82 = vector.broadcast %81 : vector<1x128xf32> to vector<8x128xf32>
    %83 = arith.addf %79, %82 : vector<8x128xf32>
    %84 = arith.mulf %69, %83 : vector<8x128xf32>
    %85 = arith.addf %78, %84 : vector<8x128xf32>
    %86 = math.tanh %85 : vector<8x128xf32>
    %cst_38 = arith.constant 1.000000e+00 : f32
    %87 = vector.broadcast %cst_38 : f32 to vector<8x128xf32>
    %88 = arith.subf %87, %77 : vector<8x128xf32>
    %89 = arith.mulf %88, %86 : vector<8x128xf32>
    %90 = arith.mulf %77, %50 : vector<8x128xf32>
    %91 = arith.addf %89, %90 : vector<8x128xf32>
    %92 = arith.index_cast %c1_i32 : i32 to index
    %c0_39 = arith.constant 0 : index
    %c0_40 = arith.constant 0 : index
    %93 = vector.load %arg9[%92, %c0_39, %c0_40] : memref<8x8x128xf32, #tpu.memory_space<vmem>>, vector<1x8x128xf32>
    %94 = vector.shape_cast %93 : vector<1x8x128xf32> to vector<8x128xf32>
    %95 = vector.shape_cast %91 : vector<8x128xf32> to vector<1x8x128xf32>
    tpu.vector_store %arg9[%92, %c0_39, %c0_40], %95 {strides = array<i32>} : memref<8x8x128xf32, #tpu.memory_space<vmem>>, vector<1x8x128xf32>,
    %c2_i32 = arith.constant 2 : i32
    %96 = arith.truncf %91 : vector<8x128xf32> to vector<8x128xbf16>
    %c0_41 = arith.constant 0 : index
    %c0_42 = arith.constant 0 : index
    %c0_43 = arith.constant 0 : index
    %97 = vector.load %arg3[%c0_41, %c0_42, %c0_43] : memref<2x128x384xbf16, #tpu.memory_space<vmem>>, vector<1x128x384xbf16>
    %98 = vector.shape_cast %97 : vector<1x128x384xbf16> to vector<128x384xbf16>
    %cst_44 = arith.constant dense<0.000000e+00> : vector<8x384xf32>
    %99 = tpu.matmul %96, %98, %cst_44 {dimension_numbers = #tpu.dot_dimension_numbers<[1], [0], [0], [1], [0, 0, 1, 1], [], []>} : vector<8x128xbf16>, vector<128x384xbf16>, vector<8x384xf32> -> vector<8x384xf32>
    %100 = arith.index_cast %c2_i32 : i32 to index
    %c0_45 = arith.constant 0 : index
    %c0_46 = arith.constant 0 : index
    %101 = vector.load %arg10[%100, %c0_45, %c0_46] : memref<8x8x384xf32, #tpu.memory_space<vmem>>, vector<1x8x384xf32>
    %102 = vector.shape_cast %101 : vector<1x8x384xf32> to vector<8x384xf32>
    %103 = vector.extract_strided_slice %102 {offsets = [0, 0], sizes = [8, 128], strides = [1, 1]} : vector<8x384xf32> to vector<8x128xf32>
    %104 = vector.extract_strided_slice %99 {offsets = [0, 0], sizes = [8, 128], strides = [1, 1]} : vector<8x384xf32> to vector<8x128xf32>
    %105 = arith.addf %103, %104 : vector<8x128xf32>
    %106 = arith.negf %105 : vector<8x128xf32>
    %107 = math.exp %106 : vector<8x128xf32>
    %cst_47 = arith.constant 1.000000e+00 : f32
    %108 = vector.broadcast %cst_47 : f32 to vector<8x128xf32>
    %109 = arith.addf %108, %107 : vector<8x128xf32>
    %110 = arith.divf %108, %109 : vector<8x128xf32>
    %111 = vector.extract_strided_slice %102 {offsets = [0, 128], sizes = [8, 128], strides = [1, 1]} : vector<8x384xf32> to vector<8x128xf32>
    %112 = vector.extract_strided_slice %99 {offsets = [0, 128], sizes = [8, 128], strides = [1, 1]} : vector<8x384xf32> to vector<8x128xf32>
    %113 = arith.addf %111, %112 : vector<8x128xf32>
    %114 = arith.negf %113 : vector<8x128xf32>
    %115 = math.exp %114 : vector<8x128xf32>
    %cst_48 = arith.constant 1.000000e+00 : f32
    %116 = vector.broadcast %cst_48 : f32 to vector<8x128xf32>
    %117 = arith.addf %116, %115 : vector<8x128xf32>
    %118 = arith.divf %116, %117 : vector<8x128xf32>
    %119 = vector.extract_strided_slice %102 {offsets = [0, 256], sizes = [8, 128], strides = [1, 1]} : vector<8x384xf32> to vector<8x128xf32>
    %120 = vector.extract_strided_slice %99 {offsets = [0, 256], sizes = [8, 128], strides = [1, 1]} : vector<8x384xf32> to vector<8x128xf32>
    %c0_49 = arith.constant 0 : index
    %c0_50 = arith.constant 0 : index
    %c0_51 = arith.constant 0 : index
    %121 = vector.load %arg5[%c0_49, %c0_50, %c0_51] : memref<2x1x128xf32, #tpu.memory_space<vmem>>, vector<1x1x128xf32>
    %122 = vector.shape_cast %121 : vector<1x1x128xf32> to vector<1x128xf32>
    %123 = vector.broadcast %122 : vector<1x128xf32> to vector<8x128xf32>
    %124 = arith.addf %120, %123 : vector<8x128xf32>
    %125 = arith.mulf %110, %124 : vector<8x128xf32>
    %126 = arith.addf %119, %125 : vector<8x128xf32>
    %127 = math.tanh %126 : vector<8x128xf32>
    %cst_52 = arith.constant 1.000000e+00 : f32
    %128 = vector.broadcast %cst_52 : f32 to vector<8x128xf32>
    %129 = arith.subf %128, %118 : vector<8x128xf32>
    %130 = arith.mulf %129, %127 : vector<8x128xf32>
    %131 = arith.mulf %118, %91 : vector<8x128xf32>
    %132 = arith.addf %130, %131 : vector<8x128xf32>
    %133 = arith.index_cast %c2_i32 : i32 to index
    %c0_53 = arith.constant 0 : index
    %c0_54 = arith.constant 0 : index
    %134 = vector.load %arg9[%133, %c0_53, %c0_54] : memref<8x8x128xf32, #tpu.memory_space<vmem>>, vector<1x8x128xf32>
    %135 = vector.shape_cast %134 : vector<1x8x128xf32> to vector<8x128xf32>
    %136 = vector.shape_cast %132 : vector<8x128xf32> to vector<1x8x128xf32>
    tpu.vector_store %arg9[%133, %c0_53, %c0_54], %136 {strides = array<i32>} : memref<8x8x128xf32, #tpu.memory_space<vmem>>, vector<1x8x128xf32>,
    %c3_i32 = arith.constant 3 : i32
    %137 = arith.truncf %132 : vector<8x128xf32> to vector<8x128xbf16>
    %c0_55 = arith.constant 0 : index
    %c0_56 = arith.constant 0 : index
    %c0_57 = arith.constant 0 : index
    %138 = vector.load %arg3[%c0_55, %c0_56, %c0_57] : memref<2x128x384xbf16, #tpu.memory_space<vmem>>, vector<1x128x384xbf16>
    %139 = vector.shape_cast %138 : vector<1x128x384xbf16> to vector<128x384xbf16>
    %cst_58 = arith.constant dense<0.000000e+00> : vector<8x384xf32>
    %140 = tpu.matmul %137, %139, %cst_58 {dimension_numbers = #tpu.dot_dimension_numbers<[1], [0], [0], [1], [0, 0, 1, 1], [], []>} : vector<8x128xbf16>, vector<128x384xbf16>, vector<8x384xf32> -> vector<8x384xf32>
    %141 = arith.index_cast %c3_i32 : i32 to index
    %c0_59 = arith.constant 0 : index
    %c0_60 = arith.constant 0 : index
    %142 = vector.load %arg10[%141, %c0_59, %c0_60] : memref<8x8x384xf32, #tpu.memory_space<vmem>>, vector<1x8x384xf32>
    %143 = vector.shape_cast %142 : vector<1x8x384xf32> to vector<8x384xf32>
    %144 = vector.extract_strided_slice %143 {offsets = [0, 0], sizes = [8, 128], strides = [1, 1]} : vector<8x384xf32> to vector<8x128xf32>
    %145 = vector.extract_strided_slice %140 {offsets = [0, 0], sizes = [8, 128], strides = [1, 1]} : vector<8x384xf32> to vector<8x128xf32>
    %146 = arith.addf %144, %145 : vector<8x128xf32>
    %147 = arith.negf %146 : vector<8x128xf32>
    %148 = math.exp %147 : vector<8x128xf32>
    %cst_61 = arith.constant 1.000000e+00 : f32
    %149 = vector.broadcast %cst_61 : f32 to vector<8x128xf32>
    %150 = arith.addf %149, %148 : vector<8x128xf32>
    %151 = arith.divf %149, %150 : vector<8x128xf32>
    %152 = vector.extract_strided_slice %143 {offsets = [0, 128], sizes = [8, 128], strides = [1, 1]} : vector<8x384xf32> to vector<8x128xf32>
    %153 = vector.extract_strided_slice %140 {offsets = [0, 128], sizes = [8, 128], strides = [1, 1]} : vector<8x384xf32> to vector<8x128xf32>
    %154 = arith.addf %152, %153 : vector<8x128xf32>
    %155 = arith.negf %154 : vector<8x128xf32>
    %156 = math.exp %155 : vector<8x128xf32>
    %cst_62 = arith.constant 1.000000e+00 : f32
    %157 = vector.broadcast %cst_62 : f32 to vector<8x128xf32>
    %158 = arith.addf %157, %156 : vector<8x128xf32>
    %159 = arith.divf %157, %158 : vector<8x128xf32>
    %160 = vector.extract_strided_slice %143 {offsets = [0, 256], sizes = [8, 128], strides = [1, 1]} : vector<8x384xf32> to vector<8x128xf32>
    %161 = vector.extract_strided_slice %140 {offsets = [0, 256], sizes = [8, 128], strides = [1, 1]} : vector<8x384xf32> to vector<8x128xf32>
    %c0_63 = arith.constant 0 : index
    %c0_64 = arith.constant 0 : index
    %c0_65 = arith.constant 0 : index
    %162 = vector.load %arg5[%c0_63, %c0_64, %c0_65] : memref<2x1x128xf32, #tpu.memory_space<vmem>>, vector<1x1x128xf32>
    %163 = vector.shape_cast %162 : vector<1x1x128xf32> to vector<1x128xf32>
    %164 = vector.broadcast %163 : vector<1x128xf32> to vector<8x128xf32>
    %165 = arith.addf %161, %164 : vector<8x128xf32>
    %166 = arith.mulf %151, %165 : vector<8x128xf32>
    %167 = arith.addf %160, %166 : vector<8x128xf32>
    %168 = math.tanh %167 : vector<8x128xf32>
    %cst_66 = arith.constant 1.000000e+00 : f32
    %169 = vector.broadcast %cst_66 : f32 to vector<8x128xf32>
    %170 = arith.subf %169, %159 : vector<8x128xf32>
    %171 = arith.mulf %170, %168 : vector<8x128xf32>
    %172 = arith.mulf %159, %132 : vector<8x128xf32>
    %173 = arith.addf %171, %172 : vector<8x128xf32>
    %174 = arith.index_cast %c3_i32 : i32 to index
    %c0_67 = arith.constant 0 : index
    %c0_68 = arith.constant 0 : index
    %175 = vector.load %arg9[%174, %c0_67, %c0_68] : memref<8x8x128xf32, #tpu.memory_space<vmem>>, vector<1x8x128xf32>
    %176 = vector.shape_cast %175 : vector<1x8x128xf32> to vector<8x128xf32>
    %177 = vector.shape_cast %173 : vector<8x128xf32> to vector<1x8x128xf32>
    tpu.vector_store %arg9[%174, %c0_67, %c0_68], %177 {strides = array<i32>} : memref<8x8x128xf32, #tpu.memory_space<vmem>>, vector<1x8x128xf32>,
    %c4_i32 = arith.constant 4 : i32
    %178 = arith.truncf %173 : vector<8x128xf32> to vector<8x128xbf16>
    %c0_69 = arith.constant 0 : index
    %c0_70 = arith.constant 0 : index
    %c0_71 = arith.constant 0 : index
    %179 = vector.load %arg3[%c0_69, %c0_70, %c0_71] : memref<2x128x384xbf16, #tpu.memory_space<vmem>>, vector<1x128x384xbf16>
    %180 = vector.shape_cast %179 : vector<1x128x384xbf16> to vector<128x384xbf16>
    %cst_72 = arith.constant dense<0.000000e+00> : vector<8x384xf32>
    %181 = tpu.matmul %178, %180, %cst_72 {dimension_numbers = #tpu.dot_dimension_numbers<[1], [0], [0], [1], [0, 0, 1, 1], [], []>} : vector<8x128xbf16>, vector<128x384xbf16>, vector<8x384xf32> -> vector<8x384xf32>
    %182 = arith.index_cast %c4_i32 : i32 to index
    %c0_73 = arith.constant 0 : index
    %c0_74 = arith.constant 0 : index
    %183 = vector.load %arg10[%182, %c0_73, %c0_74] : memref<8x8x384xf32, #tpu.memory_space<vmem>>, vector<1x8x384xf32>
    %184 = vector.shape_cast %183 : vector<1x8x384xf32> to vector<8x384xf32>
    %185 = vector.extract_strided_slice %184 {offsets = [0, 0], sizes = [8, 128], strides = [1, 1]} : vector<8x384xf32> to vector<8x128xf32>
    %186 = vector.extract_strided_slice %181 {offsets = [0, 0], sizes = [8, 128], strides = [1, 1]} : vector<8x384xf32> to vector<8x128xf32>
    %187 = arith.addf %185, %186 : vector<8x128xf32>
    %188 = arith.negf %187 : vector<8x128xf32>
    %189 = math.exp %188 : vector<8x128xf32>
    %cst_75 = arith.constant 1.000000e+00 : f32
    %190 = vector.broadcast %cst_75 : f32 to vector<8x128xf32>
    %191 = arith.addf %190, %189 : vector<8x128xf32>
    %192 = arith.divf %190, %191 : vector<8x128xf32>
    %193 = vector.extract_strided_slice %184 {offsets = [0, 128], sizes = [8, 128], strides = [1, 1]} : vector<8x384xf32> to vector<8x128xf32>
    %194 = vector.extract_strided_slice %181 {offsets = [0, 128], sizes = [8, 128], strides = [1, 1]} : vector<8x384xf32> to vector<8x128xf32>
    %195 = arith.addf %193, %194 : vector<8x128xf32>
    %196 = arith.negf %195 : vector<8x128xf32>
    %197 = math.exp %196 : vector<8x128xf32>
    %cst_76 = arith.constant 1.000000e+00 : f32
    %198 = vector.broadcast %cst_76 : f32 to vector<8x128xf32>
    %199 = arith.addf %198, %197 : vector<8x128xf32>
    %200 = arith.divf %198, %199 : vector<8x128xf32>
    %201 = vector.extract_strided_slice %184 {offsets = [0, 256], sizes = [8, 128], strides = [1, 1]} : vector<8x384xf32> to vector<8x128xf32>
    %202 = vector.extract_strided_slice %181 {offsets = [0, 256], sizes = [8, 128], strides = [1, 1]} : vector<8x384xf32> to vector<8x128xf32>
    %c0_77 = arith.constant 0 : index
    %c0_78 = arith.constant 0 : index
    %c0_79 = arith.constant 0 : index
    %203 = vector.load %arg5[%c0_77, %c0_78, %c0_79] : memref<2x1x128xf32, #tpu.memory_space<vmem>>, vector<1x1x128xf32>
    %204 = vector.shape_cast %203 : vector<1x1x128xf32> to vector<1x128xf32>
    %205 = vector.broadcast %204 : vector<1x128xf32> to vector<8x128xf32>
    %206 = arith.addf %202, %205 : vector<8x128xf32>
    %207 = arith.mulf %192, %206 : vector<8x128xf32>
    %208 = arith.addf %201, %207 : vector<8x128xf32>
    %209 = math.tanh %208 : vector<8x128xf32>
    %cst_80 = arith.constant 1.000000e+00 : f32
    %210 = vector.broadcast %cst_80 : f32 to vector<8x128xf32>
    %211 = arith.subf %210, %200 : vector<8x128xf32>
    %212 = arith.mulf %211, %209 : vector<8x128xf32>
    %213 = arith.mulf %200, %173 : vector<8x128xf32>
    %214 = arith.addf %212, %213 : vector<8x128xf32>
    %215 = arith.index_cast %c4_i32 : i32 to index
    %c0_81 = arith.constant 0 : index
    %c0_82 = arith.constant 0 : index
    %216 = vector.load %arg9[%215, %c0_81, %c0_82] : memref<8x8x128xf32, #tpu.memory_space<vmem>>, vector<1x8x128xf32>
    %217 = vector.shape_cast %216 : vector<1x8x128xf32> to vector<8x128xf32>
    %218 = vector.shape_cast %214 : vector<8x128xf32> to vector<1x8x128xf32>
    tpu.vector_store %arg9[%215, %c0_81, %c0_82], %218 {strides = array<i32>} : memref<8x8x128xf32, #tpu.memory_space<vmem>>, vector<1x8x128xf32>,
    %c5_i32 = arith.constant 5 : i32
    %219 = arith.truncf %214 : vector<8x128xf32> to vector<8x128xbf16>
    %c0_83 = arith.constant 0 : index
    %c0_84 = arith.constant 0 : index
    %c0_85 = arith.constant 0 : index
    %220 = vector.load %arg3[%c0_83, %c0_84, %c0_85] : memref<2x128x384xbf16, #tpu.memory_space<vmem>>, vector<1x128x384xbf16>
    %221 = vector.shape_cast %220 : vector<1x128x384xbf16> to vector<128x384xbf16>
    %cst_86 = arith.constant dense<0.000000e+00> : vector<8x384xf32>
    %222 = tpu.matmul %219, %221, %cst_86 {dimension_numbers = #tpu.dot_dimension_numbers<[1], [0], [0], [1], [0, 0, 1, 1], [], []>} : vector<8x128xbf16>, vector<128x384xbf16>, vector<8x384xf32> -> vector<8x384xf32>
    %223 = arith.index_cast %c5_i32 : i32 to index
    %c0_87 = arith.constant 0 : index
    %c0_88 = arith.constant 0 : index
    %224 = vector.load %arg10[%223, %c0_87, %c0_88] : memref<8x8x384xf32, #tpu.memory_space<vmem>>, vector<1x8x384xf32>
    %225 = vector.shape_cast %224 : vector<1x8x384xf32> to vector<8x384xf32>
    %226 = vector.extract_strided_slice %225 {offsets = [0, 0], sizes = [8, 128], strides = [1, 1]} : vector<8x384xf32> to vector<8x128xf32>
    %227 = vector.extract_strided_slice %222 {offsets = [0, 0], sizes = [8, 128], strides = [1, 1]} : vector<8x384xf32> to vector<8x128xf32>
    %228 = arith.addf %226, %227 : vector<8x128xf32>
    %229 = arith.negf %228 : vector<8x128xf32>
    %230 = math.exp %229 : vector<8x128xf32>
    %cst_89 = arith.constant 1.000000e+00 : f32
    %231 = vector.broadcast %cst_89 : f32 to vector<8x128xf32>
    %232 = arith.addf %231, %230 : vector<8x128xf32>
    %233 = arith.divf %231, %232 : vector<8x128xf32>
    %234 = vector.extract_strided_slice %225 {offsets = [0, 128], sizes = [8, 128], strides = [1, 1]} : vector<8x384xf32> to vector<8x128xf32>
    %235 = vector.extract_strided_slice %222 {offsets = [0, 128], sizes = [8, 128], strides = [1, 1]} : vector<8x384xf32> to vector<8x128xf32>
    %236 = arith.addf %234, %235 : vector<8x128xf32>
    %237 = arith.negf %236 : vector<8x128xf32>
    %238 = math.exp %237 : vector<8x128xf32>
    %cst_90 = arith.constant 1.000000e+00 : f32
    %239 = vector.broadcast %cst_90 : f32 to vector<8x128xf32>
    %240 = arith.addf %239, %238 : vector<8x128xf32>
    %241 = arith.divf %239, %240 : vector<8x128xf32>
    %242 = vector.extract_strided_slice %225 {offsets = [0, 256], sizes = [8, 128], strides = [1, 1]} : vector<8x384xf32> to vector<8x128xf32>
    %243 = vector.extract_strided_slice %222 {offsets = [0, 256], sizes = [8, 128], strides = [1, 1]} : vector<8x384xf32> to vector<8x128xf32>
    %c0_91 = arith.constant 0 : index
    %c0_92 = arith.constant 0 : index
    %c0_93 = arith.constant 0 : index
    %244 = vector.load %arg5[%c0_91, %c0_92, %c0_93] : memref<2x1x128xf32, #tpu.memory_space<vmem>>, vector<1x1x128xf32>
    %245 = vector.shape_cast %244 : vector<1x1x128xf32> to vector<1x128xf32>
    %246 = vector.broadcast %245 : vector<1x128xf32> to vector<8x128xf32>
    %247 = arith.addf %243, %246 : vector<8x128xf32>
    %248 = arith.mulf %233, %247 : vector<8x128xf32>
    %249 = arith.addf %242, %248 : vector<8x128xf32>
    %250 = math.tanh %249 : vector<8x128xf32>
    %cst_94 = arith.constant 1.000000e+00 : f32
    %251 = vector.broadcast %cst_94 : f32 to vector<8x128xf32>
    %252 = arith.subf %251, %241 : vector<8x128xf32>
    %253 = arith.mulf %252, %250 : vector<8x128xf32>
    %254 = arith.mulf %241, %214 : vector<8x128xf32>
    %255 = arith.addf %253, %254 : vector<8x128xf32>
    %256 = arith.index_cast %c5_i32 : i32 to index
    %c0_95 = arith.constant 0 : index
    %c0_96 = arith.constant 0 : index
    %257 = vector.load %arg9[%256, %c0_95, %c0_96] : memref<8x8x128xf32, #tpu.memory_space<vmem>>, vector<1x8x128xf32>
    %258 = vector.shape_cast %257 : vector<1x8x128xf32> to vector<8x128xf32>
    %259 = vector.shape_cast %255 : vector<8x128xf32> to vector<1x8x128xf32>
    tpu.vector_store %arg9[%256, %c0_95, %c0_96], %259 {strides = array<i32>} : memref<8x8x128xf32, #tpu.memory_space<vmem>>, vector<1x8x128xf32>,
    %c6_i32 = arith.constant 6 : i32
    %260 = arith.truncf %255 : vector<8x128xf32> to vector<8x128xbf16>
    %c0_97 = arith.constant 0 : index
    %c0_98 = arith.constant 0 : index
    %c0_99 = arith.constant 0 : index
    %261 = vector.load %arg3[%c0_97, %c0_98, %c0_99] : memref<2x128x384xbf16, #tpu.memory_space<vmem>>, vector<1x128x384xbf16>
    %262 = vector.shape_cast %261 : vector<1x128x384xbf16> to vector<128x384xbf16>
    %cst_100 = arith.constant dense<0.000000e+00> : vector<8x384xf32>
    %263 = tpu.matmul %260, %262, %cst_100 {dimension_numbers = #tpu.dot_dimension_numbers<[1], [0], [0], [1], [0, 0, 1, 1], [], []>} : vector<8x128xbf16>, vector<128x384xbf16>, vector<8x384xf32> -> vector<8x384xf32>
    %264 = arith.index_cast %c6_i32 : i32 to index
    %c0_101 = arith.constant 0 : index
    %c0_102 = arith.constant 0 : index
    %265 = vector.load %arg10[%264, %c0_101, %c0_102] : memref<8x8x384xf32, #tpu.memory_space<vmem>>, vector<1x8x384xf32>
    %266 = vector.shape_cast %265 : vector<1x8x384xf32> to vector<8x384xf32>
    %267 = vector.extract_strided_slice %266 {offsets = [0, 0], sizes = [8, 128], strides = [1, 1]} : vector<8x384xf32> to vector<8x128xf32>
    %268 = vector.extract_strided_slice %263 {offsets = [0, 0], sizes = [8, 128], strides = [1, 1]} : vector<8x384xf32> to vector<8x128xf32>
    %269 = arith.addf %267, %268 : vector<8x128xf32>
    %270 = arith.negf %269 : vector<8x128xf32>
    %271 = math.exp %270 : vector<8x128xf32>
    %cst_103 = arith.constant 1.000000e+00 : f32
    %272 = vector.broadcast %cst_103 : f32 to vector<8x128xf32>
    %273 = arith.addf %272, %271 : vector<8x128xf32>
    %274 = arith.divf %272, %273 : vector<8x128xf32>
    %275 = vector.extract_strided_slice %266 {offsets = [0, 128], sizes = [8, 128], strides = [1, 1]} : vector<8x384xf32> to vector<8x128xf32>
    %276 = vector.extract_strided_slice %263 {offsets = [0, 128], sizes = [8, 128], strides = [1, 1]} : vector<8x384xf32> to vector<8x128xf32>
    %277 = arith.addf %275, %276 : vector<8x128xf32>
    %278 = arith.negf %277 : vector<8x128xf32>
    %279 = math.exp %278 : vector<8x128xf32>
    %cst_104 = arith.constant 1.000000e+00 : f32
    %280 = vector.broadcast %cst_104 : f32 to vector<8x128xf32>
    %281 = arith.addf %280, %279 : vector<8x128xf32>
    %282 = arith.divf %280, %281 : vector<8x128xf32>
    %283 = vector.extract_strided_slice %266 {offsets = [0, 256], sizes = [8, 128], strides = [1, 1]} : vector<8x384xf32> to vector<8x128xf32>
    %284 = vector.extract_strided_slice %263 {offsets = [0, 256], sizes = [8, 128], strides = [1, 1]} : vector<8x384xf32> to vector<8x128xf32>
    %c0_105 = arith.constant 0 : index
    %c0_106 = arith.constant 0 : index
    %c0_107 = arith.constant 0 : index
    %285 = vector.load %arg5[%c0_105, %c0_106, %c0_107] : memref<2x1x128xf32, #tpu.memory_space<vmem>>, vector<1x1x128xf32>
    %286 = vector.shape_cast %285 : vector<1x1x128xf32> to vector<1x128xf32>
    %287 = vector.broadcast %286 : vector<1x128xf32> to vector<8x128xf32>
    %288 = arith.addf %284, %287 : vector<8x128xf32>
    %289 = arith.mulf %274, %288 : vector<8x128xf32>
    %290 = arith.addf %283, %289 : vector<8x128xf32>
    %291 = math.tanh %290 : vector<8x128xf32>
    %cst_108 = arith.constant 1.000000e+00 : f32
    %292 = vector.broadcast %cst_108 : f32 to vector<8x128xf32>
    %293 = arith.subf %292, %282 : vector<8x128xf32>
    %294 = arith.mulf %293, %291 : vector<8x128xf32>
    %295 = arith.mulf %282, %255 : vector<8x128xf32>
    %296 = arith.addf %294, %295 : vector<8x128xf32>
    %297 = arith.index_cast %c6_i32 : i32 to index
    %c0_109 = arith.constant 0 : index
    %c0_110 = arith.constant 0 : index
    %298 = vector.load %arg9[%297, %c0_109, %c0_110] : memref<8x8x128xf32, #tpu.memory_space<vmem>>, vector<1x8x128xf32>
    %299 = vector.shape_cast %298 : vector<1x8x128xf32> to vector<8x128xf32>
    %300 = vector.shape_cast %296 : vector<8x128xf32> to vector<1x8x128xf32>
    tpu.vector_store %arg9[%297, %c0_109, %c0_110], %300 {strides = array<i32>} : memref<8x8x128xf32, #tpu.memory_space<vmem>>, vector<1x8x128xf32>,
    %c7_i32 = arith.constant 7 : i32
    %301 = arith.truncf %296 : vector<8x128xf32> to vector<8x128xbf16>
    %c0_111 = arith.constant 0 : index
    %c0_112 = arith.constant 0 : index
    %c0_113 = arith.constant 0 : index
    %302 = vector.load %arg3[%c0_111, %c0_112, %c0_113] : memref<2x128x384xbf16, #tpu.memory_space<vmem>>, vector<1x128x384xbf16>
    %303 = vector.shape_cast %302 : vector<1x128x384xbf16> to vector<128x384xbf16>
    %cst_114 = arith.constant dense<0.000000e+00> : vector<8x384xf32>
    %304 = tpu.matmul %301, %303, %cst_114 {dimension_numbers = #tpu.dot_dimension_numbers<[1], [0], [0], [1], [0, 0, 1, 1], [], []>} : vector<8x128xbf16>, vector<128x384xbf16>, vector<8x384xf32> -> vector<8x384xf32>
    %305 = arith.index_cast %c7_i32 : i32 to index
    %c0_115 = arith.constant 0 : index
    %c0_116 = arith.constant 0 : index
    %306 = vector.load %arg10[%305, %c0_115, %c0_116] : memref<8x8x384xf32, #tpu.memory_space<vmem>>, vector<1x8x384xf32>
    %307 = vector.shape_cast %306 : vector<1x8x384xf32> to vector<8x384xf32>
    %308 = vector.extract_strided_slice %307 {offsets = [0, 0], sizes = [8, 128], strides = [1, 1]} : vector<8x384xf32> to vector<8x128xf32>
    %309 = vector.extract_strided_slice %304 {offsets = [0, 0], sizes = [8, 128], strides = [1, 1]} : vector<8x384xf32> to vector<8x128xf32>
    %310 = arith.addf %308, %309 : vector<8x128xf32>
    %311 = arith.negf %310 : vector<8x128xf32>
    %312 = math.exp %311 : vector<8x128xf32>
    %cst_117 = arith.constant 1.000000e+00 : f32
    %313 = vector.broadcast %cst_117 : f32 to vector<8x128xf32>
    %314 = arith.addf %313, %312 : vector<8x128xf32>
    %315 = arith.divf %313, %314 : vector<8x128xf32>
    %316 = vector.extract_strided_slice %307 {offsets = [0, 128], sizes = [8, 128], strides = [1, 1]} : vector<8x384xf32> to vector<8x128xf32>
    %317 = vector.extract_strided_slice %304 {offsets = [0, 128], sizes = [8, 128], strides = [1, 1]} : vector<8x384xf32> to vector<8x128xf32>
    %318 = arith.addf %316, %317 : vector<8x128xf32>
    %319 = arith.negf %318 : vector<8x128xf32>
    %320 = math.exp %319 : vector<8x128xf32>
    %cst_118 = arith.constant 1.000000e+00 : f32
    %321 = vector.broadcast %cst_118 : f32 to vector<8x128xf32>
    %322 = arith.addf %321, %320 : vector<8x128xf32>
    %323 = arith.divf %321, %322 : vector<8x128xf32>
    %324 = vector.extract_strided_slice %307 {offsets = [0, 256], sizes = [8, 128], strides = [1, 1]} : vector<8x384xf32> to vector<8x128xf32>
    %325 = vector.extract_strided_slice %304 {offsets = [0, 256], sizes = [8, 128], strides = [1, 1]} : vector<8x384xf32> to vector<8x128xf32>
    %c0_119 = arith.constant 0 : index
    %c0_120 = arith.constant 0 : index
    %c0_121 = arith.constant 0 : index
    %326 = vector.load %arg5[%c0_119, %c0_120, %c0_121] : memref<2x1x128xf32, #tpu.memory_space<vmem>>, vector<1x1x128xf32>
    %327 = vector.shape_cast %326 : vector<1x1x128xf32> to vector<1x128xf32>
    %328 = vector.broadcast %327 : vector<1x128xf32> to vector<8x128xf32>
    %329 = arith.addf %325, %328 : vector<8x128xf32>
    %330 = arith.mulf %315, %329 : vector<8x128xf32>
    %331 = arith.addf %324, %330 : vector<8x128xf32>
    %332 = math.tanh %331 : vector<8x128xf32>
    %cst_122 = arith.constant 1.000000e+00 : f32
    %333 = vector.broadcast %cst_122 : f32 to vector<8x128xf32>
    %334 = arith.subf %333, %323 : vector<8x128xf32>
    %335 = arith.mulf %334, %332 : vector<8x128xf32>
    %336 = arith.mulf %323, %296 : vector<8x128xf32>
    %337 = arith.addf %335, %336 : vector<8x128xf32>
    %338 = arith.index_cast %c7_i32 : i32 to index
    %c0_123 = arith.constant 0 : index
    %c0_124 = arith.constant 0 : index
    %339 = vector.load %arg9[%338, %c0_123, %c0_124] : memref<8x8x128xf32, #tpu.memory_space<vmem>>, vector<1x8x128xf32>
    %340 = vector.shape_cast %339 : vector<1x8x128xf32> to vector<8x128xf32>
    %341 = vector.shape_cast %337 : vector<8x128xf32> to vector<1x8x128xf32>
    tpu.vector_store %arg9[%338, %c0_123, %c0_124], %341 {strides = array<i32>} : memref<8x8x128xf32, #tpu.memory_space<vmem>>, vector<1x8x128xf32>,
    %c8_i32 = arith.constant 8 : i32
    %c0_125 = arith.constant 0 : index
    %c0_126 = arith.constant 0 : index
    %c0_127 = arith.constant 0 : index
    %342 = vector.load %arg9[%c0_125, %c0_126, %c0_127] : memref<8x8x128xf32, #tpu.memory_space<vmem>>, vector<8x8x128xf32>
    %343 = vector.shape_cast %342 : vector<8x8x128xf32> to vector<64x128xf32>
    %344 = arith.truncf %343 : vector<64x128xf32> to vector<64x128xbf16>
    %c1 = arith.constant 1 : index
    %c0_128 = arith.constant 0 : index
    %c0_129 = arith.constant 0 : index
    %345 = vector.load %arg2[%c1, %c0_128, %c0_129] : memref<2x128x384xbf16, #tpu.memory_space<vmem>>, vector<1x128x384xbf16>
    %346 = vector.shape_cast %345 : vector<1x128x384xbf16> to vector<128x384xbf16>
    %cst_130 = arith.constant dense<0.000000e+00> : vector<64x384xf32>
    %347 = tpu.matmul %344, %346, %cst_130 {dimension_numbers = #tpu.dot_dimension_numbers<[1], [0], [0], [1], [0, 0, 1, 1], [], []>} : vector<64x128xbf16>, vector<128x384xbf16>, vector<64x384xf32> -> vector<64x384xf32>
    %c1_131 = arith.constant 1 : index
    %c0_132 = arith.constant 0 : index
    %c0_133 = arith.constant 0 : index
    %348 = vector.load %arg4[%c1_131, %c0_132, %c0_133] : memref<2x1x384xf32, #tpu.memory_space<vmem>>, vector<1x1x384xf32>
    %349 = vector.shape_cast %348 : vector<1x1x384xf32> to vector<1x384xf32>
    %350 = vector.broadcast %349 : vector<1x384xf32> to vector<64x384xf32>
    %351 = arith.addf %347, %350 : vector<64x384xf32>
    %352 = vector.shape_cast %351 : vector<64x384xf32> to vector<8x8x384xf32>
    %c0_134 = arith.constant 0 : index
    %c0_135 = arith.constant 0 : index
    %c0_136 = arith.constant 0 : index
    %353 = vector.load %arg10[%c0_134, %c0_135, %c0_136] : memref<8x8x384xf32, #tpu.memory_space<vmem>>, vector<8x8x384xf32>
    tpu.vector_store %arg10[%c0_134, %c0_135, %c0_136], %352 {strides = array<i32>} : memref<8x8x384xf32, #tpu.memory_space<vmem>>, vector<8x8x384xf32>,
    %cst_137 = arith.constant 0.000000e+00 : f32
    %354 = vector.broadcast %cst_137 : f32 to vector<8x128xf32>
    %c0_i32_138 = arith.constant 0 : i32
    %355 = arith.truncf %354 : vector<8x128xf32> to vector<8x128xbf16>
    %c1_139 = arith.constant 1 : index
    %c0_140 = arith.constant 0 : index
    %c0_141 = arith.constant 0 : index
    %356 = vector.load %arg3[%c1_139, %c0_140, %c0_141] : memref<2x128x384xbf16, #tpu.memory_space<vmem>>, vector<1x128x384xbf16>
    %357 = vector.shape_cast %356 : vector<1x128x384xbf16> to vector<128x384xbf16>
    %cst_142 = arith.constant dense<0.000000e+00> : vector<8x384xf32>
    %358 = tpu.matmul %355, %357, %cst_142 {dimension_numbers = #tpu.dot_dimension_numbers<[1], [0], [0], [1], [0, 0, 1, 1], [], []>} : vector<8x128xbf16>, vector<128x384xbf16>, vector<8x384xf32> -> vector<8x384xf32>
    %359 = arith.index_cast %c0_i32_138 : i32 to index
    %c0_143 = arith.constant 0 : index
    %c0_144 = arith.constant 0 : index
    %360 = vector.load %arg10[%359, %c0_143, %c0_144] : memref<8x8x384xf32, #tpu.memory_space<vmem>>, vector<1x8x384xf32>
    %361 = vector.shape_cast %360 : vector<1x8x384xf32> to vector<8x384xf32>
    %362 = vector.extract_strided_slice %361 {offsets = [0, 0], sizes = [8, 128], strides = [1, 1]} : vector<8x384xf32> to vector<8x128xf32>
    %363 = vector.extract_strided_slice %358 {offsets = [0, 0], sizes = [8, 128], strides = [1, 1]} : vector<8x384xf32> to vector<8x128xf32>
    %364 = arith.addf %362, %363 : vector<8x128xf32>
    %365 = arith.negf %364 : vector<8x128xf32>
    %366 = math.exp %365 : vector<8x128xf32>
    %cst_145 = arith.constant 1.000000e+00 : f32
    %367 = vector.broadcast %cst_145 : f32 to vector<8x128xf32>
    %368 = arith.addf %367, %366 : vector<8x128xf32>
    %369 = arith.divf %367, %368 : vector<8x128xf32>
    %370 = vector.extract_strided_slice %361 {offsets = [0, 128], sizes = [8, 128], strides = [1, 1]} : vector<8x384xf32> to vector<8x128xf32>
    %371 = vector.extract_strided_slice %358 {offsets = [0, 128], sizes = [8, 128], strides = [1, 1]} : vector<8x384xf32> to vector<8x128xf32>
    %372 = arith.addf %370, %371 : vector<8x128xf32>
    %373 = arith.negf %372 : vector<8x128xf32>
    %374 = math.exp %373 : vector<8x128xf32>
    %cst_146 = arith.constant 1.000000e+00 : f32
    %375 = vector.broadcast %cst_146 : f32 to vector<8x128xf32>
    %376 = arith.addf %375, %374 : vector<8x128xf32>
    %377 = arith.divf %375, %376 : vector<8x128xf32>
    %378 = vector.extract_strided_slice %361 {offsets = [0, 256], sizes = [8, 128], strides = [1, 1]} : vector<8x384xf32> to vector<8x128xf32>
    %379 = vector.extract_strided_slice %358 {offsets = [0, 256], sizes = [8, 128], strides = [1, 1]} : vector<8x384xf32> to vector<8x128xf32>
    %c1_147 = arith.constant 1 : index
    %c0_148 = arith.constant 0 : index
    %c0_149 = arith.constant 0 : index
    %380 = vector.load %arg5[%c1_147, %c0_148, %c0_149] : memref<2x1x128xf32, #tpu.memory_space<vmem>>, vector<1x1x128xf32>
    %381 = vector.shape_cast %380 : vector<1x1x128xf32> to vector<1x128xf32>
    %382 = vector.broadcast %381 : vector<1x128xf32> to vector<8x128xf32>
    %383 = arith.addf %379, %382 : vector<8x128xf32>
    %384 = arith.mulf %369, %383 : vector<8x128xf32>
    %385 = arith.addf %378, %384 : vector<8x128xf32>
    %386 = math.tanh %385 : vector<8x128xf32>
    %cst_150 = arith.constant 1.000000e+00 : f32
    %387 = vector.broadcast %cst_150 : f32 to vector<8x128xf32>
    %388 = arith.subf %387, %377 : vector<8x128xf32>
    %389 = arith.mulf %388, %386 : vector<8x128xf32>
    %390 = arith.mulf %377, %354 : vector<8x128xf32>
    %391 = arith.addf %389, %390 : vector<8x128xf32>
    %392 = arith.index_cast %c0_i32_138 : i32 to index
    %c0_151 = arith.constant 0 : index
    %c0_152 = arith.constant 0 : index
    %393 = vector.load %arg9[%392, %c0_151, %c0_152] : memref<8x8x128xf32, #tpu.memory_space<vmem>>, vector<1x8x128xf32>
    %394 = vector.shape_cast %393 : vector<1x8x128xf32> to vector<8x128xf32>
    %395 = vector.shape_cast %391 : vector<8x128xf32> to vector<1x8x128xf32>
    tpu.vector_store %arg9[%392, %c0_151, %c0_152], %395 {strides = array<i32>} : memref<8x8x128xf32, #tpu.memory_space<vmem>>, vector<1x8x128xf32>,
    %c1_i32_153 = arith.constant 1 : i32
    %396 = arith.truncf %391 : vector<8x128xf32> to vector<8x128xbf16>
    %c1_154 = arith.constant 1 : index
    %c0_155 = arith.constant 0 : index
    %c0_156 = arith.constant 0 : index
    %397 = vector.load %arg3[%c1_154, %c0_155, %c0_156] : memref<2x128x384xbf16, #tpu.memory_space<vmem>>, vector<1x128x384xbf16>
    %398 = vector.shape_cast %397 : vector<1x128x384xbf16> to vector<128x384xbf16>
    %cst_157 = arith.constant dense<0.000000e+00> : vector<8x384xf32>
    %399 = tpu.matmul %396, %398, %cst_157 {dimension_numbers = #tpu.dot_dimension_numbers<[1], [0], [0], [1], [0, 0, 1, 1], [], []>} : vector<8x128xbf16>, vector<128x384xbf16>, vector<8x384xf32> -> vector<8x384xf32>
    %400 = arith.index_cast %c1_i32_153 : i32 to index
    %c0_158 = arith.constant 0 : index
    %c0_159 = arith.constant 0 : index
    %401 = vector.load %arg10[%400, %c0_158, %c0_159] : memref<8x8x384xf32, #tpu.memory_space<vmem>>, vector<1x8x384xf32>
    %402 = vector.shape_cast %401 : vector<1x8x384xf32> to vector<8x384xf32>
    %403 = vector.extract_strided_slice %402 {offsets = [0, 0], sizes = [8, 128], strides = [1, 1]} : vector<8x384xf32> to vector<8x128xf32>
    %404 = vector.extract_strided_slice %399 {offsets = [0, 0], sizes = [8, 128], strides = [1, 1]} : vector<8x384xf32> to vector<8x128xf32>
    %405 = arith.addf %403, %404 : vector<8x128xf32>
    %406 = arith.negf %405 : vector<8x128xf32>
    %407 = math.exp %406 : vector<8x128xf32>
    %cst_160 = arith.constant 1.000000e+00 : f32
    %408 = vector.broadcast %cst_160 : f32 to vector<8x128xf32>
    %409 = arith.addf %408, %407 : vector<8x128xf32>
    %410 = arith.divf %408, %409 : vector<8x128xf32>
    %411 = vector.extract_strided_slice %402 {offsets = [0, 128], sizes = [8, 128], strides = [1, 1]} : vector<8x384xf32> to vector<8x128xf32>
    %412 = vector.extract_strided_slice %399 {offsets = [0, 128], sizes = [8, 128], strides = [1, 1]} : vector<8x384xf32> to vector<8x128xf32>
    %413 = arith.addf %411, %412 : vector<8x128xf32>
    %414 = arith.negf %413 : vector<8x128xf32>
    %415 = math.exp %414 : vector<8x128xf32>
    %cst_161 = arith.constant 1.000000e+00 : f32
    %416 = vector.broadcast %cst_161 : f32 to vector<8x128xf32>
    %417 = arith.addf %416, %415 : vector<8x128xf32>
    %418 = arith.divf %416, %417 : vector<8x128xf32>
    %419 = vector.extract_strided_slice %402 {offsets = [0, 256], sizes = [8, 128], strides = [1, 1]} : vector<8x384xf32> to vector<8x128xf32>
    %420 = vector.extract_strided_slice %399 {offsets = [0, 256], sizes = [8, 128], strides = [1, 1]} : vector<8x384xf32> to vector<8x128xf32>
    %c1_162 = arith.constant 1 : index
    %c0_163 = arith.constant 0 : index
    %c0_164 = arith.constant 0 : index
    %421 = vector.load %arg5[%c1_162, %c0_163, %c0_164] : memref<2x1x128xf32, #tpu.memory_space<vmem>>, vector<1x1x128xf32>
    %422 = vector.shape_cast %421 : vector<1x1x128xf32> to vector<1x128xf32>
    %423 = vector.broadcast %422 : vector<1x128xf32> to vector<8x128xf32>
    %424 = arith.addf %420, %423 : vector<8x128xf32>
    %425 = arith.mulf %410, %424 : vector<8x128xf32>
    %426 = arith.addf %419, %425 : vector<8x128xf32>
    %427 = math.tanh %426 : vector<8x128xf32>
    %cst_165 = arith.constant 1.000000e+00 : f32
    %428 = vector.broadcast %cst_165 : f32 to vector<8x128xf32>
    %429 = arith.subf %428, %418 : vector<8x128xf32>
    %430 = arith.mulf %429, %427 : vector<8x128xf32>
    %431 = arith.mulf %418, %391 : vector<8x128xf32>
    %432 = arith.addf %430, %431 : vector<8x128xf32>
    %433 = arith.index_cast %c1_i32_153 : i32 to index
    %c0_166 = arith.constant 0 : index
    %c0_167 = arith.constant 0 : index
    %434 = vector.load %arg9[%433, %c0_166, %c0_167] : memref<8x8x128xf32, #tpu.memory_space<vmem>>, vector<1x8x128xf32>
    %435 = vector.shape_cast %434 : vector<1x8x128xf32> to vector<8x128xf32>
    %436 = vector.shape_cast %432 : vector<8x128xf32> to vector<1x8x128xf32>
    tpu.vector_store %arg9[%433, %c0_166, %c0_167], %436 {strides = array<i32>} : memref<8x8x128xf32, #tpu.memory_space<vmem>>, vector<1x8x128xf32>,
    %c2_i32_168 = arith.constant 2 : i32
    %437 = arith.truncf %432 : vector<8x128xf32> to vector<8x128xbf16>
    %c1_169 = arith.constant 1 : index
    %c0_170 = arith.constant 0 : index
    %c0_171 = arith.constant 0 : index
    %438 = vector.load %arg3[%c1_169, %c0_170, %c0_171] : memref<2x128x384xbf16, #tpu.memory_space<vmem>>, vector<1x128x384xbf16>
    %439 = vector.shape_cast %438 : vector<1x128x384xbf16> to vector<128x384xbf16>
    %cst_172 = arith.constant dense<0.000000e+00> : vector<8x384xf32>
    %440 = tpu.matmul %437, %439, %cst_172 {dimension_numbers = #tpu.dot_dimension_numbers<[1], [0], [0], [1], [0, 0, 1, 1], [], []>} : vector<8x128xbf16>, vector<128x384xbf16>, vector<8x384xf32> -> vector<8x384xf32>
    %441 = arith.index_cast %c2_i32_168 : i32 to index
    %c0_173 = arith.constant 0 : index
    %c0_174 = arith.constant 0 : index
    %442 = vector.load %arg10[%441, %c0_173, %c0_174] : memref<8x8x384xf32, #tpu.memory_space<vmem>>, vector<1x8x384xf32>
    %443 = vector.shape_cast %442 : vector<1x8x384xf32> to vector<8x384xf32>
    %444 = vector.extract_strided_slice %443 {offsets = [0, 0], sizes = [8, 128], strides = [1, 1]} : vector<8x384xf32> to vector<8x128xf32>
    %445 = vector.extract_strided_slice %440 {offsets = [0, 0], sizes = [8, 128], strides = [1, 1]} : vector<8x384xf32> to vector<8x128xf32>
    %446 = arith.addf %444, %445 : vector<8x128xf32>
    %447 = arith.negf %446 : vector<8x128xf32>
    %448 = math.exp %447 : vector<8x128xf32>
    %cst_175 = arith.constant 1.000000e+00 : f32
    %449 = vector.broadcast %cst_175 : f32 to vector<8x128xf32>
    %450 = arith.addf %449, %448 : vector<8x128xf32>
    %451 = arith.divf %449, %450 : vector<8x128xf32>
    %452 = vector.extract_strided_slice %443 {offsets = [0, 128], sizes = [8, 128], strides = [1, 1]} : vector<8x384xf32> to vector<8x128xf32>
    %453 = vector.extract_strided_slice %440 {offsets = [0, 128], sizes = [8, 128], strides = [1, 1]} : vector<8x384xf32> to vector<8x128xf32>
    %454 = arith.addf %452, %453 : vector<8x128xf32>
    %455 = arith.negf %454 : vector<8x128xf32>
    %456 = math.exp %455 : vector<8x128xf32>
    %cst_176 = arith.constant 1.000000e+00 : f32
    %457 = vector.broadcast %cst_176 : f32 to vector<8x128xf32>
    %458 = arith.addf %457, %456 : vector<8x128xf32>
    %459 = arith.divf %457, %458 : vector<8x128xf32>
    %460 = vector.extract_strided_slice %443 {offsets = [0, 256], sizes = [8, 128], strides = [1, 1]} : vector<8x384xf32> to vector<8x128xf32>
    %461 = vector.extract_strided_slice %440 {offsets = [0, 256], sizes = [8, 128], strides = [1, 1]} : vector<8x384xf32> to vector<8x128xf32>
    %c1_177 = arith.constant 1 : index
    %c0_178 = arith.constant 0 : index
    %c0_179 = arith.constant 0 : index
    %462 = vector.load %arg5[%c1_177, %c0_178, %c0_179] : memref<2x1x128xf32, #tpu.memory_space<vmem>>, vector<1x1x128xf32>
    %463 = vector.shape_cast %462 : vector<1x1x128xf32> to vector<1x128xf32>
    %464 = vector.broadcast %463 : vector<1x128xf32> to vector<8x128xf32>
    %465 = arith.addf %461, %464 : vector<8x128xf32>
    %466 = arith.mulf %451, %465 : vector<8x128xf32>
    %467 = arith.addf %460, %466 : vector<8x128xf32>
    %468 = math.tanh %467 : vector<8x128xf32>
    %cst_180 = arith.constant 1.000000e+00 : f32
    %469 = vector.broadcast %cst_180 : f32 to vector<8x128xf32>
    %470 = arith.subf %469, %459 : vector<8x128xf32>
    %471 = arith.mulf %470, %468 : vector<8x128xf32>
    %472 = arith.mulf %459, %432 : vector<8x128xf32>
    %473 = arith.addf %471, %472 : vector<8x128xf32>
    %474 = arith.index_cast %c2_i32_168 : i32 to index
    %c0_181 = arith.constant 0 : index
    %c0_182 = arith.constant 0 : index
    %475 = vector.load %arg9[%474, %c0_181, %c0_182] : memref<8x8x128xf32, #tpu.memory_space<vmem>>, vector<1x8x128xf32>
    %476 = vector.shape_cast %475 : vector<1x8x128xf32> to vector<8x128xf32>
    %477 = vector.shape_cast %473 : vector<8x128xf32> to vector<1x8x128xf32>
    tpu.vector_store %arg9[%474, %c0_181, %c0_182], %477 {strides = array<i32>} : memref<8x8x128xf32, #tpu.memory_space<vmem>>, vector<1x8x128xf32>,
    %c3_i32_183 = arith.constant 3 : i32
    %478 = arith.truncf %473 : vector<8x128xf32> to vector<8x128xbf16>
    %c1_184 = arith.constant 1 : index
    %c0_185 = arith.constant 0 : index
    %c0_186 = arith.constant 0 : index
    %479 = vector.load %arg3[%c1_184, %c0_185, %c0_186] : memref<2x128x384xbf16, #tpu.memory_space<vmem>>, vector<1x128x384xbf16>
    %480 = vector.shape_cast %479 : vector<1x128x384xbf16> to vector<128x384xbf16>
    %cst_187 = arith.constant dense<0.000000e+00> : vector<8x384xf32>
    %481 = tpu.matmul %478, %480, %cst_187 {dimension_numbers = #tpu.dot_dimension_numbers<[1], [0], [0], [1], [0, 0, 1, 1], [], []>} : vector<8x128xbf16>, vector<128x384xbf16>, vector<8x384xf32> -> vector<8x384xf32>
    %482 = arith.index_cast %c3_i32_183 : i32 to index
    %c0_188 = arith.constant 0 : index
    %c0_189 = arith.constant 0 : index
    %483 = vector.load %arg10[%482, %c0_188, %c0_189] : memref<8x8x384xf32, #tpu.memory_space<vmem>>, vector<1x8x384xf32>
    %484 = vector.shape_cast %483 : vector<1x8x384xf32> to vector<8x384xf32>
    %485 = vector.extract_strided_slice %484 {offsets = [0, 0], sizes = [8, 128], strides = [1, 1]} : vector<8x384xf32> to vector<8x128xf32>
    %486 = vector.extract_strided_slice %481 {offsets = [0, 0], sizes = [8, 128], strides = [1, 1]} : vector<8x384xf32> to vector<8x128xf32>
    %487 = arith.addf %485, %486 : vector<8x128xf32>
    %488 = arith.negf %487 : vector<8x128xf32>
    %489 = math.exp %488 : vector<8x128xf32>
    %cst_190 = arith.constant 1.000000e+00 : f32
    %490 = vector.broadcast %cst_190 : f32 to vector<8x128xf32>
    %491 = arith.addf %490, %489 : vector<8x128xf32>
    %492 = arith.divf %490, %491 : vector<8x128xf32>
    %493 = vector.extract_strided_slice %484 {offsets = [0, 128], sizes = [8, 128], strides = [1, 1]} : vector<8x384xf32> to vector<8x128xf32>
    %494 = vector.extract_strided_slice %481 {offsets = [0, 128], sizes = [8, 128], strides = [1, 1]} : vector<8x384xf32> to vector<8x128xf32>
    %495 = arith.addf %493, %494 : vector<8x128xf32>
    %496 = arith.negf %495 : vector<8x128xf32>
    %497 = math.exp %496 : vector<8x128xf32>
    %cst_191 = arith.constant 1.000000e+00 : f32
    %498 = vector.broadcast %cst_191 : f32 to vector<8x128xf32>
    %499 = arith.addf %498, %497 : vector<8x128xf32>
    %500 = arith.divf %498, %499 : vector<8x128xf32>
    %501 = vector.extract_strided_slice %484 {offsets = [0, 256], sizes = [8, 128], strides = [1, 1]} : vector<8x384xf32> to vector<8x128xf32>
    %502 = vector.extract_strided_slice %481 {offsets = [0, 256], sizes = [8, 128], strides = [1, 1]} : vector<8x384xf32> to vector<8x128xf32>
    %c1_192 = arith.constant 1 : index
    %c0_193 = arith.constant 0 : index
    %c0_194 = arith.constant 0 : index
    %503 = vector.load %arg5[%c1_192, %c0_193, %c0_194] : memref<2x1x128xf32, #tpu.memory_space<vmem>>, vector<1x1x128xf32>
    %504 = vector.shape_cast %503 : vector<1x1x128xf32> to vector<1x128xf32>
    %505 = vector.broadcast %504 : vector<1x128xf32> to vector<8x128xf32>
    %506 = arith.addf %502, %505 : vector<8x128xf32>
    %507 = arith.mulf %492, %506 : vector<8x128xf32>
    %508 = arith.addf %501, %507 : vector<8x128xf32>
    %509 = math.tanh %508 : vector<8x128xf32>
    %cst_195 = arith.constant 1.000000e+00 : f32
    %510 = vector.broadcast %cst_195 : f32 to vector<8x128xf32>
    %511 = arith.subf %510, %500 : vector<8x128xf32>
    %512 = arith.mulf %511, %509 : vector<8x128xf32>
    %513 = arith.mulf %500, %473 : vector<8x128xf32>
    %514 = arith.addf %512, %513 : vector<8x128xf32>
    %515 = arith.index_cast %c3_i32_183 : i32 to index
    %c0_196 = arith.constant 0 : index
    %c0_197 = arith.constant 0 : index
    %516 = vector.load %arg9[%515, %c0_196, %c0_197] : memref<8x8x128xf32, #tpu.memory_space<vmem>>, vector<1x8x128xf32>
    %517 = vector.shape_cast %516 : vector<1x8x128xf32> to vector<8x128xf32>
    %518 = vector.shape_cast %514 : vector<8x128xf32> to vector<1x8x128xf32>
    tpu.vector_store %arg9[%515, %c0_196, %c0_197], %518 {strides = array<i32>} : memref<8x8x128xf32, #tpu.memory_space<vmem>>, vector<1x8x128xf32>,
    %c4_i32_198 = arith.constant 4 : i32
    %519 = arith.truncf %514 : vector<8x128xf32> to vector<8x128xbf16>
    %c1_199 = arith.constant 1 : index
    %c0_200 = arith.constant 0 : index
    %c0_201 = arith.constant 0 : index
    %520 = vector.load %arg3[%c1_199, %c0_200, %c0_201] : memref<2x128x384xbf16, #tpu.memory_space<vmem>>, vector<1x128x384xbf16>
    %521 = vector.shape_cast %520 : vector<1x128x384xbf16> to vector<128x384xbf16>
    %cst_202 = arith.constant dense<0.000000e+00> : vector<8x384xf32>
    %522 = tpu.matmul %519, %521, %cst_202 {dimension_numbers = #tpu.dot_dimension_numbers<[1], [0], [0], [1], [0, 0, 1, 1], [], []>} : vector<8x128xbf16>, vector<128x384xbf16>, vector<8x384xf32> -> vector<8x384xf32>
    %523 = arith.index_cast %c4_i32_198 : i32 to index
    %c0_203 = arith.constant 0 : index
    %c0_204 = arith.constant 0 : index
    %524 = vector.load %arg10[%523, %c0_203, %c0_204] : memref<8x8x384xf32, #tpu.memory_space<vmem>>, vector<1x8x384xf32>
    %525 = vector.shape_cast %524 : vector<1x8x384xf32> to vector<8x384xf32>
    %526 = vector.extract_strided_slice %525 {offsets = [0, 0], sizes = [8, 128], strides = [1, 1]} : vector<8x384xf32> to vector<8x128xf32>
    %527 = vector.extract_strided_slice %522 {offsets = [0, 0], sizes = [8, 128], strides = [1, 1]} : vector<8x384xf32> to vector<8x128xf32>
    %528 = arith.addf %526, %527 : vector<8x128xf32>
    %529 = arith.negf %528 : vector<8x128xf32>
    %530 = math.exp %529 : vector<8x128xf32>
    %cst_205 = arith.constant 1.000000e+00 : f32
    %531 = vector.broadcast %cst_205 : f32 to vector<8x128xf32>
    %532 = arith.addf %531, %530 : vector<8x128xf32>
    %533 = arith.divf %531, %532 : vector<8x128xf32>
    %534 = vector.extract_strided_slice %525 {offsets = [0, 128], sizes = [8, 128], strides = [1, 1]} : vector<8x384xf32> to vector<8x128xf32>
    %535 = vector.extract_strided_slice %522 {offsets = [0, 128], sizes = [8, 128], strides = [1, 1]} : vector<8x384xf32> to vector<8x128xf32>
    %536 = arith.addf %534, %535 : vector<8x128xf32>
    %537 = arith.negf %536 : vector<8x128xf32>
    %538 = math.exp %537 : vector<8x128xf32>
    %cst_206 = arith.constant 1.000000e+00 : f32
    %539 = vector.broadcast %cst_206 : f32 to vector<8x128xf32>
    %540 = arith.addf %539, %538 : vector<8x128xf32>
    %541 = arith.divf %539, %540 : vector<8x128xf32>
    %542 = vector.extract_strided_slice %525 {offsets = [0, 256], sizes = [8, 128], strides = [1, 1]} : vector<8x384xf32> to vector<8x128xf32>
    %543 = vector.extract_strided_slice %522 {offsets = [0, 256], sizes = [8, 128], strides = [1, 1]} : vector<8x384xf32> to vector<8x128xf32>
    %c1_207 = arith.constant 1 : index
    %c0_208 = arith.constant 0 : index
    %c0_209 = arith.constant 0 : index
    %544 = vector.load %arg5[%c1_207, %c0_208, %c0_209] : memref<2x1x128xf32, #tpu.memory_space<vmem>>, vector<1x1x128xf32>
    %545 = vector.shape_cast %544 : vector<1x1x128xf32> to vector<1x128xf32>
    %546 = vector.broadcast %545 : vector<1x128xf32> to vector<8x128xf32>
    %547 = arith.addf %543, %546 : vector<8x128xf32>
    %548 = arith.mulf %533, %547 : vector<8x128xf32>
    %549 = arith.addf %542, %548 : vector<8x128xf32>
    %550 = math.tanh %549 : vector<8x128xf32>
    %cst_210 = arith.constant 1.000000e+00 : f32
    %551 = vector.broadcast %cst_210 : f32 to vector<8x128xf32>
    %552 = arith.subf %551, %541 : vector<8x128xf32>
    %553 = arith.mulf %552, %550 : vector<8x128xf32>
    %554 = arith.mulf %541, %514 : vector<8x128xf32>
    %555 = arith.addf %553, %554 : vector<8x128xf32>
    %556 = arith.index_cast %c4_i32_198 : i32 to index
    %c0_211 = arith.constant 0 : index
    %c0_212 = arith.constant 0 : index
    %557 = vector.load %arg9[%556, %c0_211, %c0_212] : memref<8x8x128xf32, #tpu.memory_space<vmem>>, vector<1x8x128xf32>
    %558 = vector.shape_cast %557 : vector<1x8x128xf32> to vector<8x128xf32>
    %559 = vector.shape_cast %555 : vector<8x128xf32> to vector<1x8x128xf32>
    tpu.vector_store %arg9[%556, %c0_211, %c0_212], %559 {strides = array<i32>} : memref<8x8x128xf32, #tpu.memory_space<vmem>>, vector<1x8x128xf32>,
    %c5_i32_213 = arith.constant 5 : i32
    %560 = arith.truncf %555 : vector<8x128xf32> to vector<8x128xbf16>
    %c1_214 = arith.constant 1 : index
    %c0_215 = arith.constant 0 : index
    %c0_216 = arith.constant 0 : index
    %561 = vector.load %arg3[%c1_214, %c0_215, %c0_216] : memref<2x128x384xbf16, #tpu.memory_space<vmem>>, vector<1x128x384xbf16>
    %562 = vector.shape_cast %561 : vector<1x128x384xbf16> to vector<128x384xbf16>
    %cst_217 = arith.constant dense<0.000000e+00> : vector<8x384xf32>
    %563 = tpu.matmul %560, %562, %cst_217 {dimension_numbers = #tpu.dot_dimension_numbers<[1], [0], [0], [1], [0, 0, 1, 1], [], []>} : vector<8x128xbf16>, vector<128x384xbf16>, vector<8x384xf32> -> vector<8x384xf32>
    %564 = arith.index_cast %c5_i32_213 : i32 to index
    %c0_218 = arith.constant 0 : index
    %c0_219 = arith.constant 0 : index
    %565 = vector.load %arg10[%564, %c0_218, %c0_219] : memref<8x8x384xf32, #tpu.memory_space<vmem>>, vector<1x8x384xf32>
    %566 = vector.shape_cast %565 : vector<1x8x384xf32> to vector<8x384xf32>
    %567 = vector.extract_strided_slice %566 {offsets = [0, 0], sizes = [8, 128], strides = [1, 1]} : vector<8x384xf32> to vector<8x128xf32>
    %568 = vector.extract_strided_slice %563 {offsets = [0, 0], sizes = [8, 128], strides = [1, 1]} : vector<8x384xf32> to vector<8x128xf32>
    %569 = arith.addf %567, %568 : vector<8x128xf32>
    %570 = arith.negf %569 : vector<8x128xf32>
    %571 = math.exp %570 : vector<8x128xf32>
    %cst_220 = arith.constant 1.000000e+00 : f32
    %572 = vector.broadcast %cst_220 : f32 to vector<8x128xf32>
    %573 = arith.addf %572, %571 : vector<8x128xf32>
    %574 = arith.divf %572, %573 : vector<8x128xf32>
    %575 = vector.extract_strided_slice %566 {offsets = [0, 128], sizes = [8, 128], strides = [1, 1]} : vector<8x384xf32> to vector<8x128xf32>
    %576 = vector.extract_strided_slice %563 {offsets = [0, 128], sizes = [8, 128], strides = [1, 1]} : vector<8x384xf32> to vector<8x128xf32>
    %577 = arith.addf %575, %576 : vector<8x128xf32>
    %578 = arith.negf %577 : vector<8x128xf32>
    %579 = math.exp %578 : vector<8x128xf32>
    %cst_221 = arith.constant 1.000000e+00 : f32
    %580 = vector.broadcast %cst_221 : f32 to vector<8x128xf32>
    %581 = arith.addf %580, %579 : vector<8x128xf32>
    %582 = arith.divf %580, %581 : vector<8x128xf32>
    %583 = vector.extract_strided_slice %566 {offsets = [0, 256], sizes = [8, 128], strides = [1, 1]} : vector<8x384xf32> to vector<8x128xf32>
    %584 = vector.extract_strided_slice %563 {offsets = [0, 256], sizes = [8, 128], strides = [1, 1]} : vector<8x384xf32> to vector<8x128xf32>
    %c1_222 = arith.constant 1 : index
    %c0_223 = arith.constant 0 : index
    %c0_224 = arith.constant 0 : index
    %585 = vector.load %arg5[%c1_222, %c0_223, %c0_224] : memref<2x1x128xf32, #tpu.memory_space<vmem>>, vector<1x1x128xf32>
    %586 = vector.shape_cast %585 : vector<1x1x128xf32> to vector<1x128xf32>
    %587 = vector.broadcast %586 : vector<1x128xf32> to vector<8x128xf32>
    %588 = arith.addf %584, %587 : vector<8x128xf32>
    %589 = arith.mulf %574, %588 : vector<8x128xf32>
    %590 = arith.addf %583, %589 : vector<8x128xf32>
    %591 = math.tanh %590 : vector<8x128xf32>
    %cst_225 = arith.constant 1.000000e+00 : f32
    %592 = vector.broadcast %cst_225 : f32 to vector<8x128xf32>
    %593 = arith.subf %592, %582 : vector<8x128xf32>
    %594 = arith.mulf %593, %591 : vector<8x128xf32>
    %595 = arith.mulf %582, %555 : vector<8x128xf32>
    %596 = arith.addf %594, %595 : vector<8x128xf32>
    %597 = arith.index_cast %c5_i32_213 : i32 to index
    %c0_226 = arith.constant 0 : index
    %c0_227 = arith.constant 0 : index
    %598 = vector.load %arg9[%597, %c0_226, %c0_227] : memref<8x8x128xf32, #tpu.memory_space<vmem>>, vector<1x8x128xf32>
    %599 = vector.shape_cast %598 : vector<1x8x128xf32> to vector<8x128xf32>
    %600 = vector.shape_cast %596 : vector<8x128xf32> to vector<1x8x128xf32>
    tpu.vector_store %arg9[%597, %c0_226, %c0_227], %600 {strides = array<i32>} : memref<8x8x128xf32, #tpu.memory_space<vmem>>, vector<1x8x128xf32>,
    %c6_i32_228 = arith.constant 6 : i32
    %601 = arith.truncf %596 : vector<8x128xf32> to vector<8x128xbf16>
    %c1_229 = arith.constant 1 : index
    %c0_230 = arith.constant 0 : index
    %c0_231 = arith.constant 0 : index
    %602 = vector.load %arg3[%c1_229, %c0_230, %c0_231] : memref<2x128x384xbf16, #tpu.memory_space<vmem>>, vector<1x128x384xbf16>
    %603 = vector.shape_cast %602 : vector<1x128x384xbf16> to vector<128x384xbf16>
    %cst_232 = arith.constant dense<0.000000e+00> : vector<8x384xf32>
    %604 = tpu.matmul %601, %603, %cst_232 {dimension_numbers = #tpu.dot_dimension_numbers<[1], [0], [0], [1], [0, 0, 1, 1], [], []>} : vector<8x128xbf16>, vector<128x384xbf16>, vector<8x384xf32> -> vector<8x384xf32>
    %605 = arith.index_cast %c6_i32_228 : i32 to index
    %c0_233 = arith.constant 0 : index
    %c0_234 = arith.constant 0 : index
    %606 = vector.load %arg10[%605, %c0_233, %c0_234] : memref<8x8x384xf32, #tpu.memory_space<vmem>>, vector<1x8x384xf32>
    %607 = vector.shape_cast %606 : vector<1x8x384xf32> to vector<8x384xf32>
    %608 = vector.extract_strided_slice %607 {offsets = [0, 0], sizes = [8, 128], strides = [1, 1]} : vector<8x384xf32> to vector<8x128xf32>
    %609 = vector.extract_strided_slice %604 {offsets = [0, 0], sizes = [8, 128], strides = [1, 1]} : vector<8x384xf32> to vector<8x128xf32>
    %610 = arith.addf %608, %609 : vector<8x128xf32>
    %611 = arith.negf %610 : vector<8x128xf32>
    %612 = math.exp %611 : vector<8x128xf32>
    %cst_235 = arith.constant 1.000000e+00 : f32
    %613 = vector.broadcast %cst_235 : f32 to vector<8x128xf32>
    %614 = arith.addf %613, %612 : vector<8x128xf32>
    %615 = arith.divf %613, %614 : vector<8x128xf32>
    %616 = vector.extract_strided_slice %607 {offsets = [0, 128], sizes = [8, 128], strides = [1, 1]} : vector<8x384xf32> to vector<8x128xf32>
    %617 = vector.extract_strided_slice %604 {offsets = [0, 128], sizes = [8, 128], strides = [1, 1]} : vector<8x384xf32> to vector<8x128xf32>
    %618 = arith.addf %616, %617 : vector<8x128xf32>
    %619 = arith.negf %618 : vector<8x128xf32>
    %620 = math.exp %619 : vector<8x128xf32>
    %cst_236 = arith.constant 1.000000e+00 : f32
    %621 = vector.broadcast %cst_236 : f32 to vector<8x128xf32>
    %622 = arith.addf %621, %620 : vector<8x128xf32>
    %623 = arith.divf %621, %622 : vector<8x128xf32>
    %624 = vector.extract_strided_slice %607 {offsets = [0, 256], sizes = [8, 128], strides = [1, 1]} : vector<8x384xf32> to vector<8x128xf32>
    %625 = vector.extract_strided_slice %604 {offsets = [0, 256], sizes = [8, 128], strides = [1, 1]} : vector<8x384xf32> to vector<8x128xf32>
    %c1_237 = arith.constant 1 : index
    %c0_238 = arith.constant 0 : index
    %c0_239 = arith.constant 0 : index
    %626 = vector.load %arg5[%c1_237, %c0_238, %c0_239] : memref<2x1x128xf32, #tpu.memory_space<vmem>>, vector<1x1x128xf32>
    %627 = vector.shape_cast %626 : vector<1x1x128xf32> to vector<1x128xf32>
    %628 = vector.broadcast %627 : vector<1x128xf32> to vector<8x128xf32>
    %629 = arith.addf %625, %628 : vector<8x128xf32>
    %630 = arith.mulf %615, %629 : vector<8x128xf32>
    %631 = arith.addf %624, %630 : vector<8x128xf32>
    %632 = math.tanh %631 : vector<8x128xf32>
    %cst_240 = arith.constant 1.000000e+00 : f32
    %633 = vector.broadcast %cst_240 : f32 to vector<8x128xf32>
    %634 = arith.subf %633, %623 : vector<8x128xf32>
    %635 = arith.mulf %634, %632 : vector<8x128xf32>
    %636 = arith.mulf %623, %596 : vector<8x128xf32>
    %637 = arith.addf %635, %636 : vector<8x128xf32>
    %638 = arith.index_cast %c6_i32_228 : i32 to index
    %c0_241 = arith.constant 0 : index
    %c0_242 = arith.constant 0 : index
    %639 = vector.load %arg9[%638, %c0_241, %c0_242] : memref<8x8x128xf32, #tpu.memory_space<vmem>>, vector<1x8x128xf32>
    %640 = vector.shape_cast %639 : vector<1x8x128xf32> to vector<8x128xf32>
    %641 = vector.shape_cast %637 : vector<8x128xf32> to vector<1x8x128xf32>
    tpu.vector_store %arg9[%638, %c0_241, %c0_242], %641 {strides = array<i32>} : memref<8x8x128xf32, #tpu.memory_space<vmem>>, vector<1x8x128xf32>,
    %c7_i32_243 = arith.constant 7 : i32
    %642 = arith.truncf %637 : vector<8x128xf32> to vector<8x128xbf16>
    %c1_244 = arith.constant 1 : index
    %c0_245 = arith.constant 0 : index
    %c0_246 = arith.constant 0 : index
    %643 = vector.load %arg3[%c1_244, %c0_245, %c0_246] : memref<2x128x384xbf16, #tpu.memory_space<vmem>>, vector<1x128x384xbf16>
    %644 = vector.shape_cast %643 : vector<1x128x384xbf16> to vector<128x384xbf16>
    %cst_247 = arith.constant dense<0.000000e+00> : vector<8x384xf32>
    %645 = tpu.matmul %642, %644, %cst_247 {dimension_numbers = #tpu.dot_dimension_numbers<[1], [0], [0], [1], [0, 0, 1, 1], [], []>} : vector<8x128xbf16>, vector<128x384xbf16>, vector<8x384xf32> -> vector<8x384xf32>
    %646 = arith.index_cast %c7_i32_243 : i32 to index
    %c0_248 = arith.constant 0 : index
    %c0_249 = arith.constant 0 : index
    %647 = vector.load %arg10[%646, %c0_248, %c0_249] : memref<8x8x384xf32, #tpu.memory_space<vmem>>, vector<1x8x384xf32>
    %648 = vector.shape_cast %647 : vector<1x8x384xf32> to vector<8x384xf32>
    %649 = vector.extract_strided_slice %648 {offsets = [0, 0], sizes = [8, 128], strides = [1, 1]} : vector<8x384xf32> to vector<8x128xf32>
    %650 = vector.extract_strided_slice %645 {offsets = [0, 0], sizes = [8, 128], strides = [1, 1]} : vector<8x384xf32> to vector<8x128xf32>
    %651 = arith.addf %649, %650 : vector<8x128xf32>
    %652 = arith.negf %651 : vector<8x128xf32>
    %653 = math.exp %652 : vector<8x128xf32>
    %cst_250 = arith.constant 1.000000e+00 : f32
    %654 = vector.broadcast %cst_250 : f32 to vector<8x128xf32>
    %655 = arith.addf %654, %653 : vector<8x128xf32>
    %656 = arith.divf %654, %655 : vector<8x128xf32>
    %657 = vector.extract_strided_slice %648 {offsets = [0, 128], sizes = [8, 128], strides = [1, 1]} : vector<8x384xf32> to vector<8x128xf32>
    %658 = vector.extract_strided_slice %645 {offsets = [0, 128], sizes = [8, 128], strides = [1, 1]} : vector<8x384xf32> to vector<8x128xf32>
    %659 = arith.addf %657, %658 : vector<8x128xf32>
    %660 = arith.negf %659 : vector<8x128xf32>
    %661 = math.exp %660 : vector<8x128xf32>
    %cst_251 = arith.constant 1.000000e+00 : f32
    %662 = vector.broadcast %cst_251 : f32 to vector<8x128xf32>
    %663 = arith.addf %662, %661 : vector<8x128xf32>
    %664 = arith.divf %662, %663 : vector<8x128xf32>
    %665 = vector.extract_strided_slice %648 {offsets = [0, 256], sizes = [8, 128], strides = [1, 1]} : vector<8x384xf32> to vector<8x128xf32>
    %666 = vector.extract_strided_slice %645 {offsets = [0, 256], sizes = [8, 128], strides = [1, 1]} : vector<8x384xf32> to vector<8x128xf32>
    %c1_252 = arith.constant 1 : index
    %c0_253 = arith.constant 0 : index
    %c0_254 = arith.constant 0 : index
    %667 = vector.load %arg5[%c1_252, %c0_253, %c0_254] : memref<2x1x128xf32, #tpu.memory_space<vmem>>, vector<1x1x128xf32>
    %668 = vector.shape_cast %667 : vector<1x1x128xf32> to vector<1x128xf32>
    %669 = vector.broadcast %668 : vector<1x128xf32> to vector<8x128xf32>
    %670 = arith.addf %666, %669 : vector<8x128xf32>
    %671 = arith.mulf %656, %670 : vector<8x128xf32>
    %672 = arith.addf %665, %671 : vector<8x128xf32>
    %673 = math.tanh %672 : vector<8x128xf32>
    %cst_255 = arith.constant 1.000000e+00 : f32
    %674 = vector.broadcast %cst_255 : f32 to vector<8x128xf32>
    %675 = arith.subf %674, %664 : vector<8x128xf32>
    %676 = arith.mulf %675, %673 : vector<8x128xf32>
    %677 = arith.mulf %664, %637 : vector<8x128xf32>
    %678 = arith.addf %676, %677 : vector<8x128xf32>
    %679 = arith.index_cast %c7_i32_243 : i32 to index
    %c0_256 = arith.constant 0 : index
    %c0_257 = arith.constant 0 : index
    %680 = vector.load %arg9[%679, %c0_256, %c0_257] : memref<8x8x128xf32, #tpu.memory_space<vmem>>, vector<1x8x128xf32>
    %681 = vector.shape_cast %680 : vector<1x8x128xf32> to vector<8x128xf32>
    %682 = vector.shape_cast %678 : vector<8x128xf32> to vector<1x8x128xf32>
    tpu.vector_store %arg9[%679, %c0_256, %c0_257], %682 {strides = array<i32>} : memref<8x8x128xf32, #tpu.memory_space<vmem>>, vector<1x8x128xf32>,
    %c8_i32_258 = arith.constant 8 : i32
    %c0_259 = arith.constant 0 : index
    %c0_260 = arith.constant 0 : index
    %c0_261 = arith.constant 0 : index
    %683 = vector.load %arg9[%c0_259, %c0_260, %c0_261] : memref<8x8x128xf32, #tpu.memory_space<vmem>>, vector<8x8x128xf32>
    %684 = vector.shape_cast %683 : vector<8x8x128xf32> to vector<64x128xf32>
    %685 = arith.truncf %684 : vector<64x128xf32> to vector<64x128xbf16>
    %c0_262 = arith.constant 0 : index
    %c0_263 = arith.constant 0 : index
    %c0_264 = arith.constant 0 : index
    %686 = vector.load %arg6[%c0_262, %c0_263, %c0_264] : memref<1x128x128xbf16, #tpu.memory_space<vmem>>, vector<1x128x128xbf16>
    %687 = vector.shape_cast %686 : vector<1x128x128xbf16> to vector<128x128xbf16>
    %cst_265 = arith.constant dense<0.000000e+00> : vector<64x128xf32>
    %688 = tpu.matmul %685, %687, %cst_265 {dimension_numbers = #tpu.dot_dimension_numbers<[1], [0], [0], [1], [0, 0, 1, 1], [], []>} : vector<64x128xbf16>, vector<128x128xbf16>, vector<64x128xf32> -> vector<64x128xf32>
    %c0_266 = arith.constant 0 : index
    %c0_267 = arith.constant 0 : index
    %c0_268 = arith.constant 0 : index
    %689 = vector.load %arg7[%c0_266, %c0_267, %c0_268] : memref<1x1x128xf32, #tpu.memory_space<vmem>>, vector<1x1x128xf32>
    %690 = vector.shape_cast %689 : vector<1x1x128xf32> to vector<1x128xf32>
    %691 = vector.broadcast %690 : vector<1x128xf32> to vector<64x128xf32>
    %692 = arith.addf %688, %691 : vector<64x128xf32>
    %c0_269 = arith.constant 0 : index
    %c0_270 = arith.constant 0 : index
    %c0_271 = arith.constant 0 : index
    %693 = vector.load %arg8[%c0_269, %c0_270, %c0_271] : memref<1x64x128xf32, #tpu.memory_space<vmem>>, vector<1x64x128xf32>
    %694 = vector.shape_cast %693 : vector<1x64x128xf32> to vector<64x128xf32>
    %695 = vector.shape_cast %692 : vector<64x128xf32> to vector<1x64x128xf32>
    tpu.vector_store %arg8[%c0_269, %c0_270, %c0_271], %695 {strides = array<i32>} : memref<1x64x128xf32, #tpu.memory_space<vmem>>, vector<1x64x128xf32>,
    return
  }
  func.func @transform_0(%arg0: i32) -> (i32, i32, i32, i32) {
    %c0_i32 = arith.constant 0 : i32
    %c0_i32_0 = arith.constant 0 : i32
    %c0_i32_1 = arith.constant 0 : i32
    %c0_i32_2 = arith.constant 0 : i32
    return %arg0, %c0_i32, %c0_i32_0, %c0_i32_1 : i32, i32, i32, i32
  }
  func.func @transform_1(%arg0: i32) -> (i32, i32, i32) {
    %c0_i32 = arith.constant 0 : i32
    %c0_i32_0 = arith.constant 0 : i32
    %c0_i32_1 = arith.constant 0 : i32
    return %arg0, %c0_i32, %c0_i32_0 : i32, i32, i32
  }
  func.func @transform_2(%arg0: i32) -> (i32, i32, i32) {
    %c0_i32 = arith.constant 0 : i32
    %c0_i32_0 = arith.constant 0 : i32
    %c0_i32_1 = arith.constant 0 : i32
    return %arg0, %c0_i32, %c0_i32_0 : i32, i32, i32
  }
  func.func @transform_3(%arg0: i32) -> (i32, i32, i32) {
    %c0_i32 = arith.constant 0 : i32
    %c0_i32_0 = arith.constant 0 : i32
    %c0_i32_1 = arith.constant 0 : i32
    return %arg0, %c0_i32, %c0_i32_0 : i32, i32, i32
  }
  func.func @transform_4(%arg0: i32) -> (i32, i32, i32) {
    %c0_i32 = arith.constant 0 : i32
    %c0_i32_0 = arith.constant 0 : i32
    %c0_i32_1 = arith.constant 0 : i32
    return %arg0, %c0_i32, %c0_i32_0 : i32, i32, i32
  }
  func.func @transform_5(%arg0: i32) -> (i32, i32, i32) {
    %c0_i32 = arith.constant 0 : i32
    %c0_i32_0 = arith.constant 0 : i32
    %c0_i32_1 = arith.constant 0 : i32
    return %arg0, %c0_i32, %c0_i32_0 : i32, i32, i32
  }
  func.func @transform_6(%arg0: i32) -> (i32, i32, i32) {
    %c0_i32 = arith.constant 0 : i32
    %c0_i32_0 = arith.constant 0 : i32
    %c0_i32_1 = arith.constant 0 : i32
    return %arg0, %c0_i32, %c0_i32_0 : i32, i32, i32
  }
  func.func @transform_7(%arg0: i32) -> (i32, i32, i32) {
    %c0_i32 = arith.constant 0 : i32
    %c0_i32_0 = arith.constant 0 : i32
    %c0_i32_1 = arith.constant 0 : i32
    return %arg0, %c0_i32, %c0_i32_0 : i32, i32, i32
  }
}

</mosaic_0001>

<bundles_post_ra>
// kernel: tpu_custom_call.1
= control target key start
LH: loop header
LB: loop body
LE: loop exit
PB: predicated region body
PF: predicated region fallthrough
CT: control target
= control target key end

     0   :  { %s10320_s0 = inlined_call_operand.hbm [shape: f32[2,8,8,128], index: 0, kind: input, shape index: {}]   ;;  %s10321_s1 = inlined_call_operand.hbm [shape: bf16[4,128,384], index: 1, kind: input, shape index: {}]   ;;  %s10322_s2 = inlined_call_operand.hbm [shape: bf16[4,128,384], index: 2, kind: input, shape index: {}]   ;;  %s10323_s3 = inlined_call_operand.hbm [shape: f32[4,1,384], index: 3, kind: input, shape index: {}]   ;;  %s10324_s4 = inlined_call_operand.hbm [shape: f32[4,1,128], index: 4, kind: input, shape index: {}]   ;;  %s10325_s5 = inlined_call_operand.hbm [shape: bf16[2,128,128], index: 5, kind: input, shape index: {}]   ;;  %s10326_s6 = inlined_call_operand.vmem [shape: f32[2,1,128], index: 6, kind: input, shape index: {}]   ;;  %s10327_s7 = inlined_call_operand.hbm [shape: f32[2,64,128], index: 7, kind: output, shape index: {}]  }
   0x1   :  { %10341 = sst [smem:[#allocation26_spill]] %s10320_s0 }
   0x2   :  { %10342 = sst [smem:[#allocation27_spill]] %s10321_s1 }
   0x3   :  { %10343 = sst [smem:[#allocation28_spill]] %s10323_s3 }
   0x4   :  { %10344 = sst [smem:[#allocation29_spill]] %s10327_s7 }
   0x5   :  { %12 = vsyncpa [#allocation5], 0 }
   0x6   :  { %14 = vsyncpa [#allocation5 + $0x1], 0 }
   0x7   :  { %15 = vsyncpa [#allocation8], 0 }
   0x8   :  { %17 = vsyncpa [#allocation8 + $0x1], 0 }
   0x9   :  { %18 = vsyncpa [#allocation11], 0 }
   0xa   :  { %20 = vsyncpa [#allocation11 + $0x1], 0 }
   0xb   :  { %21 = vsyncpa [#allocation14], 0 }
   0xc   :  { %23 = vsyncpa [#allocation14 + $0x1], 0 }
   0xd   :  { %24 = vsyncpa [#allocation6], 0 }
   0xe   :  { %26 = vsyncpa [#allocation6 + $0x1], 0  ;;  %s8692_s24 = smov 0   ;;  %s8694_s25 = smov 0  }
   0xf   :  { %s8696_s26 = smov 0   ;;  %s8698_s27 = smov 0  }
  0x10 LB: > { %10345 = sst [smem:[#allocation21_spill]] %s8625_s24  ;;  %s8713_s28 = sadd.s32 4294967295, %s8637_s27   ;;  %s8637_s27 = sphi %s8698_s27, %s10371_s27   ;;  %s8633_s26 = sphi %s8696_s26, %s10373_s26   ;;  %s8629_s25 = sphi %s8694_s25, %s10375_s25   ;;  %s8625_s24 = sphi %s8692_s24, %s10374_s24  }
  0x11   : > { %10346 = sst [smem:[#allocation22_spill]] %s8633_s26  ;;  %s5541_s29 = sadd.s32 4294967294, %s8637_s27  }
  0x12   : > { %s8717_s30 = sadd.s32 1, %s8637_s27   ;;  %s39_s8 = sadd.s32 1, %s8633_s26 }
  0x13   : > { %10347 = sst [smem:[#allocation23_spill]] %s8717_s30  ;;  %s36_s9 = ssub.s32 %s8637_s27, %s8717_s30 }
  0x14   : > { %p46_p0 = scmp.ne.s32.totalorder %s8633_s26, %s8629_s25  ;;  %p37_p1 = scmp.eq.s32.totalorder %s36_s9, 0 }
  0x15   : > { %p47_p2 = scmp.eq.s32.totalorder %s8637_s27, 0  ;;  %p52_p3 = scmp.ne.s32.totalorder %s8629_s25, %s8625_s24 }
  0x16   : > { %p53_p4 = scmp.eq.s32.totalorder %s8713_s28, 0  ;;  %p232_p7 = scmp.eq.s32.totalorder %s8713_s28, 1 }
  0x17   : > { %s8729_s10 = scalar_select %p37_p1, %s8633_s26, %s39_s8  }
  0x18   : > { %p48_p5 = por %p47_p2, %p46_p0  ;;  %p8731_p6 = por %p53_p4, %p52_p3 }
  0x19   : > { %10348 = sst [smem:[#allocation24_spill]] %s8729_s10  ;;  %p238_p8 = scmp.eq.s32.totalorder %s5541_s29, 1 }
  0x1a   : > { %p5543_p9 = scmp.ge.s32.totalorder %s8637_s27, 2  ;;  %p8155_p10 = scmp.lt.s32.totalorder %s8637_s27, 2 }
  0x1b   : > { %p8738_p11 = por %p232_p7, %p46_p0  ;;  %p8742_p12 = por %p238_p8, %p52_p3 }
  0x1c   : > { %s8747_s14 = sand.u32 1, %s8633_s26   ;;  %p8749_p13 = pnand %p8155_p10, %p48_p5 }
  0x1d   : > { %s10351_s13 = scalar_select %p8742_p12, 1, 0 }
  0x1e   : > { %s10330_s16 = sand.u32 1, %s8637_s27   ;;  %s10328_s17 = smul.u32 384, %s8747_s14 }
  0x1f   : > { %10352 = sst [smem:[#allocation25_spill]] %s10351_s13  ;;  %s10329_s18 = smul.u32 384, %s8637_s27 }
  0x20   : > { %s284_s19 = scalar_lea.vmem [#allocation7], %s10328_s17  ;;  %s10354_s1 = sld [smem:[#allocation27_spill]] }
  0x21   : > { %s293_s20 = sshll.u32 %s284_s19, 4  ;;  %p5560_p0 = scmp.ge.s32.totalorder %s8637_s27, 1  ;;  %s294_s20 = int_to_ptr.vmem [resolvable:$true] %s293_s20 }
  0x22   : > { %s8766_s8 = scalar_lea.sflag [#allocation8], %s10330_s16  ;;  %p8770_p2 = pneg %p8749_p13 }
  0x26   : > { %s290_s23 = scalar_lea.hbm %s10354_s1, %s10329_s18  ;;  %s8386_s22 = scalar_lea.hbm %s10354_s1, 768 }
  0x27   : > { %s291_s29 = sshll.u32 %s290_s23, 4  ;;  %s292_s29 = int_to_ptr.hbm [resolvable:$true] %s291_s29 }
  0x28   : > { %s8379_s9 = sshra.s32 %s292_s29, 4  ;;  %s8380_s9 = int_to_ptr.hbm [resolvable:$true] %s8379_s9 }
  0x29   : > { %s8381_s10 = scalar_lea.hbm %s8380_s9, 384  ;;  %p8387_p5 = scmp.lt.s32.totalorder %s8380_s9, %s10354_s1 }
  0x2a   : > { %p8382_p1 = scmp.ne.s32.totalorder %s8380_s9, %s8381_s10  ;;  %p8388_p7 = scmp.lt.s32.totalorder %s8386_s22, %s8381_s10 }
  0x2c   : > { %p8384_p3 = pnand %p8770_p2, %p8382_p1  ;;  %p8389_p8 = por %p8388_p7, %p8387_p5 }
  0x2e   : > { %p8385_p4 = pneg %p8384_p3 }
  0x30   : > { %p8390_p10 = pnand %p8389_p8, %p8385_p4 }
  0x32   : > { %8393 = shalt.err (!%p8390_p10)
}
  0x33   : > { %s10335_s16 = smov 192   ;;  %s10336_s26 = smov 12  }
  0x34   : > { %8138 = dma.hbm_to_vmem [thread:$0]  (!%p8749_p13), %s292_s29, 6144, %s294_s20, %s8766_s8, %s10335_s16, %s10335_s16, %s10336_s26  }
  0x35   : > { %p395_p1 = scmp.lt.s32.totalorder %s8637_s27, 3  ;;  %s8114_s10 = smul.u32 6, %s8747_s14 }
  0x36   : > { %s8115_s9 = smul.u32 6, %s8637_s27  ;;  %s10357_s3 = sld [smem:[#allocation28_spill]] }
  0x37   : > { %p8792_p3 = pnand %p5560_p0, %p395_p1  ;;  %s330_s23 = scalar_lea.vmem [#allocation10], %s8114_s10 }
  0x38   : > { %s338_s1 = sshll.u32 %s330_s23, 4  ;;  %s10358_s13 = sand.u32 1, %s8637_s27   ;;  %s339_s1 = int_to_ptr.vmem [resolvable:$true] %s338_s1 }
  0x39   : > { %s8802_s20 = scalar_lea.sflag [#allocation11], %s10358_s13 }
  0x3c   : > { %s335_s22 = scalar_lea.hbm %s10357_s3, %s8115_s9  ;;  %s8416_s19 = scalar_lea.hbm %s10357_s3, 12 }
  0x3d   : > { %s336_s30 = sshll.u32 %s335_s22, 4  ;;  %s337_s30 = int_to_ptr.hbm [resolvable:$true] %s336_s30 }
  0x3e   : > { %s8409_s29 = sshra.s32 %s337_s30, 4  ;;  %s8410_s29 = int_to_ptr.hbm [resolvable:$true] %s8409_s29 }
  0x3f   : > { %s8411_s16 = scalar_lea.hbm %s8410_s29, 6  ;;  %p8417_p7 = scmp.lt.s32.totalorder %s8410_s29, %s10357_s3 }
  0x40   : > { %p8412_p0 = scmp.ne.s32.totalorder %s8410_s29, %s8411_s16  ;;  %p8418_p8 = scmp.lt.s32.totalorder %s8416_s19, %s8411_s16 }
  0x42   : > { %p8414_p4 = pnand %p8412_p0, %p8770_p2  ;;  %p8419_p10 = por %p8418_p8, %p8417_p7 }
  0x44   : > { %p8415_p5 = pneg %p8414_p4 }
  0x46   : > { %p8420_p1 = pnand %p8419_p10, %p8415_p5 }
  0x48   : > { %8423 = shalt.err (!%p8420_p1)
}
  0x49   : > { %s8641_s13 = smov 48   ;;  %s8642_s21 = smov 3  }
  0x4a   : > { %8144 = dma.hbm_to_vmem [thread:$0]  (!%p8749_p13), %s337_s30, 96, %s339_s1, %s8802_s20, %s8641_s13, %s8641_s13, %s8642_s21  }
  0x4b   : > { %s10339_s24 = sshll.u32 %s8747_s14, 6  ;;  %s10340_s26 = sshll.u32 %s8637_s27, 6 }
  0x4c   : > { %s10359_s0 = sld [smem:[#allocation26_spill]]  ;;  %s262_s19 = scalar_lea.vmem [#allocation4], %s10339_s24 }
  0x4d   : > { %s270_s9 = sshll.u32 %s262_s19, 4  ;;  %s259_s10 = scalar_lea.sflag [#allocation5], %s8747_s14  ;;  %s271_s9 = int_to_ptr.vmem [resolvable:$true] %s270_s9 }
  0x52   : > { %s267_s23 = scalar_lea.hbm %s10359_s0, %s10340_s26  ;;  %s8446_s13 = scalar_lea.hbm %s10359_s0, 128 }
  0x53   : > { %s268_s29 = sshll.u32 %s267_s23, 4  ;;  %s269_s29 = int_to_ptr.hbm [resolvable:$true] %s268_s29 }
  0x54   : > { %s8439_s3 = sshra.s32 %s269_s29, 4  ;;  %s8440_s3 = int_to_ptr.hbm [resolvable:$true] %s8439_s3 }
  0x55   : > { %s8441_s7 = scalar_lea.hbm %s8440_s3, 64  ;;  %p8447_p7 = scmp.lt.s32.totalorder %s8440_s3, %s10359_s0 }
  0x56   : > { %p8442_p0 = scmp.ne.s32.totalorder %s8440_s3, %s8441_s7  ;;  %p8448_p8 = scmp.lt.s32.totalorder %s8446_s13, %s8441_s7 }
  0x58   : > { %p8444_p4 = pnand %p8442_p0, %p8770_p2  ;;  %p8449_p10 = por %p8448_p8, %p8447_p7 }
  0x5a   : > { %p8445_p5 = pneg %p8444_p4 }
  0x5c   : > { %p8450_p1 = pnand %p8449_p10, %p8445_p5 }
  0x5e   : > { %8453 = shalt.err (!%p8450_p1)
}
  0x5f   : > { %s8643_s16 = smov 128   ;;  %s8644_s23 = smov 8  }
  0x60   : > { %8135 = dma.hbm_to_vmem [thread:$0]  (!%p8749_p13), %s269_s29, 1024, %s271_s9, %s259_s10, %s8643_s16, %s8643_s16, %s8644_s23  }
  0x61   : > { %s10360_s19 = smul.u32 384, %s8637_s27  ;;  %s8476_s9 = scalar_lea.hbm %s10322_s2, 768 }
  0x62   : > { %s10361_s21 = smul.u32 384, %s8747_s14 }
  0x63   : > { %s313_s30 = scalar_lea.hbm %s10322_s2, %s10360_s19 }
  0x64   : > { %s314_s26 = sshll.u32 %s313_s30, 4  ;;  %s307_s3 = scalar_lea.vmem [#allocation9], %s10361_s21  ;;  %s315_s26 = int_to_ptr.hbm [resolvable:$true] %s314_s26 }
  0x65   : > { %s316_s7 = sshll.u32 %s307_s3, 4  ;;  %s8469_s13 = sshra.s32 %s315_s26, 4  ;;  %s317_s7 = int_to_ptr.vmem [resolvable:$true] %s316_s7  ;;  %s8470_s13 = int_to_ptr.hbm [resolvable:$true] %s8469_s13 }
  0x66   : > { %s8471_s22 = scalar_lea.hbm %s8470_s13, 384  ;;  %p8477_p7 = scmp.lt.s32.totalorder %s8470_s13, %s10322_s2 }
  0x67   : > { %p8472_p0 = scmp.ne.s32.totalorder %s8470_s13, %s8471_s22  ;;  %p8478_p8 = scmp.lt.s32.totalorder %s8476_s9, %s8471_s22 }
  0x69   : > { %p8474_p4 = pnand %p8472_p0, %p8770_p2  ;;  %p8479_p10 = por %p8478_p8, %p8477_p7 }
  0x6b   : > { %p8475_p5 = pneg %p8474_p4 }
  0x6d   : > { %p8480_p1 = pnand %p8479_p10, %p8475_p5 }
  0x6f   : > { %8483 = shalt.err (!%p8480_p1)
}
  0x70   : > { %s10362_s16 = smov 12   ;;  %s10363_s23 = smov 192  }
  0x71   : > { %8141 = dma.hbm_to_vmem [thread:$0]  (!%p8749_p13), %s315_s26, 6144, %s317_s7, %s8766_s8, %s10363_s23, %s10363_s23, %s10362_s16  }
  0x72   : > { %s5555_s0 = sshll.u32 %s8747_s14, 1  ;;  %s5556_s19 = sshll.u32 %s8637_s27, 1 }
  0x73   : > { %s356_s21 = scalar_lea.hbm %s10324_s4, %s5556_s19  ;;  %s352_s13 = scalar_lea.vmem [#allocation12], %s5555_s0 }
  0x74   : > { %s357_s3 = sshll.u32 %s356_s21, 4  ;;  %s359_s22 = sshll.u32 %s352_s13, 4  ;;  %s358_s3 = int_to_ptr.hbm [resolvable:$true] %s357_s3  ;;  %s360_s22 = int_to_ptr.vmem [resolvable:$true] %s359_s22 }
  0x75   : > { %s8499_s29 = sshra.s32 %s358_s3, 4  ;;  %s8506_s26 = scalar_lea.hbm %s10324_s4, 4  ;;  %s8500_s29 = int_to_ptr.hbm [resolvable:$true] %s8499_s29 }
  0x76   : > { %s8501_s9 = scalar_lea.hbm %s8500_s29, 2  ;;  %p8507_p7 = scmp.lt.s32.totalorder %s8500_s29, %s10324_s4 }
  0x77   : > { %p8502_p0 = scmp.ne.s32.totalorder %s8500_s29, %s8501_s9  ;;  %p8508_p8 = scmp.lt.s32.totalorder %s8506_s26, %s8501_s9 }
  0x79   : > { %p8504_p4 = pnand %p8502_p0, %p8770_p2  ;;  %p8509_p10 = por %p8508_p8, %p8507_p7 }
  0x7b   : > { %p8505_p5 = pneg %p8504_p4 }
  0x7d   : > { %p8510_p1 = pnand %p8509_p10, %p8505_p5 }
  0x7f   : > { %8513 = shalt.err (!%p8510_p1)
}
  0x80   : > { %s8645_s16 = smov 16   ;;  %s8646_s23 = smov 1  }
  0x81   : > { %8147 = dma.hbm_to_vmem [thread:$0]  (!%p8749_p13), %s358_s3, 32, %s360_s22, %s8802_s20, %s8645_s16, %s8645_s16, %s8646_s23  }
  0x82   : > { %s10364_s0 = sshll.u32 %s8637_s27, 6  ;;  %s10365_s21 = sshll.u32 %s8747_s14, 6 }
  0x83   : > { %s378_s30 = scalar_lea.hbm %s10325_s5, %s10364_s0  ;;  %s373_s13 = scalar_lea.vmem [#allocation13], %s10365_s21 }
  0x84   : > { %s381_s29 = sshll.u32 %s373_s13, 4  ;;  %s379_s9 = sshll.u32 %s378_s30, 4  ;;  %s382_s29 = int_to_ptr.vmem [resolvable:$true] %s381_s29  ;;  %s380_s9 = int_to_ptr.hbm [resolvable:$true] %s379_s9 }
  0x85   : > { %s370_s10 = scalar_lea.sflag [#allocation14], %s8747_s14  ;;  %s8529_s8 = sshra.s32 %s380_s9, 4  ;;  %s8530_s8 = int_to_ptr.hbm [resolvable:$true] %s8529_s8 }
  0x86   : > { %s8531_s26 = scalar_lea.hbm %s8530_s8, 64  ;;  %s8536_s22 = scalar_lea.hbm %s10325_s5, 128 }
  0x87   : > { %p8532_p0 = scmp.ne.s32.totalorder %s8530_s8, %s8531_s26  ;;  %p8537_p7 = scmp.lt.s32.totalorder %s8530_s8, %s10325_s5 }
  0x88   : > { %p8538_p8 = scmp.lt.s32.totalorder %s8536_s22, %s8531_s26 }
  0x89   : > { %p8534_p4 = pnand %p8532_p0, %p8770_p2 }
  0x8a   : > { %p8539_p10 = por %p8538_p8, %p8537_p7 }
  0x8b   : > { %p8535_p5 = pneg %p8534_p4 }
  0x8d   : > { %p8540_p1 = pnand %p8539_p10, %p8535_p5 }
  0x8f   : > { %8543 = shalt.err (!%p8540_p1)
}
  0x90   : > { %s8647_s14 = smov 64   ;;  %s8648_s16 = smov 4  }
  0x91   : > { %8150 = dma.hbm_to_vmem [thread:$0]  (!%p8749_p13), %s380_s9, 1024, %s382_s29, %s370_s10, %s8647_s14, %s8647_s14, %s8648_s16  }
  0x92   : > { %399 = sbr.rel (%p8792_p3) target bundleno = 3171 (0xc63), region = 48  ;;  %s8893_s17 = sand.u32 (!%p8792_p3), 1, %s8629_s25  }
  0x93   : > { %s8896_s23 = sshll.u32 (!%p8792_p3), %s8893_s17, 6  ;;  %s402_s0 = scalar_lea.sflag (!%p8792_p3), [#allocation5], %s8893_s17 }
  0x94   : > { %s8900_s19 = scalar_lea.vmem (!%p8792_p3), [#allocation4], %s8896_s23 }
  0x97   : > { %8604 = dma.done.wait (%p8731_p6), %s402_s0, 1024  }
  0x98   : > { %8606 = vsyncadd (%p8731_p6), %s402_s0, 4294966272  ;;  %s411_s15 = sand.u32 1, %s8713_s28   ;;  %s8116_s18 = smul.u32 384, %s8893_s17 }
  0x99   : > { %s412_s1 = scalar_lea.sflag [#allocation8], %s411_s15 }
  0x9a   : > { %s8908_s30 = scalar_lea.vmem [#allocation7], %s8116_s18 }
  0x9b   : > { %8608 = dma.done.wait (%p8731_p6), %s412_s1, 12288  }
  0x9c   : > { %8610 = vsyncadd (%p8731_p6), %s412_s1, 4294955008  ;;  %s8117_s21 = smul.u32 6, %s8893_s17  ;;  %s8915_s13 = scalar_lea.vmem [#allocation9], %s8116_s18 }
  0x9d   : > { %s432_s29 = scalar_lea.sflag [#allocation11], %s411_s15 }
  0x9e   : > { %s8917_s9 = scalar_lea.vmem [#allocation10], %s8117_s21 }
  0x9f   : > { %8612 = dma.done.wait (%p8731_p6), %s432_s29, 128  }
  0xa0   : > { %8614 = vsyncadd (%p8731_p6), %s432_s29, 4294967168  ;;  %s5562_s10 = sshll.u32 %s8893_s17, 1  ;;  %s452_s26 = scalar_lea.sflag [#allocation14], %s8893_s17 }
  0xa1   : > { %s8924_s8 = scalar_lea.vmem [#allocation12], %s5562_s10  ;;  %s8928_s20 = scalar_lea.vmem [#allocation13], %s8896_s23 }
  0xa2   : > { %8616 = dma.done.wait (%p8731_p6), %s452_s26, 1024  }
  0xa3   : > { %8618 = vsyncadd (%p8731_p6), %s452_s26, 4294966272  ;;  %v5651_v0 = vld [vmem:[%s8908_s30 + $0xa8] sm:$0xf]  ;;  %v7683_v1 = vld [vmem:[%s8908_s30 + $0xb0] sm:$0xf0]  ;;  %p519_p6 = scmp.lt.s32.totalorder %s8713_s28, 1 }
  0xa4   : > { %v5747_v2 = vld [vmem:[%s8915_s13 + $0xa8] sm:$0xf]  ;;  %v5652_v3 = vor.u32 %v7683_v1, %v5651_v0  ;;  %v7707_v4 = vld [vmem:[%s8915_s13 + $0xb0] sm:$0xf0]  ;;  %v5639_v5 = vld [vmem:[%s8908_s30 + $0x90] sm:$0xf] }
  0xa5   : > { %v7680_v6 = vld [vmem:[%s8908_s30 + $0x98] sm:$0xf0]  ;;  %v5748_v7 = vor.u32 %v7707_v4, %v5747_v2  ;;  %v5735_v8 = vld [vmem:[%s8915_s13 + $0x90] sm:$0xf]  ;;  %v5627_v12 = vld [vmem:[%s8908_s30 + $0x78] sm:$0xf] }
  0xa6   : > { %v7704_v9 = vld [vmem:[%s8915_s13 + $0x98] sm:$0xf0]  ;;  %703 = vmatpush.bf16.msra.mxu1 %v5652_v3  ;;  %8102 = vmatpush.bf16.msra.mxu2 %v5652_v3  ;;  %v5640_v10 = vor.u32 %v7680_v6, %v5639_v5  ;;  %v7677_v13 = vld [vmem:[%s8908_s30 + $0x80] sm:$0xf0]  ;;  %v5723_v14 = vld [vmem:[%s8915_s13 + $0x78] sm:$0xf] }
  0xa7   : > { %974 = vmatpush.bf16.msra.mxu3 %v5748_v7  ;;  %v5736_v11 = vor.u32 %v7704_v9, %v5735_v8  ;;  %v7701_v15 = vld [vmem:[%s8915_s13 + $0x80] sm:$0xf0]  ;;  %v5628_v16 = vor.u32 %v7677_v13, %v5627_v12  ;;  %v5615_v18 = vld [vmem:[%s8908_s30 + $0x60] sm:$0xf]  ;;  %v7674_v19 = vld [vmem:[%s8908_s30 + $0x68] sm:$0xf0] }
  0xa8   : > { %v5724_v17 = vor.u32 %v7701_v15, %v5723_v14  ;;  %v5711_v20 = vld [vmem:[%s8915_s13 + $0x60] sm:$0xf]  ;;  %v7698_v21 = vld [vmem:[%s8915_s13 + $0x68] sm:$0xf0]  ;;  %v5616_v22 = vor.u32 %v7674_v19, %v5615_v18  ;;  %v5603_v24 = vld [vmem:[%s8908_s30 + $0x48] sm:$0xf] }
  0xa9   : > { %v5712_v23 = vor.u32 %v7698_v21, %v5711_v20  ;;  %v7671_v25 = vld [vmem:[%s8908_s30 + $0x50] sm:$0xf0]  ;;  %v5699_v26 = vld [vmem:[%s8915_s13 + $0x48] sm:$0xf]  ;;  %v5755_v28 = vld [vmem:[%s8915_s13 + $0xb0] sm:$0xf] }
  0xaa   : > { %704 = vmatpush.bf16.msra.mxu1 %v5640_v10  ;;  %8103 = vmatpush.bf16.msra.mxu2 %v5640_v10  ;;  %v7695_v27 = vld [vmem:[%s8915_s13 + $0x50] sm:$0xf0]  ;;  %v5604_v29 = vor.u32 %v7671_v25, %v5603_v24  ;;  %v7708_v30 = vld [vmem:[%s8915_s13 + $0xb8] sm:$0xf0]  ;;  %v5591_v32 = vld [vmem:[%s8908_s30 + $0x30] sm:$0xf] }
  0xab   : > { %975 = vmatpush.bf16.msra.mxu3 %v5736_v11  ;;  %v5700_v31 = vor.u32 %v7695_v27, %v5699_v26  ;;  %v7668_v33 = vld [vmem:[%s8908_s30 + $0x38] sm:$0xf0]  ;;  %v5687_v34 = vld [vmem:[%s8915_s13 + $0x30] sm:$0xf]  ;;  %v5756_v35 = vor.u32 %v7708_v30, %v5755_v28  ;;  %v5743_v37 = vld [vmem:[%s8915_s13 + $0x98] sm:$0xf] }
  0xac   : > { %v7692_v36 = vld [vmem:[%s8915_s13 + $0x38] sm:$0xf0]  ;;  %v7705_v38 = vld [vmem:[%s8915_s13 + $0xa0] sm:$0xf0]  ;;  %v5592_v40 = vor.u32 %v7668_v33, %v5591_v32  ;;  %v5579_v41 = vld [vmem:[%s8908_s30 + $0x18] sm:$0xf] }
  0xad   : > { %1000 = vmatpush.bf16.msra.mxu0 %v5756_v35  ;;  %v5744_v39 = vor.u32 %v7705_v38, %v5743_v37  ;;  %v5688_v42 = vor.u32 %v7692_v36, %v5687_v34  ;;  %v7665_v43 = vld [vmem:[%s8908_s30 + $0x20] sm:$0xf0]  ;;  %v5731_v44 = vld [vmem:[%s8915_s13 + $0x80] sm:$0xf]  ;;  %v7702_v45 = vld [vmem:[%s8915_s13 + $0x88] sm:$0xf0] }
  0xae   : > { %705 = vmatpush.bf16.msra.mxu1 %v5628_v16  ;;  %8104 = vmatpush.bf16.msra.mxu2 %v5628_v16  ;;  %v5675_v46 = vld [vmem:[%s8915_s13 + $0x18] sm:$0xf]  ;;  %v7689_v47 = vld [vmem:[%s8915_s13 + $0x20] sm:$0xf0]  ;;  %v5567_v48 = vld [vmem:[%s8908_s30] sm:$0xf]  ;;  %v5732_v49 = vor.u32 %v7702_v45, %v5731_v44  ;;  %v5580_v50 = vor.u32 %v7665_v43, %v5579_v41 }
  0xaf   : > { %976 = vmatpush.bf16.msra.mxu3 %v5724_v17  ;;  %v7662_v51 = vld [vmem:[%s8908_s30 + $0x8] sm:$0xf0]  ;;  %v5719_v52 = vld [vmem:[%s8915_s13 + $0x68] sm:$0xf]  ;;  %v7699_v53 = vld [vmem:[%s8915_s13 + $0x70] sm:$0xf0]  ;;  %v5676_v54 = vor.u32 %v7689_v47, %v5675_v46 }
  0xb0   : > { %v5663_v55 = vld [vmem:[%s8915_s13] sm:$0xf]  ;;  %v7686_v56 = vld [vmem:[%s8915_s13 + $0x8] sm:$0xf0]  ;;  %v5749_v58 = vld [vmem:[%s8915_s13 + $0xb4] sm:$0xf0]  ;;  %v5720_v0 = vor.u32 %v7699_v53, %v5719_v52  ;;  %v5568_v1 = vor.u32 %v7662_v51, %v5567_v48 }
  0xb1   : > { %1001 = vmatpush.bf16.msra.mxu0 %v5744_v39  ;;  %v7706_v57 = vld [vmem:[%s8915_s13 + $0xac] sm:$0xf]  ;;  %v5653_v60 = vld [vmem:[%s8908_s30 + $0xb4] sm:$0xf0]  ;;  %v523_v61 = vld [vmem:[%s8900_s19] sm:$0xff]  ;;  %v5664_v5 = vor.u32 %v7686_v56, %v5663_v55  ;;  %v8649_v32 = vmov 0  }
  0xb2   : > { %706 = vmatpush.bf16.msra.mxu1 %v5616_v22  ;;  %8105 = vmatpush.bf16.msra.mxu2 %v5616_v22  ;;  %v7682_v59 = vld [vmem:[%s8908_s30 + $0xac] sm:$0xf]  ;;  %v5659_v62 = vld [vmem:[%s8908_s30 + $0xb0] sm:$0xf]  ;;  %v7684_v63 = vld [vmem:[%s8908_s30 + $0xb8] sm:$0xf0]  ;;  %v5752_v9 = vor.u32 %v7706_v57, %v5749_v58 }
  0xb3   : > { %977 = vmatpush.bf16.msra.mxu3 %v5712_v23  ;;  %v524_v2 = vld [vmem:[%s8900_s19 + $0x8] sm:$0xff]  ;;  %v527_v3 = vld [vmem:[%s8900_s19 + $0x20] sm:$0xff]  ;;  %v5656_v6 = vor.u32 %v7682_v59, %v5653_v60  ;;  %v5707_v7 = vld [vmem:[%s8915_s13 + $0x50] sm:$0xf]  ;;  %v5660_v10 = vor.u32 %v7684_v63, %v5659_v62  ;;  %s10176_s11 = scalar_select %p519_p6, %s8713_s28, 1 }
  0xb4   : > { %v528_v4 = vld [vmem:[%s8900_s19 + $0x28] sm:$0xff]  ;;  %v7696_v8 = vld [vmem:[%s8915_s13 + $0x58] sm:$0xf0]  ;;  %v7703_v11 = vld [vmem:[%s8915_s13 + $0x94] sm:$0xf]  ;;  %v8989_v14 = vpack.c.bf16 %v524_v2, %v523_v61  ;;  %s10247_s16 = scalar_lea.vmem [#allocation15], %s8896_s23 }
  0xb5   : > { %1002 = vmatpush.bf16.msra.mxu0 %v5732_v49  ;;  %v7679_v12 = vld [vmem:[%s8908_s30 + $0x94] sm:$0xf]  ;;  %v5641_v13 = vld [vmem:[%s8908_s30 + $0x9c] sm:$0xf0]  ;;  %v8991_v15 = vpack.c.bf16 %v528_v4, %v527_v3  ;;  %v5647_v17 = vld [vmem:[%s8908_s30 + $0x98] sm:$0xf]  ;;  %v5708_v19 = vor.u32 %v7696_v8, %v5707_v7  ;;  %s521_s7 = scalar_lea.vmem %s10326_s6, %s10176_s11 }
  0xb6   : > { %707 = vmatpush.bf16.msra.mxu1 %v5604_v29  ;;  %8106 = vmatpush.bf16.msra.mxu2 %v5604_v29  ;;  %v5737_v16 = vld [vmem:[%s8915_s13 + $0x9c] sm:$0xf0]  ;;  %v7681_v18 = vld [vmem:[%s8908_s30 + $0xa0] sm:$0xf0]  ;;  %v5644_v20 = vor.u32 %v7679_v12, %v5641_v13  ;;  %v7700_v21 = vld [vmem:[%s8915_s13 + $0x7c] sm:$0xf] }
  0xb7   : > { %978 = vmatpush.bf16.msra.mxu3 %v5700_v31  ;;  %v5695_v22 = vld [vmem:[%s8915_s13 + $0x38] sm:$0xf]  ;;  %v7693_v23 = vld [vmem:[%s8915_s13 + $0x40] sm:$0xf0]  ;;  %v5740_v24 = vor.u32 %v7703_v11, %v5737_v16  ;;  %v5648_v25 = vor.u32 %v7681_v18, %v5647_v17  ;;  %v5725_v26 = vld [vmem:[%s8915_s13 + $0x84] sm:$0xf0] }
  0xb8   : > { %v7676_v27 = vld [vmem:[%s8908_s30 + $0x7c] sm:$0xf]  ;;  %v5629_v28 = vld [vmem:[%s8908_s30 + $0x84] sm:$0xf0]  ;;  %v5635_v29 = vld [vmem:[%s8908_s30 + $0x80] sm:$0xf]  ;;  %v5696_v35 = vor.u32 %v7693_v23, %v5695_v22 }
  0xb9   : > { %1003 = vmatpush.bf16.msra.mxu0 %v5720_v0  ;;  %v7678_v30 = vld [vmem:[%s8908_s30 + $0x88] sm:$0xf0]  ;;  %v5683_v31 = vld [vmem:[%s8915_s13 + $0x20] sm:$0xf]  ;;  %v7673_v33 = vld [vmem:[%s8908_s30 + $0x64] sm:$0xf]  ;;  %v5632_v37 = vor.u32 %v7676_v27, %v5629_v28 }
  0xba   : > { %708 = vmatpush.bf16.msra.mxu1 %v5592_v40  ;;  %8107 = vmatpush.bf16.msra.mxu2 %v5592_v40  ;;  %v5617_v34 = vld [vmem:[%s8908_s30 + $0x6c] sm:$0xf0]  ;;  %v7690_v36 = vld [vmem:[%s8915_s13 + $0x28] sm:$0xf0]  ;;  %v7697_v38 = vld [vmem:[%s8915_s13 + $0x64] sm:$0xf]  ;;  %v5636_v43 = vor.u32 %v7678_v30, %v5635_v29 }
  0xbb   : > { %979 = vmatpush.bf16.msra.mxu3 %v5688_v42  ;;  %v5713_v39 = vld [vmem:[%s8915_s13 + $0x6c] sm:$0xf0]  ;;  %v5623_v40 = vld [vmem:[%s8908_s30 + $0x68] sm:$0xf]  ;;  %v7675_v41 = vld [vmem:[%s8908_s30 + $0x70] sm:$0xf0]  ;;  %v5728_v42 = vor.u32 %v7700_v21, %v5725_v26  ;;  %v5684_v45 = vor.u32 %v7690_v36, %v5683_v31  ;;  %v5620_v46 = vor.u32 %v7673_v33, %v5617_v34 }
  0xbc   : > { %v5671_v44 = vld [vmem:[%s8915_s13 + $0x8] sm:$0xf]  ;;  %v7694_v47 = vld [vmem:[%s8915_s13 + $0x4c] sm:$0xf]  ;;  %v7687_v48 = vld [vmem:[%s8915_s13 + $0x10] sm:$0xf0]  ;;  %v5716_v49 = vor.u32 %v7697_v38, %v5713_v39 }
  0xbd   : > { %1004 = vmatpush.bf16.msra.mxu0 %v5708_v19  ;;  %v5701_v51 = vld [vmem:[%s8915_s13 + $0x54] sm:$0xf0]  ;;  %v7670_v52 = vld [vmem:[%s8908_s30 + $0x4c] sm:$0xf]  ;;  %v5611_v55 = vld [vmem:[%s8908_s30 + $0x50] sm:$0xf]  ;;  %v5672_v60 = vor.u32 %v7687_v48, %v5671_v44 }
  0xbe   : > { %709 = vmatpush.bf16.msra.mxu1 %v5580_v50  ;;  %8108 = vmatpush.bf16.msra.mxu2 %v5580_v50  ;;  %v5624_v50 = vor.u32 %v7675_v41, %v5623_v40  ;;  %v5605_v53 = vld [vmem:[%s8908_s30 + $0x54] sm:$0xf0]  ;;  %v7672_v56 = vld [vmem:[%s8908_s30 + $0x58] sm:$0xf0]  ;;  %v529_v58 = vld [vmem:[%s8900_s19 + $0x30] sm:$0xff]  ;;  %v5704_v62 = vor.u32 %v7694_v47, %v5701_v51  ;;  %s8101_s23 = sshll.u32 %s8713_s28, 6 }
  0xbf   : > { %980 = vmatpush.bf16.msra.mxu3 %v5676_v54  ;;  %v525_v54 = vld [vmem:[%s8900_s19 + $0x10] sm:$0xff]  ;;  %v526_v57 = vld [vmem:[%s8900_s19 + $0x18] sm:$0xff]  ;;  %v5608_v61 = vor.u32 %v7670_v52, %v5605_v53  ;;  %v5612_v63 = vor.u32 %v7672_v56, %v5611_v55  ;;  %v5593_v2 = vld [vmem:[%s8908_s30 + $0x3c] sm:$0xf0]  ;;  %s10368_s15 = sld [smem:[#allocation29_spill]]  ;;  %s5347_s1 = sshll.u32 %s10247_s16, 4  ;;  %s5348_s1 = int_to_ptr.vmem [resolvable:$true] %s5347_s1 }
  0xc0   : > { %v530_v59 = vld [vmem:[%s8900_s19 + $0x38] sm:$0xff]  ;;  %v7691_v0 = vld [vmem:[%s8915_s13 + $0x34] sm:$0xf]  ;;  %v532_v3 = vpack.c.bf16 %v526_v57, %v525_v54  ;;  %v7669_v7 = vld [vmem:[%s8908_s30 + $0x40] sm:$0xf0]  ;;  %s5335_s21 = scalar_lea.sflag [#allocation6], %s8893_s17 }
  0xc1   : > { %1005 = vmatpush.bf16.msra.mxu0 %v5696_v35  ;;  %v534_v4 = vpack.c.bf16 %v530_v59, %v529_v58  ;;  %v7688_v11 = vld [vmem:[%s8915_s13 + $0x1c] sm:$0xf]  ;;  %v5581_v13 = vld [vmem:[%s8908_s30 + $0x24] sm:$0xf0]  ;;  %v5587_v17 = vld [vmem:[%s8908_s30 + $0x20] sm:$0xf] }
  0xc2   : > { %710 = vmatpush.bf16.msra.mxu1 %v5568_v1  ;;  %8109 = vmatpush.bf16.msra.mxu2 %v5568_v1  ;;  %v7667_v1 = vld [vmem:[%s8908_s30 + $0x34] sm:$0xf]  ;;  %v7664_v12 = vld [vmem:[%s8908_s30 + $0x1c] sm:$0xf]  ;;  %v5677_v16 = vld [vmem:[%s8915_s13 + $0x24] sm:$0xf0] }
  0xc3   : > { %981 = vmatpush.bf16.msra.mxu3 %v5664_v5  ;;  %v5689_v5 = vld [vmem:[%s8915_s13 + $0x3c] sm:$0xf0]  ;;  %v5596_v8 = vor.u32 %v7667_v1, %v5593_v2  ;;  %v7666_v18 = vld [vmem:[%s8908_s30 + $0x28] sm:$0xf0]  ;;  %v5584_v19 = vor.u32 %v7664_v12, %v5581_v13  ;;  %v7685_v22 = vld [vmem:[%s8915_s13 + $0x4] sm:$0xf] }
  0xc4   : > { %v5588_v21 = vor.u32 %v7666_v18, %v5587_v17  ;;  %v7661_v23 = vld [vmem:[%s8908_s30 + $0x4] sm:$0xf]  ;;  %v5575_v26 = vld [vmem:[%s8908_s30 + $0x8] sm:$0xf]  ;;  %v7663_v27 = vld [vmem:[%s8908_s30 + $0x10] sm:$0xf0] }
  0xc5   : > { %711 = vmatmul.bf16.vlgmr.msra.gmra.mxu1 %v8989_v14  ;;  %721 = vmatmul.bf16.vlgmr.msra.gmra.mxu2 %v8991_v15  ;;  %v5576_v30 = vor.u32 %v7663_v27, %v5575_v26  ;;  %v5845_v31 = vld [vmem:[%s8915_s13 + $0xa8] sm:$0xf]  ;;  %v7731_v33 = vld [vmem:[%s8915_s13 + $0xb0] sm:$0xf0]  ;;  %v7730_v34 = vld [vmem:[%s8915_s13 + $0xac] sm:$0xf]  ;;  %s5346_s18 = scalar_lea.hbm %s10368_s15, %s8101_s23 }
  0xc6   : > { %732 = vmatpush.bf16.msrb.mxu1 %v5656_v6  ;;  %761 = vmatpush.bf16.msrb.mxu2 %v5660_v10  ;;  %v5599_v6 = vld [vmem:[%s8908_s30 + $0x38] sm:$0xf]  ;;  %v5846_v35 = vor.u32 %v7731_v33, %v5845_v31  ;;  %v7727_v39 = vld [vmem:[%s8915_s13 + $0x94] sm:$0xf]  ;;  %v5835_v40 = vld [vmem:[%s8915_s13 + $0x9c] sm:$0xf0] }
  0xc7   : > { %987 = vmatpush.bf16.msrb.mxu3 %v5752_v9  ;;  %1006 = vmatpush.bf16.msra.mxu0 %v5684_v45  ;;  %v5692_v9 = vor.u32 %v7691_v0, %v5689_v5  ;;  %v5600_v10 = vor.u32 %v7669_v7, %v5599_v6  ;;  %v5847_v36 = vld [vmem:[%s8915_s13 + $0xb4] sm:$0xf0]  ;;  %v7724_v44 = vld [vmem:[%s8915_s13 + $0x7c] sm:$0xf]  ;;  %v5823_v45 = vld [vmem:[%s8915_s13 + $0x84] sm:$0xf0] }
  0xc8   : > { %982 = vmatmul.bf16.vlgmr.msra.gmra.mxu3 %v8649_v32  ;;  %v5850_v38 = vor.u32 %v7730_v34, %v5847_v36  ;;  %v5826_v47 = vor.u32 %v7724_v44, %v5823_v45  ;;  %v9064_v48 = vld [vmem:[%s8917_s9] sm:$0x7]  ;;  %v7722_v54 = vld [vmem:[%s8915_s13 + $0x68] sm:$0xf0]  ;;  %v5841_v0 = vld [vmem:[%s8915_s13 + $0x98] sm:$0xf] }
  0xc9   : > { %v5809_v53 = vld [vmem:[%s8915_s13 + $0x60] sm:$0xf]  ;;  %v7729_v1 = vld [vmem:[%s8915_s13 + $0xa0] sm:$0xf0]  ;;  %v5811_v17 = vld [vmem:[%s8915_s13 + $0x6c] sm:$0xf0] }
  0xca   : > { %733 = vmatpush.bf16.msrb.mxu1 %v5644_v20  ;;  %762 = vmatpush.bf16.msrb.mxu2 %v5648_v25  ;;  %v5680_v20 = vor.u32 %v7688_v11, %v5677_v16  ;;  %v5665_v25 = vld [vmem:[%s8915_s13 + $0xc] sm:$0xf0]  ;;  %v5810_v57 = vor.u32 %v7722_v54, %v5809_v53  ;;  %v7721_v13 = vld [vmem:[%s8915_s13 + $0x64] sm:$0xf]  ;;  %v5817_v18 = vld [vmem:[%s8915_s13 + $0x68] sm:$0xf] }
  0xcb   : > { %988 = vmatpush.bf16.msrb.mxu3 %v5740_v24  ;;  %1007 = vmatpush.bf16.msra.mxu0 %v5672_v60  ;;  %v5569_v24 = vld [vmem:[%s8908_s30 + $0xc] sm:$0xf0]  ;;  %v5668_v29 = vor.u32 %v7685_v22, %v5665_v25  ;;  %v7719_v25 = vld [vmem:[%s8915_s13 + $0x50] sm:$0xf0]  ;;  %v7718_v26 = vld [vmem:[%s8915_s13 + $0x4c] sm:$0xf] }
  0xcc   : > { %v5572_v28 = vor.u32 %v7661_v23, %v5569_v24  ;;  %v5853_v60 = vld [vmem:[%s8915_s13 + $0xb0] sm:$0xf]  ;;  %v5797_v24 = vld [vmem:[%s8915_s13 + $0x48] sm:$0xf]  ;;  %v7720_v31 = vld [vmem:[%s8915_s13 + $0x58] sm:$0xf0] }
  0xcd   : > { %v9111_v36 = vperm.slane %v9064_v48, 1  ;;  %v5775_v54 = vld [vmem:[%s8915_s13 + $0x24] sm:$0xf0]  ;;  %s8579_s10 = scalar_lea.hbm %s10368_s15, 128 }
  0xce   : > { %734 = vmatpush.bf16.msrb.mxu1 %v5632_v37  ;;  %763 = vmatpush.bf16.msrb.mxu2 %v5636_v43  ;;  %v5833_v37 = vld [vmem:[%s8915_s13 + $0x90] sm:$0xf]  ;;  %v7725_v43 = vld [vmem:[%s8915_s13 + $0x80] sm:$0xf0] }
  0xcf   : > { %989 = vmatpush.bf16.msrb.mxu3 %v5728_v42  ;;  %1008 = vmatmul.bf16.vlgmr.msra.gmra.mxu0 %v8649_v32  ;;  %v5821_v42 = vld [vmem:[%s8915_s13 + $0x78] sm:$0xf] }
  0xd2   : > { %735 = vmatpush.bf16.msrb.mxu1 %v5620_v46  ;;  %764 = vmatpush.bf16.msrb.mxu2 %v5624_v50  ;;  %v5822_v46 = vor.u32 %v7725_v43, %v5821_v42  ;;  %v9067_v50 = vperm.slane %v9064_v48, 0  ;;  %v5793_v42 = vld [vmem:[%s8915_s13 + $0x38] sm:$0xf]  ;;  %v7717_v43 = vld [vmem:[%s8915_s13 + $0x40] sm:$0xf0] }
  0xd3   : > { %990 = vmatpush.bf16.msrb.mxu3 %v5716_v49 }
  0xd5   : > { %716 = vmatmul.bf16.gmra.mxu1 %v532_v3  ;;  %726 = vmatmul.bf16.gmra.mxu2 %v534_v4 }
  0xd6   : > { %736 = vmatpush.bf16.msrb.mxu1 %v5608_v61  ;;  %765 = vmatpush.bf16.msrb.mxu2 %v5612_v63  ;;  %v7732_v61 = vld [vmem:[%s8915_s13 + $0xb8] sm:$0xf0] }
  0xd7   : > { %991 = vmatpush.bf16.msrb.mxu3 %v5704_v62  ;;  %v5854_v63 = vor.u32 %v7732_v61, %v5853_v60 }
  0xda   : > { %737 = vmatpush.bf16.msrb.mxu1 %v5596_v8  ;;  %766 = vmatpush.bf16.msrb.mxu2 %v5600_v10  ;;  %v5829_v8 = vld [vmem:[%s8915_s13 + $0x80] sm:$0xf] }
  0xdb   : > { %992 = vmatpush.bf16.msrb.mxu3 %v5692_v9  ;;  %v7726_v9 = vld [vmem:[%s8915_s13 + $0x88] sm:$0xf0] }
  0xdc   : > { %v5830_v11 = vor.u32 %v7726_v9, %v5829_v8  ;;  %v5763_v8 = vld [vmem:[%s8915_s13 + $0xc] sm:$0xf0]  ;;  %v5769_v9 = vld [vmem:[%s8915_s13 + $0x8] sm:$0xf] }
  0xde   : > { %738 = vmatpush.bf16.msrb.mxu1 %v5584_v19  ;;  %767 = vmatpush.bf16.msrb.mxu2 %v5588_v21  ;;  %v7723_v19 = vld [vmem:[%s8915_s13 + $0x70] sm:$0xf0]  ;;  %v5814_v21 = vor.u32 %v7721_v13, %v5811_v17 }
  0xdf   : > { %993 = vmatpush.bf16.msrb.mxu3 %v5680_v20  ;;  %v5818_v23 = vor.u32 %v7723_v19, %v5817_v18 }
  0xe2   : > { %739 = vmatpush.bf16.msrb.mxu1 %v5572_v28  ;;  %768 = vmatpush.bf16.msrb.mxu2 %v5576_v30  ;;  %v5798_v28 = vor.u32 %v7719_v25, %v5797_v24  ;;  %v5805_v30 = vld [vmem:[%s8915_s13 + $0x50] sm:$0xf] }
  0xe3   : > { %994 = vmatpush.bf16.msrb.mxu3 %v5668_v29  ;;  %v5799_v29 = vld [vmem:[%s8915_s13 + $0x54] sm:$0xf0]  ;;  %v5806_v34 = vor.u32 %v7720_v31, %v5805_v30 }
  0xe4   : > { %v5802_v33 = vor.u32 %v7718_v26, %v5799_v29 }
  0xe5   : > { %740 = vmatmul.bf16.vlgmr.msrb.gmra.mxu1 %v8989_v14  ;;  %769 = vmatmul.bf16.vlgmr.msrb.gmra.mxu2 %v8989_v14  ;;  %v7728_v14 = vld [vmem:[%s8915_s13 + $0x98] sm:$0xf0] }
  0xe6   : > { %995 = vmatmul.bf16.vlgmr.msrb.gmra.mxu3 %v8649_v32  ;;  %1230 = vmatpush.bf16.msra.mxu1 %v5846_v35  ;;  %v5834_v41 = vor.u32 %v7728_v14, %v5833_v37  ;;  %v5785_v37 = vld [vmem:[%s8915_s13 + $0x30] sm:$0xf]  ;;  %v7716_v14 = vld [vmem:[%s8915_s13 + $0x38] sm:$0xf0] }
  0xe7   : > { %1243 = vmatpush.bf16.msra.mxu2 %v5850_v38  ;;  %1256 = vmatpush.bf16.msra.mxu3 %v5854_v63 }
  0xea   : > { %1231 = vmatpush.bf16.msra.mxu1 %v5834_v41  ;;  %v5787_v41 = vld [vmem:[%s8915_s13 + $0x3c] sm:$0xf0] }
  0xee   : > { %1232 = vmatpush.bf16.msra.mxu1 %v5822_v46  ;;  %v5794_v46 = vor.u32 %v7717_v43, %v5793_v42 }
  0xf2   : > { %1233 = vmatpush.bf16.msra.mxu1 %v5810_v57  ;;  %v7714_v57 = vld [vmem:[%s8915_s13 + $0x28] sm:$0xf0] }
  0xf5   : > { %745 = vmatmul.bf16.gmra.mxu1 %v532_v3  ;;  %774 = vmatmul.bf16.gmra.mxu2 %v532_v3  ;;  %v5842_v3 = vor.u32 %v7729_v1, %v5841_v0  ;;  %v5761_v0 = vld [vmem:[%s8915_s13] sm:$0xf]  ;;  %v7710_v1 = vld [vmem:[%s8915_s13 + $0x8] sm:$0xf0] }
  0xf6   : > { %1234 = vmatpush.bf16.msra.mxu1 %v5798_v28 }
  0xf7   : > { %1257 = vmatpush.bf16.msra.mxu3 %v5842_v3  ;;  %v7709_v3 = vld [vmem:[%s8915_s13 + $0x4] sm:$0xf] }
  0xf8   : > { %v5766_v13 = vor.u32 %v7709_v3, %v5763_v8 }
  0xfb   : > { %1258 = vmatpush.bf16.msra.mxu3 %v5830_v11 }
  0xff   : > { %1259 = vmatpush.bf16.msra.mxu3 %v5818_v23 }
 0x103   : > { %1260 = vmatpush.bf16.msra.mxu3 %v5806_v34 }
 0x105   : > { %750 = vmatmul.bf16.gmra.mxu1 %v8991_v15  ;;  %779 = vmatmul.bf16.gmra.mxu2 %v8991_v15  ;;  %v5838_v15 = vor.u32 %v7727_v39, %v5835_v40  ;;  %v5786_v39 = vor.u32 %v7716_v14, %v5785_v37  ;;  %v7715_v40 = vld [vmem:[%s8915_s13 + $0x34] sm:$0xf] }
 0x107   : > { %1244 = vmatpush.bf16.msra.mxu2 %v5838_v15  ;;  %v5790_v15 = vor.u32 %v7715_v40, %v5787_v41  ;;  %1235 = vmatpush.bf16.msra.mxu1 %v5786_v39 }
 0x108   : > { %1261 = vmatpush.bf16.msra.mxu3 %v5794_v46 }
 0x10b   : > { %1245 = vmatpush.bf16.msra.mxu2 %v5826_v47 }
 0x10f   : > { %1246 = vmatpush.bf16.msra.mxu2 %v5814_v21 }
 0x113   : > { %1247 = vmatpush.bf16.msra.mxu2 %v5802_v33  ;;  %v9152_v33 = vperm.slane %v9064_v48, 2 }
 0x115   : > { %755 = vmatmul.bf16.gmra.mxu1 %v534_v4  ;;  %784 = vmatmul.bf16.gmra.mxu2 %v534_v4 }
 0x117   : > { %1248 = vmatpush.bf16.msra.mxu2 %v5790_v15 }
 0x142   : > { %v712_v49 = vpop.f32.mrf.mxu1 }
 0x143   : > { %v713_v51 = vadd.f32 %v712_v49, %v9067_v50  ;;  %v5773_v49 = vld [vmem:[%s8915_s13 + $0x18] sm:$0xf] }
 0x148   : > { %v722_v52 = vpop.f32.mrf.mxu2 }
 0x149   : > { %v9073_v55 = vadd.f32 %v722_v52, %v9067_v50  ;;  %v7712_v52 = vld [vmem:[%s8915_s13 + $0x1c] sm:$0xf] }
 0x14a   : > { %v9075_v59 = vpop.f32.mrf.mxu1 }
 0x14b   : > { %v983_v56 = vpop.f32.mrf.mxu3 }
 0x14c   : > { %v1016_v58 = vadd.f32 %v983_v56, %v713_v51  ;;  %v9086_v7 = vpop.f32.mrf.mxu0  ;;  %v7713_v51 = vld [vmem:[%s8915_s13 + $0x20] sm:$0xf0]  ;;  %v5781_v56 = vld [vmem:[%s8915_s13 + $0x20] sm:$0xf] }
 0x14d   : > { %v5774_v53 = vor.u32 %v7713_v51, %v5773_v49  ;;  %v5782_v60 = vor.u32 %v7714_v57, %v5781_v56 }
 0x14e   : > { %v5757_v62 = vmul.f32 -1.442695, %v1016_v58  ;;  %v5778_v58 = vor.u32 %v7712_v52, %v5775_v54 }
 0x14f   : > { %1236 = vmatpush.bf16.msra.mxu1 %v5774_v53  ;;  %1262 = vmatpush.bf16.msra.mxu3 %v5782_v60 }
 0x150   : > { %8219 = vpow2.f32 %v5757_v62  ;;  %v9081_v2 = vpop.f32.mrf.mxu2  ;;  %1249 = vmatpush.bf16.msra.mxu2 %v5778_v58 }
 0x152   : > { %v717_v5 = vpop.f32.mrf.mxu1 }
 0x153   : > { %v985_v4 = vpop.f32.mrf.mxu3  ;;  %v9084_v6 = vadd.f32 %v717_v5, %v9067_v50  ;;  %v5762_v5 = vor.u32 %v7710_v1, %v5761_v0 }
 0x154   : > { %v1011_v27 = vpop.f32.mrf.mxu0  ;;  %1250 = vmatpush.bf16.msra.mxu2 %v5766_v13  ;;  %v7754_v13 = vld [vmem:[%s8915_s13 + $0xac] sm:$0xf] }
 0x155   : > { %1237 = vmatpush.bf16.msra.mxu1 %v5762_v5  ;;  %v8202_v27 = vld [vmem:[%s8924_s8] ss:$0 sm:$0xff] }
 0x156   : > { %v8220_v10 = vpop.eup %8219  ;;  %v1060_v37 = vadd.f32 %v8202_v27, %v9086_v7  ;;  %v7752_v27 = vld [vmem:[%s8915_s13 + $0x98] sm:$0xf0] }
 0x157   : > { %v9090_v12 = vadd.f32 1.0, %v8220_v10  ;;  %v7711_v10 = vld [vmem:[%s8915_s13 + $0x10] sm:$0xf0] }
 0x158   : > { %v727_v16 = vpop.f32.mrf.mxu2 }
 0x159   : > { %8221 = vrcp.f32 %v9090_v12  ;;  %v9098_v20 = vadd.f32 %v727_v16, %v9067_v50  ;;  %v5770_v16 = vor.u32 %v7711_v10, %v5769_v9  ;;  %v1032_v25 = vand.u32 2147483648, %v9090_v12  ;;  %v5943_v10 = vld [vmem:[%s8915_s13 + $0xa8] sm:$0xf] }
 0x15a   : > { %v9100_v22 = vpop.f32.mrf.mxu1  ;;  %vm1026_vm1 = vweird.f32 %v9090_v12  ;;  %v1030_v26 = vand.u32 2147483647, %v9090_v12 }
 0x15b   : > { %1263 = vmatpush.bf16.msra.mxu3 %v5770_v16  ;;  %v1033_v34 = vor.u32 1.1754944e-38, %v1032_v25 }
 0x15c   : > { %vm1031_vm3 = vcmp.eq.f32.partialorder %v1030_v26, 8.507059e+37  ;;  %v5931_v26 = vld [vmem:[%s8915_s13 + $0x90] sm:$0xf] }
 0x15f   : > { %v9108_v35 = vpop.eup %8221 }
 0x160   : > { %v9115_v38 = vpop.f32.mrf.mxu2  ;;  %v1022_v45 = vmul.f32 %v9108_v35, %v9090_v12  ;;  %vm1027_vm0 = vweird.f32 %v9108_v35 }
 0x161   : > { %vm1028_vm2 = vmor %vm1026_vm1, %vm1027_vm0 }
 0x162   : > { %v741_v44 = vpop.f32.mrf.mxu1  ;;  %v1023_v61 = vsub.f32 1.0, %v1022_v45 }
 0x163   : > { %v742_v47 = vadd.f32 %v741_v44, %v9111_v36 }
 0x164   : > { %v1024_v18 = vmul.f32 %v9108_v35, %v1023_v61 }
 0x166   : > { %v1025_v21 = vadd.f32 %v9108_v35, %v1024_v18  ;;  %v5945_v18 = vld [vmem:[%s8915_s13 + $0xb4] sm:$0xf0] }
 0x168   : > { %v770_v4 = vpop.f32.mrf.mxu2  ;;  %v1029_v31 = vsel %vm1028_vm2, %v9108_v35, %v1025_v21  ;;  %v7756_v21 = vld [vmem:[%s8915_s13 + $0xb8] sm:$0xf0] }
 0x169   : > { %v996_v62 = vpop.f32.mrf.mxu3  ;;  %v1034_v14 = vsel %vm1031_vm3, %v1033_v34, %v1029_v31  ;;  %v771_v12 = vadd.f32 %v770_v4, %v9152_v33  ;;  %v5933_v31 = vld [vmem:[%s8915_s13 + $0x9c] sm:$0xf0]  ;;  %v5939_v34 = vld [vmem:[%s8915_s13 + $0x98] sm:$0xf] }
 0x16a   : > { %v1036_v63 = vadd.f32 %v996_v62, %v742_v47  ;;  %v9136_v17 = vpop.f32.mrf.mxu1  ;;  %v1061_v15 = vmul.f32 %v1060_v37, %v1034_v14  ;;  %v7753_v37 = vld [vmem:[%s8915_s13 + $0xa0] sm:$0xf0] }
 0x16c   : > { %v5758_v11 = vmul.f32 -1.442695, %v1036_v63  ;;  %v1062_v43 = vadd.f32 %v1061_v15, %v771_v12  ;;  %v5940_v12 = vor.u32 %v7753_v37, %v5939_v34  ;;  %v7748_v15 = vld [vmem:[%s8915_s13 + $0x7c] sm:$0xf]  ;;  %v5885_v34 = vld [vmem:[%s8915_s13 + $0x3c] sm:$0xf0] }
 0x16d   : > { %v5891_v37 = vld [vmem:[%s8915_s13 + $0x38] sm:$0xf] }
 0x16e   : > { %8223 = vpow2.f32 %v5758_v11  ;;  %v7755_v11 = vld [vmem:[%s8915_s13 + $0xb0] sm:$0xf0] }
 0x16f   : > { %v5944_v16 = vor.u32 %v7755_v11, %v5943_v10  ;;  %v7743_v10 = vld [vmem:[%s8915_s13 + $0x50] sm:$0xf0]  ;;  %v7742_v11 = vld [vmem:[%s8915_s13 + $0x4c] sm:$0xf] }
 0x170   : > { %v9141_v23 = vpop.f32.mrf.mxu2 }
 0x171   : > { %v998_v19 = vpop.f32.mrf.mxu3  ;;  %1488 = vmatpush.bf16.msrb.mxu0 %v5944_v16 }
 0x172   : > { %v746_v29 = vpop.f32.mrf.mxu1  ;;  %v5951_v19 = vld [vmem:[%s8915_s13 + $0xb0] sm:$0xf] }
 0x173   : > { %v9148_v30 = vadd.f32 %v746_v29, %v9111_v36  ;;  %v5952_v25 = vor.u32 %v7756_v21, %v5951_v19  ;;  %v5932_v29 = vor.u32 %v7752_v27, %v5931_v26  ;;  %v5903_v19 = vld [vmem:[%s8915_s13 + $0x50] sm:$0xf]  ;;  %v7744_v21 = vld [vmem:[%s8915_s13 + $0x58] sm:$0xf0] }
 0x174   : > { %v8224_v24 = vpop.eup %8223  ;;  %v5883_v27 = vld [vmem:[%s8915_s13 + $0x30] sm:$0xf] }
 0x175   : > { %v1040_v28 = vadd.f32 1.0, %v8224_v24  ;;  %v5948_v24 = vor.u32 %v7754_v13, %v5945_v18  ;;  %1514 = vmatpush.bf16.msrb.mxu2 %v5952_v25  ;;  %1489 = vmatpush.bf16.msrb.mxu0 %v5932_v29  ;;  %v5897_v18 = vld [vmem:[%s8915_s13 + $0x54] sm:$0xf0] }
 0x176   : > { %v5900_v25 = vor.u32 %v7742_v11, %v5897_v18 }
 0x177   : > { %8225 = vrcp.f32 %v1040_v28  ;;  %v1052_v48 = vand.u32 2147483648, %v1040_v28  ;;  %v1050_v46 = vand.u32 2147483647, %v1040_v28  ;;  %vm1046_vm5 = vweird.f32 %v1040_v28  ;;  %1501 = vmatpush.bf16.msrb.mxu1 %v5948_v24 }
 0x178   : > { %v775_v39 = vpop.f32.mrf.mxu2  ;;  %8227 = vtanh.f32 %v1062_v43 }
 0x179   : > { %v9157_v40 = vadd.f32 %v775_v39, %v9152_v33  ;;  %v1053_v49 = vor.u32 1.1754944e-38, %v1052_v48  ;;  %vm1051_vm7 = vcmp.eq.f32.partialorder %v1050_v46, 8.507059e+37  ;;  %1515 = vmatpush.bf16.msrb.mxu2 %v5940_v12  ;;  %v5919_v39 = vld [vmem:[%s8915_s13 + $0x78] sm:$0xf]  ;;  %v5927_v48 = vld [vmem:[%s8915_s13 + $0x80] sm:$0xf] }
 0x17a   : > { %v9159_v42 = vpop.f32.mrf.mxu1 }
 0x17d   : > { %v8226_v41 = vpop.eup %8225 }
 0x17e   : > { %v1042_v35 = vmul.f32 %v8226_v41, %v1040_v28  ;;  %vm1047_vm4 = vweird.f32 %v8226_v41  ;;  %v8228_v57 = vpop.eup %8227  ;;  %v7751_v28 = vld [vmem:[%s8915_s13 + $0x94] sm:$0xf] }
 0x17f   : > { %vm1048_vm6 = vmor %vm1046_vm5, %vm1047_vm4  ;;  %v5936_v14 = vor.u32 %v7751_v28, %v5933_v31  ;;  %v7740_v28 = vld [vmem:[%s8915_s13 + $0x38] sm:$0xf0]  ;;  %v7739_v31 = vld [vmem:[%s8915_s13 + $0x34] sm:$0xf] }
 0x180   : > { %v1043_v44 = vsub.f32 1.0, %v1042_v35  ;;  %v9161_v7 = vpop.f32.mrf.mxu2  ;;  %v5884_v29 = vor.u32 %v7740_v28, %v5883_v27  ;;  %v5888_v12 = vor.u32 %v7739_v31, %v5885_v34 }
 0x181   : > { %1502 = vmatpush.bf16.msrb.mxu1 %v5936_v14  ;;  %v744_v14 = vadd.f32 %v9136_v17, %v9111_v36 }
 0x182   : > { %v1044_v45 = vmul.f32 %v8226_v41, %v1043_v44  ;;  %v751_v51 = vpop.f32.mrf.mxu1  ;;  %v5921_v44 = vld [vmem:[%s8915_s13 + $0x84] sm:$0xf0] }
 0x183   : > { %v9164_v53 = vadd.f32 %v751_v51, %v9111_v36  ;;  %v5924_v46 = vor.u32 %v7748_v15, %v5921_v44  ;;  %v7746_v51 = vld [vmem:[%s8915_s13 + $0x68] sm:$0xf0]  ;;  %v7737_v15 = vld [vmem:[%s8915_s13 + $0x20] sm:$0xf0] }
 0x184   : > { %v1045_v47 = vadd.f32 %v8226_v41, %v1044_v45  ;;  %v7750_v45 = vld [vmem:[%s8915_s13 + $0x88] sm:$0xf0] }
 0x185   : > { %1503 = vmatpush.bf16.msrb.mxu1 %v5924_v46  ;;  %v5873_v46 = vld [vmem:[%s8915_s13 + $0x24] sm:$0xf0] }
 0x186   : > { %v1049_v52 = vsel %vm1048_vm6, %v8226_v41, %v1045_v47  ;;  %v7749_v41 = vld [vmem:[%s8915_s13 + $0x80] sm:$0xf0]  ;;  %v5928_v47 = vor.u32 %v7750_v45, %v5927_v48  ;;  %v7736_v45 = vld [vmem:[%s8915_s13 + $0x1c] sm:$0xf] }
 0x187   : > { %v1054_v54 = vsel %vm1051_vm7, %v1053_v49, %v1049_v52  ;;  %v5920_v43 = vor.u32 %v7749_v41, %v5919_v39  ;;  %v5907_v49 = vld [vmem:[%s8915_s13 + $0x60] sm:$0xf]  ;;  %v7745_v52 = vld [vmem:[%s8915_s13 + $0x64] sm:$0xf]  ;;  %v5871_v41 = vld [vmem:[%s8915_s13 + $0x18] sm:$0xf] }
 0x188   : > { %v1064_v56 = vsub.f32 1.0, %v1054_v54  ;;  %v1066_v60 = vmul.f32 0.0, %v1054_v54  ;;  %v780_v61 = vpop.f32.mrf.mxu2  ;;  %1516 = vmatpush.bf16.msrb.mxu2 %v5928_v47  ;;  %v5908_v54 = vor.u32 %v7746_v51, %v5907_v49  ;;  %v7741_v39 = vld [vmem:[%s8915_s13 + $0x40] sm:$0xf0]  ;;  %v5872_v48 = vor.u32 %v7737_v15, %v5871_v41  ;;  %v5879_v47 = vld [vmem:[%s8915_s13 + $0x20] sm:$0xf] }
 0x189   : > { %v9169_v63 = vadd.f32 %v780_v61, %v9152_v33  ;;  %1490 = vmatpush.bf16.msrb.mxu0 %v5920_v43  ;;  %v5892_v44 = vor.u32 %v7741_v39, %v5891_v37  ;;  %v5876_v51 = vor.u32 %v7736_v45, %v5873_v46  ;;  %v8203_v37 = vld [vmem:[%s8924_s8] ss:$0 sm:$0xff] }
 0x18a   : > { %v1065_v58 = vmul.f32 %v8228_v57, %v1064_v56  ;;  %v9171_v0 = vpop.f32.mrf.mxu1  ;;  %v5909_v56 = vld [vmem:[%s8915_s13 + $0x6c] sm:$0xf0]  ;;  %v5915_v57 = vld [vmem:[%s8915_s13 + $0x68] sm:$0xf] }
 0x18c   : > { %v9166_v62 = vadd.f32 %v1066_v60, %v1065_v58  ;;  %v7747_v58 = vld [vmem:[%s8915_s13 + $0x70] sm:$0xf0]  ;;  %v5912_v60 = vor.u32 %v7745_v52, %v5909_v56  ;;  %v7738_v52 = vld [vmem:[%s8915_s13 + $0x28] sm:$0xf0] }
 0x18d   : > { %v5916_v61 = vor.u32 %v7747_v58, %v5915_v57  ;;  %1491 = vmatpush.bf16.msrb.mxu0 %v5908_v54  ;;  %v5859_v54 = vld [vmem:[%s8915_s13] sm:$0xf]  ;;  %v7734_v56 = vld [vmem:[%s8915_s13 + $0x8] sm:$0xf0]  ;;  %v5880_v58 = vor.u32 %v7738_v52, %v5879_v47 }
 0x18e   : > { %v1069_v1 = vpack.c.bf16 %v9166_v62, %v9166_v62  ;;  %1504 = vmatpush.bf16.msrb.mxu1 %v5912_v60  ;;  %v7733_v60 = vld [vmem:[%s8915_s13 + $0x4] sm:$0xf]  ;;  %v5860_v11 = vor.u32 %v7734_v56, %v5859_v54 }
 0x18f   : > { %1517 = vmatpush.bf16.msrb.mxu2 %v5916_v61  ;;  %v5861_v61 = vld [vmem:[%s8915_s13 + $0xc] sm:$0xf0] }
 0x190   : > { %1238 = vmatmul.bf16.vlgmr.msra.gmra.mxu1 %v1069_v1  ;;  %1251 = vmatmul.bf16.vlgmr.msra.gmra.mxu2 %v1069_v1  ;;  %v9175_v3 = vpop.f32.mrf.mxu2 }
 0x191   : > { %1264 = vmatmul.bf16.vlgmr.msra.gmra.mxu3 %v1069_v1 }
 0x192   : > { %v756_v4 = vpop.f32.mrf.mxu1  ;;  %1505 = vmatpush.bf16.msrb.mxu1 %v5900_v25 }
 0x193   : > { %v9178_v5 = vadd.f32 %v756_v4, %v9111_v36  ;;  %v715_v4 = vadd.f32 %v9075_v59, %v9067_v50  ;;  %v5904_v59 = vor.u32 %v7744_v21, %v5903_v19 }
 0x195   : > { %1518 = vmatpush.bf16.msrb.mxu2 %v5904_v59 }
 0x196   : > { %1506 = vmatpush.bf16.msrb.mxu1 %v5888_v12 }
 0x198   : > { %v785_v8 = vpop.f32.mrf.mxu2 }
 0x199   : > { %v9181_v9 = vadd.f32 %v785_v8, %v9152_v33  ;;  %v5895_v8 = vld [vmem:[%s8915_s13 + $0x48] sm:$0xf]  ;;  %1519 = vmatpush.bf16.msrb.mxu2 %v5892_v44 }
 0x19a   : > { %v9198_v35 = vpop.f32.mrf.mxu1  ;;  %v5896_v16 = vor.u32 %v7743_v10, %v5895_v8  ;;  %v5867_v8 = vld [vmem:[%s8915_s13 + $0x8] sm:$0xf]  ;;  %v7735_v10 = vld [vmem:[%s8915_s13 + $0x10] sm:$0xf0]  ;;  %1507 = vmatpush.bf16.msrb.mxu1 %v5876_v51 }
 0x19b   : > { %v5868_v19 = vor.u32 %v7735_v10, %v5867_v8  ;;  %v6041_v10 = vld [vmem:[%s8915_s13 + $0xa8] sm:$0xf] }
 0x19c   : > { %1492 = vmatpush.bf16.msrb.mxu0 %v5896_v16  ;;  %v5864_v16 = vor.u32 %v7733_v60, %v5861_v61 }
 0x19d   : > { %1520 = vmatpush.bf16.msrb.mxu2 %v5880_v58 }
 0x19e   : > { %1508 = vmatpush.bf16.msrb.mxu1 %v5864_v16 }
 0x1a0   : > { %v9209_v1 = vpop.f32.mrf.mxu2  ;;  %1493 = vmatpush.bf16.msrb.mxu0 %v5884_v29 }
 0x1a1   : > { %1521 = vmatpush.bf16.msrb.mxu2 %v5868_v19  ;;  %v6049_v19 = vld [vmem:[%s8915_s13 + $0xb0] sm:$0xf] }
 0x1a4   : > { %1494 = vmatpush.bf16.msrb.mxu0 %v5872_v48  ;;  %v773_v48 = vadd.f32 %v9141_v23, %v9152_v33 }
 0x1a8   : > { %1495 = vmatpush.bf16.msrb.mxu0 %v5860_v11  ;;  %v7779_v11 = vld [vmem:[%s8915_s13 + $0xb0] sm:$0xf0] }
 0x1a9   : > { %v6042_v16 = vor.u32 %v7779_v11, %v6041_v10 }
 0x1ab   : > { %1746 = vmatpush.bf16.msrb.mxu3 %v6042_v16  ;;  %v6001_v16 = vld [vmem:[%s8915_s13 + $0x50] sm:$0xf] }
 0x20d   : > { %v1239_v13 = vpop.f32.mrf.mxu1 }
 0x20e   : > { %v1273_v24 = vadd.f32 %v1239_v13, %v715_v4 }
 0x210   : > { %v5855_v26 = vmul.f32 -1.442695, %v1273_v24 }
 0x212   : > { %8229 = vpow2.f32 %v5855_v26 }
 0x213   : > { %v1252_v43 = vpop.f32.mrf.mxu2 }
 0x214   : > { %v1293_v17 = vadd.f32 %v1252_v43, %v744_v14  ;;  %v1265_v49 = vpop.f32.mrf.mxu3 }
 0x215   : > { %v1241_v57 = vpop.f32.mrf.mxu1  ;;  %v1317_v44 = vadd.f32 %v8203_v37, %v1265_v49 }
 0x216   : > { %v5856_v4 = vmul.f32 -1.442695, %v1293_v17 }
 0x218   : > { %v8230_v13 = vpop.eup %8229  ;;  %8231 = vpow2.f32 %v5856_v4 }
 0x219   : > { %v1277_v18 = vadd.f32 1.0, %v8230_v13  ;;  %v7778_v13 = vld [vmem:[%s8915_s13 + $0xac] sm:$0xf] }
 0x21b   : > { %8233 = vrcp.f32 %v1277_v18  ;;  %v1254_v21 = vpop.f32.mrf.mxu2  ;;  %v1289_v29 = vand.u32 2147483648, %v1277_v18  ;;  %v1287_v34 = vand.u32 2147483647, %v1277_v18  ;;  %vm1283_vm9 = vweird.f32 %v1277_v18 }
 0x21c   : > { %v1267_v24 = vpop.f32.mrf.mxu3  ;;  %v7780_v21 = vld [vmem:[%s8915_s13 + $0xb8] sm:$0xf0] }
 0x21d   : > { %v1290_v41 = vor.u32 1.1754944e-38, %v1289_v29  ;;  %vm1288_vm11 = vcmp.eq.f32.partialorder %v1287_v34, 8.507059e+37  ;;  %v6031_v29 = vld [vmem:[%s8915_s13 + $0x9c] sm:$0xf0]  ;;  %v7777_v34 = vld [vmem:[%s8915_s13 + $0xa0] sm:$0xf0] }
 0x21e   : > { %v8232_v25 = vpop.eup %8231 }
 0x21f   : > { %v1297_v59 = vadd.f32 1.0, %v8232_v25  ;;  %v6050_v25 = vor.u32 %v7780_v21, %v6049_v19 }
 0x221   : > { %v8234_v26 = vpop.eup %8233  ;;  %8235 = vrcp.f32 %v1297_v59  ;;  %v1309_v47 = vand.u32 2147483648, %v1297_v59  ;;  %v1307_v51 = vand.u32 2147483647, %v1297_v59  ;;  %vm1303_vm13 = vweird.f32 %v1297_v59  ;;  %1772 = vmatpush.bf16.msra.mxu1 %v6050_v25 }
 0x222   : > { %v1279_v27 = vmul.f32 %v8234_v26, %v1277_v18  ;;  %vm1284_vm8 = vweird.f32 %v8234_v26  ;;  %v6043_v18 = vld [vmem:[%s8915_s13 + $0xb4] sm:$0xf0] }
 0x223   : > { %vm1285_vm10 = vmor %vm1283_vm9, %vm1284_vm8  ;;  %v1310_v57 = vor.u32 1.1754944e-38, %v1309_v47  ;;  %vm1308_vm15 = vcmp.eq.f32.partialorder %v1307_v51, 8.507059e+37  ;;  %v6046_v24 = vor.u32 %v7778_v13, %v6043_v18  ;;  %v6005_v47 = vld [vmem:[%s8915_s13 + $0x60] sm:$0xf]  ;;  %v7769_v51 = vld [vmem:[%s8915_s13 + $0x64] sm:$0xf] }
 0x224   : > { %v1280_v28 = vsub.f32 1.0, %v1279_v27  ;;  %v7775_v27 = vld [vmem:[%s8915_s13 + $0x94] sm:$0xf]  ;;  %v5995_v13 = vld [vmem:[%s8915_s13 + $0x54] sm:$0xf0] }
 0x225   : > { %1759 = vmatpush.bf16.msra.mxu0 %v6046_v24  ;;  %v6034_v37 = vor.u32 %v7775_v27, %v6031_v29  ;;  %v7768_v18 = vld [vmem:[%s8915_s13 + $0x58] sm:$0xf0]  ;;  %v5981_v27 = vld [vmem:[%s8915_s13 + $0x30] sm:$0xf]  ;;  %v7763_v29 = vld [vmem:[%s8915_s13 + $0x34] sm:$0xf] }
 0x226   : > { %v1281_v31 = vmul.f32 %v8234_v26, %v1280_v28  ;;  %v6002_v25 = vor.u32 %v7768_v18, %v6001_v16 }
 0x227   : > { %v8236_v14 = vpop.eup %8235 }
 0x228   : > { %v1299_v12 = vmul.f32 %v8236_v14, %v1297_v59  ;;  %v1282_v39 = vadd.f32 %v8234_v26, %v1281_v31  ;;  %vm1304_vm12 = vweird.f32 %v8236_v14  ;;  %v6029_v59 = vld [vmem:[%s8915_s13 + $0x90] sm:$0xf]  ;;  %v6037_v31 = vld [vmem:[%s8915_s13 + $0x98] sm:$0xf] }
 0x229   : > { %vm1305_vm14 = vmor %vm1303_vm13, %vm1304_vm12  ;;  %1760 = vmatpush.bf16.msra.mxu0 %v6034_v37  ;;  %v7765_v37 = vld [vmem:[%s8915_s13 + $0x40] sm:$0xf0] }
 0x22a   : > { %v1300_v15 = vsub.f32 1.0, %v1299_v12  ;;  %v1286_v43 = vsel %vm1285_vm10, %v8234_v26, %v1282_v39  ;;  %v7776_v26 = vld [vmem:[%s8915_s13 + $0x98] sm:$0xf0]  ;;  %v6017_v12 = vld [vmem:[%s8915_s13 + $0x78] sm:$0xf] }
 0x22b   : > { %v1291_v45 = vsel %vm1288_vm11, %v1290_v41, %v1286_v43  ;;  %v6030_v28 = vor.u32 %v7776_v26, %v6029_v59  ;;  %v7773_v39 = vld [vmem:[%s8915_s13 + $0x80] sm:$0xf0]  ;;  %v7772_v41 = vld [vmem:[%s8915_s13 + $0x7c] sm:$0xf]  ;;  %v6019_v43 = vld [vmem:[%s8915_s13 + $0x84] sm:$0xf0] }
 0x22c   : > { %v1301_v46 = vmul.f32 %v8236_v14, %v1300_v15  ;;  %v1318_v17 = vmul.f32 %v1317_v44, %v1291_v45  ;;  %v6018_v15 = vor.u32 %v7773_v39, %v6017_v12  ;;  %v6025_v44 = vld [vmem:[%s8915_s13 + $0x80] sm:$0xf]  ;;  %v6022_v45 = vor.u32 %v7772_v41, %v6019_v43  ;;  %v5969_v39 = vld [vmem:[%s8915_s13 + $0x18] sm:$0xf]  ;;  %v7761_v41 = vld [vmem:[%s8915_s13 + $0x20] sm:$0xf0] }
 0x22d   : > { %1747 = vmatpush.bf16.msrb.mxu3 %v6030_v28  ;;  %v7764_v28 = vld [vmem:[%s8915_s13 + $0x38] sm:$0xf0] }
 0x22e   : > { %v1319_v52 = vadd.f32 %v1318_v17, %v773_v48  ;;  %v1302_v54 = vadd.f32 %v8236_v14, %v1301_v46  ;;  %v7774_v48 = vld [vmem:[%s8915_s13 + $0x88] sm:$0xf0]  ;;  %1761 = vmatpush.bf16.msra.mxu0 %v6022_v45  ;;  %v5971_v45 = vld [vmem:[%s8915_s13 + $0x24] sm:$0xf0] }
 0x22f   : > { %v6026_v46 = vor.u32 %v7774_v48, %v6025_v44  ;;  %v7770_v17 = vld [vmem:[%s8915_s13 + $0x68] sm:$0xf0]  ;;  %v5970_v48 = vor.u32 %v7761_v41, %v5969_v39 }
 0x230   : > { %8237 = vtanh.f32 %v1319_v52  ;;  %v1306_v56 = vsel %vm1305_vm14, %v8236_v14, %v1302_v54  ;;  %v6038_v14 = vor.u32 %v7777_v34, %v6037_v31  ;;  %v6006_v52 = vor.u32 %v7770_v17, %v6005_v47  ;;  %v6007_v54 = vld [vmem:[%s8915_s13 + $0x6c] sm:$0xf0]  ;;  %v5983_v31 = vld [vmem:[%s8915_s13 + $0x3c] sm:$0xf0]  ;;  %v7762_v47 = vld [vmem:[%s8915_s13 + $0x28] sm:$0xf0] }
 0x231   : > { %v1311_v23 = vsel %vm1308_vm15, %v1310_v57, %v1306_v56  ;;  %1748 = vmatpush.bf16.msrb.mxu3 %v6018_v15  ;;  %v6013_v56 = vld [vmem:[%s8915_s13 + $0x68] sm:$0xf]  ;;  %v7771_v57 = vld [vmem:[%s8915_s13 + $0x70] sm:$0xf0]  ;;  %v5986_v34 = vor.u32 %v7763_v29, %v5983_v31  ;;  %v7760_v15 = vld [vmem:[%s8915_s13 + $0x1c] sm:$0xf] }
 0x232   : > { %v1321_v49 = vsub.f32 1.0, %v1311_v23  ;;  %v1323_v61 = vmul.f32 %v1311_v23, %v9166_v62  ;;  %1773 = vmatpush.bf16.msra.mxu1 %v6038_v14  ;;  %v6010_v23 = vor.u32 %v7769_v51, %v6007_v54  ;;  %v5974_v17 = vor.u32 %v7760_v15, %v5971_v45  ;;  %v7758_v54 = vld [vmem:[%s8915_s13 + $0x8] sm:$0xf0] }
 0x233   : > { %v8204_v29 = vld [vmem:[%s8924_s8] ss:$0 sm:$0xff] }
 0x234   : > { %1762 = vmatpush.bf16.msra.mxu0 %v6010_v23 }
 0x235   : > { %1749 = vmatpush.bf16.msrb.mxu3 %v6006_v52  ;;  %v5957_v52 = vld [vmem:[%s8915_s13] sm:$0xf] }
 0x236   : > { %v8238_v58 = vpop.eup %8237  ;;  %1774 = vmatpush.bf16.msra.mxu1 %v6026_v46  ;;  %v5977_v46 = vld [vmem:[%s8915_s13 + $0x20] sm:$0xf]  ;;  %v5958_v23 = vor.u32 %v7758_v54, %v5957_v52  ;;  %v6139_v54 = vld [vmem:[%s8915_s13 + $0xa8] sm:$0xf] }
 0x237   : > { %v1322_v60 = vmul.f32 %v8238_v58, %v1321_v49  ;;  %v6014_v49 = vor.u32 %v7771_v57, %v6013_v56  ;;  %v5993_v58 = vld [vmem:[%s8915_s13 + $0x48] sm:$0xf]  ;;  %v5978_v51 = vor.u32 %v7762_v47, %v5977_v46  ;;  %v7757_v56 = vld [vmem:[%s8915_s13 + $0x4] sm:$0xf] }
 0x239   : > { %v9243_v4 = vadd.f32 %v1323_v61, %v1322_v60  ;;  %v7767_v60 = vld [vmem:[%s8915_s13 + $0x50] sm:$0xf0]  ;;  %v7766_v61 = vld [vmem:[%s8915_s13 + $0x4c] sm:$0xf] }
 0x23a   : > { %1775 = vmatpush.bf16.msra.mxu1 %v6014_v49  ;;  %v5994_v11 = vor.u32 %v7767_v60, %v5993_v58  ;;  %v5998_v24 = vor.u32 %v7766_v61, %v5995_v13  ;;  %v5959_v49 = vld [vmem:[%s8915_s13 + $0xc] sm:$0xf0]  ;;  %v5965_v58 = vld [vmem:[%s8915_s13 + $0x8] sm:$0xf]  ;;  %v7759_v60 = vld [vmem:[%s8915_s13 + $0x10] sm:$0xf0] }
 0x23b   : > { %v1327_v8 = vpack.c.bf16 %v9243_v4, %v9243_v4 }
 0x23c   : > { %1750 = vmatpush.bf16.msrb.mxu3 %v5994_v11  ;;  %1763 = vmatpush.bf16.msra.mxu0 %v5998_v24  ;;  %v5966_v11 = vor.u32 %v7759_v60, %v5965_v58  ;;  %v6147_v58 = vld [vmem:[%s8915_s13 + $0xb0] sm:$0xf]  ;;  %v7804_v60 = vld [vmem:[%s8915_s13 + $0xb8] sm:$0xf0] }
 0x23d   : > { %1496 = vmatmul.bf16.vlgmr.msrb.gmra.mxu0 %v1327_v8  ;;  %1509 = vmatmul.bf16.vlgmr.msrb.gmra.mxu1 %v1327_v8 }
 0x23e   : > { %1522 = vmatmul.bf16.vlgmr.msrb.gmra.mxu2 %v1327_v8  ;;  %1776 = vmatpush.bf16.msra.mxu1 %v6002_v25 }
 0x240   : > { %1764 = vmatpush.bf16.msra.mxu0 %v5986_v34 }
 0x244   : > { %1765 = vmatpush.bf16.msra.mxu0 %v5974_v17 }
 0x2ba   : > { %v1497_v8 = vpop.f32.mrf.mxu0  ;;  %v1510_v10 = vpop.f32.mrf.mxu1 }
 0x2bb   : > { %v1531_v19 = vadd.f32 %v1497_v8, %v9084_v6  ;;  %v1551_v21 = vadd.f32 %v1510_v10, %v9148_v30  ;;  %v5982_v6 = vor.u32 %v7764_v28, %v5981_v27  ;;  %v5989_v30 = vld [vmem:[%s8915_s13 + $0x38] sm:$0xf]  ;;  %v5962_v10 = vor.u32 %v7757_v56, %v5959_v49  ;;  %v7803_v56 = vld [vmem:[%s8915_s13 + $0xb0] sm:$0xf0] }
 0x2bc   : > { %v5990_v14 = vor.u32 %v7765_v37, %v5989_v30  ;;  %v6141_v49 = vld [vmem:[%s8915_s13 + $0xb4] sm:$0xf0] }
 0x2bd   : > { %v5953_v59 = vmul.f32 -1.442695, %v1531_v19  ;;  %v5954_v26 = vmul.f32 -1.442695, %v1551_v21  ;;  %1751 = vmatpush.bf16.msrb.mxu3 %v5982_v6  ;;  %1766 = vmatpush.bf16.msra.mxu0 %v5962_v10  ;;  %v6127_v10 = vld [vmem:[%s8915_s13 + $0x90] sm:$0xf] }
 0x2be   : > { %1777 = vmatpush.bf16.msra.mxu1 %v5990_v14 }
 0x2bf   : > { %8239 = vpow2.f32 %v5953_v59 }
 0x2c0   : > { %8241 = vpow2.f32 %v5954_v26 }
 0x2c1   : > { %v1523_v12 = vpop.f32.mrf.mxu2  ;;  %1752 = vmatpush.bf16.msrb.mxu3 %v5970_v48 }
 0x2c2   : > { %v1499_v43 = vpop.f32.mrf.mxu0  ;;  %v1512_v44 = vpop.f32.mrf.mxu1  ;;  %1778 = vmatpush.bf16.msra.mxu1 %v5978_v51  ;;  %v1575_v37 = vadd.f32 %v8204_v29, %v1523_v12  ;;  %v6117_v29 = vld [vmem:[%s8915_s13 + $0x84] sm:$0xf0] }
 0x2c5   : > { %v8240_v57 = vpop.eup %8239  ;;  %1753 = vmatpush.bf16.msrb.mxu3 %v5958_v23  ;;  %v6140_v23 = vor.u32 %v7803_v56, %v6139_v54  ;;  %v7791_v54 = vld [vmem:[%s8915_s13 + $0x50] sm:$0xf0]  ;;  %v7790_v56 = vld [vmem:[%s8915_s13 + $0x4c] sm:$0xf] }
 0x2c6   : > { %v8242_v61 = vpop.eup %8241  ;;  %v1535_v8 = vadd.f32 1.0, %v8240_v57  ;;  %1779 = vmatpush.bf16.msra.mxu1 %v5966_v11  ;;  %v7802_v57 = vld [vmem:[%s8915_s13 + $0xac] sm:$0xf]  ;;  %v7800_v11 = vld [vmem:[%s8915_s13 + $0x98] sm:$0xf0] }
 0x2c7   : > { %v1555_v13 = vadd.f32 1.0, %v8242_v61  ;;  %v6144_v61 = vor.u32 %v7802_v57, %v6141_v49  ;;  %2004 = vmatpush.bf16.msra.mxu2 %v6140_v23  ;;  %v6093_v49 = vld [vmem:[%s8915_s13 + $0x54] sm:$0xf0] }
 0x2c8   : > { %8243 = vrcp.f32 %v1535_v8  ;;  %v1547_v26 = vand.u32 2147483648, %v1535_v8  ;;  %v1545_v28 = vand.u32 2147483647, %v1535_v8  ;;  %vm1541_vm1 = vweird.f32 %v1535_v8 }
 0x2c9   : > { %8245 = vrcp.f32 %v1555_v13  ;;  %v1525_v16 = vpop.f32.mrf.mxu2  ;;  %v1567_v41 = vand.u32 2147483648, %v1555_v13  ;;  %vm1561_vm5 = vweird.f32 %v1555_v13  ;;  %v1565_v43 = vand.u32 2147483647, %v1555_v13  ;;  %2017 = vmatpush.bf16.msra.mxu3 %v6144_v61 }
 0x2ca   : > { %v1548_v34 = vor.u32 1.1754944e-38, %v1547_v26  ;;  %vm1546_vm3 = vcmp.eq.f32.partialorder %v1545_v28, 8.507059e+37  ;;  %v6128_v16 = vor.u32 %v7800_v11, %v6127_v10  ;;  %v7797_v26 = vld [vmem:[%s8915_s13 + $0x80] sm:$0xf0]  ;;  %v7788_v11 = vld [vmem:[%s8915_s13 + $0x38] sm:$0xf0] }
 0x2cb   : > { %v1568_v45 = vor.u32 1.1754944e-38, %v1567_v41  ;;  %vm1566_vm7 = vcmp.eq.f32.partialorder %v1565_v43, 8.507059e+37  ;;  %v7794_v43 = vld [vmem:[%s8915_s13 + $0x68] sm:$0xf0] }
 0x2cc   : > { %2005 = vmatpush.bf16.msra.mxu2 %v6128_v16 }
 0x2ce   : > { %v8244_v18 = vpop.eup %8243 }
 0x2cf   : > { %v8246_v19 = vpop.eup %8245  ;;  %v1537_v21 = vmul.f32 %v8244_v18, %v1535_v8  ;;  %vm1542_vm0 = vweird.f32 %v8244_v18  ;;  %v6148_v8 = vor.u32 %v7804_v60, %v6147_v58  ;;  %v6099_v58 = vld [vmem:[%s8915_s13 + $0x50] sm:$0xf]  ;;  %v7792_v60 = vld [vmem:[%s8915_s13 + $0x58] sm:$0xf0] }
 0x2d0   : > { %v1557_v24 = vmul.f32 %v8246_v19, %v1555_v13  ;;  %vm1543_vm2 = vmor %vm1541_vm1, %vm1542_vm0  ;;  %vm1562_vm4 = vweird.f32 %v8246_v19  ;;  %v7799_v13 = vld [vmem:[%s8915_s13 + $0x94] sm:$0xf]  ;;  %v6100_v10 = vor.u32 %v7792_v60, %v6099_v58 }
 0x2d1   : > { %v1538_v25 = vsub.f32 1.0, %v1537_v21  ;;  %vm1563_vm6 = vmor %vm1561_vm5, %vm1562_vm4  ;;  %2030 = vmatpush.bf16.msrb.mxu0 %v6148_v8  ;;  %v7801_v21 = vld [vmem:[%s8915_s13 + $0xa0] sm:$0xf0]  ;;  %v6096_v8 = vor.u32 %v7790_v56, %v6093_v49 }
 0x2d2   : > { %v1558_v59 = vsub.f32 1.0, %v1557_v24 }
 0x2d3   : > { %v1539_v27 = vmul.f32 %v8244_v18, %v1538_v25 }
 0x2d4   : > { %v1559_v31 = vmul.f32 %v8246_v19, %v1558_v59  ;;  %v6115_v59 = vld [vmem:[%s8915_s13 + $0x78] sm:$0xf] }
 0x2d5   : > { %v1540_v6 = vadd.f32 %v8244_v18, %v1539_v27  ;;  %v7796_v27 = vld [vmem:[%s8915_s13 + $0x7c] sm:$0xf]  ;;  %v6116_v28 = vor.u32 %v7797_v26, %v6115_v59 }
 0x2d6   : > { %v1560_v14 = vadd.f32 %v8246_v19, %v1559_v31  ;;  %v6123_v31 = vld [vmem:[%s8915_s13 + $0x80] sm:$0xf] }
 0x2d7   : > { %v1544_v30 = vsel %vm1543_vm2, %v8244_v18, %v1540_v6  ;;  %v6129_v18 = vld [vmem:[%s8915_s13 + $0x9c] sm:$0xf0]  ;;  %v7798_v6 = vld [vmem:[%s8915_s13 + $0x88] sm:$0xf0]  ;;  %2006 = vmatpush.bf16.msra.mxu2 %v6116_v28  ;;  %v6067_v28 = vld [vmem:[%s8915_s13 + $0x18] sm:$0xf] }
 0x2d8   : > { %v1549_v39 = vsel %vm1546_vm3, %v1548_v34, %v1544_v30  ;;  %v1564_v48 = vsel %vm1563_vm6, %v8246_v19, %v1560_v14  ;;  %v6135_v19 = vld [vmem:[%s8915_s13 + $0x98] sm:$0xf]  ;;  %v6132_v24 = vor.u32 %v7799_v13, %v6129_v18  ;;  %v749_v34 = vadd.f32 %v9159_v42, %v9111_v36  ;;  %v7795_v42 = vld [vmem:[%s8915_s13 + $0x70] sm:$0xf0] }
 0x2d9   : > { %v1576_v15 = vmul.f32 %v1575_v37, %v1549_v39  ;;  %v1569_v12 = vsel %vm1566_vm7, %v1568_v45, %v1564_v48  ;;  %v6136_v25 = vor.u32 %v7801_v21, %v6135_v19  ;;  %v6120_v30 = vor.u32 %v7796_v27, %v6117_v29  ;;  %v6105_v45 = vld [vmem:[%s8915_s13 + $0x6c] sm:$0xf0]  ;;  %v7787_v13 = vld [vmem:[%s8915_s13 + $0x34] sm:$0xf]  ;;  %v6081_v19 = vld [vmem:[%s8915_s13 + $0x3c] sm:$0xf0] }
 0x2da   : > { %v1579_v46 = vsub.f32 1.0, %v1569_v12  ;;  %v1581_v51 = vmul.f32 %v1569_v12, %v9243_v4  ;;  %2018 = vmatpush.bf16.msra.mxu3 %v6132_v24  ;;  %v6124_v37 = vor.u32 %v7798_v6, %v6123_v31  ;;  %v6111_v12 = vld [vmem:[%s8915_s13 + $0x68] sm:$0xf]  ;;  %v6087_v21 = vld [vmem:[%s8915_s13 + $0x38] sm:$0xf]  ;;  %v6084_v26 = vor.u32 %v7787_v13, %v6081_v19 }
 0x2db   : > { %v1577_v44 = vadd.f32 %v1576_v15, %v9157_v40  ;;  %2031 = vmatpush.bf16.msrb.mxu0 %v6136_v25  ;;  %v6103_v15 = vld [vmem:[%s8915_s13 + $0x60] sm:$0xf]  ;;  %v7789_v24 = vld [vmem:[%s8915_s13 + $0x40] sm:$0xf0]  ;;  %v7784_v31 = vld [vmem:[%s8915_s13 + $0x1c] sm:$0xf] }
 0x2dc   : > { %v6104_v48 = vor.u32 %v7794_v43, %v6103_v15  ;;  %v6088_v27 = vor.u32 %v7789_v24, %v6087_v21  ;;  %v7785_v29 = vld [vmem:[%s8915_s13 + $0x20] sm:$0xf0]  ;;  %v6069_v6 = vld [vmem:[%s8915_s13 + $0x24] sm:$0xf0] }
 0x2dd   : > { %8247 = vtanh.f32 %v1577_v44  ;;  %v7793_v44 = vld [vmem:[%s8915_s13 + $0x64] sm:$0xf]  ;;  %v6072_v15 = vor.u32 %v7784_v31, %v6069_v6 }
 0x2de   : > { %2019 = vmatpush.bf16.msra.mxu3 %v6120_v30  ;;  %2007 = vmatpush.bf16.msra.mxu2 %v6104_v48  ;;  %v7782_v48 = vld [vmem:[%s8915_s13 + $0x8] sm:$0xf0] }
 0x2df   : > { %2032 = vmatpush.bf16.msrb.mxu0 %v6124_v37  ;;  %v7786_v37 = vld [vmem:[%s8915_s13 + $0x28] sm:$0xf0] }
 0x2e3   : > { %v8248_v47 = vpop.eup %8247 }
 0x2e4   : > { %v1580_v17 = vmul.f32 %v8248_v47, %v1579_v46  ;;  %v6108_v47 = vor.u32 %v7793_v44, %v6105_v45  ;;  %v6055_v44 = vld [vmem:[%s8915_s13] sm:$0xf]  ;;  %v7781_v45 = vld [vmem:[%s8915_s13 + $0x4] sm:$0xf] }
 0x2e6   : > { %v9300_v52 = vadd.f32 %v1581_v51, %v1580_v17  ;;  %v6112_v17 = vor.u32 %v7795_v42, %v6111_v12  ;;  %v720_v51 = vadd.f32 %v9100_v22, %v9067_v50  ;;  %2020 = vmatpush.bf16.msra.mxu3 %v6108_v47  ;;  %v6079_v22 = vld [vmem:[%s8915_s13 + $0x30] sm:$0xf]  ;;  %v7783_v47 = vld [vmem:[%s8915_s13 + $0x10] sm:$0xf0] }
 0x2e7   : > { %v6080_v18 = vor.u32 %v7788_v11, %v6079_v22  ;;  %v6057_v42 = vld [vmem:[%s8915_s13 + $0xc] sm:$0xf0] }
 0x2e8   : > { %v1585_v40 = vpack.c.bf16 %v9300_v52, %v9300_v52  ;;  %2033 = vmatpush.bf16.msrb.mxu0 %v6112_v17  ;;  %v6056_v17 = vor.u32 %v7782_v48, %v6055_v44  ;;  %v7826_v44 = vld [vmem:[%s8915_s13 + $0xac] sm:$0xf] }
 0x2ea   : > { %1754 = vmatmul.bf16.vlgmr.msrb.gmra.mxu3 %v1585_v40  ;;  %1767 = vmatmul.bf16.vlgmr.msra.gmra.mxu0 %v1585_v40 }
 0x2eb   : > { %1780 = vmatmul.bf16.vlgmr.msra.gmra.mxu1 %v1585_v40  ;;  %v6091_v40 = vld [vmem:[%s8915_s13 + $0x48] sm:$0xf]  ;;  %2021 = vmatpush.bf16.msra.mxu3 %v6096_v8 }
 0x2ec   : > { %v6092_v23 = vor.u32 %v7791_v54, %v6091_v40  ;;  %2034 = vmatpush.bf16.msrb.mxu0 %v6100_v10  ;;  %v6060_v40 = vor.u32 %v7781_v45, %v6057_v42  ;;  %v8205_v10 = vld [vmem:[%s8924_s8] ss:$0 sm:$0xff]  ;;  %v6239_v45 = vld [vmem:[%s8915_s13 + $0xb4] sm:$0xf0]  ;;  %v7828_v42 = vld [vmem:[%s8915_s13 + $0xb8] sm:$0xf0] }
 0x2ee   : > { %2008 = vmatpush.bf16.msra.mxu2 %v6092_v23 }
 0x2ef   : > { %2022 = vmatpush.bf16.msra.mxu3 %v6084_v26 }
 0x2f0   : > { %2035 = vmatpush.bf16.msrb.mxu0 %v6088_v27 }
 0x2f2   : > { %2009 = vmatpush.bf16.msra.mxu2 %v6080_v18 }
 0x2f3   : > { %2023 = vmatpush.bf16.msra.mxu3 %v6072_v15  ;;  %v6237_v15 = vld [vmem:[%s8915_s13 + $0xa8] sm:$0xf] }
 0x2f7   : > { %2024 = vmatpush.bf16.msra.mxu3 %v6060_v40  ;;  %v7823_v40 = vld [vmem:[%s8915_s13 + $0x94] sm:$0xf] }
 0x367   : > { %v1768_v14 = vpop.f32.mrf.mxu0 }
 0x368   : > { %v1809_v39 = vadd.f32 %v1768_v14, %v749_v34  ;;  %v9324_v41 = vpop.f32.mrf.mxu1  ;;  %v6075_v34 = vld [vmem:[%s8915_s13 + $0x20] sm:$0xf] }
 0x369   : > { %v6076_v43 = vor.u32 %v7786_v37, %v6075_v34  ;;  %v1833_v19 = vadd.f32 %v8205_v10, %v9324_v41 }
 0x36a   : > { %v6052_v46 = vmul.f32 -1.442695, %v1809_v39  ;;  %v6068_v39 = vor.u32 %v7785_v29, %v6067_v28 }
 0x36b   : > { %2036 = vmatpush.bf16.msrb.mxu0 %v6076_v43  ;;  %v7827_v43 = vld [vmem:[%s8915_s13 + $0xb0] sm:$0xf0] }
 0x36c   : > { %8249 = vpow2.f32 %v6052_v46  ;;  %v6063_v46 = vld [vmem:[%s8915_s13 + $0x8] sm:$0xf]  ;;  %2010 = vmatpush.bf16.msra.mxu2 %v6068_v39  ;;  %v6238_v48 = vor.u32 %v7827_v43, %v6237_v15  ;;  %v6197_v15 = vld [vmem:[%s8915_s13 + $0x50] sm:$0xf]  ;;  %v7816_v43 = vld [vmem:[%s8915_s13 + $0x58] sm:$0xf0] }
 0x36d   : > { %v1755_v57 = vpop.f32.mrf.mxu3  ;;  %v6064_v54 = vor.u32 %v7783_v47, %v6063_v46  ;;  %v6242_v46 = vor.u32 %v7826_v44, %v6239_v45 }
 0x36e   : > { %v1789_v61 = vadd.f32 %v1755_v57, %v720_v51  ;;  %2262 = vmatpush.bf16.msrb.mxu1 %v6238_v48 }
 0x36f   : > { %v1770_v16 = vpop.f32.mrf.mxu0  ;;  %2037 = vmatpush.bf16.msrb.mxu0 %v6064_v54 }
 0x370   : > { %v6051_v25 = vmul.f32 -1.442695, %v1789_v61  ;;  %v1783_v59 = vpop.f32.mrf.mxu1  ;;  %2011 = vmatpush.bf16.msra.mxu2 %v6056_v17  ;;  %v6225_v17 = vld [vmem:[%s8915_s13 + $0x90] sm:$0xf] }
 0x371   : > { %v778_v59 = vadd.f32 %v9161_v7, %v9152_v33 }
 0x372   : > { %v8250_v30 = vpop.eup %8249  ;;  %8251 = vpow2.f32 %v6051_v25 }
 0x373   : > { %v1813_v14 = vadd.f32 1.0, %v8250_v30 }
 0x374   : > { %2275 = vmatpush.bf16.msrb.mxu2 %v6242_v46  ;;  %v7812_v46 = vld [vmem:[%s8915_s13 + $0x38] sm:$0xf0] }
 0x375   : > { %v1757_v12 = vpop.f32.mrf.mxu3  ;;  %8253 = vrcp.f32 %v1813_v14  ;;  %v1825_v26 = vand.u32 2147483648, %v1813_v14  ;;  %vm1819_vm13 = vweird.f32 %v1813_v14  ;;  %v1823_v28 = vand.u32 2147483647, %v1813_v14 }
 0x376   : > { %v6245_v12 = vld [vmem:[%s8915_s13 + $0xb0] sm:$0xf] }
 0x377   : > { %v1826_v6 = vor.u32 1.1754944e-38, %v1825_v26  ;;  %vm1824_vm15 = vcmp.eq.f32.partialorder %v1823_v28, 8.507059e+37  ;;  %v6246_v47 = vor.u32 %v7828_v42, %v6245_v12  ;;  %v6203_v26 = vld [vmem:[%s8915_s13 + $0x6c] sm:$0xf0]  ;;  %v7819_v28 = vld [vmem:[%s8915_s13 + $0x70] sm:$0xf0]  ;;  %v6198_v12 = vor.u32 %v7816_v43, %v6197_v15 }
 0x378   : > { %v8252_v51 = vpop.eup %8251  ;;  %v6177_v42 = vld [vmem:[%s8915_s13 + $0x30] sm:$0xf] }
 0x379   : > { %v1793_v56 = vadd.f32 1.0, %v8252_v51  ;;  %2288 = vmatpush.bf16.msrb.mxu3 %v6246_v47  ;;  %v7824_v51 = vld [vmem:[%s8915_s13 + $0x98] sm:$0xf0]  ;;  %v7811_v47 = vld [vmem:[%s8915_s13 + $0x34] sm:$0xf] }
 0x37a   : > { %v6226_v54 = vor.u32 %v7824_v51, %v6225_v17  ;;  %v6178_v17 = vor.u32 %v7812_v46, %v6177_v42  ;;  %v6179_v51 = vld [vmem:[%s8915_s13 + $0x3c] sm:$0xf0] }
 0x37b   : > { %8255 = vrcp.f32 %v1793_v56  ;;  %v8254_v57 = vpop.eup %8253  ;;  %v1805_v8 = vand.u32 2147483648, %v1793_v56  ;;  %v1803_v11 = vand.u32 2147483647, %v1793_v56  ;;  %vm1799_vm9 = vweird.f32 %v1793_v56 }
 0x37c   : > { %v1815_v23 = vmul.f32 %v8254_v57, %v1813_v14  ;;  %vm1820_vm12 = vweird.f32 %v8254_v57  ;;  %2263 = vmatpush.bf16.msrb.mxu1 %v6226_v54  ;;  %v7813_v54 = vld [vmem:[%s8915_s13 + $0x40] sm:$0xf0] }
 0x37d   : > { %v1806_v18 = vor.u32 1.1754944e-38, %v1805_v8  ;;  %vm1804_vm11 = vcmp.eq.f32.partialorder %v1803_v11, 8.507059e+37  ;;  %vm1821_vm14 = vmor %vm1819_vm13, %vm1820_vm12  ;;  %v7820_v8 = vld [vmem:[%s8915_s13 + $0x7c] sm:$0xf]  ;;  %v6221_v11 = vld [vmem:[%s8915_s13 + $0x80] sm:$0xf] }
 0x37e   : > { %v1816_v60 = vsub.f32 1.0, %v1815_v23  ;;  %v7825_v23 = vld [vmem:[%s8915_s13 + $0xa0] sm:$0xf0] }
 0x380   : > { %v1817_v13 = vmul.f32 %v8254_v57, %v1816_v60  ;;  %v6213_v60 = vld [vmem:[%s8915_s13 + $0x78] sm:$0xf] }
 0x381   : > { %v8256_v49 = vpop.eup %8255 }
 0x382   : > { %v1795_v58 = vmul.f32 %v8256_v49, %v1793_v56  ;;  %vm1800_vm8 = vweird.f32 %v8256_v49  ;;  %v1818_v24 = vadd.f32 %v8254_v57, %v1817_v13  ;;  %v6227_v56 = vld [vmem:[%s8915_s13 + $0x9c] sm:$0xf0]  ;;  %v7822_v13 = vld [vmem:[%s8915_s13 + $0x88] sm:$0xf0] }
 0x383   : > { %vm1801_vm10 = vmor %vm1799_vm9, %vm1800_vm8 }
 0x384   : > { %v1796_v61 = vsub.f32 1.0, %v1795_v58  ;;  %v1822_v31 = vsel %vm1821_vm14, %v8254_v57, %v1818_v24  ;;  %v6233_v57 = vld [vmem:[%s8915_s13 + $0x98] sm:$0xf]  ;;  %v7818_v24 = vld [vmem:[%s8915_s13 + $0x68] sm:$0xf0] }
 0x385   : > { %v1827_v41 = vsel %vm1824_vm15, %v1826_v6, %v1822_v31  ;;  %v6234_v58 = vor.u32 %v7825_v23, %v6233_v57  ;;  %v6189_v6 = vld [vmem:[%s8915_s13 + $0x48] sm:$0xf] }
 0x386   : > { %v1797_v22 = vmul.f32 %v8256_v49, %v1796_v61  ;;  %v1837_v34 = vsub.f32 1.0, %v1827_v41  ;;  %v1839_v37 = vmul.f32 %v1827_v41, %v9300_v52  ;;  %v7821_v61 = vld [vmem:[%s8915_s13 + $0x80] sm:$0xf0]  ;;  %v7815_v41 = vld [vmem:[%s8915_s13 + $0x50] sm:$0xf0] }
 0x387   : > { %2289 = vmatpush.bf16.msrb.mxu3 %v6234_v58  ;;  %v6214_v10 = vor.u32 %v7821_v61, %v6213_v60  ;;  %v7809_v58 = vld [vmem:[%s8915_s13 + $0x20] sm:$0xf0]  ;;  %v7808_v60 = vld [vmem:[%s8915_s13 + $0x1c] sm:$0xf]  ;;  %v6167_v61 = vld [vmem:[%s8915_s13 + $0x24] sm:$0xf0] }
 0x388   : > { %v1798_v16 = vadd.f32 %v8256_v49, %v1797_v22  ;;  %v6215_v22 = vld [vmem:[%s8915_s13 + $0x84] sm:$0xf0] }
 0x389   : > { %2264 = vmatpush.bf16.msrb.mxu1 %v6214_v10  ;;  %v7810_v10 = vld [vmem:[%s8915_s13 + $0x28] sm:$0xf0] }
 0x38a   : > { %v1802_v21 = vsel %vm1801_vm10, %v8256_v49, %v1798_v16  ;;  %v6230_v49 = vor.u32 %v7823_v40, %v6227_v56  ;;  %v6218_v16 = vor.u32 %v7820_v8, %v6215_v22  ;;  %v6185_v40 = vld [vmem:[%s8915_s13 + $0x38] sm:$0xf]  ;;  %v6173_v8 = vld [vmem:[%s8915_s13 + $0x20] sm:$0xf] }
 0x38b   : > { %v1807_v25 = vsel %vm1804_vm11, %v1806_v18, %v1802_v21  ;;  %v6222_v18 = vor.u32 %v7822_v13, %v6221_v11  ;;  %v6201_v21 = vld [vmem:[%s8915_s13 + $0x60] sm:$0xf]  ;;  %v6186_v23 = vor.u32 %v7813_v54, %v6185_v40  ;;  %v6170_v11 = vor.u32 %v7808_v60, %v6167_v61 }
 0x38c   : > { %v1834_v27 = vmul.f32 %v1833_v19, %v1807_v25  ;;  %2276 = vmatpush.bf16.msrb.mxu2 %v6230_v49  ;;  %v7817_v25 = vld [vmem:[%s8915_s13 + $0x64] sm:$0xf]  ;;  %v6165_v49 = vld [vmem:[%s8915_s13 + $0x18] sm:$0xf]  ;;  %v6174_v13 = vor.u32 %v7810_v10, %v6173_v8 }
 0x38d   : > { %2290 = vmatpush.bf16.msrb.mxu3 %v6222_v18  ;;  %v6166_v22 = vor.u32 %v7809_v58, %v6165_v49  ;;  %v7806_v18 = vld [vmem:[%s8915_s13 + $0x8] sm:$0xf0] }
 0x38e   : > { %v1835_v29 = vadd.f32 %v1834_v27, %v778_v59  ;;  %v6202_v59 = vor.u32 %v7818_v24, %v6201_v21  ;;  %v6209_v27 = vld [vmem:[%s8915_s13 + $0x68] sm:$0xf]  ;;  %v7805_v21 = vld [vmem:[%s8915_s13 + $0x4] sm:$0xf] }
 0x38f   : > { %v6210_v31 = vor.u32 %v7819_v28, %v6209_v27  ;;  %v7807_v27 = vld [vmem:[%s8915_s13 + $0x10] sm:$0xf0] }
 0x390   : > { %8257 = vtanh.f32 %v1835_v29  ;;  %2277 = vmatpush.bf16.msrb.mxu2 %v6218_v16  ;;  %v6206_v29 = vor.u32 %v7817_v25, %v6203_v26  ;;  %2265 = vmatpush.bf16.msrb.mxu1 %v6202_v59  ;;  %v6153_v16 = vld [vmem:[%s8915_s13] sm:$0xf]  ;;  %v6155_v59 = vld [vmem:[%s8915_s13 + $0xc] sm:$0xf0]  ;;  %v6161_v26 = vld [vmem:[%s8915_s13 + $0x8] sm:$0xf] }
 0x391   : > { %2291 = vmatpush.bf16.msrb.mxu3 %v6210_v31  ;;  %v6154_v28 = vor.u32 %v7806_v18, %v6153_v16  ;;  %v6158_v31 = vor.u32 %v7805_v21, %v6155_v59  ;;  %v6331_v18 = vld [vmem:[%s8915_s13 + $0x98] sm:$0xf]  ;;  %v7849_v21 = vld [vmem:[%s8915_s13 + $0xa0] sm:$0xf0]  ;;  %v7846_v59 = vld [vmem:[%s8915_s13 + $0x88] sm:$0xf0] }
 0x394   : > { %2278 = vmatpush.bf16.msrb.mxu2 %v6206_v29 }
 0x395   : > { %2292 = vmatpush.bf16.msrb.mxu3 %v6198_v12 }
 0x396   : > { %v8258_v30 = vpop.eup %8257 }
 0x397   : > { %v1838_v7 = vmul.f32 %v8258_v30, %v1837_v34  ;;  %v7814_v34 = vld [vmem:[%s8915_s13 + $0x4c] sm:$0xf] }
 0x399   : > { %v9363_v39 = vadd.f32 %v1839_v37, %v1838_v7  ;;  %v6190_v37 = vor.u32 %v7815_v41, %v6189_v6  ;;  %2293 = vmatpush.bf16.msrb.mxu3 %v6186_v23  ;;  %v6162_v6 = vor.u32 %v7807_v27, %v6161_v26  ;;  %v6307_v27 = vld [vmem:[%s8915_s13 + $0x68] sm:$0xf] }
 0x39b   : > { %v1843_v14 = vpack.c.bf16 %v9363_v39, %v9363_v39  ;;  %2266 = vmatpush.bf16.msrb.mxu1 %v6190_v37 }
 0x39d   : > { %2012 = vmatmul.bf16.vlgmr.msra.gmra.mxu2 %v1843_v14  ;;  %2025 = vmatmul.bf16.vlgmr.msra.gmra.mxu3 %v1843_v14 }
 0x39e   : > { %2038 = vmatmul.bf16.vlgmr.msrb.gmra.mxu0 %v1843_v14  ;;  %v6191_v14 = vld [vmem:[%s8915_s13 + $0x54] sm:$0xf0]  ;;  %2294 = vmatpush.bf16.msrb.mxu3 %v6174_v13  ;;  %v7852_v13 = vld [vmem:[%s8915_s13 + $0xb8] sm:$0xf0] }
 0x39f   : > { %v6194_v45 = vor.u32 %v7814_v34, %v6191_v14  ;;  %2267 = vmatpush.bf16.msrb.mxu1 %v6178_v17 }
 0x3a1   : > { %2279 = vmatpush.bf16.msrb.mxu2 %v6194_v45  ;;  %v8206_v45 = vld [vmem:[%s8924_s8] ss:$0 sm:$0xff] }
 0x3a2   : > { %2295 = vmatpush.bf16.msrb.mxu3 %v6162_v6  ;;  %v7851_v6 = vld [vmem:[%s8915_s13 + $0xb0] sm:$0xf0] }
 0x3a3   : > { %2268 = vmatpush.bf16.msrb.mxu1 %v6166_v22 }
 0x3a7   : > { %2269 = vmatpush.bf16.msrb.mxu1 %v6154_v28  ;;  %v7843_v28 = vld [vmem:[%s8915_s13 + $0x70] sm:$0xf0] }
 0x41b   : > { %v9385_v19 = vpop.f32.mrf.mxu0 }
 0x420   : > { %v2013_v30 = vpop.f32.mrf.mxu2  ;;  %v2026_v7 = vpop.f32.mrf.mxu3 }
 0x421   : > { %v2047_v44 = vadd.f32 %v2013_v30, %v9073_v55  ;;  %v2067_v48 = vadd.f32 %v2026_v7, %v9164_v53  ;;  %v6182_v53 = vor.u32 %v7811_v47, %v6179_v51  ;;  %v2091_v51 = vadd.f32 %v8206_v45, %v9385_v19 }
 0x423   : > { %v6149_v56 = vmul.f32 -1.442695, %v2047_v44  ;;  %v6150_v55 = vmul.f32 -1.442695, %v2067_v48  ;;  %v2041_v57 = vpop.f32.mrf.mxu0  ;;  %2280 = vmatpush.bf16.msrb.mxu2 %v6182_v53 }
 0x425   : > { %8259 = vpow2.f32 %v6149_v56 }
 0x426   : > { %8261 = vpow2.f32 %v6150_v55 }
 0x427   : > { %2281 = vmatpush.bf16.msrb.mxu2 %v6170_v11  ;;  %v6343_v11 = vld [vmem:[%s8915_s13 + $0xb0] sm:$0xf] }
 0x428   : > { %v2015_v24 = vpop.f32.mrf.mxu2  ;;  %v2028_v25 = vpop.f32.mrf.mxu3  ;;  %v6344_v16 = vor.u32 %v7852_v13, %v6343_v11  ;;  %v7831_v11 = vld [vmem:[%s8915_s13 + $0x10] sm:$0xf0]  ;;  %v725_v13 = vadd.f32 %v9081_v2, %v9067_v50 }
 0x429   : > { %v6332_v24 = vor.u32 %v7849_v21, %v6331_v18  ;;  %v6319_v25 = vld [vmem:[%s8915_s13 + $0x80] sm:$0xf]  ;;  %v6287_v18 = vld [vmem:[%s8915_s13 + $0x48] sm:$0xf]  ;;  %v7839_v21 = vld [vmem:[%s8915_s13 + $0x50] sm:$0xf0] }
 0x42a   : > { %v6320_v26 = vor.u32 %v7846_v59, %v6319_v25  ;;  %v6288_v59 = vor.u32 %v7839_v21, %v6287_v18  ;;  %v6516_v21 = vld [vmem:[%s8908_s30 + $0x108] sm:$0xf] }
 0x42b   : > { %v8260_v29 = vpop.eup %8259  ;;  %2282 = vmatpush.bf16.msrb.mxu2 %v6158_v31  ;;  %v6335_v31 = vld [vmem:[%s8915_s13 + $0xa8] sm:$0xf] }
 0x42c   : > { %v8262_v41 = vpop.eup %8261  ;;  %v2051_v34 = vadd.f32 1.0, %v8260_v29  ;;  %v6308_v29 = vor.u32 %v7843_v28, %v6307_v27  ;;  %v6564_v27 = vld [vmem:[%s8908_s30 + $0x168] sm:$0xf]  ;;  %v7899_v28 = vld [vmem:[%s8908_s30 + $0x170] sm:$0xf0] }
 0x42d   : > { %v2071_v30 = vadd.f32 1.0, %v8262_v41  ;;  %v7850_v41 = vld [vmem:[%s8915_s13 + $0xac] sm:$0xf]  ;;  %v6565_v2 = vor.u32 %v7899_v28, %v6564_v27  ;;  %v7884_v27 = vld [vmem:[%s8908_s30 + $0xf8] sm:$0xf0] }
 0x42e   : > { %8263 = vrcp.f32 %v2051_v34  ;;  %v2063_v44 = vand.u32 2147483648, %v2051_v34  ;;  %v2061_v42 = vand.u32 2147483647, %v2051_v34  ;;  %vm2057_vm1 = vweird.f32 %v2051_v34 }
 0x42f   : > { %8265 = vrcp.f32 %v2071_v30  ;;  %v2083_v57 = vand.u32 2147483648, %v2071_v30  ;;  %vm2077_vm5 = vweird.f32 %v2071_v30  ;;  %v2081_v53 = vand.u32 2147483647, %v2071_v30  ;;  %2546 = vmatpush.bf16.msra.mxu2 %v6344_v16 }
 0x430   : > { %v2064_v17 = vor.u32 1.1754944e-38, %v2063_v44  ;;  %vm2062_vm3 = vcmp.eq.f32.partialorder %v2061_v42, 8.507059e+37  ;;  %v7848_v44 = vld [vmem:[%s8915_s13 + $0x98] sm:$0xf0] }
 0x431   : > { %v2084_v58 = vor.u32 1.1754944e-38, %v2083_v57  ;;  %vm2082_vm7 = vcmp.eq.f32.partialorder %v2081_v53, 8.507059e+37  ;;  %v6271_v53 = vld [vmem:[%s8915_s13 + $0x20] sm:$0xf] }
 0x433   : > { %2547 = vmatpush.bf16.msra.mxu2 %v6332_v24  ;;  %v7838_v24 = vld [vmem:[%s8915_s13 + $0x4c] sm:$0xf] }
 0x434   : > { %v8264_v7 = vpop.eup %8263 }
 0x435   : > { %v8266_v37 = vpop.eup %8265  ;;  %v2053_v14 = vmul.f32 %v8264_v7, %v2051_v34  ;;  %vm2058_vm0 = vweird.f32 %v8264_v7  ;;  %v6336_v34 = vor.u32 %v7851_v6, %v6335_v31 }
 0x436   : > { %v2073_v15 = vmul.f32 %v8266_v37, %v2071_v30  ;;  %vm2059_vm2 = vmor %vm2057_vm1, %vm2058_vm0  ;;  %vm2078_vm4 = vweird.f32 %v8266_v37  ;;  %v6337_v30 = vld [vmem:[%s8915_s13 + $0xb4] sm:$0xf0] }
 0x437   : > { %v2054_v43 = vsub.f32 1.0, %v2053_v14  ;;  %vm2079_vm6 = vmor %vm2077_vm5, %vm2078_vm4  ;;  %2548 = vmatpush.bf16.msra.mxu2 %v6320_v26  ;;  %2520 = vmatpush.bf16.msra.mxu0 %v6336_v34  ;;  %v7840_v14 = vld [vmem:[%s8915_s13 + $0x58] sm:$0xf0]  ;;  %v6289_v26 = vld [vmem:[%s8915_s13 + $0x54] sm:$0xf0] }
 0x438   : > { %v2074_v48 = vsub.f32 1.0, %v2073_v15  ;;  %v6292_v31 = vor.u32 %v7838_v24, %v6289_v26  ;;  %v7836_v34 = vld [vmem:[%s8915_s13 + $0x38] sm:$0xf0]  ;;  %v7887_v24 = vld [vmem:[%s8908_s30 + $0x110] sm:$0xf0] }
 0x439   : > { %v2055_v12 = vmul.f32 %v8264_v7, %v2054_v43  ;;  %v6323_v43 = vld [vmem:[%s8915_s13 + $0x90] sm:$0xf] }
 0x43a   : > { %v2075_v46 = vmul.f32 %v8266_v37, %v2074_v48  ;;  %v7847_v48 = vld [vmem:[%s8915_s13 + $0x94] sm:$0xf]  ;;  %v6324_v45 = vor.u32 %v7848_v44, %v6323_v43  ;;  %v7896_v44 = vld [vmem:[%s8908_s30 + $0x158] sm:$0xf0]  ;;  %v6504_v26 = vld [vmem:[%s8908_s30 + $0xf0] sm:$0xf] }
 0x43b   : > { %v2056_v47 = vadd.f32 %v8264_v7, %v2055_v12  ;;  %2549 = vmatpush.bf16.msra.mxu2 %v6308_v29  ;;  %v6325_v12 = vld [vmem:[%s8915_s13 + $0x9c] sm:$0xf0] }
 0x43c   : > { %v2076_v56 = vadd.f32 %v8266_v37, %v2075_v46  ;;  %v6328_v42 = vor.u32 %v7847_v48, %v6325_v12  ;;  %2521 = vmatpush.bf16.msra.mxu0 %v6324_v45  ;;  %v6283_v46 = vld [vmem:[%s8915_s13 + $0x38] sm:$0xf] }
 0x43d   : > { %v2060_v40 = vsel %vm2059_vm2, %v8264_v7, %v2056_v47  ;;  %v6340_v7 = vor.u32 %v7850_v41, %v6337_v30  ;;  %v7837_v47 = vld [vmem:[%s8915_s13 + $0x40] sm:$0xf0]  ;;  %v6275_v41 = vld [vmem:[%s8915_s13 + $0x30] sm:$0xf] }
 0x43e   : > { %v2065_v54 = vsel %vm2062_vm3, %v2064_v17, %v2060_v40  ;;  %v2080_v49 = vsel %vm2079_vm6, %v8266_v37, %v2076_v56  ;;  %v6295_v37 = vld [vmem:[%s8915_s13 + $0x50] sm:$0xf]  ;;  %v6284_v17 = vor.u32 %v7837_v47, %v6283_v46  ;;  %v7845_v40 = vld [vmem:[%s8915_s13 + $0x80] sm:$0xf0]  ;;  %v6276_v30 = vor.u32 %v7836_v34, %v6275_v41  ;;  %v6263_v46 = vld [vmem:[%s8915_s13 + $0x18] sm:$0xf] }
 0x43f   : > { %v2092_v55 = vmul.f32 %v2091_v51, %v2065_v54  ;;  %v2085_v19 = vsel %vm2082_vm7, %v2084_v58, %v2080_v49  ;;  %2533 = vmatpush.bf16.msra.mxu1 %v6340_v7  ;;  %v6296_v15 = vor.u32 %v7840_v14, %v6295_v37  ;;  %v6311_v51 = vld [vmem:[%s8915_s13 + $0x78] sm:$0xf]  ;;  %v7844_v54 = vld [vmem:[%s8915_s13 + $0x7c] sm:$0xf]  ;;  %v6299_v58 = vld [vmem:[%s8915_s13 + $0x60] sm:$0xf] }
 0x440   : > { %v2095_v60 = vsub.f32 1.0, %v2085_v19  ;;  %v2097_v10 = vmul.f32 %v2085_v19, %v9363_v39  ;;  %v6312_v56 = vor.u32 %v7845_v40, %v6311_v51  ;;  %v7842_v19 = vld [vmem:[%s8915_s13 + $0x68] sm:$0xf0]  ;;  %v7835_v7 = vld [vmem:[%s8915_s13 + $0x34] sm:$0xf] }
 0x441   : > { %v2093_v23 = vadd.f32 %v2092_v55, %v9169_v63  ;;  %2550 = vmatpush.bf16.msra.mxu2 %v6296_v15  ;;  %v6313_v55 = vld [vmem:[%s8915_s13 + $0x84] sm:$0xf0]  ;;  %v6277_v37 = vld [vmem:[%s8915_s13 + $0x3c] sm:$0xf0]  ;;  %v6552_v14 = vld [vmem:[%s8908_s30 + $0x150] sm:$0xf]  ;;  %v754_v15 = vadd.f32 %v9171_v0, %v9111_v36 }
 0x442   : > { %v6316_v57 = vor.u32 %v7844_v54, %v6313_v55  ;;  %2522 = vmatpush.bf16.msra.mxu0 %v6312_v56  ;;  %v6280_v43 = vor.u32 %v7835_v7, %v6277_v37  ;;  %v6553_v45 = vor.u32 %v7896_v44, %v6552_v14  ;;  %v7833_v47 = vld [vmem:[%s8915_s13 + $0x20] sm:$0xf0]  ;;  %v6265_v40 = vld [vmem:[%s8915_s13 + $0x24] sm:$0xf0]  ;;  %v6540_v54 = vld [vmem:[%s8908_s30 + $0x138] sm:$0xf] }
 0x443   : > { %8267 = vtanh.f32 %v2093_v23  ;;  %2534 = vmatpush.bf16.msra.mxu1 %v6328_v42  ;;  %v7834_v23 = vld [vmem:[%s8915_s13 + $0x28] sm:$0xf0]  ;;  %v6264_v51 = vor.u32 %v7833_v47, %v6263_v46  ;;  %v7893_v56 = vld [vmem:[%s8908_s30 + $0x140] sm:$0xf0] }
 0x444   : > { %v6272_v49 = vor.u32 %v7834_v23, %v6271_v53  ;;  %v6541_v53 = vor.u32 %v7893_v56, %v6540_v54  ;;  %v6251_v23 = vld [vmem:[%s8915_s13] sm:$0xf]  ;;  %v7881_v41 = vld [vmem:[%s8908_s30 + $0xe0] sm:$0xf0]  ;;  %v8207_v7 = vld [vmem:[%s8924_s8] ss:$0 sm:$0xff] }
 0x445   : > { %2551 = vmatpush.bf16.msra.mxu2 %v6284_v17  ;;  %v7832_v17 = vld [vmem:[%s8915_s13 + $0x1c] sm:$0xf]  ;;  %v7878_v44 = vld [vmem:[%s8908_s30 + $0xc8] sm:$0xf0] }
 0x447   : > { %2535 = vmatpush.bf16.msra.mxu1 %v6316_v57  ;;  %v6268_v57 = vor.u32 %v7832_v17, %v6265_v40  ;;  %v783_v40 = vadd.f32 %v9175_v3, %v9152_v33 }
 0x449   : > { %v8268_v61 = vpop.eup %8267  ;;  %2552 = vmatpush.bf16.msra.mxu2 %v6272_v49  ;;  %v7830_v49 = vld [vmem:[%s8915_s13 + $0x8] sm:$0xf0] }
 0x44a   : > { %v2096_v8 = vmul.f32 %v8268_v61, %v2095_v60  ;;  %v7841_v60 = vld [vmem:[%s8915_s13 + $0x64] sm:$0xf]  ;;  %v6300_v61 = vor.u32 %v7842_v19, %v6299_v58 }
 0x44b   : > { %v7829_v58 = vld [vmem:[%s8915_s13 + $0x4] sm:$0xf] }
 0x44c   : > { %v9423_v22 = vadd.f32 %v2097_v10, %v2096_v8  ;;  %v6301_v8 = vld [vmem:[%s8915_s13 + $0x6c] sm:$0xf0]  ;;  %2523 = vmatpush.bf16.msra.mxu0 %v6300_v61 }
 0x44d   : > { %v6304_v10 = vor.u32 %v7841_v60, %v6301_v8  ;;  %v6252_v60 = vor.u32 %v7830_v49, %v6251_v23  ;;  %v6253_v61 = vld [vmem:[%s8915_s13 + $0xc] sm:$0xf0]  ;;  %v6528_v8 = vld [vmem:[%s8908_s30 + $0x120] sm:$0xf] }
 0x44e   : > { %v2101_v63 = vpack.c.bf16 %v9423_v22, %v9423_v22 }
 0x44f   : > { %2536 = vmatpush.bf16.msra.mxu1 %v6304_v10  ;;  %v7890_v10 = vld [vmem:[%s8908_s30 + $0x128] sm:$0xf0] }
 0x450   : > { %2270 = vmatmul.bf16.vlgmr.msrb.gmra.mxu1 %v2101_v63  ;;  %2283 = vmatmul.bf16.vlgmr.msrb.gmra.mxu2 %v2101_v63 }
 0x451   : > { %2296 = vmatmul.bf16.vlgmr.msrb.gmra.mxu3 %v2101_v63  ;;  %v6259_v63 = vld [vmem:[%s8915_s13 + $0x8] sm:$0xf]  ;;  %2524 = vmatpush.bf16.msra.mxu0 %v6288_v59 }
 0x452   : > { %v6260_v16 = vor.u32 %v7831_v11, %v6259_v63  ;;  %v6256_v11 = vor.u32 %v7829_v58, %v6253_v61 }
 0x453   : > { %2537 = vmatpush.bf16.msra.mxu1 %v6292_v31  ;;  %v6505_v31 = vor.u32 %v7884_v27, %v6504_v26  ;;  %v7870_v26 = vld [vmem:[%s8915_s13 + $0x88] sm:$0xf0] }
 0x454   : > { %2553 = vmatpush.bf16.msra.mxu2 %v6260_v16 }
 0x455   : > { %2525 = vmatpush.bf16.msra.mxu0 %v6276_v30 }
 0x457   : > { %2538 = vmatpush.bf16.msra.mxu1 %v6280_v43  ;;  %v6480_v43 = vld [vmem:[%s8908_s30 + $0xc0] sm:$0xf] }
 0x458   : > { %3057 = vmatpush.bf16.msrb.mxu2 %v6565_v2  ;;  %v6481_v47 = vor.u32 %v7878_v44, %v6480_v43  ;;  %v7871_v43 = vld [vmem:[%s8915_s13 + $0x94] sm:$0xf]  ;;  %v6423_v44 = vld [vmem:[%s8915_s13 + $0x9c] sm:$0xf0] }
 0x459   : > { %2526 = vmatpush.bf16.msra.mxu0 %v6264_v51 }
 0x45b   : > { %2539 = vmatpush.bf16.msra.mxu1 %v6268_v57 }
 0x45c   : > { %3058 = vmatpush.bf16.msrb.mxu2 %v6553_v45 }
 0x45d   : > { %2527 = vmatpush.bf16.msra.mxu0 %v6252_v60 }
 0x45f   : > { %2540 = vmatpush.bf16.msra.mxu1 %v6256_v11  ;;  %v9508_v11 = vpack.c.bf16 %v9243_v4, %v9166_v62  ;;  %v9519_v4 = vpack.c.bf16 %v9363_v39, %v9300_v52  ;;  %v7874_v52 = vld [vmem:[%s8915_s13 + $0xac] sm:$0xf] }
 0x460   : > { %3059 = vmatpush.bf16.msrb.mxu2 %v6541_v53 }
 0x4cd   : > { %v2271_v25 = vpop.f32.mrf.mxu1 }
 0x4ce   : > { %v2305_v29 = vadd.f32 %v2271_v25, %v725_v13  ;;  %v6529_v13 = vor.u32 %v7890_v10, %v6528_v8  ;;  %v6517_v25 = vor.u32 %v7887_v24, %v6516_v21  ;;  %v7873_v24 = vld [vmem:[%s8915_s13 + $0xa0] sm:$0xf0] }
 0x4d0   : > { %v6247_v6 = vmul.f32 -1.442695, %v2305_v29  ;;  %3060 = vmatpush.bf16.msrb.mxu2 %v6529_v13  ;;  %v6441_v13 = vld [vmem:[%s8915_s13 + $0xb0] sm:$0xf] }
 0x4d2   : > { %8269 = vpow2.f32 %v6247_v6  ;;  %v6492_v6 = vld [vmem:[%s8908_s30 + $0xd8] sm:$0xf] }
 0x4d3   : > { %v2284_v48 = vpop.f32.mrf.mxu2  ;;  %v6493_v37 = vor.u32 %v7881_v41, %v6492_v6  ;;  %v7875_v6 = vld [vmem:[%s8915_s13 + $0xb0] sm:$0xf0]  ;;  %v6435_v41 = vld [vmem:[%s8915_s13 + $0xb4] sm:$0xf0] }
 0x4d4   : > { %v2325_v12 = vadd.f32 %v2284_v48, %v754_v15  ;;  %v9475_v42 = vpop.f32.mrf.mxu3  ;;  %3061 = vmatpush.bf16.msrb.mxu2 %v6517_v25 }
 0x4d5   : > { %v2273_v0 = vpop.f32.mrf.mxu1  ;;  %v2349_v51 = vadd.f32 %v8207_v7, %v9475_v42 }
 0x4d6   : > { %v6248_v55 = vmul.f32 -1.442695, %v2325_v12 }
 0x4d8   : > { %v8270_v19 = vpop.eup %8269  ;;  %8271 = vpow2.f32 %v6248_v55  ;;  %3062 = vmatpush.bf16.msrb.mxu2 %v6505_v31 }
 0x4d9   : > { %v2309_v63 = vadd.f32 1.0, %v8270_v19 }
 0x4db   : > { %8273 = vrcp.f32 %v2309_v63  ;;  %v2286_v16 = vpop.f32.mrf.mxu2  ;;  %v2321_v30 = vand.u32 2147483648, %v2309_v63  ;;  %v2319_v15 = vand.u32 2147483647, %v2309_v63  ;;  %vm2315_vm9 = vweird.f32 %v2309_v63 }
 0x4dc   : > { %v2299_v18 = vpop.f32.mrf.mxu3  ;;  %3063 = vmatpush.bf16.msrb.mxu2 %v6493_v37  ;;  %v7876_v16 = vld [vmem:[%s8915_s13 + $0xb8] sm:$0xf0]  ;;  %v6421_v37 = vld [vmem:[%s8915_s13 + $0x90] sm:$0xf] }
 0x4dd   : > { %v2322_v46 = vor.u32 1.1754944e-38, %v2321_v30  ;;  %vm2320_vm11 = vcmp.eq.f32.partialorder %v2319_v15, 8.507059e+37  ;;  %v6429_v18 = vld [vmem:[%s8915_s13 + $0x98] sm:$0xf]  ;;  %v6442_v21 = vor.u32 %v7876_v16, %v6441_v13  ;;  %v7864_v30 = vld [vmem:[%s8915_s13 + $0x58] sm:$0xf0] }
 0x4de   : > { %v8272_v59 = vpop.eup %8271  ;;  %v6430_v25 = vor.u32 %v7873_v24, %v6429_v18  ;;  %v7862_v13 = vld [vmem:[%s8915_s13 + $0x4c] sm:$0xf]  ;;  %v6387_v18 = vld [vmem:[%s8915_s13 + $0x54] sm:$0xf0]  ;;  %v7923_v24 = vld [vmem:[%s8915_s13 + $0x170] sm:$0xf0] }
 0x4df   : > { %v2329_v28 = vadd.f32 1.0, %v8272_v59  ;;  %2804 = vmatpush.bf16.msrb.mxu1 %v6442_v21  ;;  %v6417_v59 = vld [vmem:[%s8915_s13 + $0x80] sm:$0xf]  ;;  %v6692_v21 = vld [vmem:[%s8915_s13 + $0x168] sm:$0xf] }
 0x4e0   : > { %3064 = vmatpush.bf16.msrb.mxu2 %v6481_v47  ;;  %v6418_v62 = vor.u32 %v7870_v26, %v6417_v59  ;;  %v6409_v47 = vld [vmem:[%s8915_s13 + $0x78] sm:$0xf]  ;;  %v6693_v59 = vor.u32 %v7923_v24, %v6692_v21  ;;  %v6373_v26 = vld [vmem:[%s8915_s13 + $0x30] sm:$0xf]  ;;  %v7908_v24 = vld [vmem:[%s8915_s13 + $0xf8] sm:$0xf0] }
 0x4e1   : > { %v8274_v29 = vpop.eup %8273  ;;  %8275 = vrcp.f32 %v2329_v28  ;;  %v2341_v55 = vand.u32 2147483648, %v2329_v28  ;;  %v2339_v53 = vand.u32 2147483647, %v2329_v28  ;;  %vm2335_vm13 = vweird.f32 %v2329_v28  ;;  %v6632_v21 = vld [vmem:[%s8915_s13 + $0xf0] sm:$0xf] }
 0x4e2   : > { %v2311_v2 = vmul.f32 %v8274_v29, %v2309_v63  ;;  %vm2316_vm8 = vweird.f32 %v8274_v29 }
 0x4e3   : > { %vm2317_vm10 = vmor %vm2315_vm9, %vm2316_vm8  ;;  %v2342_v58 = vor.u32 1.1754944e-38, %v2341_v55  ;;  %vm2340_vm15 = vcmp.eq.f32.partialorder %v2339_v53, 8.507059e+37  ;;  %2805 = vmatpush.bf16.msrb.mxu1 %v6430_v25  ;;  %v7858_v55 = vld [vmem:[%s8915_s13 + $0x28] sm:$0xf0]  ;;  %v6397_v53 = vld [vmem:[%s8915_s13 + $0x60] sm:$0xf]  ;;  %v6390_v25 = vor.u32 %v7862_v13, %v6387_v18 }
 0x4e4   : > { %v2312_v34 = vsub.f32 1.0, %v2311_v2  ;;  %v6433_v2 = vld [vmem:[%s8915_s13 + $0xa8] sm:$0xf]  ;;  %v7897_v13 = vld [vmem:[%s8908_s30 + $0x160] sm:$0xf0] }
 0x4e5   : > { %v6434_v39 = vor.u32 %v7875_v6, %v6433_v2  ;;  %v6680_v2 = vld [vmem:[%s8915_s13 + $0x150] sm:$0xf] }
 0x4e6   : > { %v2313_v14 = vmul.f32 %v8274_v29, %v2312_v34  ;;  %v6438_v34 = vor.u32 %v7874_v52, %v6435_v41  ;;  %v7920_v52 = vld [vmem:[%s8915_s13 + $0x158] sm:$0xf0]  ;;  %v6361_v41 = vld [vmem:[%s8915_s13 + $0x18] sm:$0xf] }
 0x4e7   : > { %v8276_v48 = vpop.eup %8275  ;;  %2806 = vmatpush.bf16.msrb.mxu1 %v6418_v62  ;;  %2778 = vmatpush.bf16.msra.mxu3 %v6434_v39  ;;  %v7860_v62 = vld [vmem:[%s8915_s13 + $0x38] sm:$0xf0]  ;;  %v6681_v39 = vor.u32 %v7920_v52, %v6680_v2 }
 0x4e8   : > { %v2331_v45 = vmul.f32 %v8276_v48, %v2329_v28  ;;  %v2314_v12 = vadd.f32 %v8274_v29, %v2313_v14  ;;  %vm2336_vm12 = vweird.f32 %v8276_v48  ;;  %v6405_v28 = vld [vmem:[%s8915_s13 + $0x68] sm:$0xf]  ;;  %2791 = vmatpush.bf16.msrb.mxu0 %v6438_v34  ;;  %v7872_v14 = vld [vmem:[%s8915_s13 + $0x98] sm:$0xf0]  ;;  %v7857_v34 = vld [vmem:[%s8915_s13 + $0x20] sm:$0xf0] }
 0x4e9   : > { %vm2337_vm14 = vmor %vm2335_vm13, %vm2336_vm12  ;;  %v6422_v15 = vor.u32 %v7872_v14, %v6421_v37  ;;  %v6668_v37 = vld [vmem:[%s8915_s13 + $0x138] sm:$0xf]  ;;  %v7917_v14 = vld [vmem:[%s8915_s13 + $0x140] sm:$0xf0] }
 0x4ea   : > { %v2332_v17 = vsub.f32 1.0, %v2331_v45  ;;  %v2318_v0 = vsel %vm2317_vm10, %v8274_v29, %v2314_v12  ;;  %v7867_v29 = vld [vmem:[%s8915_s13 + $0x70] sm:$0xf0]  ;;  %v6381_v45 = vld [vmem:[%s8915_s13 + $0x38] sm:$0xf] }
 0x4eb   : > { %v2323_v54 = vsel %vm2320_vm11, %v2322_v46, %v2318_v0  ;;  %v6406_v31 = vor.u32 %v7867_v29, %v6405_v28  ;;  %2779 = vmatpush.bf16.msra.mxu3 %v6422_v15  ;;  %v7861_v12 = vld [vmem:[%s8915_s13 + $0x40] sm:$0xf0]  ;;  %v7868_v0 = vld [vmem:[%s8915_s13 + $0x7c] sm:$0xf]  ;;  %v6374_v28 = vor.u32 %v7860_v62, %v6373_v26  ;;  %v7859_v29 = vld [vmem:[%s8915_s13 + $0x34] sm:$0xf] }
 0x4ec   : > { %v2333_v56 = vmul.f32 %v8276_v48, %v2332_v17  ;;  %v2350_v57 = vmul.f32 %v2349_v51, %v2323_v54  ;;  %v6382_v46 = vor.u32 %v7861_v12, %v6381_v45  ;;  %v7869_v17 = vld [vmem:[%s8915_s13 + $0x80] sm:$0xf0]  ;;  %v7892_v26 = vld [vmem:[%s8908_s30 + $0x13c] sm:$0xf]  ;;  %v6542_v62 = vld [vmem:[%s8908_s30 + $0x144] sm:$0xf0] }
 0x4ed   : > { %2807 = vmatpush.bf16.msrb.mxu1 %v6406_v31  ;;  %v6410_v51 = vor.u32 %v7869_v17, %v6409_v47  ;;  %v6375_v31 = vld [vmem:[%s8915_s13 + $0x3c] sm:$0xf0]  ;;  %v7853_v45 = vld [vmem:[%s8915_s13 + $0x4] sm:$0xf]  ;;  %v7914_v17 = vld [vmem:[%s8915_s13 + $0x128] sm:$0xf0]  ;;  %v6545_v2 = vor.u32 %v7892_v26, %v6542_v62 }
 0x4ee   : > { %v2334_v23 = vadd.f32 %v8276_v48, %v2333_v56  ;;  %v2351_v49 = vadd.f32 %v2350_v57, %v783_v40  ;;  %v6411_v40 = vld [vmem:[%s8915_s13 + $0x84] sm:$0xf0]  ;;  %v6369_v56 = vld [vmem:[%s8915_s13 + $0x20] sm:$0xf]  ;;  %v6378_v6 = vor.u32 %v7859_v29, %v6375_v31  ;;  %v8208_v26 = vld [vmem:[%s8924_s8] ss:$0 sm:$0xff] }
 0x4ef   : > { %v6414_v54 = vor.u32 %v7868_v0, %v6411_v40  ;;  %2780 = vmatpush.bf16.msra.mxu3 %v6410_v51  ;;  %v6370_v57 = vor.u32 %v7858_v55, %v6369_v56  ;;  %v6656_v47 = vld [vmem:[%s8915_s13 + $0x120] sm:$0xf]  ;;  %v7898_v56 = vld [vmem:[%s8908_s30 + $0x16c] sm:$0xf]  ;;  %v6566_v55 = vld [vmem:[%s8908_s30 + $0x174] sm:$0xf0] }
 0x4f0   : > { %v2338_v19 = vsel %vm2337_vm14, %v8276_v48, %v2334_v23  ;;  %8277 = vtanh.f32 %v2351_v49  ;;  %v6426_v48 = vor.u32 %v7871_v43, %v6423_v44  ;;  %v7866_v23 = vld [vmem:[%s8915_s13 + $0x68] sm:$0xf0]  ;;  %v7865_v49 = vld [vmem:[%s8915_s13 + $0x64] sm:$0xf]  ;;  %v6669_v43 = vor.u32 %v7917_v14, %v6668_v37  ;;  %v6349_v44 = vld [vmem:[%s8915_s13] sm:$0xf] }
 0x4f1   : > { %v2343_v42 = vsel %vm2340_vm15, %v2342_v58, %v2338_v19  ;;  %v6398_v58 = vor.u32 %v7866_v23, %v6397_v53  ;;  %v6399_v19 = vld [vmem:[%s8915_s13 + $0x6c] sm:$0xf0]  ;;  %v6536_v37 = vld [vmem:[%s8908_s30 + $0x128] sm:$0xf]  ;;  %v7891_v14 = vld [vmem:[%s8908_s30 + $0x130] sm:$0xf0] }
 0x4f2   : > { %v2353_v3 = vsub.f32 1.0, %v2343_v42  ;;  %v2355_v8 = vmul.f32 %v2343_v42, %v9423_v22  ;;  %2792 = vmatpush.bf16.msrb.mxu0 %v6426_v48  ;;  %v6402_v42 = vor.u32 %v7865_v49, %v6399_v19  ;;  %v7854_v48 = vld [vmem:[%s8915_s13 + $0x8] sm:$0xf0]  ;;  %v6569_v49 = vor.u32 %v7898_v56, %v6566_v55  ;;  %v7888_v56 = vld [vmem:[%s8908_s30 + $0x118] sm:$0xf0] }
 0x4f3   : > { %2781 = vmatpush.bf16.msra.mxu3 %v6398_v58  ;;  %v6350_v12 = vor.u32 %v7854_v48, %v6349_v44  ;;  %v7900_v58 = vld [vmem:[%s8908_s30 + $0x178] sm:$0xf0]  ;;  %v6537_v48 = vor.u32 %v7891_v14, %v6536_v37 }
 0x4f6   : > { %v8278_v60 = vpop.eup %8277  ;;  %2793 = vmatpush.bf16.msrb.mxu0 %v6414_v54  ;;  %v6657_v54 = vor.u32 %v7914_v17, %v6656_v47  ;;  %v7902_v47 = vld [vmem:[%s8915_s13 + $0xc8] sm:$0xf0] }
 0x4f7   : > { %v2354_v61 = vmul.f32 %v8278_v60, %v2353_v3  ;;  %v6357_v3 = vld [vmem:[%s8915_s13 + $0x8] sm:$0xf]  ;;  %v7855_v60 = vld [vmem:[%s8915_s13 + $0x10] sm:$0xf0] }
 0x4f9   : > { %v9502_v10 = vadd.f32 %v2355_v8, %v2354_v61  ;;  %v6358_v61 = vor.u32 %v7855_v60, %v6357_v3  ;;  %v6385_v8 = vld [vmem:[%s8915_s13 + $0x48] sm:$0xf]  ;;  %v7911_v3 = vld [vmem:[%s8915_s13 + $0x110] sm:$0xf0] }
 0x4fa   : > { %2794 = vmatpush.bf16.msrb.mxu0 %v6402_v42  ;;  %v6644_v42 = vld [vmem:[%s8915_s13 + $0x108] sm:$0xf] }
 0x4fb   : > { %v2359_v63 = vpack.c.bf16 %v9502_v10, %v9502_v10  ;;  %v9524_v27 = vpack.c.bf16 %v9502_v10, %v9423_v22  ;;  %v6393_v22 = vld [vmem:[%s8915_s13 + $0x50] sm:$0xf] }
 0x4fc   : > { %v6394_v7 = vor.u32 %v7864_v30, %v6393_v22  ;;  %v7856_v22 = vld [vmem:[%s8915_s13 + $0x1c] sm:$0xf]  ;;  %v6362_v30 = vor.u32 %v7857_v34, %v6361_v41  ;;  %v7905_v41 = vld [vmem:[%s8915_s13 + $0xe0] sm:$0xf0] }
 0x4fd   : > { %2528 = vmatmul.bf16.vlgmr.msra.gmra.mxu0 %v2359_v63  ;;  %2541 = vmatmul.bf16.vlgmr.msra.gmra.mxu1 %v2359_v63  ;;  %v7889_v34 = vld [vmem:[%s8908_s30 + $0x124] sm:$0xf] }
 0x4fe   : > { %2554 = vmatmul.bf16.vlgmr.msra.gmra.mxu2 %v2359_v63  ;;  %2808 = vmatpush.bf16.msrb.mxu1 %v6394_v7  ;;  %v7863_v63 = vld [vmem:[%s8915_s13 + $0x50] sm:$0xf0]  ;;  %v6363_v7 = vld [vmem:[%s8915_s13 + $0x24] sm:$0xf0] }
 0x4ff   : > { %v6386_v16 = vor.u32 %v7863_v63, %v6385_v8  ;;  %2795 = vmatpush.bf16.msrb.mxu0 %v6390_v25  ;;  %v6366_v15 = vor.u32 %v7856_v22, %v6363_v7  ;;  %v6645_v8 = vor.u32 %v7911_v3, %v6644_v42  ;;  %v6560_v63 = vld [vmem:[%s8908_s30 + $0x158] sm:$0xf]  ;;  %v6530_v7 = vld [vmem:[%s8908_s30 + $0x12c] sm:$0xf0] }
 0x500   : > { %v6561_v18 = vor.u32 %v7897_v13, %v6560_v63  ;;  %v6533_v44 = vor.u32 %v7889_v34, %v6530_v7 }
 0x501   : > { %2782 = vmatpush.bf16.msra.mxu3 %v6386_v16 }
 0x502   : > { %2809 = vmatpush.bf16.msrb.mxu1 %v6382_v46  ;;  %v6351_v46 = vld [vmem:[%s8915_s13 + $0xc] sm:$0xf0] }
 0x503   : > { %2796 = vmatpush.bf16.msrb.mxu0 %v6378_v6  ;;  %v6354_v40 = vor.u32 %v7853_v45, %v6351_v46  ;;  %v7894_v6 = vld [vmem:[%s8908_s30 + $0x148] sm:$0xf0] }
 0x505   : > { %2783 = vmatpush.bf16.msra.mxu3 %v6374_v28  ;;  %v6548_v28 = vld [vmem:[%s8908_s30 + $0x140] sm:$0xf] }
 0x506   : > { %2810 = vmatpush.bf16.msrb.mxu1 %v6370_v57  ;;  %v6572_v57 = vld [vmem:[%s8908_s30 + $0x170] sm:$0xf]  ;;  %v6549_v52 = vor.u32 %v7894_v6, %v6548_v28 }
 0x507   : > { %2797 = vmatpush.bf16.msrb.mxu0 %v6366_v15  ;;  %v6573_v19 = vor.u32 %v7900_v58, %v6572_v57  ;;  %v7883_v57 = vld [vmem:[%s8908_s30 + $0xf4] sm:$0xf] }
 0x509   : > { %2784 = vmatpush.bf16.msra.mxu3 %v6362_v30 }
 0x50a   : > { %2811 = vmatpush.bf16.msrb.mxu1 %v6358_v61 }
 0x50b   : > { %2798 = vmatpush.bf16.msrb.mxu0 %v6354_v40 }
 0x50d   : > { %2785 = vmatpush.bf16.msra.mxu3 %v6350_v12  ;;  %v6608_v12 = vld [vmem:[%s8915_s13 + $0xc0] sm:$0xf] }
 0x50e   : > { %3065 = vmatmul.bf16.vlgmr.msrb.gmra.mxu2 %v9508_v11  ;;  %3329 = vmatpush.bf16.msra.mxu1 %v6693_v59  ;;  %v6633_v59 = vor.u32 %v7908_v24, %v6632_v21  ;;  %v6609_v17 = vor.u32 %v7902_v47, %v6608_v12  ;;  %v7882_v21 = vld [vmem:[%s8908_s30 + $0xe8] sm:$0xf0] }
 0x50f   : > { %3115 = vmatpush.bf16.msra.mxu0 %v6573_v19 }
 0x511   : > { %3086 = vmatpush.bf16.msrb.mxu3 %v6569_v49  ;;  %v7885_v49 = vld [vmem:[%s8908_s30 + $0x100] sm:$0xf0] }
 0x512   : > { %3330 = vmatpush.bf16.msra.mxu1 %v6681_v39  ;;  %v6620_v39 = vld [vmem:[%s8915_s13 + $0xd8] sm:$0xf] }
 0x513   : > { %3116 = vmatpush.bf16.msra.mxu0 %v6561_v18  ;;  %v6621_v30 = vor.u32 %v7905_v41, %v6620_v39  ;;  %v6500_v18 = vld [vmem:[%s8908_s30 + $0xe0] sm:$0xf]  ;;  %v7879_v39 = vld [vmem:[%s8908_s30 + $0xd0] sm:$0xf0] }
 0x514   : > { %v6501_v62 = vor.u32 %v7882_v21, %v6500_v18  ;;  %v6610_v18 = vld [vmem:[%s8915_s13 + $0xcc] sm:$0xf0] }
 0x516   : > { %3331 = vmatpush.bf16.msra.mxu1 %v6669_v43 }
 0x517   : > { %3117 = vmatpush.bf16.msra.mxu0 %v6549_v52 }
 0x51a   : > { %3332 = vmatpush.bf16.msra.mxu1 %v6657_v54  ;;  %v6524_v54 = vld [vmem:[%s8908_s30 + $0x110] sm:$0xf] }
 0x51b   : > { %3118 = vmatpush.bf16.msra.mxu0 %v6537_v48  ;;  %v6525_v55 = vor.u32 %v7888_v56, %v6524_v54  ;;  %v7919_v56 = vld [vmem:[%s8915_s13 + $0x154] sm:$0xf] }
 0x51e   : > { %3070 = vmatmul.bf16.gmra.mxu2 %v9519_v4  ;;  %3333 = vmatpush.bf16.msra.mxu1 %v6645_v8 }
 0x51f   : > { %3119 = vmatpush.bf16.msra.mxu0 %v6525_v55  ;;  %v6682_v55 = vld [vmem:[%s8915_s13 + $0x15c] sm:$0xf0] }
 0x522   : > { %3334 = vmatpush.bf16.msra.mxu1 %v6633_v59 }
 0x526   : > { %3335 = vmatpush.bf16.msra.mxu1 %v6621_v30 }
 0x52a   : > { %3336 = vmatpush.bf16.msra.mxu1 %v6609_v17 }
 0x52e   : > { %3075 = vmatmul.bf16.gmra.mxu2 %v9524_v27 }
 0x57a   : > { %v2529_v0 = vpop.f32.mrf.mxu0  ;;  %v2542_v51 = vpop.f32.mrf.mxu1 }
 0x57b   : > { %v2563_v53 = vadd.f32 %v2529_v0, %v9098_v20  ;;  %v2583_v23 = vadd.f32 %v2542_v51, %v9178_v5  ;;  %v7895_v20 = vld [vmem:[%s8908_s30 + $0x154] sm:$0xf]  ;;  %v6554_v5 = vld [vmem:[%s8908_s30 + $0x15c] sm:$0xf0]  ;;  %v7886_v0 = vld [vmem:[%s8908_s30 + $0x10c] sm:$0xf] }
 0x57c   : > { %v6557_v16 = vor.u32 %v7895_v20, %v6554_v5  ;;  %v6518_v51 = vld [vmem:[%s8908_s30 + $0x114] sm:$0xf0]  ;;  %v7880_v20 = vld [vmem:[%s8908_s30 + $0xdc] sm:$0xf]  ;;  %v6494_v5 = vld [vmem:[%s8908_s30 + $0xe4] sm:$0xf0] }
 0x57d   : > { %v6345_v60 = vmul.f32 -1.442695, %v2563_v53  ;;  %v6346_v61 = vmul.f32 -1.442695, %v2583_v23  ;;  %v6521_v40 = vor.u32 %v7886_v0, %v6518_v51  ;;  %v6506_v53 = vld [vmem:[%s8908_s30 + $0xfc] sm:$0xf0] }
 0x57e   : > { %3087 = vmatpush.bf16.msrb.mxu3 %v6557_v16  ;;  %v6512_v23 = vld [vmem:[%s8908_s30 + $0xf8] sm:$0xf]  ;;  %v6509_v19 = vor.u32 %v7883_v57, %v6506_v53  ;;  %v6497_v16 = vor.u32 %v7880_v20, %v6494_v5  ;;  %v7922_v51 = vld [vmem:[%s8915_s13 + $0x16c] sm:$0xf]  ;;  %v7916_v57 = vld [vmem:[%s8915_s13 + $0x13c] sm:$0xf] }
 0x57f   : > { %8279 = vpow2.f32 %v6345_v60  ;;  %v6513_v42 = vor.u32 %v7885_v49, %v6512_v23  ;;  %v6670_v53 = vld [vmem:[%s8915_s13 + $0x144] sm:$0xf0]  ;;  %v7913_v49 = vld [vmem:[%s8915_s13 + $0x124] sm:$0xf]  ;;  %v7904_v5 = vld [vmem:[%s8915_s13 + $0xdc] sm:$0xf] }
 0x580   : > { %8281 = vpow2.f32 %v6346_v61  ;;  %v6673_v23 = vor.u32 %v7916_v57, %v6670_v53  ;;  %v7906_v57 = vld [vmem:[%s8915_s13 + $0xe8] sm:$0xf0] }
 0x581   : > { %v9591_v25 = vpop.f32.mrf.mxu2  ;;  %3120 = vmatpush.bf16.msra.mxu0 %v6513_v42  ;;  %v7910_v42 = vld [vmem:[%s8915_s13 + $0x10c] sm:$0xf] }
 0x582   : > { %v2531_v29 = vpop.f32.mrf.mxu0  ;;  %v2544_v31 = vpop.f32.mrf.mxu1  ;;  %3088 = vmatpush.bf16.msrb.mxu3 %v6545_v2  ;;  %v6488_v2 = vld [vmem:[%s8908_s30 + $0xc8] sm:$0xf]  ;;  %v2607_v30 = vadd.f32 %v8208_v26, %v9591_v25 }
 0x583   : > { %v7877_v29 = vld [vmem:[%s8908_s30 + $0xc4] sm:$0xf]  ;;  %v6482_v31 = vld [vmem:[%s8908_s30 + $0xcc] sm:$0xf0]  ;;  %v6489_v34 = vor.u32 %v7879_v39, %v6488_v2  ;;  %v7918_v39 = vld [vmem:[%s8915_s13 + $0x148] sm:$0xf0] }
 0x584   : > { %v6485_v52 = vor.u32 %v7877_v29, %v6482_v31  ;;  %v7924_v29 = vld [vmem:[%s8915_s13 + $0x178] sm:$0xf0]  ;;  %v7921_v2 = vld [vmem:[%s8915_s13 + $0x160] sm:$0xf0]  ;;  %s5349_s30 = sshll.u32 %s5346_s18, 4  ;;  %s5350_s30 = int_to_ptr.hbm [resolvable:$true] %s5349_s30 }
 0x585   : > { %v8280_v22 = vpop.eup %8279  ;;  %3121 = vmatpush.bf16.msra.mxu0 %v6501_v62 }
 0x586   : > { %v8282_v15 = vpop.eup %8281  ;;  %v9603_v43 = vadd.f32 1.0, %v8280_v22  ;;  %3089 = vmatpush.bf16.msrb.mxu3 %v6533_v44 }
 0x587   : > { %v9605_v45 = vadd.f32 1.0, %v8282_v15 }
 0x588   : > { %8283 = vrcp.f32 %v9603_v43  ;;  %v2579_v13 = vand.u32 2147483648, %v9603_v43  ;;  %v2577_v59 = vand.u32 2147483647, %v9603_v43  ;;  %vm2573_vm1 = vweird.f32 %v9603_v43 }
 0x589   : > { %8285 = vrcp.f32 %v9605_v45  ;;  %v2557_v46 = vpop.f32.mrf.mxu2  ;;  %v2599_v14 = vand.u32 2147483648, %v9605_v45  ;;  %vm2593_vm5 = vweird.f32 %v9605_v45  ;;  %3122 = vmatpush.bf16.msra.mxu0 %v6489_v34 }
 0x58a   : > { %3090 = vmatpush.bf16.msrb.mxu3 %v6521_v40  ;;  %v2580_v41 = vor.u32 1.1754944e-38, %v2579_v13  ;;  %vm2578_vm3 = vcmp.eq.f32.partialorder %v2577_v59, 8.507059e+37 }
 0x58b   : > { %v2600_v48 = vor.u32 1.1754944e-38, %v2599_v14  ;;  %v7915_v14 = vld [vmem:[%s8915_s13 + $0x130] sm:$0xf0] }
 0x58e   : > { %v8284_v58 = vpop.eup %8283  ;;  %3091 = vmatpush.bf16.msrb.mxu3 %v6509_v19 }
 0x58f   : > { %v8286_v3 = vpop.eup %8285  ;;  %v2569_v60 = vmul.f32 %v8284_v58, %v9603_v43  ;;  %vm2574_vm0 = vweird.f32 %v8284_v58  ;;  %v2597_v43 = vand.u32 2147483647, %v9605_v45 }
 0x590   : > { %v2589_v61 = vmul.f32 %v8286_v3, %v9605_v45  ;;  %vm2575_vm2 = vmor %vm2573_vm1, %vm2574_vm0  ;;  %vm2594_vm4 = vweird.f32 %v8286_v3  ;;  %v6694_v45 = vld [vmem:[%s8915_s13 + $0x174] sm:$0xf0] }
 0x591   : > { %v2570_v8 = vsub.f32 1.0, %v2569_v60  ;;  %vm2595_vm6 = vmor %vm2593_vm5, %vm2594_vm4  ;;  %vm2598_vm7 = vcmp.eq.f32.partialorder %v2597_v43, 8.507059e+37  ;;  %v6697_v54 = vor.u32 %v7922_v51, %v6694_v45  ;;  %v6640_v45 = vld [vmem:[%s8915_s13 + $0xf8] sm:$0xf] }
 0x592   : > { %v2590_v63 = vsub.f32 1.0, %v2589_v61  ;;  %3092 = vmatpush.bf16.msrb.mxu3 %v6497_v16  ;;  %v7907_v61 = vld [vmem:[%s8915_s13 + $0xf4] sm:$0xf]  ;;  %v7901_v16 = vld [vmem:[%s8915_s13 + $0xc4] sm:$0xf] }
 0x593   : > { %v2571_v24 = vmul.f32 %v8284_v58, %v2570_v8  ;;  %v6634_v8 = vld [vmem:[%s8915_s13 + $0xfc] sm:$0xf0]  ;;  %v6613_v21 = vor.u32 %v7901_v16, %v6610_v18 }
 0x594   : > { %v2591_v28 = vmul.f32 %v8286_v3, %v2590_v63  ;;  %v6637_v20 = vor.u32 %v7907_v61, %v6634_v8  ;;  %v6622_v63 = vld [vmem:[%s8915_s13 + $0xe4] sm:$0xf0] }
 0x595   : > { %v2572_v6 = vadd.f32 %v8284_v58, %v2571_v24  ;;  %v6625_v13 = vor.u32 %v7904_v5, %v6622_v63 }
 0x596   : > { %v2592_v7 = vadd.f32 %v8286_v3, %v2591_v28  ;;  %3093 = vmatpush.bf16.msrb.mxu3 %v6485_v52  ;;  %v6700_v28 = vld [vmem:[%s8915_s13 + $0x170] sm:$0xf]  ;;  %v6676_v52 = vld [vmem:[%s8915_s13 + $0x140] sm:$0xf] }
 0x597   : > { %v2576_v22 = vsel %vm2575_vm2, %v8284_v58, %v2572_v6  ;;  %v6658_v58 = vld [vmem:[%s8915_s13 + $0x12c] sm:$0xf0]  ;;  %v6701_v31 = vor.u32 %v7924_v29, %v6700_v28  ;;  %v730_v6 = vadd.f32 %v9115_v38, %v9067_v50  ;;  %v6823_v28 = vld [vmem:[%s8915_s13 + $0x168] sm:$0xf]  ;;  %v7947_v29 = vld [vmem:[%s8915_s13 + $0x170] sm:$0xf0] }
 0x598   : > { %v2581_v37 = vsel %vm2578_vm3, %v2580_v41, %v2576_v22  ;;  %v2596_v25 = vsel %vm2595_vm6, %v8286_v3, %v2592_v7  ;;  %v6661_v19 = vor.u32 %v7913_v49, %v6658_v58  ;;  %v6646_v3 = vld [vmem:[%s8915_s13 + $0x114] sm:$0xf0]  ;;  %v8209_v49 = vld [vmem:[%s8924_s8] ss:$0 sm:$0xff] }
 0x599   : > { %v2608_v15 = vmul.f32 %v2607_v30, %v2581_v37  ;;  %v2601_v12 = vsel %vm2598_vm7, %v2600_v48, %v2596_v25  ;;  %v6649_v60 = vor.u32 %v7910_v42, %v6646_v3  ;;  %3355 = vmatpush.bf16.msra.mxu2 %v6701_v31  ;;  %v6677_v30 = vor.u32 %v7918_v39, %v6676_v52  ;;  %v6664_v37 = vld [vmem:[%s8915_s13 + $0x128] sm:$0xf]  ;;  %v6811_v31 = vld [vmem:[%s8915_s13 + $0x150] sm:$0xf] }
 0x59a   : > { %v2611_v46 = vsub.f32 1.0, %v2601_v12  ;;  %v2613_v0 = vmul.f32 %v2601_v12, %v9502_v10  ;;  %v6685_v10 = vor.u32 %v7919_v56, %v6682_v55  ;;  %v6652_v12 = vld [vmem:[%s8915_s13 + $0x110] sm:$0xf]  ;;  %v6616_v3 = vld [vmem:[%s8915_s13 + $0xc8] sm:$0xf] }
 0x59b   : > { %v2609_v44 = vadd.f32 %v2608_v15, %v9181_v9  ;;  %v6665_v15 = vor.u32 %v7915_v14, %v6664_v37 }
 0x59d   : > { %8287 = vtanh.f32 %v2609_v44 }
 0x5a3   : > { %v8288_v47 = vpop.eup %8287 }
 0x5a4   : > { %v2612_v17 = vmul.f32 %v8288_v47, %v2611_v46  ;;  %v7912_v46 = vld [vmem:[%s8915_s13 + $0x118] sm:$0xf0] }
 0x5a5   : > { %v6653_v47 = vor.u32 %v7912_v46, %v6652_v12 }
 0x5a6   : > { %v9641_v40 = vadd.f32 %v2613_v0, %v2612_v17 }
 0x5a8   : > { %v2617_v9 = vpack.c.bf16 %v9641_v40, %v9641_v40 }
 0x5aa   : > { %2786 = vmatmul.bf16.vlgmr.msra.gmra.mxu3 %v2617_v9  ;;  %2799 = vmatmul.bf16.vlgmr.msrb.gmra.mxu0 %v2617_v9 }
 0x5ab   : > { %2812 = vmatmul.bf16.vlgmr.msrb.gmra.mxu1 %v2617_v9  ;;  %v7909_v9 = vld [vmem:[%s8915_s13 + $0x100] sm:$0xf0] }
 0x5ac   : > { %3342 = vmatpush.bf16.msrb.mxu1 %v6697_v54  ;;  %v6641_v56 = vor.u32 %v7909_v9, %v6640_v45 }
 0x5b0   : > { %3343 = vmatpush.bf16.msrb.mxu1 %v6685_v10  ;;  %v6628_v10 = vld [vmem:[%s8915_s13 + $0xe0] sm:$0xf] }
 0x5b4   : > { %3344 = vmatpush.bf16.msrb.mxu1 %v6673_v23  ;;  %v6629_v23 = vor.u32 %v7906_v57, %v6628_v10  ;;  %v7940_v57 = vld [vmem:[%s8915_s13 + $0x13c] sm:$0xf] }
 0x5b8   : > { %3345 = vmatpush.bf16.msrb.mxu1 %v6661_v19 }
 0x5ba   : > { %3094 = vmatmul.bf16.vlgmr.msrb.gmra.mxu3 %v9508_v11  ;;  %3123 = vmatmul.bf16.vlgmr.msra.gmra.mxu0 %v9508_v11  ;;  %v759_v11 = vadd.f32 %v9198_v35, %v9111_v36 }
 0x5bb   : > { %3337 = vmatmul.bf16.vlgmr.msra.gmra.mxu1 %v8649_v32 }
 0x5bc   : > { %3346 = vmatpush.bf16.msrb.mxu1 %v6649_v60  ;;  %v7903_v60 = vld [vmem:[%s8915_s13 + $0xd0] sm:$0xf0] }
 0x5bd   : > { %v6617_v5 = vor.u32 %v7903_v60, %v6616_v3 }
 0x5c0   : > { %3347 = vmatpush.bf16.msrb.mxu1 %v6637_v20 }
 0x5c4   : > { %3348 = vmatpush.bf16.msrb.mxu1 %v6625_v13 }
 0x5c8   : > { %3349 = vmatpush.bf16.msrb.mxu1 %v6613_v21 }
 0x5ca   : > { %3099 = vmatmul.bf16.gmra.mxu3 %v9519_v4  ;;  %3128 = vmatmul.bf16.gmra.mxu0 %v9519_v4  ;;  %v6688_v4 = vld [vmem:[%s8915_s13 + $0x158] sm:$0xf] }
 0x5cb   : > { %3350 = vmatmul.bf16.vlgmr.msrb.gmra.mxu1 %v8649_v32  ;;  %v6689_v36 = vor.u32 %v7921_v2, %v6688_v4  ;;  %v6824_v2 = vor.u32 %v7947_v29, %v6823_v28 }
 0x5cd   : > { %3356 = vmatpush.bf16.msra.mxu2 %v6689_v36  ;;  %3586 = vmatpush.bf16.msra.mxu3 %v6824_v2 }
 0x5d1   : > { %3357 = vmatpush.bf16.msra.mxu2 %v6677_v30 }
 0x5d5   : > { %3358 = vmatpush.bf16.msra.mxu2 %v6665_v15 }
 0x5d9   : > { %3359 = vmatpush.bf16.msra.mxu2 %v6653_v47  ;;  %v7943_v47 = vld [vmem:[%s8915_s13 + $0x154] sm:$0xf] }
 0x5da   : > { %3104 = vmatmul.bf16.gmra.mxu3 %v9524_v27  ;;  %3133 = vmatmul.bf16.gmra.mxu0 %v9524_v27 }
 0x5dd   : > { %3360 = vmatpush.bf16.msra.mxu2 %v6641_v56 }
 0x5e1   : > { %3361 = vmatpush.bf16.msra.mxu2 %v6629_v23  ;;  %v6775_v23 = vld [vmem:[%s8915_s13 + $0x108] sm:$0xf] }
 0x5e5   : > { %3362 = vmatpush.bf16.msra.mxu2 %v6617_v5  ;;  %v7945_v5 = vld [vmem:[%s8915_s13 + $0x160] sm:$0xf0] }
 0x627   : > { %v2800_v24 = vpop.f32.mrf.mxu0 }
 0x628   : > { %v2841_v59 = vadd.f32 %v2800_v24, %v759_v11  ;;  %v9669_v26 = vpop.f32.mrf.mxu1  ;;  %v788_v11 = vadd.f32 %v9209_v1, %v9152_v33  ;;  %v6825_v33 = vld [vmem:[%s8915_s13 + $0x174] sm:$0xf0]  ;;  %v6807_v24 = vld [vmem:[%s8915_s13 + $0x140] sm:$0xf] }
 0x629   : > { %v2865_v13 = vadd.f32 %v8209_v49, %v9669_v26 }
 0x62a   : > { %v6444_v62 = vmul.f32 -1.442695, %v2841_v59 }
 0x62c   : > { %8289 = vpow2.f32 %v6444_v62 }
 0x62d   : > { %v2787_v27 = vpop.f32.mrf.mxu3 }
 0x62e   : > { %v2821_v35 = vadd.f32 %v2787_v27, %v730_v6  ;;  %v7944_v6 = vld [vmem:[%s8915_s13 + $0x158] sm:$0xf0]  ;;  %v7946_v27 = vld [vmem:[%s8915_s13 + $0x16c] sm:$0xf] }
 0x62f   : > { %v2802_v41 = vpop.f32.mrf.mxu0  ;;  %v6828_v36 = vor.u32 %v7946_v27, %v6825_v33  ;;  %v6812_v52 = vor.u32 %v7944_v6, %v6811_v31  ;;  %v6795_v31 = vld [vmem:[%s8915_s13 + $0x128] sm:$0xf]  ;;  %v7934_v33 = vld [vmem:[%s8915_s13 + $0x10c] sm:$0xf] }
 0x630   : > { %v6443_v34 = vmul.f32 -1.442695, %v2821_v35  ;;  %v2815_v22 = vpop.f32.mrf.mxu1  ;;  %v6799_v41 = vld [vmem:[%s8915_s13 + $0x138] sm:$0xf] }
 0x631   : > { %3599 = vmatpush.bf16.msrb.mxu0 %v6828_v36  ;;  %3587 = vmatpush.bf16.msra.mxu3 %v6812_v52  ;;  %v6783_v36 = vld [vmem:[%s8915_s13 + $0x110] sm:$0xf]  ;;  %v7936_v52 = vld [vmem:[%s8915_s13 + $0x118] sm:$0xf0] }
 0x632   : > { %v8290_v7 = vpop.eup %8289  ;;  %8291 = vpow2.f32 %v6443_v34  ;;  %v7941_v34 = vld [vmem:[%s8915_s13 + $0x140] sm:$0xf0] }
 0x633   : > { %v9681_v50 = vadd.f32 1.0, %v8290_v7  ;;  %v6800_v30 = vor.u32 %v7941_v34, %v6799_v41 }
 0x635   : > { %v2789_v38 = vpop.f32.mrf.mxu3  ;;  %8293 = vrcp.f32 %v9681_v50  ;;  %vm2851_vm13 = vweird.f32 %v9681_v50  ;;  %v2855_v59 = vand.u32 2147483647, %v9681_v50  ;;  %v2857_v26 = vand.u32 2147483648, %v9681_v50  ;;  %3588 = vmatpush.bf16.msra.mxu3 %v6800_v30  ;;  %v6765_v30 = vld [vmem:[%s8915_s13 + $0xfc] sm:$0xf0] }
 0x637   : > { %v2858_v35 = vor.u32 1.1754944e-38, %v2857_v26  ;;  %vm2856_vm15 = vcmp.eq.f32.partialorder %v2855_v59, 8.507059e+37  ;;  %v7942_v59 = vld [vmem:[%s8915_s13 + $0x148] sm:$0xf0] }
 0x638   : > { %v8292_v43 = vpop.eup %8291  ;;  %v9684_v44 = vpop.f32.mrf.mxu1 }
 0x639   : > { %v2825_v25 = vadd.f32 1.0, %v8292_v43  ;;  %v3066_v43 = vpop.f32.mrf.mxu2 }
 0x63b   : > { %8295 = vrcp.f32 %v2825_v25  ;;  %v9686_v48 = vpop.eup %8293  ;;  %v2837_v58 = vand.u32 2147483648, %v2825_v25  ;;  %v2835_v42 = vand.u32 2147483647, %v2825_v25  ;;  %vm2831_vm9 = vweird.f32 %v2825_v25 }
 0x63c   : > { %v2847_v17 = vmul.f32 %v9686_v48, %v9681_v50  ;;  %vm2852_vm11 = vweird.f32 %v9686_v48 }
 0x63d   : > { %v2838_v63 = vor.u32 1.1754944e-38, %v2837_v58  ;;  %vm2836_vm12 = vcmp.eq.f32.partialorder %v2835_v42, 8.507059e+37  ;;  %vm9708_vm14 = vmor %vm2851_vm13, %vm2852_vm11  ;;  %v3095_v56 = vpop.f32.mrf.mxu3  ;;  %v7948_v42 = vld [vmem:[%s8915_s13 + $0x178] sm:$0xf0] }
 0x63e   : > { %v2848_v55 = vsub.f32 1.0, %v2847_v17  ;;  %v6787_v17 = vld [vmem:[%s8915_s13 + $0x120] sm:$0xf] }
 0x640   : > { %v3340_v0 = vpop.f32.mrf.mxu1  ;;  %v2849_v61 = vmul.f32 %v9686_v48, %v2848_v55 }
 0x641   : > { %v8296_v51 = vpop.eup %8295 }
 0x642   : > { %v2827_v54 = vmul.f32 %v8296_v51, %v2825_v25  ;;  %vm2832_vm8 = vweird.f32 %v8296_v51  ;;  %v2850_v21 = vadd.f32 %v9686_v48, %v2849_v61  ;;  %v9728_v25 = vpop.f32.mrf.mxu2 }
 0x643   : > { %vm2833_vm10 = vmor %vm2831_vm9, %vm2832_vm8 }
 0x644   : > { %v2828_v53 = vsub.f32 1.0, %v2827_v54  ;;  %v2854_v1 = vsel %vm9708_vm14, %v9686_v48, %v2850_v21  ;;  %v9731_v48 = vld [vmem:[%s8917_s9 + $0x3] sm:$0x7] }
 0x645   : > { %v2859_v22 = vsel %vm2856_vm15, %v2858_v35, %v2854_v1  ;;  %v9734_v12 = vperm.slane %v9731_v48, 0  ;;  %v9745_v54 = vperm.slane %v9731_v48, 1  ;;  %v6777_v1 = vld [vmem:[%s8915_s13 + $0x114] sm:$0xf0] }
 0x646   : > { %v2829_v19 = vmul.f32 %v8296_v51, %v2828_v53  ;;  %v2869_v7 = vsub.f32 1.0, %v2859_v22  ;;  %v2871_v50 = vmul.f32 %v2859_v22, %v9641_v40  ;;  %v6801_v53 = vld [vmem:[%s8915_s13 + $0x144] sm:$0xf0]  ;;  %v6780_v35 = vor.u32 %v7934_v33, %v6777_v1  ;;  %v7931_v22 = vld [vmem:[%s8915_s13 + $0xf4] sm:$0xf] }
 0x647   : > { %v3067_v0 = vadd.f32 %v3066_v43, %v9734_v12  ;;  %v3096_v49 = vadd.f32 %v3095_v56, %v9745_v54  ;;  %v6804_v58 = vor.u32 %v7940_v57, %v6801_v53  ;;  %v7929_v43 = vld [vmem:[%s8915_s13 + $0xe0] sm:$0xf0]  ;;  %v7930_v56 = vld [vmem:[%s8915_s13 + $0xe8] sm:$0xf0] }
 0x648   : > { %v2830_v8 = vadd.f32 %v8296_v51, %v2829_v19  ;;  %v9700_v20 = vpop.f32.mrf.mxu1  ;;  %v6831_v19 = vld [vmem:[%s8915_s13 + $0x170] sm:$0xf] }
 0x649   : > { %v3371_v9 = vadd.f32 %v9684_v44, %v3067_v0  ;;  %v7935_v44 = vld [vmem:[%s8915_s13 + $0x110] sm:$0xf0]  ;;  %v6832_v60 = vor.u32 %v7948_v42, %v6831_v19  ;;  %v3391_v61 = vadd.f32 %v9700_v20, %v3096_v49  ;;  %v6808_v20 = vor.u32 %v7942_v59, %v6807_v24  ;;  %v7926_v0 = vld [vmem:[%s8915_s13 + $0xc8] sm:$0xf0]  ;;  %v6741_v49 = vld [vmem:[%s8915_s13 + $0xcc] sm:$0xf0] }
 0x64a   : > { %v2834_v16 = vsel %vm2833_vm10, %v8296_v51, %v2830_v8  ;;  %v9736_v46 = vpop.f32.mrf.mxu2  ;;  %v7938_v51 = vld [vmem:[%s8915_s13 + $0x128] sm:$0xf0]  ;;  %v6776_v3 = vor.u32 %v7935_v44, %v6775_v23  ;;  %v6819_v8 = vld [vmem:[%s8915_s13 + $0x158] sm:$0xf]  ;;  %v7927_v44 = vld [vmem:[%s8915_s13 + $0xd0] sm:$0xf0] }
 0x64b   : > { %v2839_v18 = vsel %vm2836_vm12, %v2838_v63, %v2834_v16  ;;  %v6788_v45 = vor.u32 %v7938_v51, %v6787_v17  ;;  %v6702_v55 = vmul.f32 -1.442695, %v3371_v9  ;;  %3612 = vmatpush.bf16.msra.mxu1 %v6832_v60  ;;  %v6820_v63 = vor.u32 %v7945_v5, %v6819_v8  ;;  %v6789_v16 = vld [vmem:[%s8915_s13 + $0x12c] sm:$0xf0]  ;;  %v6739_v17 = vld [vmem:[%s8915_s13 + $0xc0] sm:$0xf] }
 0x64c   : > { %v2866_v62 = vmul.f32 %v2865_v13, %v2839_v18  ;;  %v7937_v13 = vld [vmem:[%s8915_s13 + $0x124] sm:$0xf]  ;;  %v6763_v18 = vld [vmem:[%s8915_s13 + $0xf0] sm:$0xf]  ;;  %v6703_v26 = vmul.f32 -1.442695, %v3391_v61  ;;  %v6740_v53 = vor.u32 %v7926_v0, %v6739_v17 }
 0x64d   : > { %3589 = vmatpush.bf16.msra.mxu3 %v6788_v45  ;;  %v6792_v21 = vor.u32 %v7937_v13, %v6789_v16  ;;  %v6759_v9 = vld [vmem:[%s8915_s13 + $0xe0] sm:$0xf]  ;;  %v9808_v24 = vperm.slane %v9731_v48, 2 }
 0x64e   : > { %v2867_v4 = vadd.f32 %v2866_v62, %v788_v11  ;;  %v7932_v11 = vld [vmem:[%s8915_s13 + $0xf8] sm:$0xf0]  ;;  %v6760_v23 = vor.u32 %v7930_v56, %v6759_v9  ;;  %v6954_v9 = vld [vmem:[%s8915_s13 + $0x168] sm:$0xf]  ;;  %v7971_v56 = vld [vmem:[%s8915_s13 + $0x170] sm:$0xf0] }
 0x64f   : > { %v6764_v62 = vor.u32 %v7932_v11, %v6763_v18  ;;  %3613 = vmatpush.bf16.msra.mxu1 %v6820_v63 }
 0x650   : > { %8297 = vtanh.f32 %v2867_v4  ;;  %v3353_v39 = vpop.f32.mrf.mxu1  ;;  %v7939_v4 = vld [vmem:[%s8915_s13 + $0x130] sm:$0xf0] }
 0x651   : > { %3590 = vmatpush.bf16.msra.mxu3 %v6776_v3  ;;  %8299 = vpow2.f32 %v6702_v55  ;;  %v6796_v6 = vor.u32 %v7939_v4, %v6795_v31  ;;  %v6784_v39 = vor.u32 %v7936_v52, %v6783_v36  ;;  %v7925_v55 = vld [vmem:[%s8915_s13 + $0xc4] sm:$0xf] }
 0x652   : > { %v9747_v10 = vpop.f32.mrf.mxu2  ;;  %8301 = vpow2.f32 %v6703_v26  ;;  %v6744_v19 = vor.u32 %v7925_v55, %v6741_v49  ;;  %v3124_v26 = vpop.f32.mrf.mxu0  ;;  %v7970_v55 = vld [vmem:[%s8915_s13 + $0x16c] sm:$0xf]  ;;  %v6956_v49 = vld [vmem:[%s8915_s13 + $0x174] sm:$0xf0] }
 0x653   : > { %3614 = vmatpush.bf16.msra.mxu1 %v6808_v20 }
 0x655   : > { %3591 = vmatpush.bf16.msra.mxu3 %v6764_v62 }
 0x656   : > { %v8298_v37 = vpop.eup %8297 }
 0x657   : > { %v2870_v14 = vmul.f32 %v8298_v37, %v2869_v7  ;;  %v8300_v29 = vpop.eup %8299  ;;  %3615 = vmatpush.bf16.msra.mxu1 %v6796_v6  ;;  %v6771_v7 = vld [vmem:[%s8915_s13 + $0xf8] sm:$0xf]  ;;  %v6768_v37 = vor.u32 %v7931_v22, %v6765_v30  ;;  %v3125_v6 = vadd.f32 %v3124_v26, %v9808_v24 }
 0x658   : > { %v9769_v2 = vadd.f32 1.0, %v8300_v29  ;;  %v8302_v27 = vpop.eup %8301  ;;  %v6930_v26 = vld [vmem:[%s8915_s13 + $0x138] sm:$0xf] }
 0x659   : > { %v2872_v38 = vadd.f32 %v2871_v50, %v2870_v14  ;;  %v9778_v34 = vadd.f32 1.0, %v8302_v27  ;;  %v7933_v14 = vld [vmem:[%s8915_s13 + $0x100] sm:$0xf0] }
 0x65a   : > { %v9765_v28 = vpop.f32.mrf.mxu2  ;;  %8303 = vrcp.f32 %v9769_v2  ;;  %v6772_v50 = vor.u32 %v7933_v14, %v6771_v7  ;;  %v3387_v16 = vand.u32 2147483648, %v9769_v2  ;;  %vm3381_vm1 = vweird.f32 %v9769_v2 }
 0x65b   : > { %v2886_v15 = vpack.c.bf16 %v2872_v38, %v9641_v40  ;;  %v6813_v40 = vld [vmem:[%s8915_s13 + $0x15c] sm:$0xf0]  ;;  %3616 = vmatpush.bf16.msra.mxu1 %v6784_v39  ;;  %8305 = vrcp.f32 %v9778_v34  ;;  %v3385_v18 = vand.u32 2147483647, %v9769_v2  ;;  %v3407_v27 = vand.u32 2147483648, %v9778_v34 }
 0x65c   : > { %v3388_v20 = vor.u32 1.1754944e-38, %v3387_v16  ;;  %vm3401_vm5 = vweird.f32 %v9778_v34  ;;  %v3405_v33 = vand.u32 2147483647, %v9778_v34  ;;  %v7969_v16 = vld [vmem:[%s8915_s13 + $0x160] sm:$0xf0] }
 0x65d   : > { %3080 = vmatmul.bf16.gmra.mxu2 %v2886_v15  ;;  %3109 = vmatmul.bf16.gmra.mxu3 %v2886_v15  ;;  %vm3386_vm3 = vcmp.eq.f32.partialorder %v3385_v18, 8.507059e+37  ;;  %v3408_v36 = vor.u32 1.1754944e-38, %v3407_v27  ;;  %v7966_v27 = vld [vmem:[%s8915_s13 + $0x148] sm:$0xf0] }
 0x65e   : > { %3138 = vmatmul.bf16.gmra.mxu0 %v2886_v15  ;;  %v6751_v15 = vld [vmem:[%s8915_s13 + $0xd8] sm:$0xf]  ;;  %vm3406_vm7 = vcmp.eq.f32.partialorder %v3405_v33, 8.507059e+37 }
 0x65f   : > { %3617 = vmatpush.bf16.msra.mxu1 %v6772_v50  ;;  %v3097_v50 = vpop.f32.mrf.mxu3 }
 0x660   : > { %v8304_v38 = vpop.eup %8303 }
 0x661   : > { %v3377_v51 = vmul.f32 %v8304_v38, %v9769_v2  ;;  %v8306_v3 = vpop.eup %8305  ;;  %vm3382_vm0 = vweird.f32 %v8304_v38 }
 0x662   : > { %v9776_v41 = vpop.f32.mrf.mxu2  ;;  %v3397_v61 = vmul.f32 %v8306_v3, %v9778_v34  ;;  %vm3383_vm2 = vmor %vm3381_vm1, %vm3382_vm0  ;;  %vm3402_vm4 = vweird.f32 %v8306_v3  ;;  %v9818_v34 = vpop.f32.mrf.mxu0 }
 0x663   : > { %3618 = vmatpush.bf16.msra.mxu1 %v6760_v23  ;;  %v3378_v60 = vsub.f32 1.0, %v3377_v51  ;;  %vm3403_vm6 = vmor %vm3401_vm5, %vm3402_vm4  ;;  %v6955_v23 = vor.u32 %v7971_v56, %v6954_v9  ;;  %v7963_v9 = vld [vmem:[%s8915_s13 + $0x130] sm:$0xf0] }
 0x664   : > { %v3398_v63 = vsub.f32 1.0, %v3397_v61  ;;  %v7967_v61 = vld [vmem:[%s8915_s13 + $0x154] sm:$0xf] }
 0x665   : > { %v3379_v8 = vmul.f32 %v8304_v38, %v3378_v60  ;;  %3842 = vmatpush.bf16.msrb.mxu2 %v6955_v23  ;;  %v7968_v60 = vld [vmem:[%s8915_s13 + $0x158] sm:$0xf0] }
 0x666   : > { %v3399_v11 = vmul.f32 %v8306_v3, %v3398_v63  ;;  %v6944_v63 = vld [vmem:[%s8915_s13 + $0x15c] sm:$0xf0] }
 0x667   : > { %v3380_v13 = vadd.f32 %v8304_v38, %v3379_v8  ;;  %v6947_v18 = vor.u32 %v7967_v61, %v6944_v63 }
 0x668   : > { %v3400_v31 = vadd.f32 %v8306_v3, %v3399_v11 }
 0x669   : > { %v3384_v59 = vsel %vm3383_vm2, %v8304_v38, %v3380_v13  ;;  %v6950_v13 = vld [vmem:[%s8915_s13 + $0x158] sm:$0xf] }
 0x66a   : > { %v3389_v4 = vsel %vm3386_vm3, %v3388_v20, %v3384_v59  ;;  %v3404_v1 = vsel %vm3403_vm6, %v8306_v3, %v3400_v31  ;;  %v9820_v38 = vpop.f32.mrf.mxu0  ;;  %v6942_v3 = vld [vmem:[%s8915_s13 + $0x150] sm:$0xf]  ;;  %v3098_v59 = vadd.f32 %v3097_v50, %v9745_v54  ;;  %v7964_v20 = vld [vmem:[%s8915_s13 + $0x13c] sm:$0xf] }
 0x66b   : > { %v3409_v52 = vsel %vm3406_vm7, %v3408_v36, %v3404_v1  ;;  %v6943_v8 = vor.u32 %v7968_v60, %v6942_v3  ;;  %v6914_v3 = vld [vmem:[%s8915_s13 + $0x110] sm:$0xf]  ;;  %v7960_v60 = vld [vmem:[%s8915_s13 + $0x118] sm:$0xf0] }
 0x66c   : > { %v3420_v39 = vsub.f32 1.0, %v3409_v52  ;;  %v3422_v7 = vmul.f32 0.0, %v3409_v52  ;;  %v7962_v52 = vld [vmem:[%s8915_s13 + $0x128] sm:$0xf0] }
 0x66d   : > { %3363 = vmatmul.bf16.vlgmr.msra.gmra.mxu2 %v8649_v32  ;;  %v6816_v32 = vor.u32 %v7943_v47, %v6813_v40  ;;  %v7928_v47 = vld [vmem:[%s8915_s13 + $0xdc] sm:$0xf]  ;;  %v6752_v40 = vor.u32 %v7929_v43, %v6751_v15  ;;  %v9822_v15 = vpop.f32.mrf.mxu3 }
 0x66e   : > { %3843 = vmatpush.bf16.msrb.mxu2 %v6943_v8 }
 0x66f   : > { %3600 = vmatpush.bf16.msrb.mxu0 %v6816_v32  ;;  %v6753_v32 = vld [vmem:[%s8915_s13 + $0xe4] sm:$0xf0]  ;;  %3592 = vmatpush.bf16.msra.mxu3 %v6752_v40 }
 0x670   : > { %v6756_v45 = vor.u32 %v7928_v47, %v6753_v32 }
 0x672   : > { %v9824_v43 = vpop.f32.mrf.mxu0 }
 0x673   : > { %3601 = vmatpush.bf16.msrb.mxu0 %v6804_v58  ;;  %v6747_v58 = vld [vmem:[%s8915_s13 + $0xc8] sm:$0xf]  ;;  %3593 = vmatpush.bf16.msra.mxu3 %v6740_v53 }
 0x674   : > { %v6748_v42 = vor.u32 %v7927_v44, %v6747_v58  ;;  %v6962_v58 = vld [vmem:[%s8915_s13 + $0x170] sm:$0xf]  ;;  %v7972_v44 = vld [vmem:[%s8915_s13 + $0x178] sm:$0xf0] }
 0x675   : > { %v9826_v47 = vpop.f32.mrf.mxu3 }
 0x676   : > { %3619 = vmatpush.bf16.msra.mxu1 %v6748_v42  ;;  %v6963_v42 = vor.u32 %v7972_v44, %v6962_v58  ;;  %v7959_v58 = vld [vmem:[%s8915_s13 + $0x110] sm:$0xf0]  ;;  %v7958_v44 = vld [vmem:[%s8915_s13 + $0x10c] sm:$0xf] }
 0x677   : > { %3602 = vmatpush.bf16.msrb.mxu0 %v6792_v21  ;;  %v8210_v21 = vld [vmem:[%s8924_s8 + $0x1] ss:$0 sm:$0xff] }
 0x67a   : > { %v9828_v40 = vpop.f32.mrf.mxu0 }
 0x67b   : > { %3603 = vmatpush.bf16.msrb.mxu0 %v6780_v35 }
 0x67d   : > { %v9830_v17 = vpop.f32.mrf.mxu3 }
 0x67f   : > { %3604 = vmatpush.bf16.msrb.mxu0 %v6768_v37 }
 0x682   : > { %v9832_v0 = vpop.f32.mrf.mxu0 }
 0x683   : > { %3605 = vmatpush.bf16.msrb.mxu0 %v6756_v45 }
 0x685   : > { %v9834_v32 = vpop.f32.mrf.mxu3 }
 0x687   : > { %3606 = vmatpush.bf16.msrb.mxu0 %v6744_v19  ;;  %v6959_v19 = vor.u32 %v7970_v55, %v6956_v49  ;;  %v6906_v49 = vld [vmem:[%s8915_s13 + $0x108] sm:$0xf] }
 0x689   : > { %3855 = vmatpush.bf16.msrb.mxu3 %v6959_v19 }
 0x68b   : > { %3868 = vmatpush.bf16.msra.mxu0 %v6963_v42  ;;  %v6908_v42 = vld [vmem:[%s8915_s13 + $0x114] sm:$0xf0] }
 0x68c   : > { %v6911_v63 = vor.u32 %v7958_v44, %v6908_v42 }
 0x68d   : > { %3856 = vmatpush.bf16.msrb.mxu3 %v6947_v18  ;;  %v7956_v18 = vld [vmem:[%s8915_s13 + $0xf8] sm:$0xf0] }
 0x6db   : > { %v9836_v51 = vpop.f32.mrf.mxu0 }
 0x6e0   : > { %v9795_v57 = vpop.f32.mrf.mxu2  ;;  %v9838_v45 = vpop.f32.mrf.mxu3 }
 0x6e3   : > { %v9843_v53 = vpop.f32.mrf.mxu0 }
 0x6e8   : > { %v9801_v5 = vpop.f32.mrf.mxu2  ;;  %v9854_v11 = vpop.f32.mrf.mxu3 }
 0x6f0   : > { %v3364_v62 = vpop.f32.mrf.mxu2 }
 0x6f1   : > { %v3416_v29 = vadd.f32 %v8210_v21, %v3364_v62  ;;  %v6951_v21 = vor.u32 %v7969_v16, %v6950_v13  ;;  %v7965_v62 = vld [vmem:[%s8915_s13 + $0x140] sm:$0xf0]  ;;  %v6915_v13 = vor.u32 %v7960_v60, %v6914_v3  ;;  %v6894_v16 = vld [vmem:[%s8915_s13 + $0xf0] sm:$0xf] }
 0x6f2   : > { %v6931_v31 = vor.u32 %v7965_v62, %v6930_v26  ;;  %v6896_v26 = vld [vmem:[%s8915_s13 + $0xfc] sm:$0xf0]  ;;  %v6902_v62 = vld [vmem:[%s8915_s13 + $0xf8] sm:$0xf] }
 0x6f3   : > { %v3417_v2 = vmul.f32 %v3416_v29, %v3389_v4  ;;  %3869 = vmatpush.bf16.msra.mxu0 %v6951_v21  ;;  %v6932_v4 = vld [vmem:[%s8915_s13 + $0x144] sm:$0xf0]  ;;  %v6895_v21 = vor.u32 %v7956_v18, %v6894_v16 }
 0x6f4   : > { %3844 = vmatpush.bf16.msrb.mxu2 %v6931_v31  ;;  %v7957_v31 = vld [vmem:[%s8915_s13 + $0x100] sm:$0xf0] }
 0x6f5   : > { %v3418_v48 = vadd.f32 %v3417_v2, %v3125_v6  ;;  %v6938_v6 = vld [vmem:[%s8915_s13 + $0x140] sm:$0xf] }
 0x6f6   : > { %v6939_v1 = vor.u32 %v7966_v27, %v6938_v6  ;;  %v7953_v6 = vld [vmem:[%s8915_s13 + $0xe0] sm:$0xf0] }
 0x6f7   : > { %8307 = vtanh.f32 %v3418_v48  ;;  %v6935_v48 = vor.u32 %v7964_v20, %v6932_v4  ;;  %v6882_v4 = vld [vmem:[%s8915_s13 + $0xd8] sm:$0xf] }
 0x6f8   : > { %v3366_v35 = vpop.f32.mrf.mxu2  ;;  %3870 = vmatpush.bf16.msra.mxu0 %v6939_v1  ;;  %v6884_v1 = vld [vmem:[%s8915_s13 + $0xe4] sm:$0xf0] }
 0x6f9   : > { %3857 = vmatpush.bf16.msrb.mxu3 %v6935_v48  ;;  %v6918_v35 = vld [vmem:[%s8915_s13 + $0x120] sm:$0xf]  ;;  %v7952_v48 = vld [vmem:[%s8915_s13 + $0xdc] sm:$0xf] }
 0x6fd   : > { %v8308_v22 = vpop.eup %8307 }
 0x6fe   : > { %v3421_v30 = vmul.f32 %v8308_v22, %v3420_v39  ;;  %v6919_v39 = vor.u32 %v7962_v52, %v6918_v35  ;;  %v7961_v22 = vld [vmem:[%s8915_s13 + $0x124] sm:$0xf]  ;;  %v7954_v35 = vld [vmem:[%s8915_s13 + $0xe8] sm:$0xf0] }
 0x700   : > { %v9814_v37 = vadd.f32 %v3422_v7, %v3421_v30  ;;  %v6920_v30 = vld [vmem:[%s8915_s13 + $0x12c] sm:$0xf0]  ;;  %v6926_v7 = vld [vmem:[%s8915_s13 + $0x128] sm:$0xf]  ;;  %3845 = vmatpush.bf16.msrb.mxu2 %v6919_v39  ;;  %v6883_v39 = vor.u32 %v7953_v6, %v6882_v4  ;;  %v3127_v4 = vadd.f32 %v9818_v34, %v9808_v24 }
 0x701   : > { %v6923_v50 = vor.u32 %v7961_v22, %v6920_v30  ;;  %v6927_v55 = vor.u32 %v7963_v9, %v6926_v7  ;;  %v6887_v22 = vor.u32 %v7952_v48, %v6884_v1  ;;  %v6870_v30 = vld [vmem:[%s8915_s13 + $0xc0] sm:$0xf]  ;;  %v7950_v7 = vld [vmem:[%s8915_s13 + $0xc8] sm:$0xf0]  ;;  %v6872_v9 = vld [vmem:[%s8915_s13 + $0xcc] sm:$0xf0] }
 0x702   : > { %v3425_v14 = vpack.c.bf16 %v9814_v37, %v9814_v37 }
 0x703   : > { %3858 = vmatpush.bf16.msrb.mxu3 %v6923_v50  ;;  %3871 = vmatpush.bf16.msra.mxu0 %v6927_v55  ;;  %v7949_v50 = vld [vmem:[%s8915_s13 + $0xc4] sm:$0xf]  ;;  %v6878_v55 = vld [vmem:[%s8915_s13 + $0xc8] sm:$0xf] }
 0x704   : > { %3594 = vmatmul.bf16.vlgmr.msra.gmra.mxu3 %v3425_v14  ;;  %3607 = vmatmul.bf16.vlgmr.msrb.gmra.mxu0 %v3425_v14  ;;  %v6875_v44 = vor.u32 %v7949_v50, %v6872_v9  ;;  %v7994_v50 = vld [vmem:[%s8915_s13 + $0x16c] sm:$0xf] }
 0x705   : > { %3620 = vmatmul.bf16.vlgmr.msra.gmra.mxu1 %v3425_v14  ;;  %v3069_v14 = vadd.f32 %v9728_v25, %v9734_v12  ;;  %v6907_v25 = vor.u32 %v7959_v58, %v6906_v49  ;;  %v6871_v58 = vor.u32 %v7950_v7, %v6870_v30  ;;  %v7085_v7 = vld [vmem:[%s8915_s13 + $0x168] sm:$0xf] }
 0x707   : > { %3846 = vmatpush.bf16.msrb.mxu2 %v6907_v25  ;;  %3859 = vmatpush.bf16.msrb.mxu3 %v6911_v63 }
 0x708   : > { %3872 = vmatpush.bf16.msra.mxu0 %v6915_v13  ;;  %v8211_v13 = vld [vmem:[%s8924_s8 + $0x1] ss:$0 sm:$0xff] }
 0x70b   : > { %3847 = vmatpush.bf16.msrb.mxu2 %v6895_v21 }
 0x70f   : > { %3848 = vmatpush.bf16.msrb.mxu2 %v6883_v39 }
 0x713   : > { %3849 = vmatpush.bf16.msrb.mxu2 %v6871_v58 }
 0x781   : > { %v3608_v29 = vpop.f32.mrf.mxu0 }
 0x782   : > { %v3648_v2 = vadd.f32 %v3608_v29, %v3098_v59  ;;  %v9863_v33 = vpop.f32.mrf.mxu1  ;;  %v7955_v59 = vld [vmem:[%s8915_s13 + $0xf4] sm:$0xf] }
 0x783   : > { %v6899_v29 = vor.u32 %v7955_v59, %v6896_v26 }
 0x784   : > { %v6834_v36 = vmul.f32 -1.442695, %v3648_v2  ;;  %v6903_v2 = vor.u32 %v7957_v31, %v6902_v62  ;;  %v3672_v62 = vadd.f32 %v8211_v13, %v9863_v33  ;;  %v7061_v13 = vld [vmem:[%s8915_s13 + $0x138] sm:$0xf] }
 0x785   : > { %3860 = vmatpush.bf16.msrb.mxu3 %v6899_v29 }
 0x786   : > { %8309 = vpow2.f32 %v6834_v36  ;;  %v6890_v36 = vld [vmem:[%s8915_s13 + $0xe0] sm:$0xf]  ;;  %3873 = vmatpush.bf16.msra.mxu0 %v6903_v2 }
 0x787   : > { %v3595_v56 = vpop.f32.mrf.mxu3 }
 0x788   : > { %v3628_v23 = vadd.f32 %v3595_v56, %v3069_v14  ;;  %v6891_v14 = vor.u32 %v7954_v35, %v6890_v36 }
 0x789   : > { %v3610_v19 = vpop.f32.mrf.mxu0  ;;  %3861 = vmatpush.bf16.msrb.mxu3 %v6887_v22 }
 0x78a   : > { %v6833_v61 = vmul.f32 -1.442695, %v3628_v23  ;;  %v3623_v8 = vpop.f32.mrf.mxu1  ;;  %v7951_v23 = vld [vmem:[%s8915_s13 + $0xd0] sm:$0xf0]  ;;  %3874 = vmatpush.bf16.msra.mxu0 %v6891_v14 }
 0x78b   : > { %v6879_v19 = vor.u32 %v7951_v23, %v6878_v55  ;;  %v7995_v14 = vld [vmem:[%s8915_s13 + $0x170] sm:$0xf0]  ;;  %v7093_v55 = vld [vmem:[%s8915_s13 + $0x170] sm:$0xf]  ;;  %v7996_v23 = vld [vmem:[%s8915_s13 + $0x178] sm:$0xf0] }
 0x78c   : > { %v8310_v20 = vpop.eup %8309  ;;  %8311 = vpow2.f32 %v6833_v61  ;;  %v7086_v9 = vor.u32 %v7995_v14, %v7085_v7  ;;  %v7094_v58 = vor.u32 %v7996_v23, %v7093_v55  ;;  %v7039_v55 = vld [vmem:[%s8915_s13 + $0x114] sm:$0xf0]  ;;  %v7984_v23 = vld [vmem:[%s8915_s13 + $0x118] sm:$0xf0] }
 0x78d   : > { %v9887_v27 = vadd.f32 1.0, %v8310_v20  ;;  %3862 = vmatpush.bf16.msrb.mxu3 %v6875_v44  ;;  %v7073_v44 = vld [vmem:[%s8915_s13 + $0x150] sm:$0xf] }
 0x78e   : > { %3875 = vmatpush.bf16.msra.mxu0 %v6879_v19  ;;  %4098 = vmatpush.bf16.msrb.mxu1 %v7086_v9  ;;  %v7992_v19 = vld [vmem:[%s8915_s13 + $0x158] sm:$0xf0]  ;;  %v7982_v9 = vld [vmem:[%s8915_s13 + $0x10c] sm:$0xf] }
 0x78f   : > { %v3597_v52 = vpop.f32.mrf.mxu3  ;;  %8313 = vrcp.f32 %v9887_v27  ;;  %v3664_v6 = vand.u32 2147483648, %v9887_v27  ;;  %vm3658_vm13 = vweird.f32 %v9887_v27  ;;  %v3662_v48 = vand.u32 2147483647, %v9887_v27 }
 0x791   : > { %v3665_v36 = vor.u32 1.1754944e-38, %v3664_v6  ;;  %vm3663_vm15 = vcmp.eq.f32.partialorder %v3662_v48, 8.507059e+37  ;;  %4124 = vmatpush.bf16.msra.mxu3 %v7094_v58  ;;  %v7986_v6 = vld [vmem:[%s8915_s13 + $0x128] sm:$0xf0] }
 0x792   : > { %v8312_v56 = vpop.eup %8311 }
 0x793   : > { %v3632_v49 = vadd.f32 1.0, %v8312_v56  ;;  %v7087_v56 = vld [vmem:[%s8915_s13 + $0x174] sm:$0xf0] }
 0x795   : > { %8315 = vrcp.f32 %v3632_v49  ;;  %v8314_v25 = vpop.eup %8313  ;;  %v3644_v63 = vand.u32 2147483648, %v3632_v49  ;;  %v3642_v18 = vand.u32 2147483647, %v3632_v49  ;;  %vm3638_vm9 = vweird.f32 %v3632_v49 }
 0x796   : > { %v3654_v42 = vmul.f32 %v8314_v25, %v9887_v27  ;;  %vm3659_vm12 = vweird.f32 %v8314_v25 }
 0x797   : > { %v3645_v26 = vor.u32 1.1754944e-38, %v3644_v63  ;;  %vm3643_vm11 = vcmp.eq.f32.partialorder %v3642_v18, 8.507059e+37  ;;  %vm3660_vm14 = vmor %vm3658_vm13, %vm3659_vm12  ;;  %v7988_v18 = vld [vmem:[%s8915_s13 + $0x13c] sm:$0xf] }
 0x798   : > { %v3655_v61 = vsub.f32 1.0, %v3654_v42  ;;  %v7074_v42 = vor.u32 %v7992_v19, %v7073_v44  ;;  %v7042_v19 = vor.u32 %v7982_v9, %v7039_v55 }
 0x79a   : > { %v3656_v21 = vmul.f32 %v8314_v25, %v3655_v61  ;;  %v7993_v61 = vld [vmem:[%s8915_s13 + $0x160] sm:$0xf0]  ;;  %4099 = vmatpush.bf16.msrb.mxu1 %v7074_v42  ;;  %v7025_v42 = vld [vmem:[%s8915_s13 + $0xf0] sm:$0xf] }
 0x79b   : > { %v8316_v3 = vpop.eup %8315 }
 0x79c   : > { %v3634_v60 = vmul.f32 %v8316_v3, %v3632_v49  ;;  %vm3639_vm8 = vweird.f32 %v8316_v3  ;;  %v3657_v29 = vadd.f32 %v8314_v25, %v3656_v21  ;;  %v7090_v49 = vor.u32 %v7994_v50, %v7087_v56  ;;  %v7037_v50 = vld [vmem:[%s8915_s13 + $0x108] sm:$0xf] }
 0x79d   : > { %vm3640_vm10 = vmor %vm3638_vm9, %vm3639_vm8 }
 0x79e   : > { %v3635_v8 = vsub.f32 1.0, %v3634_v60  ;;  %v3661_v33 = vsel %vm3660_vm14, %v8314_v25, %v3657_v29  ;;  %4111 = vmatpush.bf16.msra.mxu2 %v7090_v49  ;;  %v7991_v25 = vld [vmem:[%s8915_s13 + $0x154] sm:$0xf]  ;;  %v7081_v60 = vld [vmem:[%s8915_s13 + $0x158] sm:$0xf] }
 0x79f   : > { %v3666_v35 = vsel %vm3663_vm15, %v3665_v36, %v3661_v33  ;;  %v7082_v63 = vor.u32 %v7993_v61, %v7081_v60  ;;  %v7057_v33 = vld [vmem:[%s8915_s13 + $0x128] sm:$0xf]  ;;  %v7987_v36 = vld [vmem:[%s8915_s13 + $0x130] sm:$0xf0]  ;;  %v7027_v61 = vld [vmem:[%s8915_s13 + $0xfc] sm:$0xf0] }
 0x7a0   : > { %v3636_v16 = vmul.f32 %v8316_v3, %v3635_v8  ;;  %v3676_v34 = vsub.f32 1.0, %v3666_v35  ;;  %v3678_v22 = vmul.f32 %v3666_v35, %v9814_v37  ;;  %v3072_v35 = vadd.f32 %v9736_v46, %v9734_v12  ;;  %v7983_v46 = vld [vmem:[%s8915_s13 + $0x110] sm:$0xf0] }
 0x7a1   : > { %4125 = vmatpush.bf16.msra.mxu3 %v7082_v63  ;;  %v7038_v56 = vor.u32 %v7983_v46, %v7037_v50  ;;  %v7979_v60 = vld [vmem:[%s8915_s13 + $0xf4] sm:$0xf] }
 0x7a2   : > { %v3637_v59 = vadd.f32 %v8316_v3, %v3636_v16  ;;  %v7989_v16 = vld [vmem:[%s8915_s13 + $0x140] sm:$0xf0]  ;;  %v7030_v63 = vor.u32 %v7979_v60, %v7027_v61 }
 0x7a3   : > { %v7062_v21 = vor.u32 %v7989_v16, %v7061_v13  ;;  %v7033_v13 = vld [vmem:[%s8915_s13 + $0xf8] sm:$0xf]  ;;  %v7981_v16 = vld [vmem:[%s8915_s13 + $0x100] sm:$0xf0] }
 0x7a4   : > { %v3641_v20 = vsel %vm3640_vm10, %v8316_v3, %v3637_v59  ;;  %v7075_v3 = vld [vmem:[%s8915_s13 + $0x15c] sm:$0xf0]  ;;  %v7063_v59 = vld [vmem:[%s8915_s13 + $0x144] sm:$0xf0] }
 0x7a5   : > { %v3646_v31 = vsel %vm3643_vm11, %v3645_v26, %v3641_v20  ;;  %v7078_v8 = vor.u32 %v7991_v25, %v7075_v3  ;;  %v7069_v26 = vld [vmem:[%s8915_s13 + $0x140] sm:$0xf]  ;;  %v7066_v29 = vor.u32 %v7988_v18, %v7063_v59  ;;  %4100 = vmatpush.bf16.msrb.mxu1 %v7062_v21  ;;  %v7980_v3 = vld [vmem:[%s8915_s13 + $0xf8] sm:$0xf0]  ;;  %v7013_v18 = vld [vmem:[%s8915_s13 + $0xd8] sm:$0xf]  ;;  %v7034_v21 = vor.u32 %v7981_v16, %v7033_v13 }
 0x7a6   : > { %v3673_v2 = vmul.f32 %v3672_v62, %v3646_v31  ;;  %v7990_v62 = vld [vmem:[%s8915_s13 + $0x148] sm:$0xf0]  ;;  %v7977_v59 = vld [vmem:[%s8915_s13 + $0xe0] sm:$0xf0] }
 0x7a7   : > { %4112 = vmatpush.bf16.msra.mxu2 %v7078_v8  ;;  %v7070_v31 = vor.u32 %v7990_v62, %v7069_v26  ;;  %v7026_v8 = vor.u32 %v7980_v3, %v7025_v42  ;;  %v7976_v26 = vld [vmem:[%s8915_s13 + $0xdc] sm:$0xf]  ;;  %v7015_v62 = vld [vmem:[%s8915_s13 + $0xe4] sm:$0xf0] }
 0x7a8   : > { %v3674_v1 = vadd.f32 %v3673_v2, %v3127_v4  ;;  %v7049_v4 = vld [vmem:[%s8915_s13 + $0x120] sm:$0xf]  ;;  %v7985_v2 = vld [vmem:[%s8915_s13 + $0x124] sm:$0xf] }
 0x7a9   : > { %4126 = vmatpush.bf16.msra.mxu3 %v7070_v31  ;;  %v7050_v48 = vor.u32 %v7986_v6, %v7049_v4  ;;  %v7978_v31 = vld [vmem:[%s8915_s13 + $0xe8] sm:$0xf0] }
 0x7aa   : > { %8317 = vtanh.f32 %v3674_v1  ;;  %v7051_v1 = vld [vmem:[%s8915_s13 + $0x12c] sm:$0xf0] }
 0x7ab   : > { %4113 = vmatpush.bf16.msra.mxu2 %v7066_v29  ;;  %4101 = vmatpush.bf16.msrb.mxu1 %v7050_v48  ;;  %v7021_v29 = vld [vmem:[%s8915_s13 + $0xe0] sm:$0xf]  ;;  %v7018_v48 = vor.u32 %v7976_v26, %v7015_v62 }
 0x7af   : > { %4102 = vmatpush.bf16.msrb.mxu1 %v7038_v56 }
 0x7b0   : > { %v8318_v52 = vpop.eup %8317 }
 0x7b1   : > { %v3677_v39 = vmul.f32 %v8318_v52, %v3676_v34  ;;  %v3101_v34 = vadd.f32 %v9822_v15, %v9745_v54  ;;  %v7054_v52 = vor.u32 %v7985_v2, %v7051_v1  ;;  %v7045_v15 = vld [vmem:[%s8915_s13 + $0x110] sm:$0xf]  ;;  %v7014_v2 = vor.u32 %v7977_v59, %v7013_v18 }
 0x7b2   : > { %v7046_v25 = vor.u32 %v7984_v23, %v7045_v15  ;;  %v7022_v1 = vor.u32 %v7978_v31, %v7021_v29  ;;  %v3130_v18 = vadd.f32 %v9820_v38, %v9808_v24 }
 0x7b3   : > { %v9909_v30 = vadd.f32 %v3678_v22, %v3677_v39  ;;  %v7058_v39 = vor.u32 %v7987_v36, %v7057_v33  ;;  %4114 = vmatpush.bf16.msra.mxu2 %v7054_v52  ;;  %4103 = vmatpush.bf16.msrb.mxu1 %v7026_v8  ;;  %v7001_v33 = vld [vmem:[%s8915_s13 + $0xc0] sm:$0xf]  ;;  %v7974_v36 = vld [vmem:[%s8915_s13 + $0xc8] sm:$0xf0]  ;;  %v7009_v52 = vld [vmem:[%s8915_s13 + $0xc8] sm:$0xf] }
 0x7b5   : > { %v3681_v27 = vpack.c.bf16 %v9909_v30, %v9909_v30  ;;  %4127 = vmatpush.bf16.msra.mxu3 %v7058_v39  ;;  %v7975_v39 = vld [vmem:[%s8915_s13 + $0xd0] sm:$0xf0] }
 0x7b6   : > { %v7010_v9 = vor.u32 %v7975_v39, %v7009_v52  ;;  %v7218_v52 = vld [vmem:[%s8915_s13 + $0x174] sm:$0xf0]  ;;  %v7224_v39 = vld [vmem:[%s8915_s13 + $0x170] sm:$0xf] }
 0x7b7   : > { %3850 = vmatmul.bf16.vlgmr.msrb.gmra.mxu2 %v3681_v27  ;;  %3863 = vmatmul.bf16.vlgmr.msrb.gmra.mxu3 %v3681_v27 }
 0x7b8   : > { %3876 = vmatmul.bf16.vlgmr.msra.gmra.mxu0 %v3681_v27  ;;  %4115 = vmatpush.bf16.msra.mxu2 %v7042_v19  ;;  %v8212_v19 = vld [vmem:[%s8924_s8 + $0x1] ss:$0 sm:$0xff] }
 0x7b9   : > { %4128 = vmatpush.bf16.msra.mxu3 %v7046_v25  ;;  %4104 = vmatpush.bf16.msrb.mxu1 %v7014_v2 }
 0x7bc   : > { %4116 = vmatpush.bf16.msra.mxu2 %v7030_v63 }
 0x7bd   : > { %4129 = vmatpush.bf16.msra.mxu3 %v7034_v21 }
 0x7c0   : > { %4117 = vmatpush.bf16.msra.mxu2 %v7018_v48 }
 0x7c1   : > { %4130 = vmatpush.bf16.msra.mxu3 %v7022_v1 }
 0x7c5   : > { %4131 = vmatpush.bf16.msra.mxu3 %v7010_v9 }
 0x835   : > { %v9931_v20 = vpop.f32.mrf.mxu0 }
 0x836   : > { %v3928_v8 = vadd.f32 %v8212_v19, %v9931_v20  ;;  %v8012_v19 = vld [vmem:[%s8915_s13 + $0x13c] sm:$0xf] }
 0x83a   : > { %v3851_v22 = vpop.f32.mrf.mxu2  ;;  %v3864_v27 = vpop.f32.mrf.mxu3 }
 0x83b   : > { %v3884_v7 = vadd.f32 %v3851_v22, %v3072_v35  ;;  %v3904_v14 = vadd.f32 %v3864_v27, %v3101_v34  ;;  %v7973_v35 = vld [vmem:[%s8915_s13 + $0xc4] sm:$0xf]  ;;  %v7003_v34 = vld [vmem:[%s8915_s13 + $0xcc] sm:$0xf0] }
 0x83c   : > { %v7006_v46 = vor.u32 %v7973_v35, %v7003_v34  ;;  %v8018_v35 = vld [vmem:[%s8915_s13 + $0x16c] sm:$0xf] }
 0x83d   : > { %v6964_v49 = vmul.f32 -1.442695, %v3884_v7  ;;  %v6965_v58 = vmul.f32 -1.442695, %v3904_v14  ;;  %v3879_v44 = vpop.f32.mrf.mxu0  ;;  %v7002_v14 = vor.u32 %v7974_v36, %v7001_v33  ;;  %v7216_v33 = vld [vmem:[%s8915_s13 + $0x168] sm:$0xf] }
 0x83e   : > { %4118 = vmatpush.bf16.msra.mxu2 %v7006_v46  ;;  %v8019_v36 = vld [vmem:[%s8915_s13 + $0x170] sm:$0xf0] }
 0x83f   : > { %8319 = vpow2.f32 %v6964_v49  ;;  %4105 = vmatpush.bf16.msrb.mxu1 %v7002_v14  ;;  %v7217_v34 = vor.u32 %v8019_v36, %v7216_v33  ;;  %v7204_v14 = vld [vmem:[%s8915_s13 + $0x150] sm:$0xf]  ;;  %v8015_v46 = vld [vmem:[%s8915_s13 + $0x154] sm:$0xf]  ;;  %v7170_v33 = vld [vmem:[%s8915_s13 + $0x114] sm:$0xf0] }
 0x840   : > { %8321 = vpow2.f32 %v6965_v58  ;;  %v7176_v36 = vld [vmem:[%s8915_s13 + $0x110] sm:$0xf] }
 0x841   : > { %4354 = vmatpush.bf16.msrb.mxu0 %v7217_v34 }
 0x842   : > { %v3853_v4 = vpop.f32.mrf.mxu2  ;;  %v3866_v6 = vpop.f32.mrf.mxu3 }
 0x845   : > { %v8320_v22 = vpop.eup %8319 }
 0x846   : > { %v8322_v27 = vpop.eup %8321  ;;  %v3888_v7 = vadd.f32 1.0, %v8320_v22  ;;  %v8020_v22 = vld [vmem:[%s8915_s13 + $0x178] sm:$0xf0] }
 0x847   : > { %v3908_v50 = vadd.f32 1.0, %v8322_v27  ;;  %v7221_v27 = vor.u32 %v8018_v35, %v7218_v52  ;;  %v8008_v35 = vld [vmem:[%s8915_s13 + $0x118] sm:$0xf0] }
 0x848   : > { %8323 = vrcp.f32 %v3888_v7  ;;  %v3900_v58 = vand.u32 2147483648, %v3888_v7  ;;  %v3898_v42 = vand.u32 2147483647, %v3888_v7  ;;  %vm3894_vm1 = vweird.f32 %v3888_v7 }
 0x849   : > { %8325 = vrcp.f32 %v3908_v50  ;;  %v3920_v59 = vand.u32 2147483648, %v3908_v50  ;;  %vm3914_vm5 = vweird.f32 %v3908_v50  ;;  %v3918_v26 = vand.u32 2147483647, %v3908_v50  ;;  %4367 = vmatpush.bf16.msra.mxu1 %v7221_v27  ;;  %v8004_v27 = vld [vmem:[%s8915_s13 + $0xf8] sm:$0xf0] }
 0x84a   : > { %v3901_v61 = vor.u32 1.1754944e-38, %v3900_v58  ;;  %vm3899_vm3 = vcmp.eq.f32.partialorder %v3898_v42, 8.507059e+37  ;;  %v7192_v58 = vld [vmem:[%s8915_s13 + $0x138] sm:$0xf]  ;;  %v7194_v42 = vld [vmem:[%s8915_s13 + $0x144] sm:$0xf0]  ;;  %v7177_v52 = vor.u32 %v8008_v35, %v7176_v36 }
 0x84b   : > { %v3921_v20 = vor.u32 1.1754944e-38, %v3920_v59  ;;  %vm3919_vm7 = vcmp.eq.f32.partialorder %v3918_v26, 8.507059e+37  ;;  %v7188_v59 = vld [vmem:[%s8915_s13 + $0x128] sm:$0xf]  ;;  %v8011_v26 = vld [vmem:[%s8915_s13 + $0x130] sm:$0xf0] }
 0x84e   : > { %v8324_v56 = vpop.eup %8323 }
 0x84f   : > { %v8326_v55 = vpop.eup %8325  ;;  %v3890_v15 = vmul.f32 %v8324_v56, %v3888_v7  ;;  %vm3895_vm0 = vweird.f32 %v8324_v56  ;;  %v7225_v7 = vor.u32 %v8020_v22, %v7224_v39  ;;  %v3103_v39 = vadd.f32 %v9826_v47, %v9745_v54  ;;  %v7156_v22 = vld [vmem:[%s8915_s13 + $0xf0] sm:$0xf] }
 0x850   : > { %v3910_v23 = vmul.f32 %v8326_v55, %v3908_v50  ;;  %vm3896_vm2 = vmor %vm3894_vm1, %vm3895_vm0  ;;  %vm3915_vm4 = vweird.f32 %v8326_v55  ;;  %v8016_v50 = vld [vmem:[%s8915_s13 + $0x158] sm:$0xf0] }
 0x851   : > { %v3891_v49 = vsub.f32 1.0, %v3890_v15  ;;  %vm3916_vm6 = vmor %vm3914_vm5, %vm3915_vm4  ;;  %4380 = vmatpush.bf16.msrb.mxu2 %v7225_v7  ;;  %v7205_v9 = vor.u32 %v8016_v50, %v7204_v14  ;;  %v8017_v15 = vld [vmem:[%s8915_s13 + $0x160] sm:$0xf0]  ;;  %v8003_v7 = vld [vmem:[%s8915_s13 + $0xf4] sm:$0xf]  ;;  %v7157_v50 = vor.u32 %v8004_v27, %v7156_v22 }
 0x852   : > { %v3911_v44 = vsub.f32 1.0, %v3910_v23 }
 0x853   : > { %v3892_v25 = vmul.f32 %v8324_v56, %v3891_v49  ;;  %4355 = vmatpush.bf16.msrb.mxu0 %v7205_v9  ;;  %v7164_v9 = vld [vmem:[%s8915_s13 + $0xf8] sm:$0xf] }
 0x854   : > { %v3912_v3 = vmul.f32 %v8326_v55, %v3911_v44  ;;  %v8013_v44 = vld [vmem:[%s8915_s13 + $0x140] sm:$0xf0] }
 0x855   : > { %v3893_v60 = vadd.f32 %v8324_v56, %v3892_v25  ;;  %v7193_v25 = vor.u32 %v8013_v44, %v7192_v58  ;;  %v7144_v44 = vld [vmem:[%s8915_s13 + $0xd8] sm:$0xf] }
 0x856   : > { %v3913_v16 = vadd.f32 %v8326_v55, %v3912_v3  ;;  %v7200_v3 = vld [vmem:[%s8915_s13 + $0x140] sm:$0xf] }
 0x857   : > { %v3897_v63 = vsel %vm3896_vm2, %v8324_v56, %v3893_v60  ;;  %v7206_v56 = vld [vmem:[%s8915_s13 + $0x15c] sm:$0xf0]  ;;  %v8014_v60 = vld [vmem:[%s8915_s13 + $0x148] sm:$0xf0]  ;;  %4356 = vmatpush.bf16.msrb.mxu0 %v7193_v25 }
 0x858   : > { %v3902_v13 = vsel %vm3899_vm3, %v3901_v61, %v3897_v63  ;;  %v3917_v29 = vsel %vm3916_vm6, %v8326_v55, %v3913_v16  ;;  %v7212_v55 = vld [vmem:[%s8915_s13 + $0x158] sm:$0xf]  ;;  %v7209_v23 = vor.u32 %v8015_v46, %v7206_v56  ;;  %v7197_v61 = vor.u32 %v8012_v19, %v7194_v42  ;;  %v7180_v63 = vld [vmem:[%s8915_s13 + $0x120] sm:$0xf]  ;;  %v8009_v16 = vld [vmem:[%s8915_s13 + $0x124] sm:$0xf] }
 0x859   : > { %v3929_v21 = vmul.f32 %v3928_v8, %v3902_v13  ;;  %v3922_v31 = vsel %vm3919_vm7, %v3921_v20, %v3917_v29  ;;  %v7213_v49 = vor.u32 %v8017_v15, %v7212_v55  ;;  %v7201_v8 = vor.u32 %v8014_v60, %v7200_v3  ;;  %v8010_v13 = vld [vmem:[%s8915_s13 + $0x128] sm:$0xf0]  ;;  %v7158_v46 = vld [vmem:[%s8915_s13 + $0xfc] sm:$0xf0]  ;;  %v8005_v56 = vld [vmem:[%s8915_s13 + $0x100] sm:$0xf0] }
 0x85a   : > { %v3932_v4 = vsub.f32 1.0, %v3922_v31  ;;  %v3934_v2 = vmul.f32 %v3922_v31, %v9909_v30  ;;  %4368 = vmatpush.bf16.msra.mxu1 %v7209_v23  ;;  %v7189_v20 = vor.u32 %v8011_v26, %v7188_v59  ;;  %v7161_v23 = vor.u32 %v8003_v7, %v7158_v46  ;;  %v8001_v19 = vld [vmem:[%s8915_s13 + $0xe0] sm:$0xf0]  ;;  %v8000_v42 = vld [vmem:[%s8915_s13 + $0xdc] sm:$0xf] }
 0x85b   : > { %v3930_v62 = vadd.f32 %v3929_v21, %v3130_v18  ;;  %4381 = vmatpush.bf16.msrb.mxu2 %v7213_v49  ;;  %v7181_v18 = vor.u32 %v8010_v13, %v7180_v63  ;;  %v7182_v21 = vld [vmem:[%s8915_s13 + $0x12c] sm:$0xf0]  ;;  %v7165_v47 = vor.u32 %v8005_v56, %v7164_v9  ;;  %v7145_v25 = vor.u32 %v8001_v19, %v7144_v44  ;;  %v7146_v3 = vld [vmem:[%s8915_s13 + $0xe4] sm:$0xf0]  ;;  %v7152_v60 = vld [vmem:[%s8915_s13 + $0xe0] sm:$0xf] }
 0x85c   : > { %v7185_v29 = vor.u32 %v8009_v16, %v7182_v21  ;;  %v8002_v63 = vld [vmem:[%s8915_s13 + $0xe8] sm:$0xf0]  ;;  %v7997_v26 = vld [vmem:[%s8915_s13 + $0xc4] sm:$0xf]  ;;  %v3132_v56 = vadd.f32 %v9824_v43, %v9808_v24 }
 0x85d   : > { %8327 = vtanh.f32 %v3930_v62  ;;  %v3074_v62 = vadd.f32 %v9747_v10, %v9734_v12  ;;  %4357 = vmatpush.bf16.msrb.mxu0 %v7181_v18  ;;  %v7153_v16 = vor.u32 %v8002_v63, %v7152_v60  ;;  %v7132_v18 = vld [vmem:[%s8915_s13 + $0xc0] sm:$0xf]  ;;  %v7998_v21 = vld [vmem:[%s8915_s13 + $0xc8] sm:$0xf0] }
 0x85e   : > { %4369 = vmatpush.bf16.msra.mxu1 %v7197_v61  ;;  %v7133_v59 = vor.u32 %v7998_v21, %v7132_v18  ;;  %v8042_v18 = vld [vmem:[%s8915_s13 + $0x16c] sm:$0xf] }
 0x85f   : > { %4382 = vmatpush.bf16.msrb.mxu2 %v7201_v8  ;;  %v7149_v8 = vor.u32 %v8000_v42, %v7146_v3 }
 0x862   : > { %4370 = vmatpush.bf16.msra.mxu1 %v7185_v29  ;;  %v7140_v29 = vld [vmem:[%s8915_s13 + $0xc8] sm:$0xf] }
 0x863   : > { %v8328_v6 = vpop.eup %8327  ;;  %4383 = vmatpush.bf16.msrb.mxu2 %v7189_v20 }
 0x864   : > { %v3933_v38 = vmul.f32 %v8328_v6, %v3932_v4  ;;  %v7168_v6 = vld [vmem:[%s8915_s13 + $0x108] sm:$0xf] }
 0x866   : > { %v9972_v48 = vadd.f32 %v3934_v2, %v3933_v38  ;;  %v8007_v38 = vld [vmem:[%s8915_s13 + $0x110] sm:$0xf0]  ;;  %v8006_v2 = vld [vmem:[%s8915_s13 + $0x10c] sm:$0xf] }
 0x867   : > { %v7173_v34 = vor.u32 %v8006_v2, %v7170_v33  ;;  %4384 = vmatpush.bf16.msrb.mxu2 %v7177_v52 }
 0x868   : > { %v3937_v1 = vpack.c.bf16 %v9972_v48, %v9972_v48 }
 0x869   : > { %4371 = vmatpush.bf16.msra.mxu1 %v7173_v34 }
 0x86a   : > { %4106 = vmatmul.bf16.vlgmr.msrb.gmra.mxu1 %v3937_v1  ;;  %4119 = vmatmul.bf16.vlgmr.msra.gmra.mxu2 %v3937_v1 }
 0x86b   : > { %4132 = vmatmul.bf16.vlgmr.msra.gmra.mxu3 %v3937_v1  ;;  %v7169_v1 = vor.u32 %v8007_v38, %v7168_v6  ;;  %4385 = vmatpush.bf16.msrb.mxu2 %v7165_v47 }
 0x86d   : > { %4358 = vmatpush.bf16.msrb.mxu0 %v7169_v1  ;;  %4372 = vmatpush.bf16.msra.mxu1 %v7161_v23 }
 0x86f   : > { %4386 = vmatpush.bf16.msrb.mxu2 %v7153_v16  ;;  %v8043_v16 = vld [vmem:[%s8915_s13 + $0x170] sm:$0xf0] }
 0x871   : > { %4359 = vmatpush.bf16.msrb.mxu0 %v7157_v50  ;;  %4373 = vmatpush.bf16.msra.mxu1 %v7149_v8 }
 0x875   : > { %4360 = vmatpush.bf16.msrb.mxu0 %v7145_v25 }
 0x879   : > { %4361 = vmatpush.bf16.msrb.mxu0 %v7133_v59  ;;  %v7349_v59 = vld [vmem:[%s8915_s13 + $0x174] sm:$0xf0] }
 0x8e7   : > { %v4107_v31 = vpop.f32.mrf.mxu1 }
 0x8e8   : > { %v4140_v4 = vadd.f32 %v4107_v31, %v3074_v62  ;;  %v7134_v62 = vld [vmem:[%s8915_s13 + $0xcc] sm:$0xf0]  ;;  %v7999_v31 = vld [vmem:[%s8915_s13 + $0xd0] sm:$0xf0] }
 0x8e9   : > { %v7137_v6 = vor.u32 %v7997_v26, %v7134_v62  ;;  %v7141_v38 = vor.u32 %v7999_v31, %v7140_v29  ;;  %v7355_v26 = vld [vmem:[%s8915_s13 + $0x170] sm:$0xf]  ;;  %v8044_v62 = vld [vmem:[%s8915_s13 + $0x178] sm:$0xf0]  ;;  %v7352_v29 = vor.u32 %v8042_v18, %v7349_v59 }
 0x8ea   : > { %v7095_v10 = vmul.f32 -1.442695, %v4140_v4  ;;  %v7335_v31 = vld [vmem:[%s8915_s13 + $0x150] sm:$0xf] }
 0x8eb   : > { %4374 = vmatpush.bf16.msra.mxu1 %v7137_v6  ;;  %4387 = vmatpush.bf16.msrb.mxu2 %v7141_v38  ;;  %v8039_v6 = vld [vmem:[%s8915_s13 + $0x154] sm:$0xf] }
 0x8ec   : > { %8329 = vpow2.f32 %v7095_v10  ;;  %4623 = vmatpush.bf16.msra.mxu0 %v7352_v29  ;;  %v8028_v29 = vld [vmem:[%s8915_s13 + $0xf8] sm:$0xf0] }
 0x8ed   : > { %v4120_v14 = vpop.f32.mrf.mxu2 }
 0x8ee   : > { %v4160_v55 = vadd.f32 %v4120_v14, %v3103_v39  ;;  %v4133_v15 = vpop.f32.mrf.mxu3  ;;  %v8213_v39 = vld [vmem:[%s8924_s8 + $0x1] ss:$0 sm:$0xff] }
 0x8ef   : > { %v4109_v49 = vpop.f32.mrf.mxu1  ;;  %v4184_v9 = vadd.f32 %v8213_v39, %v4133_v15 }
 0x8f0   : > { %v7096_v58 = vmul.f32 -1.442695, %v4160_v55 }
 0x8f2   : > { %v8330_v61 = vpop.eup %8329  ;;  %8331 = vpow2.f32 %v7096_v58 }
 0x8f3   : > { %v4144_v13 = vadd.f32 1.0, %v8330_v61 }
 0x8f5   : > { %8333 = vrcp.f32 %v4144_v13  ;;  %v4122_v20 = vpop.f32.mrf.mxu2  ;;  %v4156_v10 = vand.u32 2147483648, %v4144_v13  ;;  %v4154_v52 = vand.u32 2147483647, %v4144_v13  ;;  %vm4150_vm9 = vweird.f32 %v4144_v13 }
 0x8f6   : > { %v4135_v4 = vpop.f32.mrf.mxu3  ;;  %v7356_v20 = vor.u32 %v8044_v62, %v7355_v26  ;;  %v7287_v62 = vld [vmem:[%s8915_s13 + $0xf0] sm:$0xf] }
 0x8f7   : > { %v4157_v14 = vor.u32 1.1754944e-38, %v4156_v10  ;;  %vm4155_vm11 = vcmp.eq.f32.partialorder %v4154_v52, 8.507059e+37  ;;  %v8040_v4 = vld [vmem:[%s8915_s13 + $0x158] sm:$0xf0]  ;;  %v7323_v10 = vld [vmem:[%s8915_s13 + $0x138] sm:$0xf] }
 0x8f8   : > { %v8332_v2 = vpop.eup %8331  ;;  %4636 = vmatpush.bf16.msrb.mxu1 %v7356_v20  ;;  %v7336_v38 = vor.u32 %v8040_v4, %v7335_v31  ;;  %v8036_v52 = vld [vmem:[%s8915_s13 + $0x13c] sm:$0xf]  ;;  %v8027_v20 = vld [vmem:[%s8915_s13 + $0xf4] sm:$0xf]  ;;  %v7288_v31 = vor.u32 %v8028_v29, %v7287_v62  ;;  %v7289_v4 = vld [vmem:[%s8915_s13 + $0xfc] sm:$0xf0] }
 0x8f9   : > { %v4164_v1 = vadd.f32 1.0, %v8332_v2  ;;  %v7337_v2 = vld [vmem:[%s8915_s13 + $0x15c] sm:$0xf0] }
 0x8fb   : > { %v8334_v33 = vpop.eup %8333  ;;  %8335 = vrcp.f32 %v4164_v1  ;;  %v4176_v47 = vand.u32 2147483648, %v4164_v1  ;;  %v4174_v58 = vand.u32 2147483647, %v4164_v1  ;;  %vm4170_vm13 = vweird.f32 %v4164_v1 }
 0x8fc   : > { %v4146_v36 = vmul.f32 %v8334_v33, %v4144_v13  ;;  %vm4151_vm8 = vweird.f32 %v8334_v33  ;;  %v7347_v13 = vld [vmem:[%s8915_s13 + $0x168] sm:$0xf] }
 0x8fd   : > { %vm4152_vm10 = vmor %vm4150_vm9, %vm4151_vm8  ;;  %v4177_v25 = vor.u32 1.1754944e-38, %v4176_v47  ;;  %vm4175_vm15 = vcmp.eq.f32.partialorder %v4174_v58, 8.507059e+37  ;;  %v7348_v21 = vor.u32 %v8043_v16, %v7347_v13  ;;  %v7319_v47 = vld [vmem:[%s8915_s13 + $0x128] sm:$0xf]  ;;  %v3077_v58 = vadd.f32 %v9765_v28, %v9734_v12  ;;  %v8030_v28 = vld [vmem:[%s8915_s13 + $0x10c] sm:$0xf] }
 0x8fe   : > { %v4147_v35 = vsub.f32 1.0, %v4146_v36  ;;  %v7340_v36 = vor.u32 %v8039_v6, %v7337_v2  ;;  %v7301_v13 = vld [vmem:[%s8915_s13 + $0x114] sm:$0xf0]  ;;  %v8032_v16 = vld [vmem:[%s8915_s13 + $0x118] sm:$0xf0] }
 0x8ff   : > { %4610 = vmatpush.bf16.msrb.mxu3 %v7348_v21  ;;  %v7304_v59 = vor.u32 %v8030_v28, %v7301_v13  ;;  %v7295_v6 = vld [vmem:[%s8915_s13 + $0xf8] sm:$0xf] }
 0x900   : > { %v4148_v34 = vmul.f32 %v8334_v33, %v4147_v35  ;;  %4624 = vmatpush.bf16.msra.mxu0 %v7340_v36 }
 0x901   : > { %v8336_v22 = vpop.eup %8335 }
 0x902   : > { %v4166_v27 = vmul.f32 %v8336_v22, %v4164_v1  ;;  %v4149_v7 = vadd.f32 %v8334_v33, %v4148_v34  ;;  %vm4171_vm12 = vweird.f32 %v8336_v22  ;;  %v7343_v1 = vld [vmem:[%s8915_s13 + $0x158] sm:$0xf]  ;;  %v8037_v34 = vld [vmem:[%s8915_s13 + $0x140] sm:$0xf0] }
 0x903   : > { %vm4172_vm14 = vmor %vm4170_vm13, %vm4171_vm12  ;;  %4611 = vmatpush.bf16.msrb.mxu3 %v7336_v38  ;;  %v7324_v39 = vor.u32 %v8037_v34, %v7323_v10  ;;  %v8029_v38 = vld [vmem:[%s8915_s13 + $0x100] sm:$0xf0]  ;;  %v7275_v10 = vld [vmem:[%s8915_s13 + $0xd8] sm:$0xf] }
 0x904   : > { %v4167_v50 = vsub.f32 1.0, %v4166_v27  ;;  %v4153_v46 = vsel %vm4152_vm10, %v8334_v33, %v4149_v7  ;;  %v8041_v33 = vld [vmem:[%s8915_s13 + $0x160] sm:$0xf0]  ;;  %v7331_v27 = vld [vmem:[%s8915_s13 + $0x140] sm:$0xf] }
 0x905   : > { %v4158_v55 = vsel %vm4155_vm11, %v4157_v14, %v4153_v46  ;;  %v7344_v35 = vor.u32 %v8041_v33, %v7343_v1  ;;  %v8038_v7 = vld [vmem:[%s8915_s13 + $0x148] sm:$0xf0]  ;;  %v7311_v46 = vld [vmem:[%s8915_s13 + $0x120] sm:$0xf]  ;;  %v7292_v1 = vor.u32 %v8027_v20, %v7289_v4  ;;  %v7296_v33 = vor.u32 %v8029_v38, %v7295_v6  ;;  %v8025_v34 = vld [vmem:[%s8915_s13 + $0xe0] sm:$0xf0] }
 0x906   : > { %v4168_v23 = vmul.f32 %v8336_v22, %v4167_v50  ;;  %v4185_v49 = vmul.f32 %v4184_v9, %v4158_v55  ;;  %v7332_v50 = vor.u32 %v8038_v7, %v7331_v27  ;;  %v8034_v9 = vld [vmem:[%s8915_s13 + $0x128] sm:$0xf0]  ;;  %v7283_v27 = vld [vmem:[%s8915_s13 + $0xe0] sm:$0xf]  ;;  %v3135_v6 = vadd.f32 %v9828_v40, %v9808_v24 }
 0x907   : > { %4637 = vmatpush.bf16.msrb.mxu1 %v7344_v35  ;;  %4612 = vmatpush.bf16.msrb.mxu3 %v7324_v39  ;;  %v7312_v55 = vor.u32 %v8034_v9, %v7311_v46  ;;  %v7276_v39 = vor.u32 %v8025_v34, %v7275_v10  ;;  %v8026_v7 = vld [vmem:[%s8915_s13 + $0xe8] sm:$0xf0] }
 0x908   : > { %v4169_v44 = vadd.f32 %v8336_v22, %v4168_v23  ;;  %v4186_v19 = vadd.f32 %v4185_v49, %v3132_v56  ;;  %v8033_v56 = vld [vmem:[%s8915_s13 + $0x124] sm:$0xf]  ;;  %v7313_v23 = vld [vmem:[%s8915_s13 + $0x12c] sm:$0xf0]  ;;  %v8035_v49 = vld [vmem:[%s8915_s13 + $0x130] sm:$0xf0]  ;;  %v7284_v46 = vor.u32 %v8026_v7, %v7283_v27 }
 0x909   : > { %v7486_v7 = vld [vmem:[%s8915_s13 + $0x170] sm:$0xf] }
 0x90a   : > { %v4173_v42 = vsel %vm4172_vm14, %v8336_v22, %v4169_v44  ;;  %8337 = vtanh.f32 %v4186_v19  ;;  %v7325_v22 = vld [vmem:[%s8915_s13 + $0x144] sm:$0xf0]  ;;  %v3106_v44 = vadd.f32 %v9830_v17, %v9745_v54  ;;  %v7316_v19 = vor.u32 %v8033_v56, %v7313_v23  ;;  %v7307_v17 = vld [vmem:[%s8915_s13 + $0x110] sm:$0xf]  ;;  %v8022_v23 = vld [vmem:[%s8915_s13 + $0xc8] sm:$0xf0] }
 0x90b   : > { %v4178_v43 = vsel %vm4175_vm15, %v4177_v25, %v4173_v42  ;;  %v7328_v14 = vor.u32 %v8036_v52, %v7325_v22  ;;  %4638 = vmatpush.bf16.msrb.mxu1 %v7332_v50  ;;  %v7320_v25 = vor.u32 %v8035_v49, %v7319_v47  ;;  %4613 = vmatpush.bf16.msrb.mxu3 %v7312_v55  ;;  %v8024_v52 = vld [vmem:[%s8915_s13 + $0xdc] sm:$0xf]  ;;  %v7277_v22 = vld [vmem:[%s8915_s13 + $0xe4] sm:$0xf0]  ;;  %v7263_v55 = vld [vmem:[%s8915_s13 + $0xc0] sm:$0xf] }
 0x90c   : > { %v4188_v15 = vsub.f32 1.0, %v4178_v43  ;;  %v4190_v61 = vmul.f32 %v4178_v43, %v9972_v48  ;;  %v7308_v26 = vor.u32 %v8032_v16, %v7307_v17  ;;  %v7280_v50 = vor.u32 %v8024_v52, %v7277_v22 }
 0x90d   : > { %4625 = vmatpush.bf16.msra.mxu0 %v7328_v14  ;;  %v7264_v49 = vor.u32 %v8022_v23, %v7263_v55  ;;  %v7462_v55 = vld [vmem:[%s8915_s13 + $0x140] sm:$0xf]  ;;  %v8062_v23 = vld [vmem:[%s8915_s13 + $0x148] sm:$0xf0] }
 0x90f   : > { %4639 = vmatpush.bf16.msrb.mxu1 %v7320_v25 }
 0x910   : > { %v8338_v3 = vpop.eup %8337 }
 0x911   : > { %v4189_v60 = vmul.f32 %v8338_v3, %v4188_v15  ;;  %4626 = vmatpush.bf16.msra.mxu0 %v7316_v19  ;;  %v7271_v19 = vld [vmem:[%s8915_s13 + $0xc8] sm:$0xf] }
 0x913   : > { %v10032_v8 = vadd.f32 %v4190_v61, %v4189_v60  ;;  %v7299_v60 = vld [vmem:[%s8915_s13 + $0x108] sm:$0xf]  ;;  %v8031_v61 = vld [vmem:[%s8915_s13 + $0x110] sm:$0xf0]  ;;  %4640 = vmatpush.bf16.msrb.mxu1 %v7308_v26 }
 0x915   : > { %v4193_v63 = vpack.c.bf16 %v10032_v8, %v10032_v8  ;;  %4627 = vmatpush.bf16.msra.mxu0 %v7304_v59 }
 0x917   : > { %4362 = vmatmul.bf16.vlgmr.msrb.gmra.mxu0 %v4193_v63  ;;  %4375 = vmatmul.bf16.vlgmr.msra.gmra.mxu1 %v4193_v63 }
 0x918   : > { %4388 = vmatmul.bf16.vlgmr.msrb.gmra.mxu2 %v4193_v63  ;;  %v7300_v63 = vor.u32 %v8031_v61, %v7299_v60  ;;  %4641 = vmatpush.bf16.msrb.mxu1 %v7296_v33 }
 0x919   : > { %4628 = vmatpush.bf16.msra.mxu0 %v7292_v1 }
 0x91a   : > { %4614 = vmatpush.bf16.msrb.mxu3 %v7300_v63 }
 0x91c   : > { %4642 = vmatpush.bf16.msrb.mxu1 %v7284_v46  ;;  %v7474_v46 = vld [vmem:[%s8915_s13 + $0x158] sm:$0xf] }
 0x91d   : > { %4629 = vmatpush.bf16.msra.mxu0 %v7280_v50 }
 0x91e   : > { %4615 = vmatpush.bf16.msrb.mxu3 %v7288_v31 }
 0x922   : > { %4616 = vmatpush.bf16.msrb.mxu3 %v7276_v39 }
 0x926   : > { %4617 = vmatpush.bf16.msrb.mxu3 %v7264_v49  ;;  %v7450_v49 = vld [vmem:[%s8915_s13 + $0x128] sm:$0xf] }
 0x994   : > { %v4363_v42 = vpop.f32.mrf.mxu0  ;;  %v4376_v43 = vpop.f32.mrf.mxu1 }
 0x995   : > { %v4396_v15 = vadd.f32 %v4363_v42, %v3077_v58  ;;  %v4416_v3 = vadd.f32 %v4376_v43, %v3106_v44  ;;  %v8021_v58 = vld [vmem:[%s8915_s13 + $0xc4] sm:$0xf]  ;;  %v7265_v44 = vld [vmem:[%s8915_s13 + $0xcc] sm:$0xf0]  ;;  %v8023_v42 = vld [vmem:[%s8915_s13 + $0xd0] sm:$0xf0] }
 0x996   : > { %v7268_v43 = vor.u32 %v8021_v58, %v7265_v44  ;;  %v8059_v58 = vld [vmem:[%s8915_s13 + $0x130] sm:$0xf0] }
 0x997   : > { %v7226_v18 = vmul.f32 -1.442695, %v4396_v15  ;;  %v7227_v21 = vmul.f32 -1.442695, %v4416_v3  ;;  %v7272_v15 = vor.u32 %v8023_v42, %v7271_v19  ;;  %v7451_v44 = vor.u32 %v8059_v58, %v7450_v49  ;;  %v7478_v19 = vld [vmem:[%s8915_s13 + $0x168] sm:$0xf] }
 0x998   : > { %4630 = vmatpush.bf16.msra.mxu0 %v7268_v43  ;;  %v8066_v42 = vld [vmem:[%s8915_s13 + $0x16c] sm:$0xf]  ;;  %v8055_v49 = vld [vmem:[%s8915_s13 + $0x110] sm:$0xf0] }
 0x999   : > { %8339 = vpow2.f32 %v7226_v18  ;;  %4643 = vmatpush.bf16.msrb.mxu1 %v7272_v15  ;;  %v7480_v15 = vld [vmem:[%s8915_s13 + $0x174] sm:$0xf0]  ;;  %v8054_v58 = vld [vmem:[%s8915_s13 + $0x10c] sm:$0xf] }
 0x99a   : > { %8341 = vpow2.f32 %v7227_v21  ;;  %v8214_v21 = vld [vmem:[%s8924_s8 + $0x1] ss:$0 sm:$0xff] }
 0x99b   : > { %v4389_v2 = vpop.f32.mrf.mxu2 }
 0x99c   : > { %v4365_v36 = vpop.f32.mrf.mxu0  ;;  %v4378_v35 = vpop.f32.mrf.mxu1  ;;  %v4440_v20 = vadd.f32 %v8214_v21, %v4389_v2 }
 0x99f   : > { %v8340_v14 = vpop.eup %8339 }
 0x9a0   : > { %v8342_v9 = vpop.eup %8341  ;;  %v4400_v56 = vadd.f32 1.0, %v8340_v14  ;;  %v8068_v14 = vld [vmem:[%s8915_s13 + $0x178] sm:$0xf0] }
 0x9a1   : > { %v4420_v47 = vadd.f32 1.0, %v8342_v9  ;;  %v7487_v50 = vor.u32 %v8068_v14, %v7486_v7  ;;  %v8065_v9 = vld [vmem:[%s8915_s13 + $0x160] sm:$0xf0]  ;;  %v7444_v7 = vld [vmem:[%s8915_s13 + $0x12c] sm:$0xf0]  ;;  %v3079_v14 = vadd.f32 %v9776_v41, %v9734_v12 }
 0x9a2   : > { %8343 = vrcp.f32 %v4400_v56  ;;  %v4412_v17 = vand.u32 2147483648, %v4400_v56  ;;  %v4410_v18 = vand.u32 2147483647, %v4400_v56  ;;  %vm4406_vm1 = vweird.f32 %v4400_v56 }
 0x9a3   : > { %8345 = vrcp.f32 %v4420_v47  ;;  %v4391_v25 = vpop.f32.mrf.mxu2  ;;  %v4432_v38 = vand.u32 2147483648, %v4420_v47  ;;  %vm4426_vm5 = vweird.f32 %v4420_v47  ;;  %v4430_v33 = vand.u32 2147483647, %v4420_v47  ;;  %4892 = vmatpush.bf16.msrb.mxu0 %v7487_v50 }
 0x9a4   : > { %v4413_v62 = vor.u32 1.1754944e-38, %v4412_v17  ;;  %vm4411_vm3 = vcmp.eq.f32.partialorder %v4410_v18, 8.507059e+37  ;;  %v8067_v25 = vld [vmem:[%s8915_s13 + $0x170] sm:$0xf0]  ;;  %v7468_v18 = vld [vmem:[%s8915_s13 + $0x15c] sm:$0xf0] }
 0x9a5   : > { %v4433_v10 = vor.u32 1.1754944e-38, %v4432_v38  ;;  %vm4431_vm7 = vcmp.eq.f32.partialorder %v4430_v33, 8.507059e+37  ;;  %v7479_v43 = vor.u32 %v8067_v25, %v7478_v19  ;;  %v8063_v17 = vld [vmem:[%s8915_s13 + $0x154] sm:$0xf]  ;;  %v7432_v19 = vld [vmem:[%s8915_s13 + $0x114] sm:$0xf0] }
 0x9a6   : > { %v7471_v21 = vor.u32 %v8063_v17, %v7468_v18  ;;  %v8100_v25 = vld [vmem:[%s8928_s20 + $0x38] sm:$0xff]  ;;  %v7406_v18 = vld [vmem:[%s8915_s13 + $0xd8] sm:$0xf] }
 0x9a7   : > { %4866 = vmatpush.bf16.msra.mxu2 %v7479_v43 }
 0x9a8   : > { %v8344_v3 = vpop.eup %8343 }
 0x9a9   : > { %v8346_v60 = vpop.eup %8345  ;;  %v4402_v61 = vmul.f32 %v8344_v3, %v4400_v56  ;;  %vm4407_vm0 = vweird.f32 %v8344_v3  ;;  %v7475_v56 = vor.u32 %v8065_v9, %v7474_v46  ;;  %v7402_v9 = vld [vmem:[%s8915_s13 + $0xc8] sm:$0xf] }
 0x9aa   : > { %v4422_v28 = vmul.f32 %v8346_v60, %v4420_v47  ;;  %vm4408_vm2 = vmor %vm4406_vm1, %vm4407_vm0  ;;  %vm4427_vm4 = vweird.f32 %v8346_v60  ;;  %v7463_v47 = vor.u32 %v8062_v23, %v7462_v55 }
 0x9ab   : > { %v4403_v63 = vsub.f32 1.0, %v4402_v61  ;;  %vm4428_vm6 = vmor %vm4426_vm5, %vm4427_vm4  ;;  %4893 = vmatpush.bf16.msrb.mxu0 %v7475_v56  ;;  %v8056_v61 = vld [vmem:[%s8915_s13 + $0x118] sm:$0xf0]  ;;  %v8047_v56 = vld [vmem:[%s8915_s13 + $0xd0] sm:$0xf0] }
 0x9ac   : > { %v4423_v13 = vsub.f32 1.0, %v4422_v28  ;;  %v7403_v23 = vor.u32 %v8047_v56, %v7402_v9  ;;  %v8094_v56 = vld [vmem:[%s8928_s20 + $0x8] sm:$0xff] }
 0x9ad   : > { %v4404_v16 = vmul.f32 %v8344_v3, %v4403_v63  ;;  %v7466_v63 = vld [vmem:[%s8915_s13 + $0x150] sm:$0xf] }
 0x9ae   : > { %v4424_v59 = vmul.f32 %v8346_v60, %v4423_v13  ;;  %v8064_v13 = vld [vmem:[%s8915_s13 + $0x158] sm:$0xf0] }
 0x9af   : > { %v4405_v26 = vadd.f32 %v8344_v3, %v4404_v16  ;;  %4894 = vmatpush.bf16.msrb.mxu0 %v7463_v47  ;;  %v7467_v16 = vor.u32 %v8064_v13, %v7466_v63  ;;  %v7430_v47 = vld [vmem:[%s8915_s13 + $0x108] sm:$0xf]  ;;  %v7420_v63 = vld [vmem:[%s8915_s13 + $0xfc] sm:$0xf0] }
 0x9b0   : > { %v4425_v31 = vadd.f32 %v8346_v60, %v4424_v59  ;;  %v7426_v59 = vld [vmem:[%s8915_s13 + $0xf8] sm:$0xf]  ;;  %v8099_v13 = vld [vmem:[%s8928_s20 + $0x30] sm:$0xff] }
 0x9b1   : > { %v4409_v29 = vsel %vm4408_vm2, %v8344_v3, %v4405_v26  ;;  %v7483_v3 = vor.u32 %v8066_v42, %v7480_v15  ;;  %4867 = vmatpush.bf16.msra.mxu2 %v7467_v16  ;;  %v8053_v26 = vld [vmem:[%s8915_s13 + $0x100] sm:$0xf0]  ;;  %v7435_v15 = vor.u32 %v8054_v58, %v7432_v19 }
 0x9b2   : > { %v4414_v4 = vsel %vm4411_vm3, %v4413_v62, %v4409_v29  ;;  %v4429_v35 = vsel %vm4428_vm6, %v8346_v60, %v4425_v31  ;;  %v7438_v60 = vld [vmem:[%s8915_s13 + $0x110] sm:$0xf]  ;;  %v3108_v62 = vadd.f32 %v9834_v32, %v9745_v54  ;;  %v7427_v29 = vor.u32 %v8053_v26, %v7426_v59  ;;  %v8061_v31 = vld [vmem:[%s8915_s13 + $0x140] sm:$0xf0]  ;;  %v8050_v32 = vld [vmem:[%s8915_s13 + $0xe8] sm:$0xf0] }
 0x9b3   : > { %v4441_v1 = vmul.f32 %v4440_v20, %v4414_v4  ;;  %v4434_v2 = vsel %vm4431_vm7, %v4433_v10, %v4429_v35  ;;  %4895 = vmatpush.bf16.msrb.mxu0 %v7451_v44  ;;  %4879 = vmatpush.bf16.msra.mxu3 %v7483_v3  ;;  %v7439_v28 = vor.u32 %v8056_v61, %v7438_v60  ;;  %v7454_v20 = vld [vmem:[%s8915_s13 + $0x138] sm:$0xf]  ;;  %v8060_v4 = vld [vmem:[%s8915_s13 + $0x13c] sm:$0xf]  ;;  %v7414_v10 = vld [vmem:[%s8915_s13 + $0xe0] sm:$0xf] }
 0x9b4   : > { %v4444_v34 = vsub.f32 1.0, %v4434_v2  ;;  %v4446_v40 = vmul.f32 %v4434_v2, %v10032_v8  ;;  %v7455_v38 = vor.u32 %v8061_v31, %v7454_v20  ;;  %v7431_v44 = vor.u32 %v8055_v49, %v7430_v47  ;;  %v7418_v3 = vld [vmem:[%s8915_s13 + $0xf0] sm:$0xf]  ;;  %v8052_v60 = vld [vmem:[%s8915_s13 + $0xf8] sm:$0xf0] }
 0x9b5   : > { %v4442_v36 = vadd.f32 %v4441_v1, %v3135_v6  ;;  %v7456_v1 = vld [vmem:[%s8915_s13 + $0x144] sm:$0xf0]  ;;  %v7419_v61 = vor.u32 %v8052_v60, %v7418_v3  ;;  %v8048_v26 = vld [vmem:[%s8915_s13 + $0xdc] sm:$0xf] }
 0x9b6   : > { %v7459_v35 = vor.u32 %v8060_v4, %v7456_v1  ;;  %4868 = vmatpush.bf16.msra.mxu2 %v7455_v38  ;;  %v8098_v31 = vld [vmem:[%s8928_s20 + $0x28] sm:$0xff]  ;;  %v8046_v38 = vld [vmem:[%s8915_s13 + $0xc8] sm:$0xf0]  ;;  %v8045_v1 = vld [vmem:[%s8915_s13 + $0xc4] sm:$0xf] }
 0x9b7   : > { %8347 = vtanh.f32 %v4442_v36  ;;  %4896 = vmatpush.bf16.msrb.mxu0 %v7439_v28  ;;  %4880 = vmatpush.bf16.msra.mxu3 %v7471_v21  ;;  %v8051_v28 = vld [vmem:[%s8915_s13 + $0xf4] sm:$0xf]  ;;  %v8049_v21 = vld [vmem:[%s8915_s13 + $0xe0] sm:$0xf0] }
 0x9b8   : > { %v7423_v16 = vor.u32 %v8051_v28, %v7420_v63  ;;  %v7407_v20 = vor.u32 %v8049_v21, %v7406_v18 }
 0x9bb   : > { %4897 = vmatpush.bf16.msrb.mxu0 %v7427_v29  ;;  %4881 = vmatpush.bf16.msra.mxu3 %v7459_v35 }
 0x9bd   : > { %v8348_v52 = vpop.eup %8347 }
 0x9be   : > { %v4445_v39 = vmul.f32 %v8348_v52, %v4444_v34  ;;  %v7415_v34 = vor.u32 %v8050_v32, %v7414_v10  ;;  %v7442_v52 = vld [vmem:[%s8915_s13 + $0x120] sm:$0xf] }
 0x9c0   : > { %v10092_v22 = vadd.f32 %v4446_v40, %v4445_v39  ;;  %v8058_v39 = vld [vmem:[%s8915_s13 + $0x128] sm:$0xf0]  ;;  %4898 = vmatpush.bf16.msrb.mxu0 %v7415_v34 }
 0x9c1   : > { %v7443_v40 = vor.u32 %v8058_v39, %v7442_v52  ;;  %v8096_v39 = vld [vmem:[%s8928_s20 + $0x18] sm:$0xff] }
 0x9c2   : > { %v4449_v27 = vpack.c.bf16 %v10092_v22, %v10092_v22 }
 0x9c3   : > { %4869 = vmatpush.bf16.msra.mxu2 %v7443_v40 }
 0x9c4   : > { %4618 = vmatmul.bf16.vlgmr.msrb.gmra.mxu3 %v4449_v27  ;;  %4631 = vmatmul.bf16.vlgmr.msra.gmra.mxu0 %v4449_v27 }
 0x9c5   : > { %4644 = vmatmul.bf16.vlgmr.msrb.gmra.mxu1 %v4449_v27  ;;  %v8057_v27 = vld [vmem:[%s8915_s13 + $0x124] sm:$0xf]  ;;  %4899 = vmatpush.bf16.msrb.mxu0 %v7403_v23 }
 0x9c6   : > { %v7447_v50 = vor.u32 %v8057_v27, %v7444_v7  ;;  %v8095_v7 = vld [vmem:[%s8928_s20 + $0x10] sm:$0xff] }
 0x9c7   : > { %4870 = vmatpush.bf16.msra.mxu2 %v7431_v44  ;;  %v8093_v44 = vld [vmem:[%s8928_s20] sm:$0xff] }
 0x9c8   : > { %4882 = vmatpush.bf16.msra.mxu3 %v7447_v50 }
 0x9c9   : > { %5297 = vmatpush.bf16.msra.mxu0 %v8100_v25 }
 0x9cb   : > { %4871 = vmatpush.bf16.msra.mxu2 %v7419_v61 }
 0x9cc   : > { %4883 = vmatpush.bf16.msra.mxu3 %v7435_v15  ;;  %v3137_v15 = vadd.f32 %v9832_v0, %v9808_v24 }
 0x9cd   : > { %5298 = vmatpush.bf16.msra.mxu0 %v8099_v13 }
 0x9cf   : > { %4872 = vmatpush.bf16.msra.mxu2 %v7407_v20  ;;  %v7609_v20 = vld [vmem:[%s8915_s13 + $0x168] sm:$0xf] }
 0x9d0   : > { %4884 = vmatpush.bf16.msra.mxu3 %v7423_v16 }
 0x9d1   : > { %5299 = vmatpush.bf16.msra.mxu0 %v8098_v31  ;;  %v8091_v31 = vld [vmem:[%s8915_s13 + $0x170] sm:$0xf0] }
 0xa41   : > { %v4632_v6 = vpop.f32.mrf.mxu0 }
 0xa42   : > { %v4672_v33 = vadd.f32 %v4632_v6, %v3108_v62  ;;  %v10122_v36 = vpop.f32.mrf.mxu1  ;;  %v7408_v62 = vld [vmem:[%s8915_s13 + $0xe4] sm:$0xf0]  ;;  %v7394_v6 = vld [vmem:[%s8915_s13 + $0xc0] sm:$0xf] }
 0xa43   : > { %v7411_v4 = vor.u32 %v8048_v26, %v7408_v62  ;;  %v7395_v32 = vor.u32 %v8046_v38, %v7394_v6  ;;  %v5225_v26 = vpack.c.bf16 %v9909_v30, %v9814_v37  ;;  %v5226_v62 = vpack.c.bf16 %v10032_v8, %v9972_v48  ;;  %v7611_v37 = vld [vmem:[%s8915_s13 + $0x174] sm:$0xf0]  ;;  %v7617_v30 = vld [vmem:[%s8915_s13 + $0x170] sm:$0xf]  ;;  %v8092_v38 = vld [vmem:[%s8915_s13 + $0x178] sm:$0xf0] }
 0xa44   : > { %v7358_v2 = vmul.f32 -1.442695, %v4672_v33  ;;  %v7396_v33 = vld [vmem:[%s8915_s13 + $0xcc] sm:$0xf0]  ;;  %v7610_v6 = vor.u32 %v8091_v31, %v7609_v20  ;;  %v7618_v48 = vor.u32 %v8092_v38, %v7617_v30  ;;  %v8076_v20 = vld [vmem:[%s8915_s13 + $0xf8] sm:$0xf0] }
 0xa45   : > { %4885 = vmatpush.bf16.msra.mxu3 %v7411_v4  ;;  %v7399_v34 = vor.u32 %v8045_v1, %v7396_v33  ;;  %4873 = vmatpush.bf16.msra.mxu2 %v7395_v32  ;;  %v8090_v4 = vld [vmem:[%s8915_s13 + $0x16c] sm:$0xf]  ;;  %v7597_v8 = vld [vmem:[%s8915_s13 + $0x150] sm:$0xf]  ;;  %v8087_v33 = vld [vmem:[%s8915_s13 + $0x154] sm:$0xf] }
 0xa46   : > { %8349 = vpow2.f32 %v7358_v2  ;;  %v8097_v2 = vld [vmem:[%s8928_s20 + $0x20] sm:$0xff]  ;;  %v7614_v1 = vor.u32 %v8090_v4, %v7611_v37  ;;  %5122 = vmatpush.bf16.msra.mxu1 %v7610_v6  ;;  %v7605_v32 = vld [vmem:[%s8915_s13 + $0x158] sm:$0xf]  ;;  %v10232_v4 = vld [vmem:[%s521_s7] ss:$0 sm:$0xff] }
 0xa47   : > { %v4619_v46 = vpop.f32.mrf.mxu3  ;;  %5300 = vmatpush.bf16.msra.mxu0 %v8097_v2  ;;  %v8089_v2 = vld [vmem:[%s8915_s13 + $0x160] sm:$0xf0]  ;;  %v8075_v31 = vld [vmem:[%s8915_s13 + $0xf4] sm:$0xf]  ;;  %v7551_v37 = vld [vmem:[%s8915_s13 + $0xfc] sm:$0xf0] }
 0xa48   : > { %v4652_v55 = vadd.f32 %v4619_v46, %v3079_v14  ;;  %v7557_v30 = vld [vmem:[%s8915_s13 + $0xf8] sm:$0xf]  ;;  %v8077_v38 = vld [vmem:[%s8915_s13 + $0x100] sm:$0xf0] }
 0xa49   : > { %v4634_v41 = vpop.f32.mrf.mxu0  ;;  %4886 = vmatpush.bf16.msra.mxu3 %v7399_v34  ;;  %5135 = vmatpush.bf16.msrb.mxu2 %v7614_v1  ;;  %v7554_v1 = vor.u32 %v8075_v31, %v7551_v37  ;;  %v3140_v31 = vadd.f32 %v9836_v51, %v9808_v24 }
 0xa4a   : > { %v7357_v42 = vmul.f32 -1.442695, %v4652_v55  ;;  %v4647_v43 = vpop.f32.mrf.mxu1  ;;  %v8215_v55 = vld [vmem:[%s8924_s8 + $0x1] ss:$0 sm:$0xff] }
 0xa4b   : > { %5301 = vmatpush.bf16.msra.mxu0 %v8096_v39  ;;  %v4696_v19 = vadd.f32 %v8215_v55, %v10122_v36  ;;  %v7585_v39 = vld [vmem:[%s8915_s13 + $0x138] sm:$0xf] }
 0xa4c   : > { %v8350_v17 = vpop.eup %8349  ;;  %8351 = vpow2.f32 %v7357_v42 }
 0xa4d   : > { %v10146_v59 = vadd.f32 1.0, %v8350_v17  ;;  %5148 = vmatpush.bf16.msrb.mxu3 %v7618_v48  ;;  %v7558_v48 = vor.u32 %v8077_v38, %v7557_v30 }
 0xa4f   : > { %v4621_v29 = vpop.f32.mrf.mxu3  ;;  %8353 = vrcp.f32 %v10146_v59  ;;  %5302 = vmatpush.bf16.msra.mxu0 %v8095_v7  ;;  %v4688_v3 = vand.u32 2147483648, %v10146_v59  ;;  %vm4682_vm13 = vweird.f32 %v10146_v59  ;;  %v4686_v61 = vand.u32 2147483647, %v10146_v59 }
 0xa51   : > { %v4689_v63 = vor.u32 1.1754944e-38, %v4688_v3  ;;  %vm4687_vm15 = vcmp.eq.f32.partialorder %v4686_v61, 8.507059e+37 }
 0xa52   : > { %v8352_v35 = vpop.eup %8351 }
 0xa53   : > { %v4656_v10 = vadd.f32 1.0, %v8352_v35  ;;  %5303 = vmatpush.bf16.msra.mxu0 %v8094_v56 }
 0xa55   : > { %8355 = vrcp.f32 %v4656_v10  ;;  %v8354_v52 = vpop.eup %8353  ;;  %v4668_v9 = vand.u32 2147483648, %v4656_v10  ;;  %v4666_v47 = vand.u32 2147483647, %v4656_v10  ;;  %vm4662_vm9 = vweird.f32 %v4656_v10 }
 0xa56   : > { %v4678_v40 = vmul.f32 %v8354_v52, %v10146_v59  ;;  %vm4683_vm12 = vweird.f32 %v8354_v52 }
 0xa57   : > { %v4669_v41 = vor.u32 1.1754944e-38, %v4668_v9  ;;  %vm4667_vm11 = vcmp.eq.f32.partialorder %v4666_v47, 8.507059e+37  ;;  %5304 = vmatpush.bf16.msra.mxu0 %v8093_v44  ;;  %vm4684_vm14 = vmor %vm4682_vm13, %vm4683_vm12  ;;  %v8082_v47 = vld [vmem:[%s8915_s13 + $0x128] sm:$0xf0]  ;;  %v7581_v44 = vld [vmem:[%s8915_s13 + $0x128] sm:$0xf] }
 0xa58   : > { %v4679_v50 = vsub.f32 1.0, %v4678_v40  ;;  %v8085_v40 = vld [vmem:[%s8915_s13 + $0x140] sm:$0xf0] }
 0xa59   : > { %v7586_v7 = vor.u32 %v8085_v40, %v7585_v39 }
 0xa5a   : > { %v4680_v49 = vmul.f32 %v8354_v52, %v4679_v50  ;;  %v7593_v50 = vld [vmem:[%s8915_s13 + $0x140] sm:$0xf] }
 0xa5b   : > { %v8356_v27 = vpop.eup %8355 }
 0xa5c   : > { %v4658_v14 = vmul.f32 %v8356_v27, %v4656_v10  ;;  %vm4663_vm8 = vweird.f32 %v8356_v27  ;;  %v4681_v42 = vadd.f32 %v8354_v52, %v4680_v49  ;;  %v7599_v10 = vld [vmem:[%s8915_s13 + $0x15c] sm:$0xf0]  ;;  %v8081_v49 = vld [vmem:[%s8915_s13 + $0x124] sm:$0xf] }
 0xa5d   : > { %vm4664_vm10 = vmor %vm4662_vm9, %vm4663_vm8  ;;  %v7602_v34 = vor.u32 %v8087_v33, %v7599_v10  ;;  %v8072_v33 = vld [vmem:[%s8915_s13 + $0xdc] sm:$0xf] }
 0xa5e   : > { %v4659_v46 = vsub.f32 1.0, %v4658_v14  ;;  %v4685_v36 = vsel %vm4684_vm14, %v8354_v52, %v4681_v42  ;;  %v7606_v52 = vor.u32 %v8089_v2, %v7605_v32  ;;  %v7587_v14 = vld [vmem:[%s8915_s13 + $0x144] sm:$0xf0]  ;;  %v3111_v42 = vadd.f32 %v9838_v45, %v9745_v54  ;;  %v7569_v45 = vld [vmem:[%s8915_s13 + $0x110] sm:$0xf] }
 0xa5f   : > { %v4690_v13 = vsel %vm4687_vm15, %v4689_v63, %v4685_v36  ;;  %5136 = vmatpush.bf16.msrb.mxu2 %v7602_v34  ;;  %v7561_v36 = vld [vmem:[%s8915_s13 + $0x108] sm:$0xf]  ;;  %v8079_v63 = vld [vmem:[%s8915_s13 + $0x110] sm:$0xf0]  ;;  %v7545_v34 = vld [vmem:[%s8915_s13 + $0xe0] sm:$0xf] }
 0xa60   : > { %v4660_v23 = vmul.f32 %v8356_v27, %v4659_v46  ;;  %v4700_v17 = vsub.f32 1.0, %v4690_v13  ;;  %v4702_v18 = vmul.f32 %v4690_v13, %v10092_v22  ;;  %5149 = vmatpush.bf16.msrb.mxu3 %v7606_v52  ;;  %v8086_v46 = vld [vmem:[%s8915_s13 + $0x148] sm:$0xf0]  ;;  %v7539_v2 = vld [vmem:[%s8915_s13 + $0xe4] sm:$0xf0] }
 0xa61   : > { %v7594_v55 = vor.u32 %v8086_v46, %v7593_v50  ;;  %v8078_v13 = vld [vmem:[%s8915_s13 + $0x10c] sm:$0xf]  ;;  %v7542_v39 = vor.u32 %v8072_v33, %v7539_v2 }
 0xa62   : > { %v4661_v58 = vadd.f32 %v8356_v27, %v4660_v23  ;;  %v7573_v23 = vld [vmem:[%s8915_s13 + $0x120] sm:$0xf]  ;;  %v8074_v52 = vld [vmem:[%s8915_s13 + $0xe8] sm:$0xf0] }
 0xa63   : > { %v7546_v40 = vor.u32 %v8074_v52, %v7545_v34 }
 0xa64   : > { %v4665_v25 = vsel %vm4664_vm10, %v8356_v27, %v4661_v58  ;;  %v8084_v27 = vld [vmem:[%s8915_s13 + $0x13c] sm:$0xf]  ;;  %5150 = vmatpush.bf16.msrb.mxu3 %v7594_v55  ;;  %v7574_v58 = vor.u32 %v8082_v47, %v7573_v23  ;;  %v7525_v55 = vld [vmem:[%s8915_s13 + $0xc0] sm:$0xf]  ;;  %v8070_v23 = vld [vmem:[%s8915_s13 + $0xc8] sm:$0xf0] }
 0xa65   : > { %v4670_v43 = vsel %vm4667_vm11, %v4669_v41, %v4665_v25  ;;  %v7590_v56 = vor.u32 %v8084_v27, %v7587_v14  ;;  %v7575_v41 = vld [vmem:[%s8915_s13 + $0x12c] sm:$0xf0]  ;;  %v3082_v25 = vadd.f32 %v9795_v57, %v9734_v12  ;;  %v7562_v57 = vor.u32 %v8079_v63, %v7561_v36  ;;  %v8069_v47 = vld [vmem:[%s8915_s13 + $0xc4] sm:$0xf] }
 0xa66   : > { %v4697_v60 = vmul.f32 %v4696_v19, %v4670_v43  ;;  %v8083_v19 = vld [vmem:[%s8915_s13 + $0x130] sm:$0xf0]  ;;  %v7578_v43 = vor.u32 %v8081_v49, %v7575_v41  ;;  %v7527_v49 = vld [vmem:[%s8915_s13 + $0xcc] sm:$0xf0] }
 0xa67   : > { %5137 = vmatpush.bf16.msrb.mxu2 %v7590_v56  ;;  %v7530_v41 = vor.u32 %v8069_v47, %v7527_v49 }
 0xa68   : > { %v4698_v28 = vadd.f32 %v4697_v60, %v3137_v15  ;;  %v7582_v15 = vor.u32 %v8083_v19, %v7581_v44  ;;  %v7533_v44 = vld [vmem:[%s8915_s13 + $0xc8] sm:$0xf]  ;;  %v8071_v19 = vld [vmem:[%s8915_s13 + $0xd0] sm:$0xf0] }
 0xa6a   : > { %8357 = vtanh.f32 %v4698_v28  ;;  %5151 = vmatpush.bf16.msrb.mxu3 %v7582_v15 }
 0xa6b   : > { %5138 = vmatpush.bf16.msrb.mxu2 %v7578_v43 }
 0xa70   : > { %v8358_v16 = vpop.eup %8357 }
 0xa71   : > { %v4701_v0 = vmul.f32 %v8358_v16, %v4700_v17  ;;  %v7563_v17 = vld [vmem:[%s8915_s13 + $0x114] sm:$0xf0]  ;;  %v8080_v16 = vld [vmem:[%s8915_s13 + $0x118] sm:$0xf0] }
 0xa73   : > { %v10170_v21 = vadd.f32 %v4702_v18, %v4701_v0 }
 0xa75   : > { %v4705_v59 = vpack.c.bf16 %v10170_v21, %v10170_v21  ;;  %v5227_v29 = vpack.c.bf16 %v10170_v21, %v10092_v22  ;;  %v8088_v22 = vld [vmem:[%s8915_s13 + $0x158] sm:$0xf0] }
 0xa76   : > { %v7598_v35 = vor.u32 %v8088_v22, %v7597_v8  ;;  %v7537_v8 = vld [vmem:[%s8915_s13 + $0xd8] sm:$0xf]  ;;  %v8073_v22 = vld [vmem:[%s8915_s13 + $0xe0] sm:$0xf0] }
 0xa77   : > { %4874 = vmatmul.bf16.vlgmr.msra.gmra.mxu2 %v4705_v59  ;;  %4887 = vmatmul.bf16.vlgmr.msra.gmra.mxu3 %v4705_v59  ;;  %v7538_v32 = vor.u32 %v8073_v22, %v7537_v8 }
 0xa78   : > { %4900 = vmatmul.bf16.vlgmr.msrb.gmra.mxu0 %v4705_v59  ;;  %5123 = vmatpush.bf16.msra.mxu1 %v7598_v35 }
 0xa7c   : > { %5124 = vmatpush.bf16.msra.mxu1 %v7586_v7 }
 0xa80   : > { %5125 = vmatpush.bf16.msra.mxu1 %v7574_v58  ;;  %v7526_v58 = vor.u32 %v8070_v23, %v7525_v55 }
 0xa84   : > { %5126 = vmatpush.bf16.msra.mxu1 %v7562_v57 }
 0xa88   : > { %5305 = vmatmul.bf16.vlgmr.msra.gmra.mxu0 %v5225_v26  ;;  %v7566_v26 = vor.u32 %v8078_v13, %v7563_v17  ;;  %v8216_v13 = vld [vmem:[%s8924_s8 + $0x1] ss:$0 sm:$0xff] }
 0xa8a   : > { %5139 = vmatpush.bf16.msrb.mxu2 %v7566_v26 }
 0xa8e   : > { %5140 = vmatpush.bf16.msrb.mxu2 %v7554_v1 }
 0xa92   : > { %5141 = vmatpush.bf16.msrb.mxu2 %v7542_v39 }
 0xa96   : > { %5142 = vmatpush.bf16.msrb.mxu2 %v7530_v41 }
 0xa98   : > { %5310 = vmatmul.bf16.gmra.mxu0 %v5226_v62  ;;  %v7570_v62 = vor.u32 %v8080_v16, %v7569_v45 }
 0xa9a   : > { %5152 = vmatpush.bf16.msrb.mxu3 %v7570_v62 }
 0xa9e   : > { %5153 = vmatpush.bf16.msrb.mxu3 %v7558_v48 }
 0xaa2   : > { %5154 = vmatpush.bf16.msrb.mxu3 %v7546_v40 }
 0xaa8   : > { %5315 = vmatmul.bf16.gmra.mxu0 %v5227_v29  ;;  %v7549_v29 = vld [vmem:[%s8915_s13 + $0xf0] sm:$0xf]  ;;  %s8573_s13 = sshra.s32 %s5350_s30, 4  ;;  %s8574_s13 = int_to_ptr.hbm [resolvable:$true] %s8573_s13 }
 0xaa9   : > { %v7550_v6 = vor.u32 %v8076_v20, %v7549_v29  ;;  %s8575_s28 = scalar_lea.hbm %s8574_s13, 64  ;;  %p8580_p0 = scmp.lt.s32.totalorder %s8574_s13, %s10368_s15 }
 0xaaa   : > { %p8576_p13 = scmp.ne.s32.totalorder %s8574_s13, %s8575_s28  ;;  %p8581_p4 = scmp.lt.s32.totalorder %s8579_s10, %s8575_s28 }
 0xaab   : > { %5127 = vmatpush.bf16.msra.mxu1 %v7550_v6 }
 0xaac   : > { %p8577_p2 = pnand %p8576_p13, %p8738_p11  ;;  %p8582_p5 = por %p8581_p4, %p8580_p0 }
 0xaae   : > { %p8578_p3 = pneg %p8577_p2 }
 0xaaf   : > { %5128 = vmatpush.bf16.msra.mxu1 %v7538_v32 }
 0xab0   : > { %p8583_p7 = pnand %p8582_p5, %p8578_p3 }
 0xab3   : > { %5129 = vmatpush.bf16.msra.mxu1 %v7526_v58 }
 0xaf5   : > { %v10206_v9 = vpop.f32.mrf.mxu0 }
 0xaf6   : > { %v4952_v26 = vadd.f32 %v8216_v13, %v10206_v9 }
 0xafa   : > { %v4875_v3 = vpop.f32.mrf.mxu2  ;;  %v4888_v60 = vpop.f32.mrf.mxu3 }
 0xafb   : > { %v4908_v61 = vadd.f32 %v4875_v3, %v3082_v25  ;;  %v4928_v28 = vadd.f32 %v4888_v60, %v3111_v42  ;;  %v7534_v25 = vor.u32 %v8071_v19, %v7533_v44 }
 0xafd   : > { %v7488_v0 = vmul.f32 -1.442695, %v4908_v61  ;;  %v7489_v18 = vmul.f32 -1.442695, %v4928_v28  ;;  %v4903_v59 = vpop.f32.mrf.mxu0  ;;  %5155 = vmatpush.bf16.msrb.mxu3 %v7534_v25 }
 0xaff   : > { %8359 = vpow2.f32 %v7488_v0 }
 0xb00   : > { %8361 = vpow2.f32 %v7489_v18 }
 0xb02   : > { %v4877_v35 = vpop.f32.mrf.mxu2  ;;  %v4890_v10 = vpop.f32.mrf.mxu3 }
 0xb05   : > { %v8360_v27 = vpop.eup %8359  ;;  %v5306_v7 = vpop.f32.mrf.mxu0 }
 0xb06   : > { %v8362_v14 = vpop.eup %8361  ;;  %v4912_v50 = vadd.f32 1.0, %v8360_v27  ;;  %v5307_v46 = vadd.f32 %v10232_v4, %v5306_v7  ;;  %v3084_v27 = vadd.f32 %v9801_v5, %v9734_v12 }
 0xb07   : > { %v4932_v56 = vadd.f32 1.0, %v8362_v14 }
 0xb08   : > { %8363 = vrcp.f32 %v4912_v50  ;;  %5326 = vst [vmem:[%s10247_s16] sm:$0xff] %v5307_v46  ;;  %v4924_v36 = vand.u32 2147483648, %v4912_v50  ;;  %v4922_v17 = vand.u32 2147483647, %v4912_v50  ;;  %vm4918_vm1 = vweird.f32 %v4912_v50 }
 0xb09   : > { %8365 = vrcp.f32 %v4932_v56  ;;  %v4944_v37 = vand.u32 2147483648, %v4932_v56  ;;  %vm4938_vm5 = vweird.f32 %v4932_v56  ;;  %v4942_v30 = vand.u32 2147483647, %v4932_v56 }
 0xb0a   : > { %v4925_v18 = vor.u32 1.1754944e-38, %v4924_v36  ;;  %vm4923_vm3 = vcmp.eq.f32.partialorder %v4922_v17, 8.507059e+37 }
 0xb0b   : > { %v4945_v9 = vor.u32 1.1754944e-38, %v4944_v37  ;;  %vm4943_vm7 = vcmp.eq.f32.partialorder %v4942_v30, 8.507059e+37 }
 0xb0d   : > { %v5308_v42 = vpop.f32.mrf.mxu0 }
 0xb0e   : > { %v8364_v43 = vpop.eup %8363  ;;  %v5309_v15 = vadd.f32 %v10232_v4, %v5308_v42 }
 0xb0f   : > { %v8366_v3 = vpop.eup %8365  ;;  %v4914_v60 = vmul.f32 %v8364_v43, %v4912_v50  ;;  %vm4919_vm0 = vweird.f32 %v8364_v43  ;;  %v3113_v50 = vadd.f32 %v9854_v11, %v9745_v54 }
 0xb10   : > { %v4934_v61 = vmul.f32 %v8366_v3, %v4932_v56  ;;  %5327 = vst [vmem:[%s10247_s16 + $0x8] sm:$0xff] %v5309_v15  ;;  %vm4920_vm2 = vmor %vm4918_vm1, %vm4919_vm0  ;;  %vm4939_vm4 = vweird.f32 %v8366_v3  ;;  %v8218_v15 = vld [vmem:[%s8924_s8 + $0x1] ss:$0 sm:$0xff] }
 0xb11   : > { %v4915_v28 = vsub.f32 1.0, %v4914_v60  ;;  %vm4940_vm6 = vmor %vm4938_vm5, %vm4939_vm4 }
 0xb12   : > { %v4935_v63 = vsub.f32 1.0, %v4934_v61 }
 0xb13   : > { %v4916_v57 = vmul.f32 %v8364_v43, %v4915_v28 }
 0xb14   : > { %v4936_v45 = vmul.f32 %v8366_v3, %v4935_v63 }
 0xb15   : > { %v4917_v16 = vadd.f32 %v8364_v43, %v4916_v57  ;;  %v5311_v0 = vpop.f32.mrf.mxu0  ;;  %v3142_v57 = vadd.f32 %v9843_v53, %v9808_v24 }
 0xb16   : > { %v5312_v59 = vadd.f32 %v10232_v4, %v5311_v0  ;;  %v4937_v20 = vadd.f32 %v8366_v3, %v4936_v45 }
 0xb17   : > { %v4921_v62 = vsel %vm4920_vm2, %v8364_v43, %v4917_v16 }
 0xb18   : > { %v4926_v29 = vsel %vm4923_vm3, %v4925_v18, %v4921_v62  ;;  %5328 = vst [vmem:[%s10247_s16 + $0x10] sm:$0xff] %v5312_v59  ;;  %v4941_v1 = vsel %vm4940_vm6, %v8366_v3, %v4937_v20 }
 0xb19   : > { %v4953_v6 = vmul.f32 %v4952_v26, %v4926_v29  ;;  %v4946_v22 = vsel %vm4943_vm7, %v4945_v9, %v4941_v1 }
 0xb1a   : > { %v4956_v33 = vsub.f32 1.0, %v4946_v22  ;;  %v4958_v10 = vmul.f32 %v4946_v22, %v10170_v21 }
 0xb1b   : > { %v4954_v38 = vadd.f32 %v4953_v6, %v3140_v31 }
 0xb1d   : > { %8367 = vtanh.f32 %v4954_v38  ;;  %v5313_v48 = vpop.f32.mrf.mxu0 }
 0xb1e   : > { %v5314_v8 = vadd.f32 %v10232_v4, %v5313_v48 }
 0xb20   : > { %5329 = vst [vmem:[%s10247_s16 + $0x18] sm:$0xff] %v5314_v8 }
 0xb23   : > { %v8368_v35 = vpop.eup %8367 }
 0xb24   : > { %v4957_v51 = vmul.f32 %v8368_v35, %v4956_v33 }
 0xb25   : > { %v5316_v32 = vpop.f32.mrf.mxu0 }
 0xb26   : > { %v5317_v2 = vadd.f32 %v10232_v4, %v5316_v32  ;;  %v10266_v34 = vadd.f32 %v4958_v10, %v4957_v51 }
 0xb28   : > { %5330 = vst [vmem:[%s10247_s16 + $0x20] sm:$0xff] %v5317_v2  ;;  %v4961_v52 = vpack.c.bf16 %v10266_v34, %v10266_v34 }
 0xb2a   : > { %5130 = vmatmul.bf16.vlgmr.msra.gmra.mxu1 %v4961_v52  ;;  %5143 = vmatmul.bf16.vlgmr.msrb.gmra.mxu2 %v4961_v52 }
 0xb2b   : > { %5156 = vmatmul.bf16.vlgmr.msrb.gmra.mxu3 %v4961_v52 }
 0xb2d   : > { %v5318_v39 = vpop.f32.mrf.mxu0 }
 0xb2e   : > { %v5319_v40 = vadd.f32 %v10232_v4, %v5318_v39 }
 0xb30   : > { %5331 = vst [vmem:[%s10247_s16 + $0x28] sm:$0xff] %v5319_v40 }
 0xba7   : > { %v5131_v21 = vpop.f32.mrf.mxu1 }
 0xba8   : > { %v5164_v7 = vadd.f32 %v5131_v21, %v3084_v27 }
 0xbaa   : > { %v7619_v14 = vmul.f32 -1.442695, %v5164_v7 }
 0xbac   : > { %8369 = vpow2.f32 %v7619_v14 }
 0xbad   : > { %v5144_v46 = vpop.f32.mrf.mxu2 }
 0xbae   : > { %v5184_v56 = vadd.f32 %v5144_v46, %v3113_v50  ;;  %v5157_v55 = vpop.f32.mrf.mxu3 }
 0xbaf   : > { %v5133_v23 = vpop.f32.mrf.mxu1  ;;  %v5208_v13 = vadd.f32 %v8218_v15, %v5157_v55 }
 0xbb0   : > { %v7620_v47 = vmul.f32 -1.442695, %v5184_v56 }
 0xbb2   : > { %v8370_v49 = vpop.eup %8369  ;;  %8371 = vpow2.f32 %v7620_v47 }
 0xbb3   : > { %v5168_v58 = vadd.f32 1.0, %v8370_v49 }
 0xbb5   : > { %8373 = vrcp.f32 %v5168_v58  ;;  %v5146_v41 = vpop.f32.mrf.mxu2  ;;  %v5180_v54 = vand.u32 2147483648, %v5168_v58  ;;  %v5178_v43 = vand.u32 2147483647, %v5168_v58  ;;  %vm5174_vm9 = vweird.f32 %v5168_v58 }
 0xbb6   : > { %v5159_v44 = vpop.f32.mrf.mxu3 }
 0xbb7   : > { %v5181_v28 = vor.u32 1.1754944e-38, %v5180_v54  ;;  %vm5179_vm11 = vcmp.eq.f32.partialorder %v5178_v43, 8.507059e+37 }
 0xbb8   : > { %v8372_v12 = vpop.eup %8371 }
 0xbb9   : > { %v5188_v5 = vadd.f32 1.0, %v8372_v12 }
 0xbbb   : > { %v8374_v19 = vpop.eup %8373  ;;  %8375 = vrcp.f32 %v5188_v5  ;;  %v5200_v0 = vand.u32 2147483648, %v5188_v5  ;;  %v5198_v18 = vand.u32 2147483647, %v5188_v5  ;;  %vm5194_vm13 = vweird.f32 %v5188_v5 }
 0xbbc   : > { %v5170_v25 = vmul.f32 %v8374_v19, %v5168_v58  ;;  %vm5175_vm8 = vweird.f32 %v8374_v19 }
 0xbbd   : > { %vm5176_vm10 = vmor %vm5174_vm9, %vm5175_vm8  ;;  %v5201_v29 = vor.u32 1.1754944e-38, %v5200_v0  ;;  %vm5199_vm15 = vcmp.eq.f32.partialorder %v5198_v18, 8.507059e+37 }
 0xbbe   : > { %v5171_v42 = vsub.f32 1.0, %v5170_v25 }
 0xbc0   : > { %v5172_v11 = vmul.f32 %v8374_v19, %v5171_v42 }
 0xbc1   : > { %v8376_v3 = vpop.eup %8375 }
 0xbc2   : > { %v5190_v60 = vmul.f32 %v8376_v3, %v5188_v5  ;;  %v5173_v61 = vadd.f32 %v8374_v19, %v5172_v11  ;;  %vm5195_vm12 = vweird.f32 %v8376_v3 }
 0xbc3   : > { %vm5196_vm14 = vmor %vm5194_vm13, %vm5195_vm12 }
 0xbc4   : > { %v5191_v36 = vsub.f32 1.0, %v5190_v60  ;;  %v5177_v63 = vsel %vm5176_vm10, %v8374_v19, %v5173_v61 }
 0xbc5   : > { %v5182_v17 = vsel %vm5179_vm11, %v5181_v28, %v5177_v63 }
 0xbc6   : > { %v5209_v45 = vmul.f32 %v5208_v13, %v5182_v17  ;;  %v5192_v16 = vmul.f32 %v8376_v3, %v5191_v36 }
 0xbc8   : > { %v5210_v59 = vadd.f32 %v5209_v45, %v3142_v57  ;;  %v5193_v26 = vadd.f32 %v8376_v3, %v5192_v16 }
 0xbca   : > { %8377 = vtanh.f32 %v5210_v59  ;;  %v5197_v62 = vsel %vm5196_vm14, %v8376_v3, %v5193_v26 }
 0xbcb   : > { %v5202_v20 = vsel %vm5199_vm15, %v5201_v29, %v5197_v62 }
 0xbcc   : > { %v5212_v31 = vsub.f32 1.0, %v5202_v20  ;;  %v5214_v6 = vmul.f32 %v5202_v20, %v10266_v34 }
 0xbd0   : > { %v8378_v24 = vpop.eup %8377 }
 0xbd1   : > { %v5213_v53 = vmul.f32 %v8378_v24, %v5212_v31 }
 0xbd3   : > { %v5215_v37 = vadd.f32 %v5214_v6, %v5213_v53 }
 0xbd5   : > { %v5228_v30 = vpack.c.bf16 %v5215_v37, %v10266_v34 }
 0xbd7   : > { %5320 = vmatmul.bf16.gmra.mxu0 %v5228_v30 }
 0xc54   : > { %v5321_v38 = vpop.f32.mrf.mxu0 }
 0xc55   : > { %v5322_v1 = vadd.f32 %v10232_v4, %v5321_v38 }
 0xc57   : > { %5332 = vst [vmem:[%s10247_s16 + $0x30] sm:$0xff] %v5322_v1 }
 0xc5c   : > { %v5323_v9 = vpop.f32.mrf.mxu0 }
 0xc5d   : > { %v5324_v48 = vadd.f32 %v10232_v4, %v5323_v9 }
 0xc5f   : > { %5333 = vst [vmem:[%s10247_s16 + $0x38] sm:$0xff] %v5324_v48 }
 0xc60   : > { %8586 = shalt.err (!%p8583_p7)
}
 0xc61   : > { %s8650_s17 = smov 128   ;;  %s8651_s20 = smov 8  }
 0xc62   : > { %8130 = dma.vmem_to_hbm [thread:$0]  (%p8738_p11), %s5348_s1, 1024, %s5350_s30, %s5335_s21, %s8650_s17, %s8650_s17, %s8651_s20  }
 0xc63 PF: > { %s10369_s11 = sld [smem:[#allocation21_spill]]  ;;  %p8152_p8 = pnand %p5543_p9, %p8742_p12 }
 0xc65   : > { %p8153_p10 = pneg %p8152_p8 }
 0xc69   : > { %s5364_s22 = sand.u32 1, %s10369_s11  }
 0xc6a   : > { %s5365_s7 = scalar_lea.sflag [#allocation6], %s5364_s22 }
 0xc6b   : > { %8620 = dma.done.wait (%p8153_p10), %s5365_s7, 1024  }
 0xc6c   : > { %8622 = vsyncadd (%p8153_p10), %s5365_s7, 4294966272  ;;  %s10371_s27 = sld [smem:[#allocation23_spill]]  ;;  %s10374_s24 = smov %s8629_s25 }
 0xc6d   : > { %s10372_s14 = sld [smem:[#allocation22_spill]] }
 0xc6e   : > { %s10373_s26 = sld [smem:[#allocation24_spill]] }
 0xc72   : > { %p29_p1 = scmp.ge.s32.totalorder %s10371_s27, 4  }
 0xc73   : > { %s10375_s25 = smov %s10372_s14 }
 0xc74   :  { %31 = sbr.rel (!%p29_p1) target bundleno = 16 (0x10), region = 175 }
 0xc79   :  { %5371 = vsyncpa [#allocation5], 1 }
 0xc7a   :  { %5373 = vsyncpa [#allocation5 + $0x1], 1 }
 0xc7b   :  { %5374 = vsyncpa [#allocation8], 1 }
 0xc7c   :  { %5376 = vsyncpa [#allocation8 + $0x1], 1 }
 0xc7d   :  { %5377 = vsyncpa [#allocation11], 1 }
 0xc7e   :  { %5379 = vsyncpa [#allocation11 + $0x1], 1 }
 0xc7f   :  { %5380 = vsyncpa [#allocation14], 1 }
 0xc80   :  { %5382 = vsyncpa [#allocation14 + $0x1], 1 }
 0xc81   :  { %5383 = vsyncpa [#allocation6], 1 }
 0xc82   :  { %5385 = vsyncpa [#allocation6 + $0x1], 1 }

</bundles_post_ra>
